<compile_context>
chip_gen: v5e
topology: v5e:2x2
jax: 0.10.0
libtpu: 0.0.40
codegen_flags: <defaults>
</compile_context>

<pallas_src>
import jax
import jax.numpy as jnp
from jax.experimental import pallas as pl
from jax.experimental.pallas import tpu as pltpu


# ----------------------------------------------------------------------------
# Kernels
# ----------------------------------------------------------------------------
def _fused_cnn_kernel(x_ref, w1_ref, s1_ref, c1_ref, w2_ref, s2_ref, c2_ref,
                      o_ref, xpad_ref, h1pad_ref, im_ref):
    """conv1+BN1+LReLU -> conv2+BN2+LReLU -> MaxPool2d(2), one batch element.

    x_ref:  (1, H, W, 1)        input tile (NHWC)
    w1_ref: (3, 3, 1, C1)       conv1 weight (HWIO)
    s1/c1:  (1, C1)             folded BN1 scale / bias (conv bias included)
    w2_ref: (9*C1, C2)          conv2 weight reshaped to im2col layout
    s2/c2:  (1, C2)             folded BN2 scale / bias
    o_ref:  (1, H//2, W//2, C2) pooled output
    scratch: xpad (H+2, W+2, 1), h1pad (H+2, W+2, C1), im (H*W, 9*C1)
    """
    _, H, W, _ = x_ref.shape
    _, Ho, Wo, C2 = o_ref.shape
    C1 = h1pad_ref.shape[-1]

    # ---- conv1 (Cin=1, stride 1, pad 1): VPU broadcast MAC over 9 taps ----
    xpad_ref[...] = jnp.zeros_like(xpad_ref)
    xpad_ref[1:H + 1, 1:W + 1, :] = x_ref[0]
    acc1 = jnp.zeros((H, W, C1), jnp.float32)
    for dy in range(3):
        for dx in range(3):
            acc1 = acc1 + xpad_ref[dy:dy + H, dx:dx + W, :] * w1_ref[dy, dx]
    h1 = acc1 * s1_ref[...] + c1_ref[...]          # folded BatchNorm1
    h1 = jnp.where(h1 > 0, h1, 0.01 * h1)          # nn.LeakyReLU() slope=0.01

    # ---- conv2 (C1->C2): im2col into VMEM scratch, single MXU dot (K=9*C1) --
    h1pad_ref[...] = jnp.zeros_like(h1pad_ref)
    h1pad_ref[1:H + 1, 1:W + 1, :] = h1
    for dy in range(3):
        for dx in range(3):
            t = dy * 3 + dx
            im_ref[:, t * C1:(t + 1) * C1] = (
                h1pad_ref[dy:dy + H, dx:dx + W, :].reshape(H * W, C1))
    y = jnp.dot(im_ref[...], w2_ref[...], preferred_element_type=jnp.float32)
    y = y * s2_ref[...] + c2_ref[...]              # folded BatchNorm2
    y = jnp.where(y > 0, y, 0.01 * y)              # LeakyReLU

    # ---- fused MaxPool2d(2) on the in-VMEM conv2 result ----
    y = y.reshape(Ho, 2, Wo, 2, C2)
    y = jnp.max(jnp.max(y, axis=3), axis=1)        # (Ho, Wo, C2)
    o_ref[...] = y.reshape(1, Ho, Wo, C2).astype(o_ref.dtype)


def _mlp_kernel(x_ref, w1_ref, b1_ref, w2_ref, b2_ref, w3_ref, b3_ref,
                o_ref, acc_ref):
    """fc1 (tiled over reduction axis) -> LReLU -> (dropout=id) -> fc2 -> LReLU
       -> (dropout=id) -> fc3 -> sigmoid.

    Grid axis 0 walks the fc1 reduction dimension; acc_ref is the fp32
    accumulator; the tail of the MLP runs only on the last step.
    """
    k = pl.program_id(0)

    @pl.when(k == 0)
    def _():
        acc_ref[...] = jnp.zeros_like(acc_ref)

    acc_ref[...] += jnp.dot(x_ref[...].astype(jnp.bfloat16), w1_ref[...],
                            preferred_element_type=jnp.float32)

    @pl.when(k == pl.num_programs(0) - 1)
    def _():
        h = acc_ref[...] + b1_ref[...]
        h = jnp.where(h > 0, h, 0.01 * h)
        h = jnp.dot(h.astype(jnp.bfloat16), w2_ref[...],
                    preferred_element_type=jnp.float32) + b2_ref[...]
        h = jnp.where(h > 0, h, 0.01 * h)
        h = jnp.dot(h, w3_ref[...],
                    preferred_element_type=jnp.float32) + b3_ref[...]
        o_ref[...] = jax.nn.sigmoid(h).astype(o_ref.dtype)


# ----------------------------------------------------------------------------
# Wrappers
# ----------------------------------------------------------------------------
def fused_cnn_pool(x, w1, s1, c1, w2, s2, c2):
    """x: (N, H, W, 1) NHWC -> (N, H//2, W//2, 16) pooled features."""
    N, H, W, Cin = x.shape
    C1 = w1.shape[-1]
    C2 = w2.shape[-1]
    Ho, Wo = H // 2, W // 2
    return pl.pallas_call(
        _fused_cnn_kernel,
        out_shape=jax.ShapeDtypeStruct((N, Ho, Wo, C2), jnp.float32),
        grid_spec=pltpu.PrefetchScalarGridSpec(
            num_scalar_prefetch=0,
            grid=(N,),
            in_specs=[
                pl.BlockSpec((1, H, W, Cin), lambda n: (n, 0, 0, 0)),
                pl.BlockSpec((3, 3, Cin, C1), lambda n: (0, 0, 0, 0)),
                pl.BlockSpec((1, C1), lambda n: (0, 0)),
                pl.BlockSpec((1, C1), lambda n: (0, 0)),
                pl.BlockSpec((9 * C1, C2), lambda n: (0, 0)),
                pl.BlockSpec((1, C2), lambda n: (0, 0)),
                pl.BlockSpec((1, C2), lambda n: (0, 0)),
            ],
            out_specs=pl.BlockSpec((1, Ho, Wo, C2), lambda n: (n, 0, 0, 0)),
            scratch_shapes=[
                pltpu.VMEM((H + 2, W + 2, Cin), jnp.float32),
                pltpu.VMEM((H + 2, W + 2, C1), jnp.float32),
                pltpu.VMEM((H * W, 9 * C1), jnp.float32),
            ],
        ),
        compiler_params=pltpu.CompilerParams(
            dimension_semantics=("parallel",)),   # v7x: shard batch across TCs
    )(x, w1, s1, c1, w2, s2, c2)


def mlp_head(flat, w1, b1, w2, b2, w3, b3, *, tk=None):
    """flat: (N, F) f32; w1: (F, 512) bf16; w2: (512, 64) bf16; w3: (64, 1)."""
    N, F = flat.shape
    D1 = w1.shape[1]
    D2 = w2.shape[1]
    if tk is None:
        # Big enough to hide DMA behind the MXU, small enough that the
        # double-buffered bf16 weight block stays well inside scoped VMEM
        # on v5e/v6e/v7x.
        tk = next((t for t in (4096, 2048, 1024, 512, 256, 128) if F % t == 0),
                  F)
    assert F % tk == 0, (F, tk)
    return pl.pallas_call(
        _mlp_kernel,
        out_shape=jax.ShapeDtypeStruct((N, 1), jnp.float32),
        grid_spec=pltpu.PrefetchScalarGridSpec(
            num_scalar_prefetch=0,
            grid=(F // tk,),
            in_specs=[
                pl.BlockSpec((N, tk), lambda k: (0, k)),     # activation slab
                pl.BlockSpec((tk, D1), lambda k: (k, 0)),    # fc1 weight slab
                pl.BlockSpec((1, D1), lambda k: (0, 0)),
                pl.BlockSpec((D1, D2), lambda k: (0, 0)),
                pl.BlockSpec((1, D2), lambda k: (0, 0)),
                pl.BlockSpec((D2, 1), lambda k: (0, 0)),
                pl.BlockSpec((1, 1), lambda k: (0, 0)),
            ],
            out_specs=pl.BlockSpec((N, 1), lambda k: (0, 0)),
            scratch_shapes=[pltpu.VMEM((N, D1), jnp.float32)],
        ),
        compiler_params=pltpu.CompilerParams(
            dimension_semantics=("arbitrary",)),  # reduction axis carries acc
    )(flat, w1, b1, w2, b2, w3, b3)


def global_discriminator(x_nchw, pp, *, fc1_tk=None):
    """x_nchw: (N, 1, H, W); pp: prepared params (see prepare_params)."""
    N = x_nchw.shape[0]
    x = jnp.transpose(x_nchw, (0, 2, 3, 1)).astype(jnp.float32)   # NHWC (free: C=1)
    pooled = fused_cnn_pool(x, pp["w1"], pp["s1"], pp["c1"],
                            pp["w2"], pp["s2"], pp["c2"])          # (N,Ho,Wo,16)
    flat = pooled.reshape(N, -1)          # NHWC flatten; fc1 rows pre-permuted
    return mlp_head(flat, pp["w_fc1"], pp["b_fc1"],
                    pp["w_fc2"], pp["b_fc2"],
                    pp["w_fc3"], pp["b_fc3"], tk=fc1_tk)


# ----------------------------------------------------------------------------
# Parameters: PyTorch-layout init + one-time prep into kernel-friendly layouts
# ----------------------------------------------------------------------------
def init_params(key, H, W):
    """Shapes follow GlobalDiscriminator.__init__ (conv OIHW, linear (out,in)),
    with fc1 in_features scaled to 16*(H//2)*(W//2)."""
    Ho, Wo = H // 2, W // 2
    F = 16 * Ho * Wo
    ks = jax.random.split(key, 10)
    p = {
        "cnn1_w": jax.random.normal(ks[0], (8, 1, 3, 3), jnp.float32) * 0.1,
        "cnn1_b": jax.random.normal(ks[1], (8,), jnp.float32) * 0.1,
        "cnn2_w": jax.random.normal(ks[2], (16, 8, 3, 3), jnp.float32) * 0.1,
        "cnn2_b": jax.random.normal(ks[3], (16,), jnp.float32) * 0.1,
        "fc1_w": jax.random.normal(ks[4], (500, F), jnp.float32) * 0.02,
        "fc1_b": jax.random.normal(ks[5], (500,), jnp.float32) * 0.02,
        "fc2_w": jax.random.normal(ks[6], (50, 500), jnp.float32) * 0.02,
        "fc2_b": jax.random.normal(ks[7], (50,), jnp.float32) * 0.02,
        "fc3_w": jax.random.normal(ks[8], (1, 50), jnp.float32) * 0.02,
        "fc3_b": jax.random.normal(ks[9], (1,), jnp.float32) * 0.02,
    }
    for i, c in ((1, 8), (2, 16)):                 # BatchNorm2d defaults (eval)
        p[f"bn{i}_gamma"] = jnp.ones((c,), jnp.float32)
        p[f"bn{i}_beta"] = jnp.zeros((c,), jnp.float32)
        p[f"bn{i}_mean"] = jnp.zeros((c,), jnp.float32)
        p[f"bn{i}_var"] = jnp.ones((c,), jnp.float32)
    return p


def prepare_params(p, H, W, eps=1e-5):
    """One-time, zero-runtime-cost reindexing into the layouts the kernels use."""
    Ho, Wo = H // 2, W // 2
    C1, C2 = 8, 16
    D1, D2 = 512, 64        # 500 -> 512, 50 -> 64 lane-friendly zero padding

    # conv1: OIHW -> HWIO; fold BN1 (+ conv bias) into per-channel scale/bias.
    w1 = jnp.transpose(p["cnn1_w"], (2, 3, 1, 0))                  # (3,3,1,8)
    s1 = p["bn1_gamma"] / jnp.sqrt(p["bn1_var"] + eps)
    c1 = p["bn1_beta"] + (p["cnn1_b"] - p["bn1_mean"]) * s1
    # conv2: OIHW -> HWIO -> (9*Cin, Cout) im2col layout; fold BN2.
    w2 = jnp.transpose(p["cnn2_w"], (2, 3, 1, 0)).reshape(9 * C1, C2)
    s2 = p["bn2_gamma"] / jnp.sqrt(p["bn2_var"] + eps)
    c2 = p["bn2_beta"] + (p["cnn2_b"] - p["bn2_mean"]) * s2

    # fc1: (500, F_nchw) -> (F_nhwc, 512) bf16.  Permute rows once so the
    # NHWC-order flatten (h, w, c) matches PyTorch's NCHW-order .view().
    F = C2 * Ho * Wo
    w_fc1 = p["fc1_w"].T                                           # (F_nchw,500)
    w_fc1 = (w_fc1.reshape(C2, Ho, Wo, 500)
                  .transpose(1, 2, 0, 3)
                  .reshape(F, 500))
    w_fc1 = jnp.pad(w_fc1, ((0, 0), (0, D1 - 500))).astype(jnp.bfloat16)
    b_fc1 = jnp.pad(p["fc1_b"], (0, D1 - 500))[None, :]
    # fc2: (50, 500) -> (512, 64) bf16 (zero rows/cols are inert).
    w_fc2 = jnp.pad(p["fc2_w"].T,
                    ((0, D1 - 500), (0, D2 - 50))).astype(jnp.bfloat16)
    b_fc2 = jnp.pad(p["fc2_b"], (0, D2 - 50))[None, :]
    # fc3: (1, 50) -> (64, 1) f32.
    w_fc3 = jnp.pad(p["fc3_w"].T, ((0, D2 - 50), (0, 0)))
    b_fc3 = p["fc3_b"][None, :]

    return dict(w1=w1, s1=s1[None, :], c1=c1[None, :],
                w2=w2, s2=s2[None, :], c2=c2[None, :],
                w_fc1=w_fc1, b_fc1=b_fc1,
                w_fc2=w_fc2, b_fc2=b_fc2,
                w_fc3=w_fc3, b_fc3=b_fc3)


if __name__ == "__main__":
    key = jax.random.PRNGKey(0)
    kx, kp = jax.random.split(key)
    # Scaled-down shapes: batch=2, 1 input channel, 16x16 spatial
    N, H, W = 2, 16, 16
    x = jax.random.normal(kx, (N, 1, H, W), jnp.float32)
    params = init_params(kp, H, W)
    pp = prepare_params(params, H, W)

    # fc1_tk=256 -> F=1024 split into 4 reduction steps (exercises the
    # pipelined accumulator path even at the toy size).
    out = global_discriminator(x, pp, fc1_tk=256)
    out = jax.block_until_ready(out)
    assert out.shape == (N, 1)
    assert bool(jnp.all((out >= 0.0) & (out <= 1.0)))
    print("KERNEL_OK")
</pallas_src>

<mosaic_0001>
module attributes {stable_mosaic.version = 11 : i64} {
  func.func @_fused_cnn_kernel(%arg0: i32, %arg1: memref<1x16x16x1xf32, #tpu.memory_space<vmem>>, %arg2: memref<3x3x1x8xf32, #tpu.memory_space<vmem>>, %arg3: memref<1x8xf32, #tpu.memory_space<vmem>>, %arg4: memref<1x8xf32, #tpu.memory_space<vmem>>, %arg5: memref<72x16xf32, #tpu.memory_space<vmem>>, %arg6: memref<1x16xf32, #tpu.memory_space<vmem>>, %arg7: memref<1x16xf32, #tpu.memory_space<vmem>>, %arg8: memref<1x8x8x16xf32, #tpu.memory_space<vmem>>, %arg9: memref<18x18x1xf32, #tpu.memory_space<vmem>>, %arg10: memref<18x18x8xf32, #tpu.memory_space<vmem>>, %arg11: memref<256x72xf32, #tpu.memory_space<vmem>>) attributes {dimension_semantics = [#tpu.dimension_semantics<parallel>], iteration_bounds = array<i64: 2>, scalar_prefetch = 0 : i64, scratch_operands = 3 : i64, tpu.core_type = #tpu.core_type<tc>, window_params = [{transform_indices = @transform_0, window_bounds = array<i64: 1, 16, 16, 1>}, {pipeline_mode = #tpu.pipeline_mode<synchronous>, transform_indices = @transform_1, window_bounds = array<i64: 3, 3, 1, 8>}, {pipeline_mode = #tpu.pipeline_mode<synchronous>, transform_indices = @transform_2, window_bounds = array<i64: 1, 8>}, {pipeline_mode = #tpu.pipeline_mode<synchronous>, transform_indices = @transform_3, window_bounds = array<i64: 1, 8>}, {pipeline_mode = #tpu.pipeline_mode<synchronous>, transform_indices = @transform_4, window_bounds = array<i64: 72, 16>}, {pipeline_mode = #tpu.pipeline_mode<synchronous>, transform_indices = @transform_5, window_bounds = array<i64: 1, 16>}, {pipeline_mode = #tpu.pipeline_mode<synchronous>, transform_indices = @transform_6, window_bounds = array<i64: 1, 16>}, {transform_indices = @transform_7, window_bounds = array<i64: 1, 8, 8, 16>}]} {
    %cst = arith.constant 0.000000e+00 : f32
    %0 = vector.broadcast %cst : f32 to vector<18x18x1xf32>
    %c0 = arith.constant 0 : index
    %c0_0 = arith.constant 0 : index
    %c0_1 = arith.constant 0 : index
    %1 = vector.load %arg9[%c0, %c0_0, %c0_1] : memref<18x18x1xf32, #tpu.memory_space<vmem>>, vector<18x18x1xf32>
    tpu.vector_store %arg9[%c0, %c0_0, %c0_1], %0 {strides = array<i32>} : memref<18x18x1xf32, #tpu.memory_space<vmem>>, vector<18x18x1xf32>,
    %c0_2 = arith.constant 0 : index
    %c0_3 = arith.constant 0 : index
    %c0_4 = arith.constant 0 : index
    %c0_5 = arith.constant 0 : index
    %2 = vector.load %arg1[%c0_2, %c0_3, %c0_4, %c0_5] : memref<1x16x16x1xf32, #tpu.memory_space<vmem>>, vector<1x16x16x1xf32>
    %3 = vector.shape_cast %2 : vector<1x16x16x1xf32> to vector<16x16x1xf32>
    %c1 = arith.constant 1 : index
    %c1_6 = arith.constant 1 : index
    %c0_7 = arith.constant 0 : index
    %4 = vector.load %arg9[%c1, %c1_6, %c0_7] : memref<18x18x1xf32, #tpu.memory_space<vmem>>, vector<16x16x1xf32>
    tpu.vector_store %arg9[%c1, %c1_6, %c0_7], %3 {strides = array<i32>} : memref<18x18x1xf32, #tpu.memory_space<vmem>>, vector<16x16x1xf32>,
    %cst_8 = arith.constant 0.000000e+00 : f32
    %5 = vector.broadcast %cst_8 : f32 to vector<16x16x8xf32>
    %c0_9 = arith.constant 0 : index
    %c0_10 = arith.constant 0 : index
    %c0_11 = arith.constant 0 : index
    %6 = vector.load %arg9[%c0_9, %c0_10, %c0_11] : memref<18x18x1xf32, #tpu.memory_space<vmem>>, vector<16x16x1xf32>
    %c0_12 = arith.constant 0 : index
    %c0_13 = arith.constant 0 : index
    %c0_14 = arith.constant 0 : index
    %c0_15 = arith.constant 0 : index
    %7 = vector.load %arg2[%c0_12, %c0_13, %c0_14, %c0_15] : memref<3x3x1x8xf32, #tpu.memory_space<vmem>>, vector<1x1x1x8xf32>
    %8 = vector.shape_cast %7 : vector<1x1x1x8xf32> to vector<1x8xf32>
    %9 = vector.shape_cast %8 : vector<1x8xf32> to vector<1x1x8xf32>
    %10 = vector.broadcast %6 : vector<16x16x1xf32> to vector<16x16x8xf32>
    %11 = vector.broadcast %9 : vector<1x1x8xf32> to vector<16x16x8xf32>
    %12 = arith.mulf %10, %11 : vector<16x16x8xf32>
    %13 = arith.addf %5, %12 : vector<16x16x8xf32>
    %c0_16 = arith.constant 0 : index
    %c1_17 = arith.constant 1 : index
    %c0_18 = arith.constant 0 : index
    %14 = vector.load %arg9[%c0_16, %c1_17, %c0_18] : memref<18x18x1xf32, #tpu.memory_space<vmem>>, vector<16x16x1xf32>
    %c0_19 = arith.constant 0 : index
    %c1_20 = arith.constant 1 : index
    %c0_21 = arith.constant 0 : index
    %c0_22 = arith.constant 0 : index
    %15 = vector.load %arg2[%c0_19, %c1_20, %c0_21, %c0_22] : memref<3x3x1x8xf32, #tpu.memory_space<vmem>>, vector<1x1x1x8xf32>
    %16 = vector.shape_cast %15 : vector<1x1x1x8xf32> to vector<1x8xf32>
    %17 = vector.shape_cast %16 : vector<1x8xf32> to vector<1x1x8xf32>
    %18 = vector.broadcast %14 : vector<16x16x1xf32> to vector<16x16x8xf32>
    %19 = vector.broadcast %17 : vector<1x1x8xf32> to vector<16x16x8xf32>
    %20 = arith.mulf %18, %19 : vector<16x16x8xf32>
    %21 = arith.addf %13, %20 : vector<16x16x8xf32>
    %c0_23 = arith.constant 0 : index
    %c2 = arith.constant 2 : index
    %c0_24 = arith.constant 0 : index
    %22 = vector.load %arg9[%c0_23, %c2, %c0_24] : memref<18x18x1xf32, #tpu.memory_space<vmem>>, vector<16x16x1xf32>
    %c0_25 = arith.constant 0 : index
    %c2_26 = arith.constant 2 : index
    %c0_27 = arith.constant 0 : index
    %c0_28 = arith.constant 0 : index
    %23 = vector.load %arg2[%c0_25, %c2_26, %c0_27, %c0_28] : memref<3x3x1x8xf32, #tpu.memory_space<vmem>>, vector<1x1x1x8xf32>
    %24 = vector.shape_cast %23 : vector<1x1x1x8xf32> to vector<1x8xf32>
    %25 = vector.shape_cast %24 : vector<1x8xf32> to vector<1x1x8xf32>
    %26 = vector.broadcast %22 : vector<16x16x1xf32> to vector<16x16x8xf32>
    %27 = vector.broadcast %25 : vector<1x1x8xf32> to vector<16x16x8xf32>
    %28 = arith.mulf %26, %27 : vector<16x16x8xf32>
    %29 = arith.addf %21, %28 : vector<16x16x8xf32>
    %c1_29 = arith.constant 1 : index
    %c0_30 = arith.constant 0 : index
    %c0_31 = arith.constant 0 : index
    %30 = vector.load %arg9[%c1_29, %c0_30, %c0_31] : memref<18x18x1xf32, #tpu.memory_space<vmem>>, vector<16x16x1xf32>
    %c1_32 = arith.constant 1 : index
    %c0_33 = arith.constant 0 : index
    %c0_34 = arith.constant 0 : index
    %c0_35 = arith.constant 0 : index
    %31 = vector.load %arg2[%c1_32, %c0_33, %c0_34, %c0_35] : memref<3x3x1x8xf32, #tpu.memory_space<vmem>>, vector<1x1x1x8xf32>
    %32 = vector.shape_cast %31 : vector<1x1x1x8xf32> to vector<1x8xf32>
    %33 = vector.shape_cast %32 : vector<1x8xf32> to vector<1x1x8xf32>
    %34 = vector.broadcast %30 : vector<16x16x1xf32> to vector<16x16x8xf32>
    %35 = vector.broadcast %33 : vector<1x1x8xf32> to vector<16x16x8xf32>
    %36 = arith.mulf %34, %35 : vector<16x16x8xf32>
    %37 = arith.addf %29, %36 : vector<16x16x8xf32>
    %c1_36 = arith.constant 1 : index
    %c1_37 = arith.constant 1 : index
    %c0_38 = arith.constant 0 : index
    %38 = vector.load %arg9[%c1_36, %c1_37, %c0_38] : memref<18x18x1xf32, #tpu.memory_space<vmem>>, vector<16x16x1xf32>
    %c1_39 = arith.constant 1 : index
    %c1_40 = arith.constant 1 : index
    %c0_41 = arith.constant 0 : index
    %c0_42 = arith.constant 0 : index
    %39 = vector.load %arg2[%c1_39, %c1_40, %c0_41, %c0_42] : memref<3x3x1x8xf32, #tpu.memory_space<vmem>>, vector<1x1x1x8xf32>
    %40 = vector.shape_cast %39 : vector<1x1x1x8xf32> to vector<1x8xf32>
    %41 = vector.shape_cast %40 : vector<1x8xf32> to vector<1x1x8xf32>
    %42 = vector.broadcast %38 : vector<16x16x1xf32> to vector<16x16x8xf32>
    %43 = vector.broadcast %41 : vector<1x1x8xf32> to vector<16x16x8xf32>
    %44 = arith.mulf %42, %43 : vector<16x16x8xf32>
    %45 = arith.addf %37, %44 : vector<16x16x8xf32>
    %c1_43 = arith.constant 1 : index
    %c2_44 = arith.constant 2 : index
    %c0_45 = arith.constant 0 : index
    %46 = vector.load %arg9[%c1_43, %c2_44, %c0_45] : memref<18x18x1xf32, #tpu.memory_space<vmem>>, vector<16x16x1xf32>
    %c1_46 = arith.constant 1 : index
    %c2_47 = arith.constant 2 : index
    %c0_48 = arith.constant 0 : index
    %c0_49 = arith.constant 0 : index
    %47 = vector.load %arg2[%c1_46, %c2_47, %c0_48, %c0_49] : memref<3x3x1x8xf32, #tpu.memory_space<vmem>>, vector<1x1x1x8xf32>
    %48 = vector.shape_cast %47 : vector<1x1x1x8xf32> to vector<1x8xf32>
    %49 = vector.shape_cast %48 : vector<1x8xf32> to vector<1x1x8xf32>
    %50 = vector.broadcast %46 : vector<16x16x1xf32> to vector<16x16x8xf32>
    %51 = vector.broadcast %49 : vector<1x1x8xf32> to vector<16x16x8xf32>
    %52 = arith.mulf %50, %51 : vector<16x16x8xf32>
    %53 = arith.addf %45, %52 : vector<16x16x8xf32>
    %c2_50 = arith.constant 2 : index
    %c0_51 = arith.constant 0 : index
    %c0_52 = arith.constant 0 : index
    %54 = vector.load %arg9[%c2_50, %c0_51, %c0_52] : memref<18x18x1xf32, #tpu.memory_space<vmem>>, vector<16x16x1xf32>
    %c2_53 = arith.constant 2 : index
    %c0_54 = arith.constant 0 : index
    %c0_55 = arith.constant 0 : index
    %c0_56 = arith.constant 0 : index
    %55 = vector.load %arg2[%c2_53, %c0_54, %c0_55, %c0_56] : memref<3x3x1x8xf32, #tpu.memory_space<vmem>>, vector<1x1x1x8xf32>
    %56 = vector.shape_cast %55 : vector<1x1x1x8xf32> to vector<1x8xf32>
    %57 = vector.shape_cast %56 : vector<1x8xf32> to vector<1x1x8xf32>
    %58 = vector.broadcast %54 : vector<16x16x1xf32> to vector<16x16x8xf32>
    %59 = vector.broadcast %57 : vector<1x1x8xf32> to vector<16x16x8xf32>
    %60 = arith.mulf %58, %59 : vector<16x16x8xf32>
    %61 = arith.addf %53, %60 : vector<16x16x8xf32>
    %c2_57 = arith.constant 2 : index
    %c1_58 = arith.constant 1 : index
    %c0_59 = arith.constant 0 : index
    %62 = vector.load %arg9[%c2_57, %c1_58, %c0_59] : memref<18x18x1xf32, #tpu.memory_space<vmem>>, vector<16x16x1xf32>
    %c2_60 = arith.constant 2 : index
    %c1_61 = arith.constant 1 : index
    %c0_62 = arith.constant 0 : index
    %c0_63 = arith.constant 0 : index
    %63 = vector.load %arg2[%c2_60, %c1_61, %c0_62, %c0_63] : memref<3x3x1x8xf32, #tpu.memory_space<vmem>>, vector<1x1x1x8xf32>
    %64 = vector.shape_cast %63 : vector<1x1x1x8xf32> to vector<1x8xf32>
    %65 = vector.shape_cast %64 : vector<1x8xf32> to vector<1x1x8xf32>
    %66 = vector.broadcast %62 : vector<16x16x1xf32> to vector<16x16x8xf32>
    %67 = vector.broadcast %65 : vector<1x1x8xf32> to vector<16x16x8xf32>
    %68 = arith.mulf %66, %67 : vector<16x16x8xf32>
    %69 = arith.addf %61, %68 : vector<16x16x8xf32>
    %c2_64 = arith.constant 2 : index
    %c2_65 = arith.constant 2 : index
    %c0_66 = arith.constant 0 : index
    %70 = vector.load %arg9[%c2_64, %c2_65, %c0_66] : memref<18x18x1xf32, #tpu.memory_space<vmem>>, vector<16x16x1xf32>
    %c2_67 = arith.constant 2 : index
    %c2_68 = arith.constant 2 : index
    %c0_69 = arith.constant 0 : index
    %c0_70 = arith.constant 0 : index
    %71 = vector.load %arg2[%c2_67, %c2_68, %c0_69, %c0_70] : memref<3x3x1x8xf32, #tpu.memory_space<vmem>>, vector<1x1x1x8xf32>
    %72 = vector.shape_cast %71 : vector<1x1x1x8xf32> to vector<1x8xf32>
    %73 = vector.shape_cast %72 : vector<1x8xf32> to vector<1x1x8xf32>
    %74 = vector.broadcast %70 : vector<16x16x1xf32> to vector<16x16x8xf32>
    %75 = vector.broadcast %73 : vector<1x1x8xf32> to vector<16x16x8xf32>
    %76 = arith.mulf %74, %75 : vector<16x16x8xf32>
    %77 = arith.addf %69, %76 : vector<16x16x8xf32>
    %c0_71 = arith.constant 0 : index
    %c0_72 = arith.constant 0 : index
    %78 = vector.load %arg3[%c0_71, %c0_72] : memref<1x8xf32, #tpu.memory_space<vmem>>, vector<1x8xf32>
    %79 = vector.shape_cast %78 : vector<1x8xf32> to vector<1x1x8xf32>
    %80 = vector.broadcast %79 : vector<1x1x8xf32> to vector<16x16x8xf32>
    %81 = arith.mulf %77, %80 : vector<16x16x8xf32>
    %c0_73 = arith.constant 0 : index
    %c0_74 = arith.constant 0 : index
    %82 = vector.load %arg4[%c0_73, %c0_74] : memref<1x8xf32, #tpu.memory_space<vmem>>, vector<1x8xf32>
    %83 = vector.shape_cast %82 : vector<1x8xf32> to vector<1x1x8xf32>
    %84 = vector.broadcast %83 : vector<1x1x8xf32> to vector<16x16x8xf32>
    %85 = arith.addf %81, %84 : vector<16x16x8xf32>
    %cst_75 = arith.constant 0.000000e+00 : f32
    %86 = vector.broadcast %cst_75 : f32 to vector<16x16x8xf32>
    %87 = arith.cmpf ogt, %85, %86 : vector<16x16x8xf32>
    %cst_76 = arith.constant 0.00999999977 : f32
    %88 = vector.broadcast %cst_76 : f32 to vector<16x16x8xf32>
    %89 = arith.mulf %88, %85 : vector<16x16x8xf32>
    %90 = arith.select %87, %85, %89 : vector<16x16x8xi1>, vector<16x16x8xf32>
    %cst_77 = arith.constant 0.000000e+00 : f32
    %91 = vector.broadcast %cst_77 : f32 to vector<18x18x8xf32>
    %c0_78 = arith.constant 0 : index
    %c0_79 = arith.constant 0 : index
    %c0_80 = arith.constant 0 : index
    %92 = vector.load %arg10[%c0_78, %c0_79, %c0_80] : memref<18x18x8xf32, #tpu.memory_space<vmem>>, vector<18x18x8xf32>
    tpu.vector_store %arg10[%c0_78, %c0_79, %c0_80], %91 {strides = array<i32>} : memref<18x18x8xf32, #tpu.memory_space<vmem>>, vector<18x18x8xf32>,
    %c1_81 = arith.constant 1 : index
    %c1_82 = arith.constant 1 : index
    %c0_83 = arith.constant 0 : index
    %93 = vector.load %arg10[%c1_81, %c1_82, %c0_83] : memref<18x18x8xf32, #tpu.memory_space<vmem>>, vector<16x16x8xf32>
    tpu.vector_store %arg10[%c1_81, %c1_82, %c0_83], %90 {strides = array<i32>} : memref<18x18x8xf32, #tpu.memory_space<vmem>>, vector<16x16x8xf32>,
    %c0_84 = arith.constant 0 : index
    %c0_85 = arith.constant 0 : index
    %c0_86 = arith.constant 0 : index
    %94 = vector.load %arg10[%c0_84, %c0_85, %c0_86] : memref<18x18x8xf32, #tpu.memory_space<vmem>>, vector<16x16x8xf32>
    %95 = vector.shape_cast %94 : vector<16x16x8xf32> to vector<256x8xf32>
    %c0_87 = arith.constant 0 : index
    %c0_88 = arith.constant 0 : index
    %96 = vector.load %arg11[%c0_87, %c0_88] : memref<256x72xf32, #tpu.memory_space<vmem>>, vector<256x8xf32>
    tpu.vector_store %arg11[%c0_87, %c0_88], %95 {strides = array<i32>} : memref<256x72xf32, #tpu.memory_space<vmem>>, vector<256x8xf32>,
    %c0_89 = arith.constant 0 : index
    %c1_90 = arith.constant 1 : index
    %c0_91 = arith.constant 0 : index
    %97 = vector.load %arg10[%c0_89, %c1_90, %c0_91] : memref<18x18x8xf32, #tpu.memory_space<vmem>>, vector<16x16x8xf32>
    %98 = vector.shape_cast %97 : vector<16x16x8xf32> to vector<256x8xf32>
    %c0_92 = arith.constant 0 : index
    %c8 = arith.constant 8 : index
    %99 = vector.load %arg11[%c0_92, %c8] : memref<256x72xf32, #tpu.memory_space<vmem>>, vector<256x8xf32>
    tpu.vector_store %arg11[%c0_92, %c8], %98 {strides = array<i32>} : memref<256x72xf32, #tpu.memory_space<vmem>>, vector<256x8xf32>,
    %c0_93 = arith.constant 0 : index
    %c2_94 = arith.constant 2 : index
    %c0_95 = arith.constant 0 : index
    %100 = vector.load %arg10[%c0_93, %c2_94, %c0_95] : memref<18x18x8xf32, #tpu.memory_space<vmem>>, vector<16x16x8xf32>
    %101 = vector.shape_cast %100 : vector<16x16x8xf32> to vector<256x8xf32>
    %c0_96 = arith.constant 0 : index
    %c16 = arith.constant 16 : index
    %102 = vector.load %arg11[%c0_96, %c16] : memref<256x72xf32, #tpu.memory_space<vmem>>, vector<256x8xf32>
    tpu.vector_store %arg11[%c0_96, %c16], %101 {strides = array<i32>} : memref<256x72xf32, #tpu.memory_space<vmem>>, vector<256x8xf32>,
    %c1_97 = arith.constant 1 : index
    %c0_98 = arith.constant 0 : index
    %c0_99 = arith.constant 0 : index
    %103 = vector.load %arg10[%c1_97, %c0_98, %c0_99] : memref<18x18x8xf32, #tpu.memory_space<vmem>>, vector<16x16x8xf32>
    %104 = vector.shape_cast %103 : vector<16x16x8xf32> to vector<256x8xf32>
    %c0_100 = arith.constant 0 : index
    %c24 = arith.constant 24 : index
    %105 = vector.load %arg11[%c0_100, %c24] : memref<256x72xf32, #tpu.memory_space<vmem>>, vector<256x8xf32>
    tpu.vector_store %arg11[%c0_100, %c24], %104 {strides = array<i32>} : memref<256x72xf32, #tpu.memory_space<vmem>>, vector<256x8xf32>,
    %c1_101 = arith.constant 1 : index
    %c1_102 = arith.constant 1 : index
    %c0_103 = arith.constant 0 : index
    %106 = vector.load %arg10[%c1_101, %c1_102, %c0_103] : memref<18x18x8xf32, #tpu.memory_space<vmem>>, vector<16x16x8xf32>
    %107 = vector.shape_cast %106 : vector<16x16x8xf32> to vector<256x8xf32>
    %c0_104 = arith.constant 0 : index
    %c32 = arith.constant 32 : index
    %108 = vector.load %arg11[%c0_104, %c32] : memref<256x72xf32, #tpu.memory_space<vmem>>, vector<256x8xf32>
    tpu.vector_store %arg11[%c0_104, %c32], %107 {strides = array<i32>} : memref<256x72xf32, #tpu.memory_space<vmem>>, vector<256x8xf32>,
    %c1_105 = arith.constant 1 : index
    %c2_106 = arith.constant 2 : index
    %c0_107 = arith.constant 0 : index
    %109 = vector.load %arg10[%c1_105, %c2_106, %c0_107] : memref<18x18x8xf32, #tpu.memory_space<vmem>>, vector<16x16x8xf32>
    %110 = vector.shape_cast %109 : vector<16x16x8xf32> to vector<256x8xf32>
    %c0_108 = arith.constant 0 : index
    %c40 = arith.constant 40 : index
    %111 = vector.load %arg11[%c0_108, %c40] : memref<256x72xf32, #tpu.memory_space<vmem>>, vector<256x8xf32>
    tpu.vector_store %arg11[%c0_108, %c40], %110 {strides = array<i32>} : memref<256x72xf32, #tpu.memory_space<vmem>>, vector<256x8xf32>,
    %c2_109 = arith.constant 2 : index
    %c0_110 = arith.constant 0 : index
    %c0_111 = arith.constant 0 : index
    %112 = vector.load %arg10[%c2_109, %c0_110, %c0_111] : memref<18x18x8xf32, #tpu.memory_space<vmem>>, vector<16x16x8xf32>
    %113 = vector.shape_cast %112 : vector<16x16x8xf32> to vector<256x8xf32>
    %c0_112 = arith.constant 0 : index
    %c48 = arith.constant 48 : index
    %114 = vector.load %arg11[%c0_112, %c48] : memref<256x72xf32, #tpu.memory_space<vmem>>, vector<256x8xf32>
    tpu.vector_store %arg11[%c0_112, %c48], %113 {strides = array<i32>} : memref<256x72xf32, #tpu.memory_space<vmem>>, vector<256x8xf32>,
    %c2_113 = arith.constant 2 : index
    %c1_114 = arith.constant 1 : index
    %c0_115 = arith.constant 0 : index
    %115 = vector.load %arg10[%c2_113, %c1_114, %c0_115] : memref<18x18x8xf32, #tpu.memory_space<vmem>>, vector<16x16x8xf32>
    %116 = vector.shape_cast %115 : vector<16x16x8xf32> to vector<256x8xf32>
    %c0_116 = arith.constant 0 : index
    %c56 = arith.constant 56 : index
    %117 = vector.load %arg11[%c0_116, %c56] : memref<256x72xf32, #tpu.memory_space<vmem>>, vector<256x8xf32>
    tpu.vector_store %arg11[%c0_116, %c56], %116 {strides = array<i32>} : memref<256x72xf32, #tpu.memory_space<vmem>>, vector<256x8xf32>,
    %c2_117 = arith.constant 2 : index
    %c2_118 = arith.constant 2 : index
    %c0_119 = arith.constant 0 : index
    %118 = vector.load %arg10[%c2_117, %c2_118, %c0_119] : memref<18x18x8xf32, #tpu.memory_space<vmem>>, vector<16x16x8xf32>
    %119 = vector.shape_cast %118 : vector<16x16x8xf32> to vector<256x8xf32>
    %c0_120 = arith.constant 0 : index
    %c64 = arith.constant 64 : index
    %120 = vector.load %arg11[%c0_120, %c64] : memref<256x72xf32, #tpu.memory_space<vmem>>, vector<256x8xf32>
    tpu.vector_store %arg11[%c0_120, %c64], %119 {strides = array<i32>} : memref<256x72xf32, #tpu.memory_space<vmem>>, vector<256x8xf32>,
    %c0_121 = arith.constant 0 : index
    %c0_122 = arith.constant 0 : index
    %121 = vector.load %arg11[%c0_121, %c0_122] : memref<256x72xf32, #tpu.memory_space<vmem>>, vector<256x72xf32>
    %c0_123 = arith.constant 0 : index
    %c0_124 = arith.constant 0 : index
    %122 = vector.load %arg5[%c0_123, %c0_124] : memref<72x16xf32, #tpu.memory_space<vmem>>, vector<72x16xf32>
    %cst_125 = arith.constant dense<0.000000e+00> : vector<256x16xf32>
    %123 = tpu.matmul %121, %122, %cst_125 {dimension_numbers = #tpu.dot_dimension_numbers<[1], [0], [0], [1], [0, 0, 1, 1], [], []>} : vector<256x72xf32>, vector<72x16xf32>, vector<256x16xf32> -> vector<256x16xf32>
    %c0_126 = arith.constant 0 : index
    %c0_127 = arith.constant 0 : index
    %124 = vector.load %arg6[%c0_126, %c0_127] : memref<1x16xf32, #tpu.memory_space<vmem>>, vector<1x16xf32>
    %125 = vector.broadcast %124 : vector<1x16xf32> to vector<256x16xf32>
    %126 = arith.mulf %123, %125 : vector<256x16xf32>
    %c0_128 = arith.constant 0 : index
    %c0_129 = arith.constant 0 : index
    %127 = vector.load %arg7[%c0_128, %c0_129] : memref<1x16xf32, #tpu.memory_space<vmem>>, vector<1x16xf32>
    %128 = vector.broadcast %127 : vector<1x16xf32> to vector<256x16xf32>
    %129 = arith.addf %126, %128 : vector<256x16xf32>
    %cst_130 = arith.constant 0.000000e+00 : f32
    %130 = vector.broadcast %cst_130 : f32 to vector<256x16xf32>
    %131 = arith.cmpf ogt, %129, %130 : vector<256x16xf32>
    %cst_131 = arith.constant 0.00999999977 : f32
    %132 = vector.broadcast %cst_131 : f32 to vector<256x16xf32>
    %133 = arith.mulf %132, %129 : vector<256x16xf32>
    %134 = arith.select %131, %129, %133 : vector<256x16xi1>, vector<256x16xf32>
    %135 = vector.shape_cast %134 : vector<256x16xf32> to vector<8x2x8x2x16xf32>
    %cst_132 = arith.constant dense<0xFF800000> : vector<8x2x8x16xf32>
    %136 = vector.multi_reduction <maximumf>, %135, %cst_132 [3] : vector<8x2x8x2x16xf32> to vector<8x2x8x16xf32>
    %cst_133 = arith.constant dense<0xFF800000> : vector<8x8x16xf32>
    %137 = vector.multi_reduction <maximumf>, %136, %cst_133 [1] : vector<8x2x8x16xf32> to vector<8x8x16xf32>
    %138 = vector.shape_cast %137 : vector<8x8x16xf32> to vector<1x8x8x16xf32>
    %c0_134 = arith.constant 0 : index
    %c0_135 = arith.constant 0 : index
    %c0_136 = arith.constant 0 : index
    %c0_137 = arith.constant 0 : index
    %139 = vector.load %arg8[%c0_134, %c0_135, %c0_136, %c0_137] : memref<1x8x8x16xf32, #tpu.memory_space<vmem>>, vector<1x8x8x16xf32>
    tpu.vector_store %arg8[%c0_134, %c0_135, %c0_136, %c0_137], %138 {strides = array<i32>} : memref<1x8x8x16xf32, #tpu.memory_space<vmem>>, vector<1x8x8x16xf32>,
    return
  }
  func.func @transform_0(%arg0: i32) -> (i32, i32, i32, i32) {
    %c0_i32 = arith.constant 0 : i32
    %c0_i32_0 = arith.constant 0 : i32
    %c0_i32_1 = arith.constant 0 : i32
    %c0_i32_2 = arith.constant 0 : i32
    return %arg0, %c0_i32, %c0_i32_0, %c0_i32_1 : i32, i32, i32, i32
  }
  func.func @transform_1(%arg0: i32) -> (i32, i32, i32, i32) {
    %c0_i32 = arith.constant 0 : i32
    %c0_i32_0 = arith.constant 0 : i32
    %c0_i32_1 = arith.constant 0 : i32
    %c0_i32_2 = arith.constant 0 : i32
    %c0_i32_3 = arith.constant 0 : i32
    return %c0_i32, %c0_i32_0, %c0_i32_1, %c0_i32_2 : i32, i32, i32, i32
  }
  func.func @transform_2(%arg0: i32) -> (i32, i32) {
    %c0_i32 = arith.constant 0 : i32
    %c0_i32_0 = arith.constant 0 : i32
    %c0_i32_1 = arith.constant 0 : i32
    return %c0_i32, %c0_i32_0 : i32, i32
  }
  func.func @transform_3(%arg0: i32) -> (i32, i32) {
    %c0_i32 = arith.constant 0 : i32
    %c0_i32_0 = arith.constant 0 : i32
    %c0_i32_1 = arith.constant 0 : i32
    return %c0_i32, %c0_i32_0 : i32, i32
  }
  func.func @transform_4(%arg0: i32) -> (i32, i32) {
    %c0_i32 = arith.constant 0 : i32
    %c0_i32_0 = arith.constant 0 : i32
    %c0_i32_1 = arith.constant 0 : i32
    return %c0_i32, %c0_i32_0 : i32, i32
  }
  func.func @transform_5(%arg0: i32) -> (i32, i32) {
    %c0_i32 = arith.constant 0 : i32
    %c0_i32_0 = arith.constant 0 : i32
    %c0_i32_1 = arith.constant 0 : i32
    return %c0_i32, %c0_i32_0 : i32, i32
  }
  func.func @transform_6(%arg0: i32) -> (i32, i32) {
    %c0_i32 = arith.constant 0 : i32
    %c0_i32_0 = arith.constant 0 : i32
    %c0_i32_1 = arith.constant 0 : i32
    return %c0_i32, %c0_i32_0 : i32, i32
  }
  func.func @transform_7(%arg0: i32) -> (i32, i32, i32, i32) {
    %c0_i32 = arith.constant 0 : i32
    %c0_i32_0 = arith.constant 0 : i32
    %c0_i32_1 = arith.constant 0 : i32
    %c0_i32_2 = arith.constant 0 : i32
    return %arg0, %c0_i32, %c0_i32_0, %c0_i32_1 : i32, i32, i32, i32
  }
}

</mosaic_0001>

<bundles_post_ra>
// kernel: tpu_custom_call.1
= control target key start
LH: loop header
LB: loop body
LE: loop exit
PB: predicated region body
PF: predicated region fallthrough
CT: control target
= control target key end

     0   :  { %12 = vsyncpa [#allocation6], 0  ;;  %s11040_s0 = inlined_call_operand.vmem [shape: f32[2,16,16,1], index: 0, kind: input, shape index: {}]   ;;  %s11041_s1 = inlined_call_operand.vmem [shape: f32[3,3,1,8], index: 1, kind: input, shape index: {}]   ;;  %s11042_s2 = inlined_call_operand.vmem [shape: f32[1,8], index: 2, kind: input, shape index: {}]   ;;  %s11043_s3 = inlined_call_operand.vmem [shape: f32[1,8], index: 3, kind: input, shape index: {}]   ;;  %s11044_s4 = inlined_call_operand.vmem [shape: f32[72,16], index: 4, kind: input, shape index: {}]   ;;  %s11045_s5 = inlined_call_operand.vmem [shape: f32[1,16], index: 5, kind: input, shape index: {}]   ;;  %s11046_s6 = inlined_call_operand.vmem [shape: f32[1,16], index: 6, kind: input, shape index: {}]   ;;  %s11047_s7 = inlined_call_operand.hbm [shape: f32[2,8,8,16], index: 7, kind: output, shape index: {}]  }
   0x1   :  { %14 = vsyncpa [#allocation6 + $0x1], 0  ;;  %s6842_s24 = smov 0   ;;  %s6844_s25 = smov 0  }
   0x2   :  { %s6846_s26 = smov 0   ;;  %s6848_s27 = smov 0  }
   0x3 LB: > { %s6863_s28 = sadd.s32 4294967295, %s6789_s27   ;;  %s6567_s29 = sadd.s32 4294967294, %s6789_s27   ;;  %s6789_s27 = sphi %s6848_s27, %s11704_s27   ;;  %s6785_s26 = sphi %s6846_s26, %s11703_s26   ;;  %s6781_s25 = sphi %s6844_s25, %s11702_s25   ;;  %s6777_s24 = sphi %s6842_s24, %s11701_s24  }
   0x4   : > { %s6867_s30 = sadd.s32 1, %s6789_s27   ;;  %s179_s8 = sadd.s32 1, %s6785_s26 }
   0x5   : > { %s176_s9 = ssub.s32 %s6789_s27, %s6867_s30  ;;  %p189_p0 = scmp.ne.s32.totalorder %s6785_s26, %s6781_s25 }
   0x6   : > { %p177_p1 = scmp.eq.s32.totalorder %s176_s9, 0  ;;  %p190_p2 = scmp.eq.s32.totalorder %s6863_s28, 1 }
   0x7   : > { %p195_p3 = scmp.ne.s32.totalorder %s6781_s25, %s6777_s24  ;;  %p196_p4 = scmp.eq.s32.totalorder %s6567_s29, 1 }
   0x8   : > { %s6878_s10 = scalar_select %p177_p1, %s6785_s26, %s179_s8  }
   0x9   : > { %p6880_p5 = por %p190_p2, %p189_p0  ;;  %p6884_p6 = por %p196_p4, %p195_p3 }
   0xa   : > { %p6570_p7 = scmp.ge.s32.totalorder %s6789_s27, 1  ;;  %p240_p8 = scmp.lt.s32.totalorder %s6789_s27, 3 }
   0xc   : > { %p241_p9 = pnand %p6570_p7, %p240_p8 }
   0xe   : > { %244 = sbr.rel (%p241_p9) target bundleno = 1962 (0x7aa), region = 48 }
  0x13   : > { %vm277_vm0 = vcmask 7168   ;;  %v6791_v0 = vmov 0   ;;  %v11048_v1 = vmov 0.0   ;;  %p272_p10 = scmp.lt.s32.totalorder %s6863_s28, 1  ;;  %vm280_vm1 = vcmask 1024   ;;  %s6793_s22 = smov 8  }
  0x14   : > { %6698 = vset.pattern.permute.xlu0 %v6791_v0  ;;  %278 = vst.msk [vmem:[#allocation2] sm:$0xff] %vm277_vm0, %v11048_v1  ;;  %6700 = vset.pattern.permute.xlu2 %v6791_v0  ;;  %vm2915_vm2 = vcmask 64512   ;;  %vm2918_vm3 = vcmask 58368   ;;  %s6795_s15 = smov 24   ;;  %s6796_s16 = smov 32  }
  0x15   : > { %279 = vst.msk [vmem:[#allocation2 + $0x8] sm:$0xff] %vm277_vm0, %v11048_v1  ;;  %6699 = vset.pattern.permute.xlu1 %v6791_v0  ;;  %s273_s13 = scalar_select %p272_p10, %s6863_s28, 1 }
  0x16   : > { %282 = vst.msk [vmem:[#allocation2 + $0x18] sm:$0xff] %vm277_vm0, %v11048_v1  ;;  %s6798_s18 = smov 48   ;;  %s6799_s19 = smov 56  }
  0x17   : > { %283 = vst.msk [vmem:[#allocation2 + $0x20] sm:$0xff] %vm277_vm0, %v11048_v1  ;;  %s6619_s14 = sshll.u32 %s273_s13, 8  ;;  %s6800_s20 = smov 64  }
  0x18   : > { %285 = vst.msk [vmem:[#allocation2 + $0x30] sm:$0xff] %vm277_vm0, %v11048_v1  ;;  %s6957_s17 = scalar_lea.vmem %s11040_s0, %s6619_s14  ;;  %s6794_s14 = smov 16  }
  0x19   : > { %286 = vst.msk [vmem:[#allocation2 + $0x38] sm:$0xff] %vm277_vm0, %v11048_v1  ;;  %v335_v4 = vld [vmem:[%s6957_s17 + $0x10] sm:$0xff]  ;;  %v333_v5 = vld [vmem:[%s6957_s17] sm:$0xff]  ;;  %v336_v6 = vld [vmem:[%s6957_s17 + $0x18] sm:$0xff] }
  0x1a   : > { %288 = vst.msk [vmem:[#allocation2 + $0x48] sm:$0xff] %vm277_vm0, %v11048_v1  ;;  %v334_v10 = vld [vmem:[%s6957_s17 + $0x8] sm:$0xff]  ;;  %v337_v11 = vld [vmem:[%s6957_s17 + $0x20] sm:$0xff]  ;;  %v339_v12 = vld [vmem:[%s6957_s17 + $0x30] sm:$0xff] }
  0x1b   : > { %v398_v2 = vld [vmem:[#allocation2] sm:$0xff]  ;;  %289 = vst.msk [vmem:[#allocation2 + $0x50] sm:$0xff] %vm277_vm0, %v11048_v1  ;;  %v338_v13 = vld [vmem:[%s6957_s17 + $0x28] sm:$0xff]  ;;  %v340_v14 = vld [vmem:[%s6957_s17 + $0x38] sm:$0xff] }
  0x1c   : > { %433 = vperm.xlu0 %6698, %v398_v2   ;;  %291 = vst.msk [vmem:[#allocation2 + $0x60] sm:$0xff] %vm277_vm0, %v11048_v1  ;;  %v399_v3 = vld [vmem:[#allocation2 + $0x8] sm:$0xff]  ;;  %v341_v15 = vld [vmem:[%s6957_s17 + $0x40] sm:$0xff]  ;;  %v343_v17 = vld [vmem:[%s6957_s17 + $0x50] sm:$0xff] }
  0x1d   : > { %292 = vst.msk [vmem:[#allocation2 + $0x68] sm:$0xff] %vm277_vm0, %v11048_v1  ;;  %v342_v16 = vld [vmem:[%s6957_s17 + $0x48] sm:$0xff]  ;;  %v345_v18 = vld [vmem:[%s6957_s17 + $0x60] sm:$0xff]  ;;  %v344_v19 = vld [vmem:[%s6957_s17 + $0x58] sm:$0xff] }
  0x1e   : > { %294 = vst.msk [vmem:[#allocation2 + $0x78] sm:$0xff] %vm277_vm0, %v11048_v1  ;;  %v346_v21 = vld [vmem:[%s6957_s17 + $0x68] sm:$0xff]  ;;  %v347_v23 = vld [vmem:[%s6957_s17 + $0x70] sm:$0xff]  ;;  %v348_v25 = vld [vmem:[%s6957_s17 + $0x78] sm:$0xff] }
  0x1f   : > { %295 = vst.msk [vmem:[#allocation2 + $0x80] sm:$0xff] %vm277_vm0, %v11048_v1  ;;  %v349_v26 = vld [vmem:[%s6957_s17 + $0x80] sm:$0xff]  ;;  %v351_v27 = vld [vmem:[%s6957_s17 + $0x90] sm:$0xff]  ;;  %v350_v28 = vld [vmem:[%s6957_s17 + $0x88] sm:$0xff] }
  0x20   : > { %297 = vst.msk [vmem:[#allocation2 + $0x90] sm:$0xff] %vm277_vm0, %v11048_v1  ;;  %v352_v30 = vld [vmem:[%s6957_s17 + $0x98] sm:$0xff]  ;;  %v353_v33 = vld [vmem:[%s6957_s17 + $0xa0] sm:$0xff]  ;;  %v354_v34 = vld [vmem:[%s6957_s17 + $0xa8] sm:$0xff] }
  0x21   : > { %298 = vst.msk [vmem:[#allocation2 + $0x98] sm:$0xff] %vm277_vm0, %v11048_v1  ;;  %v355_v35 = vld [vmem:[%s6957_s17 + $0xb0] sm:$0xff]  ;;  %v357_v39 = vld [vmem:[%s6957_s17 + $0xc0] sm:$0xff]  ;;  %v356_v40 = vld [vmem:[%s6957_s17 + $0xb8] sm:$0xff] }
  0x22   : > { %300 = vst.msk [vmem:[#allocation2 + $0xa8] sm:$0xff] %vm277_vm0, %v11048_v1  ;;  %v358_v41 = vld [vmem:[%s6957_s17 + $0xc8] sm:$0xff]  ;;  %v359_v45 = vld [vmem:[%s6957_s17 + $0xd0] sm:$0xff]  ;;  %v360_v46 = vld [vmem:[%s6957_s17 + $0xd8] sm:$0xff] }
  0x23   : > { %301 = vst.msk [vmem:[#allocation2 + $0xb0] sm:$0xff] %vm277_vm0, %v11048_v1  ;;  %v361_v47 = vld [vmem:[%s6957_s17 + $0xe0] sm:$0xff]  ;;  %v362_v51 = vld [vmem:[%s6957_s17 + $0xe8] sm:$0xff] }
  0x24   : > { %303 = vst.msk [vmem:[#allocation2 + $0xc0] sm:$0xff] %vm277_vm0, %v11048_v1  ;;  %438 = vperm.xlu0 %6698, %v399_v3   ;;  %v658_v63 = vld [vmem:[#allocation2 + $0x1] sm:$0xff] }
  0x25   : > { %304 = vst.msk [vmem:[#allocation2 + $0xc8] sm:$0xff] %vm277_vm0, %v11048_v1 }
  0x26   : > { %306 = vst.msk [vmem:[#allocation2 + $0xd8] sm:$0xff] %vm277_vm0, %v11048_v1 }
  0x27   : > { %307 = vst.msk [vmem:[#allocation2 + $0xe0] sm:$0xff] %vm277_vm0, %v11048_v1 }
  0x28   : > { %309 = vst.msk [vmem:[#allocation2 + $0xf0] sm:$0xff] %vm277_vm0, %v11048_v1 }
  0x29   : > { %310 = vst.msk [vmem:[#allocation2 + $0xf8] sm:$0xff] %vm277_vm0, %v11048_v1 }
  0x2a   : > { %312 = vst.msk [vmem:[#allocation2 + $0x108] sm:$0xff] %vm277_vm0, %v11048_v1 }
  0x2b   : > { %313 = vst.msk [vmem:[#allocation2 + $0x110] sm:$0xff] %vm277_vm0, %v11048_v1 }
  0x2c   : > { %315 = vst.msk [vmem:[#allocation2 + $0x120] sm:$0xff] %vm277_vm0, %v11048_v1 }
  0x2d   : > { %316 = vst.msk [vmem:[#allocation2 + $0x128] sm:$0xff] %vm277_vm0, %v11048_v1 }
  0x2e   : > { %318 = vst.msk [vmem:[#allocation2 + $0x138] sm:$0xff] %vm277_vm0, %v11048_v1 }
  0x2f   : > { %319 = vst.msk [vmem:[#allocation2 + $0x140] sm:$0xff] %vm277_vm0, %v11048_v1 }
  0x30   : > { %321 = vst.msk [vmem:[#allocation2 + $0x150] sm:$0xff] %vm277_vm0, %v11048_v1 }
  0x31   : > { %322 = vst.msk [vmem:[#allocation2 + $0x158] sm:$0xff] %vm277_vm0, %v11048_v1 }
  0x32   : > { %324 = vst.msk [vmem:[#allocation2 + $0x168] sm:$0xff] %vm277_vm0, %v11048_v1 }
  0x33   : > { %325 = vst.msk [vmem:[#allocation2 + $0x170] sm:$0xff] %vm277_vm0, %v11048_v1 }
  0x34   : > { %327 = vst.msk [vmem:[#allocation2 + $0x180] sm:$0xff] %vm277_vm0, %v11048_v1 }
  0x35   : > { %328 = vst.msk [vmem:[#allocation2 + $0x188] sm:$0xff] %vm277_vm0, %v11048_v1 }
  0x36   : > { %330 = vst.msk [vmem:[#allocation2 + $0x198] sm:$0xff] %vm277_vm0, %v11048_v1 }
  0x37   : > { %331 = vst.msk [vmem:[#allocation2 + $0x1a0] sm:$0xff] %vm277_vm0, %v11048_v1 }
  0x38   : > { %368 = vst.msk [vmem:[#allocation2 + $0x31] sm:$0xff] %vm277_vm0, %v335_v4 }
  0x39   : > { %366 = vst.msk [vmem:[#allocation2 + $0x19] sm:$0xff] %vm277_vm0, %v333_v5 }
  0x3a   : > { %287 = vst.msk [vmem:[#allocation2 + $0x40] sm:$0x3] %vm280_vm1, %v11048_v1 }
  0x3b   : > { %369 = vst.msk [vmem:[#allocation2 + $0x39] sm:$0xff] %vm277_vm0, %v336_v6 }
  0x3c   : > { %281 = vst.msk [vmem:[#allocation2 + $0x10] sm:$0x3] %vm280_vm1, %v11048_v1 }
  0x3d   : > { %284 = vst.msk [vmem:[#allocation2 + $0x28] sm:$0x3] %vm280_vm1, %v11048_v1 }
  0x3e   : > { %290 = vst.msk [vmem:[#allocation2 + $0x58] sm:$0x3] %vm280_vm1, %v11048_v1 }
  0x3f   : > { %v6983_v7 = vld [vmem:[#allocation2 + $0x30] sm:$0xff]  ;;  %293 = vst.msk [vmem:[#allocation2 + $0x70] sm:$0x3] %vm280_vm1, %v11048_v1 }
  0x40   : > { %453 = vperm.xlu2 %6700, %v6983_v7   ;;  %v6988_v8 = vld [vmem:[#allocation2 + $0x18] sm:$0xff]  ;;  %296 = vst.msk [vmem:[#allocation2 + $0x88] sm:$0x3] %vm280_vm1, %v11048_v1 }
  0x41   : > { %443 = vperm.xlu1 %6699, %v6988_v8   ;;  %299 = vst.msk [vmem:[#allocation2 + $0xa0] sm:$0x3] %vm280_vm1, %v11048_v1  ;;  %v7160_v5 = vld [vmem:[#allocation2 + $0x19] sm:$0xff]  ;;  %v7162_v6 = vld [vmem:[#allocation2 + $0x31] sm:$0xff] }
  0x42   : > { %302 = vst.msk [vmem:[#allocation2 + $0xb8] sm:$0x3] %vm280_vm1, %v11048_v1  ;;  %v7001_v9 = vld [vmem:[#allocation2 + $0x38] sm:$0xff] }
  0x43   : > { %305 = vst.msk [vmem:[#allocation2 + $0xd0] sm:$0x3] %vm280_vm1, %v11048_v1  ;;  %v659_v2 = vld [vmem:[#allocation2 + $0x9] sm:$0xff] }
  0x44   : > { %308 = vst.msk [vmem:[#allocation2 + $0xe8] sm:$0x3] %vm280_vm1, %v11048_v1 }
  0x45   : > { %311 = vst.msk [vmem:[#allocation2 + $0x100] sm:$0x3] %vm280_vm1, %v11048_v1 }
  0x46   : > { %314 = vst.msk [vmem:[#allocation2 + $0x118] sm:$0x3] %vm280_vm1, %v11048_v1 }
  0x47   : > { %317 = vst.msk [vmem:[#allocation2 + $0x130] sm:$0x3] %vm280_vm1, %v11048_v1 }
  0x48   : > { %458 = vperm.xlu2 %6700, %v7001_v9   ;;  %320 = vst.msk [vmem:[#allocation2 + $0x148] sm:$0x3] %vm280_vm1, %v11048_v1 }
  0x49   : > { %323 = vst.msk [vmem:[#allocation2 + $0x160] sm:$0x3] %vm280_vm1, %v11048_v1 }
  0x4a   : > { %326 = vst.msk [vmem:[#allocation2 + $0x178] sm:$0x3] %vm280_vm1, %v11048_v1 }
  0x4b   : > { %329 = vst.msk [vmem:[#allocation2 + $0x190] sm:$0x3] %vm280_vm1, %v11048_v1 }
  0x4c   : > { %332 = vst.msk [vmem:[#allocation2 + $0x1a8] sm:$0x3] %vm280_vm1, %v11048_v1 }
  0x4d   : > { %367 = vst.msk [vmem:[#allocation2 + $0x21] sm:$0xff] %vm277_vm0, %v334_v10 }
  0x4e   : > { %370 = vst.msk [vmem:[#allocation2 + $0x49] sm:$0xff] %vm277_vm0, %v337_v11 }
  0x4f   : > { %372 = vst.msk [vmem:[#allocation2 + $0x61] sm:$0xff] %vm277_vm0, %v339_v12  ;;  %v7171_v12 = vld [vmem:[#allocation2 + $0x39] sm:$0xff] }
  0x50   : > { %371 = vst.msk [vmem:[#allocation2 + $0x51] sm:$0xff] %vm277_vm0, %v338_v13 }
  0x51   : > { %373 = vst.msk [vmem:[#allocation2 + $0x69] sm:$0xff] %vm277_vm0, %v340_v14 }
  0x52   : > { %374 = vst.msk [vmem:[#allocation2 + $0x79] sm:$0xff] %vm277_vm0, %v341_v15 }
  0x53   : > { %375 = vst.msk [vmem:[#allocation2 + $0x81] sm:$0xff] %vm277_vm0, %v342_v16 }
  0x54   : > { %v7037_v20 = vld [vmem:[#allocation2 + $0x20] sm:$0xff]  ;;  %376 = vst.msk [vmem:[#allocation2 + $0x91] sm:$0xff] %vm277_vm0, %v343_v17 }
  0x55   : > { %448 = vperm.xlu1 %6699, %v7037_v20   ;;  %v7042_v22 = vld [vmem:[#allocation2 + $0x48] sm:$0xff]  ;;  %378 = vst.msk [vmem:[#allocation2 + $0xa9] sm:$0xff] %vm277_vm0, %v345_v18 }
  0x56   : > { %463 = vperm.xlu0 %6698, %v7042_v22   ;;  %v7047_v24 = vld [vmem:[#allocation2 + $0x60] sm:$0xff]  ;;  %377 = vst.msk [vmem:[#allocation2 + $0x99] sm:$0xff] %vm277_vm0, %v344_v19  ;;  %v7164_v10 = vld [vmem:[#allocation2 + $0x49] sm:$0xff] }
  0x57   : > { %473 = vperm.xlu2 %6700, %v7047_v24   ;;  %379 = vst.msk [vmem:[#allocation2 + $0xb1] sm:$0xff] %vm277_vm0, %v346_v21  ;;  %v7058_v29 = vld [vmem:[#allocation2 + $0x50] sm:$0xff]  ;;  %v7154_v3 = vld [vmem:[#allocation2 + $0x21] sm:$0xff] }
  0x58   : > { %380 = vst.msk [vmem:[#allocation2 + $0xc1] sm:$0xff] %vm277_vm0, %v347_v23  ;;  %v7062_v31 = vld [vmem:[#allocation2 + $0x68] sm:$0xff]  ;;  %v7173_v13 = vld [vmem:[#allocation2 + $0x51] sm:$0xff] }
  0x59   : > { %381 = vst.msk [vmem:[#allocation2 + $0xc9] sm:$0xff] %vm277_vm0, %v348_v25  ;;  %v7078_v36 = vld [vmem:[#allocation2 + $0x78] sm:$0xff]  ;;  %v7175_v14 = vld [vmem:[#allocation2 + $0x69] sm:$0xff]  ;;  %v7182_v16 = vld [vmem:[#allocation2 + $0x61] sm:$0xff] }
  0x5a   : > { %382 = vst.msk [vmem:[#allocation2 + $0xd9] sm:$0xff] %vm277_vm0, %v349_v26  ;;  %v7065_v32 = vld [vmem:[#allocation2 + $0x80] sm:$0xff] }
  0x5b   : > { %384 = vst.msk [vmem:[#allocation2 + $0xf1] sm:$0xff] %vm277_vm0, %v351_v27  ;;  %v7080_v37 = vld [vmem:[#allocation2 + $0x90] sm:$0xff]  ;;  %v7184_v17 = vld [vmem:[#allocation2 + $0x79] sm:$0xff]  ;;  %v7195_v23 = vld [vmem:[#allocation2 + $0x81] sm:$0xff] }
  0x5c   : > { %383 = vst.msk [vmem:[#allocation2 + $0xe1] sm:$0xff] %vm277_vm0, %v350_v28  ;;  %v7082_v38 = vld [vmem:[#allocation2 + $0xa8] sm:$0xff]  ;;  %v7188_v19 = vld [vmem:[#allocation2 + $0x91] sm:$0xff] }
  0x5d   : > { %468 = vperm.xlu1 %6699, %v7058_v29   ;;  %385 = vst.msk [vmem:[#allocation2 + $0xf9] sm:$0xff] %vm277_vm0, %v352_v30  ;;  %v7093_v42 = vld [vmem:[#allocation2 + $0x98] sm:$0xff] }
  0x5e   : > { %478 = vperm.xlu0 %6698, %v7062_v31   ;;  %386 = vst.msk [vmem:[#allocation2 + $0x109] sm:$0xff] %vm277_vm0, %v353_v33  ;;  %v7095_v43 = vld [vmem:[#allocation2 + $0xb0] sm:$0xff]  ;;  %v7197_v25 = vld [vmem:[#allocation2 + $0x99] sm:$0xff] }
  0x5f   : > { %488 = vperm.xlu2 %6700, %v7065_v32   ;;  %387 = vst.msk [vmem:[#allocation2 + $0x111] sm:$0xff] %vm277_vm0, %v354_v34  ;;  %v7108_v48 = vld [vmem:[#allocation2 + $0xc0] sm:$0xff]  ;;  %v7199_v26 = vld [vmem:[#allocation2 + $0xb1] sm:$0xff]  ;;  %v7210_v33 = vld [vmem:[#allocation2 + $0xa9] sm:$0xff] }
  0x60   : > { %388 = vst.msk [vmem:[#allocation2 + $0x121] sm:$0xff] %vm277_vm0, %v355_v35  ;;  %v7097_v44 = vld [vmem:[#allocation2 + $0xc8] sm:$0xff] }
  0x61   : > { %390 = vst.msk [vmem:[#allocation2 + $0x139] sm:$0xff] %vm277_vm0, %v357_v39  ;;  %v7110_v49 = vld [vmem:[#allocation2 + $0xd8] sm:$0xff]  ;;  %v7212_v34 = vld [vmem:[#allocation2 + $0xc1] sm:$0xff] }
  0x62   : > { %389 = vst.msk [vmem:[#allocation2 + $0x129] sm:$0xff] %vm277_vm0, %v356_v40  ;;  %v7112_v50 = vld [vmem:[#allocation2 + $0xf0] sm:$0xff]  ;;  %v7214_v35 = vld [vmem:[#allocation2 + $0xd9] sm:$0xff] }
  0x63   : > { %391 = vst.msk [vmem:[#allocation2 + $0x141] sm:$0xff] %vm277_vm0, %v358_v41  ;;  %v7119_v52 = vld [vmem:[#allocation2 + $0xe0] sm:$0xff]  ;;  %v7240_v1 = vld [vmem:[#allocation2 + $0xf1] sm:$0xff] }
  0x64   : > { %392 = vst.msk [vmem:[#allocation2 + $0x151] sm:$0xff] %vm277_vm0, %v359_v45  ;;  %v7121_v53 = vld [vmem:[#allocation2 + $0xf8] sm:$0xff]  ;;  %v7225_v45 = vld [vmem:[#allocation2 + $0xc9] sm:$0xff] }
  0x65   : > { %483 = vperm.xlu1 %6699, %v7078_v36   ;;  %393 = vst.msk [vmem:[#allocation2 + $0x159] sm:$0xff] %vm277_vm0, %v360_v46  ;;  %v7128_v55 = vld [vmem:[#allocation2 + $0x108] sm:$0xff] }
  0x66   : > { %493 = vperm.xlu0 %6698, %v7080_v37   ;;  %394 = vst.msk [vmem:[#allocation2 + $0x169] sm:$0xff] %vm277_vm0, %v361_v47  ;;  %v7123_v54 = vld [vmem:[#allocation2 + $0x110] sm:$0xff]  ;;  %v7227_v46 = vld [vmem:[#allocation2 + $0xe1] sm:$0xff]  ;;  %v7229_v47 = vld [vmem:[#allocation2 + $0xf9] sm:$0xff] }
  0x67   : > { %503 = vperm.xlu2 %6700, %v7082_v38   ;;  %395 = vst.msk [vmem:[#allocation2 + $0x171] sm:$0xff] %vm277_vm0, %v362_v51  ;;  %v7130_v56 = vld [vmem:[#allocation2 + $0x120] sm:$0xff] }
  0x68   : > { %v7132_v57 = vld [vmem:[#allocation2 + $0x138] sm:$0xff] }
  0x69   : > { %v7137_v58 = vld [vmem:[#allocation2 + $0x128] sm:$0xff] }
  0x6a   : > { %v7139_v59 = vld [vmem:[#allocation2 + $0x140] sm:$0xff] }
  0x6b   : > { %v7146_v61 = vld [vmem:[#allocation2 + $0x150] sm:$0xff] }
  0x6c   : > { %v7141_v60 = vld [vmem:[#allocation2 + $0x158] sm:$0xff] }
  0x6d   : > { %498 = vperm.xlu1 %6699, %v7093_v42   ;;  %v7148_v62 = vld [vmem:[#allocation2 + $0x168] sm:$0xff] }
  0x6e   : > { %508 = vperm.xlu0 %6698, %v7095_v43   ;;  %v7152_v0 = vld [vmem:[#allocation2 + $0x170] sm:$0xff] }
  0x6f   : > { %518 = vperm.xlu2 %6700, %v7097_v44  }
  0x75   : > { %513 = vperm.xlu1 %6699, %v7108_v48  }
  0x76   : > { %523 = vperm.xlu0 %6698, %v7110_v49  }
  0x77   : > { %533 = vperm.xlu2 %6700, %v7112_v50  }
  0x7d   : > { %528 = vperm.xlu1 %6699, %v7119_v52  }
  0x7e   : > { %538 = vperm.xlu0 %6698, %v7121_v53  }
  0x7f   : > { %548 = vperm.xlu2 %6700, %v7123_v54  }
  0x85   : > { %543 = vperm.xlu1 %6699, %v7128_v55  }
  0x86   : > { %553 = vperm.xlu0 %6698, %v7130_v56  }
  0x87   : > { %563 = vperm.xlu2 %6700, %v7132_v57  }
  0x8d   : > { %558 = vperm.xlu1 %6699, %v7137_v58  }
  0x8e   : > { %568 = vperm.xlu0 %6698, %v7139_v59   ;;  %v7186_v18 = vpop.permute.xlu0 %433 }
  0x8f   : > { %578 = vperm.xlu2 %6700, %v7141_v60   ;;  %11106 = vst [vmem:[#allocation11_spill] sm:$0xff] %v7186_v18 }
  0x95   : > { %573 = vperm.xlu1 %6699, %v7146_v61  }
  0x96   : > { %583 = vperm.xlu0 %6698, %v7148_v62   ;;  %v7205_v28 = vpop.permute.xlu0 %438 }
  0x97   : > { %694 = vperm.xlu2 %6700, %v658_v63   ;;  %11109 = vst [vmem:[#allocation14_spill] sm:$0xff] %v7205_v28 }
  0x9a   : > { %v7157_v4 = vpop.permute.xlu2 %453 }
  0x9b   : > { %11103 = vst [vmem:[#allocation8_spill] sm:$0xff] %v7157_v4  ;;  %v920_v4 = vld [vmem:[#allocation2 + $0xa] sm:$0xff] }
  0x9d   : > { %588 = vperm.xlu1 %6699, %v7152_v0  }
  0x9e   : > { %699 = vperm.xlu0 %6698, %v659_v2  }
  0x9f   : > { %709 = vperm.xlu2 %6700, %v7154_v3  }
  0xa2   : > { %v7169_v11 = vpop.permute.xlu2 %458 }
  0xa3   : > { %11104 = vst [vmem:[#allocation9_spill] sm:$0xff] %v7169_v11  ;;  %v7274_v11 = vld [vmem:[#allocation2 + $0x169] sm:$0xff] }
  0xa4   : > { %11126 = vst [vmem:[#allocation31_spill] sm:$0xff] %v7274_v11 }
  0xa5   : > { %704 = vperm.xlu1 %6699, %v7160_v5  }
  0xa6   : > { %714 = vperm.xlu0 %6698, %v7162_v6  }
  0xa7   : > { %724 = vperm.xlu2 %6700, %v7164_v10  }
  0xad   : > { %719 = vperm.xlu1 %6699, %v7171_v12  }
  0xae   : > { %729 = vperm.xlu0 %6698, %v7173_v13  }
  0xaf   : > { %739 = vperm.xlu2 %6700, %v7175_v14  }
  0xb1   : > { %v7180_v15 = vpop.permute.xlu2 %473 }
  0xb2   : > { %11105 = vst [vmem:[#allocation10_spill] sm:$0xff] %v7180_v15 }
  0xb3   : > { %v7202_v27 = vpop.permute.xlu1 %443 }
  0xb4   : > { %11108 = vst [vmem:[#allocation13_spill] sm:$0xff] %v7202_v27  ;;  %v7259_v27 = vld [vmem:[#allocation2 + $0x141] sm:$0xff] }
  0xb5   : > { %734 = vperm.xlu1 %6699, %v7182_v16   ;;  %11121 = vst [vmem:[#allocation26_spill] sm:$0xff] %v7259_v27 }
  0xb6   : > { %744 = vperm.xlu0 %6698, %v7184_v17  }
  0xb7   : > { %754 = vperm.xlu2 %6700, %v7188_v19  }
  0xb9   : > { %v7193_v21 = vpop.permute.xlu2 %488 }
  0xba   : > { %11107 = vst [vmem:[#allocation12_spill] sm:$0xff] %v7193_v21 }
  0xbd   : > { %749 = vperm.xlu1 %6699, %v7195_v23  }
  0xbe   : > { %759 = vperm.xlu0 %6698, %v7197_v25  }
  0xbf   : > { %769 = vperm.xlu2 %6700, %v7199_v26  }
  0xc1   : > { %v7208_v30 = vpop.permute.xlu2 %503 }
  0xc2   : > { %11110 = vst [vmem:[#allocation15_spill] sm:$0xff] %v7208_v30 }
  0xc5   : > { %764 = vperm.xlu1 %6699, %v7210_v33  }
  0xc6   : > { %774 = vperm.xlu0 %6698, %v7212_v34  }
  0xc7   : > { %v7218_v39 = vpop.permute.xlu1 %448  ;;  %784 = vperm.xlu2 %6700, %v7214_v35  }
  0xc8   : > { %11111 = vst [vmem:[#allocation16_spill] sm:$0xff] %v7218_v39  ;;  %v7221_v40 = vpop.permute.xlu0 %463 }
  0xc9   : > { %11112 = vst [vmem:[#allocation17_spill] sm:$0xff] %v7221_v40  ;;  %v7223_v41 = vpop.permute.xlu2 %518  ;;  %v7244_v40 = vld [vmem:[#allocation2 + $0x121] sm:$0xff] }
  0xca   : > { %11113 = vst [vmem:[#allocation18_spill] sm:$0xff] %v7223_v41  ;;  %v7242_v41 = vld [vmem:[#allocation2 + $0x109] sm:$0xff] }
  0xcd   : > { %779 = vperm.xlu1 %6699, %v7225_v45  }
  0xce   : > { %789 = vperm.xlu0 %6698, %v7227_v46  }
  0xcf   : > { %v7233_v51 = vpop.permute.xlu1 %468  ;;  %799 = vperm.xlu2 %6700, %v7229_v47  }
  0xd0   : > { %11114 = vst [vmem:[#allocation19_spill] sm:$0xff] %v7233_v51  ;;  %v7236_v63 = vpop.permute.xlu0 %478 }
  0xd1   : > { %11115 = vst [vmem:[#allocation20_spill] sm:$0xff] %v7236_v63  ;;  %v7238_v2 = vpop.permute.xlu2 %533  ;;  %v7255_v63 = vld [vmem:[#allocation2 + $0x111] sm:$0xff] }
  0xd2   : > { %11116 = vst [vmem:[#allocation21_spill] sm:$0xff] %v7238_v2  ;;  %v7257_v2 = vld [vmem:[#allocation2 + $0x129] sm:$0xff] }
  0xd3   : > { %11120 = vst [vmem:[#allocation25_spill] sm:$0xff] %v7257_v2 }
  0xd5   : > { %794 = vperm.xlu1 %6699, %v7240_v1  }
  0xd6   : > { %804 = vperm.xlu0 %6698, %v7242_v41  }
  0xd7   : > { %v7248_v39 = vpop.permute.xlu1 %483  ;;  %814 = vperm.xlu2 %6700, %v7244_v40  }
  0xd8   : > { %11117 = vst [vmem:[#allocation22_spill] sm:$0xff] %v7248_v39  ;;  %v7251_v51 = vpop.permute.xlu0 %493 }
  0xd9   : > { %11118 = vst [vmem:[#allocation23_spill] sm:$0xff] %v7251_v51  ;;  %v7253_v30 = vpop.permute.xlu2 %548  ;;  %v7270_v51 = vld [vmem:[#allocation2 + $0x139] sm:$0xff] }
  0xda   : > { %11119 = vst [vmem:[#allocation24_spill] sm:$0xff] %v7253_v30  ;;  %v7272_v30 = vld [vmem:[#allocation2 + $0x151] sm:$0xff] }
  0xdb   : > { %11125 = vst [vmem:[#allocation30_spill] sm:$0xff] %v7272_v30 }
  0xdd   : > { %809 = vperm.xlu1 %6699, %v7255_v63  }
  0xde   : > { %819 = vperm.xlu0 %6698, %v7257_v2  }
  0xdf   : > { %v7263_v21 = vpop.permute.xlu1 %498  ;;  %829 = vperm.xlu2 %6700, %v7259_v27  }
  0xe0   : > { %11122 = vst [vmem:[#allocation27_spill] sm:$0xff] %v7263_v21  ;;  %v7266_v39 = vpop.permute.xlu0 %508 }
  0xe1   : > { %11123 = vst [vmem:[#allocation28_spill] sm:$0xff] %v7266_v39  ;;  %v7268_v15 = vpop.permute.xlu2 %563  ;;  %v7285_v39 = vld [vmem:[#allocation2 + $0x159] sm:$0xff] }
  0xe2   : > { %11124 = vst [vmem:[#allocation29_spill] sm:$0xff] %v7268_v15  ;;  %v7287_v15 = vld [vmem:[#allocation2 + $0x171] sm:$0xff] }
  0xe3   : > { %11130 = vst [vmem:[#allocation35_spill] sm:$0xff] %v7287_v15 }
  0xe5   : > { %824 = vperm.xlu1 %6699, %v7270_v51  }
  0xe6   : > { %834 = vperm.xlu0 %6698, %v7272_v30  }
  0xe7   : > { %v7278_v28 = vpop.permute.xlu1 %513  ;;  %844 = vperm.xlu2 %6700, %v7274_v11   ;;  %v919_v11 = vld [vmem:[#allocation2 + $0x2] sm:$0xff] }
  0xe8   : > { %11127 = vst [vmem:[#allocation32_spill] sm:$0xff] %v7278_v28  ;;  %v7281_v21 = vpop.permute.xlu0 %523 }
  0xe9   : > { %11128 = vst [vmem:[#allocation33_spill] sm:$0xff] %v7281_v21  ;;  %v7283_v18 = vpop.permute.xlu2 %578  ;;  %v7297_v21 = vld [vmem:[#allocation2 + $0x1a] sm:$0xff] }
  0xea   : > { %11129 = vst [vmem:[#allocation34_spill] sm:$0xff] %v7283_v18  ;;  %v7299_v18 = vld [vmem:[#allocation2 + $0x32] sm:$0xff] }
  0xeb   : > { %11134 = vst [vmem:[#allocation39_spill] sm:$0xff] %v7297_v21 }
  0xec   : > { %11135 = vst [vmem:[#allocation40_spill] sm:$0xff] %v7299_v18 }
  0xed   : > { %839 = vperm.xlu1 %6699, %v7285_v39  }
  0xee   : > { %849 = vperm.xlu0 %6698, %v7287_v15  }
  0xef   : > { %v7291_v27 = vpop.permute.xlu1 %528  ;;  %960 = vperm.xlu2 %6700, %v920_v4   ;;  %v7309_v4 = vld [vmem:[#allocation2 + $0x22] sm:$0xff] }
  0xf0   : > { %11131 = vst [vmem:[#allocation36_spill] sm:$0xff] %v7291_v27  ;;  %v7293_v30 = vpop.permute.xlu0 %538 }
  0xf1   : > { %11132 = vst [vmem:[#allocation37_spill] sm:$0xff] %v7293_v30  ;;  %v7295_v28 = vpop.permute.xlu2 %694  ;;  %v7311_v30 = vld [vmem:[#allocation2 + $0x3a] sm:$0xff] }
  0xf2   : > { %11133 = vst [vmem:[#allocation38_spill] sm:$0xff] %v7295_v28  ;;  %v7313_v28 = vld [vmem:[#allocation2 + $0x52] sm:$0xff] }
  0xf3   : > { %11139 = vst [vmem:[#allocation44_spill] sm:$0xff] %v7309_v4 }
  0xf4   : > { %11140 = vst [vmem:[#allocation45_spill] sm:$0xff] %v7311_v30 }
  0xf5   : > { %955 = vperm.xlu1 %6699, %v919_v11   ;;  %11141 = vst [vmem:[#allocation46_spill] sm:$0xff] %v7313_v28 }
  0xf6   : > { %965 = vperm.xlu0 %6698, %v7297_v21   ;;  %v7328_v21 = vld [vmem:[#allocation2 + $0x7a] sm:$0xff] }
  0xf7   : > { %v7302_v2 = vpop.permute.xlu1 %543  ;;  %975 = vperm.xlu2 %6700, %v7299_v18   ;;  %11147 = vst [vmem:[#allocation52_spill] sm:$0xff] %v7328_v21 }
  0xf8   : > { %11136 = vst [vmem:[#allocation41_spill] sm:$0xff] %v7302_v2  ;;  %v7305_v15 = vpop.permute.xlu0 %553 }
  0xf9   : > { %11137 = vst [vmem:[#allocation42_spill] sm:$0xff] %v7305_v15  ;;  %v7307_v27 = vpop.permute.xlu2 %709  ;;  %v7324_v15 = vld [vmem:[#allocation2 + $0x4a] sm:$0xff] }
  0xfa   : > { %11138 = vst [vmem:[#allocation43_spill] sm:$0xff] %v7307_v27  ;;  %v7326_v27 = vld [vmem:[#allocation2 + $0x62] sm:$0xff] }
  0xfb   : > { %11145 = vst [vmem:[#allocation50_spill] sm:$0xff] %v7324_v15 }
  0xfc   : > { %11146 = vst [vmem:[#allocation51_spill] sm:$0xff] %v7326_v27 }
  0xfd   : > { %970 = vperm.xlu1 %6699, %v7309_v4  }
  0xfe   : > { %980 = vperm.xlu0 %6698, %v7311_v30   ;;  %v7343_v30 = vld [vmem:[#allocation2 + $0x9a] sm:$0xff] }
  0xff   : > { %v7317_v11 = vpop.permute.xlu1 %558  ;;  %990 = vperm.xlu2 %6700, %v7313_v28   ;;  %11153 = vst [vmem:[#allocation58_spill] sm:$0xff] %v7343_v30 }
 0x100   : > { %11142 = vst [vmem:[#allocation47_spill] sm:$0xff] %v7317_v11  ;;  %v7320_v2 = vpop.permute.xlu0 %568 }
 0x101   : > { %11143 = vst [vmem:[#allocation48_spill] sm:$0xff] %v7320_v2  ;;  %v7322_v18 = vpop.permute.xlu2 %724  ;;  %v7339_v2 = vld [vmem:[#allocation2 + $0x6a] sm:$0xff] }
 0x102   : > { %11144 = vst [vmem:[#allocation49_spill] sm:$0xff] %v7322_v18  ;;  %v7341_v18 = vld [vmem:[#allocation2 + $0x82] sm:$0xff] }
 0x103   : > { %11151 = vst [vmem:[#allocation56_spill] sm:$0xff] %v7339_v2 }
 0x104   : > { %11152 = vst [vmem:[#allocation57_spill] sm:$0xff] %v7341_v18 }
 0x105   : > { %985 = vperm.xlu1 %6699, %v7324_v15  }
 0x106   : > { %995 = vperm.xlu0 %6698, %v7326_v27   ;;  %v7358_v27 = vld [vmem:[#allocation2 + $0xc2] sm:$0xff] }
 0x107   : > { %v7332_v4 = vpop.permute.xlu1 %573  ;;  %1005 = vperm.xlu2 %6700, %v7328_v21   ;;  %11159 = vst [vmem:[#allocation64_spill] sm:$0xff] %v7358_v27 }
 0x108   : > { %11148 = vst [vmem:[#allocation53_spill] sm:$0xff] %v7332_v4  ;;  %v7335_v11 = vpop.permute.xlu0 %583 }
 0x109   : > { %11149 = vst [vmem:[#allocation54_spill] sm:$0xff] %v7335_v11  ;;  %v7337_v28 = vpop.permute.xlu2 %739  ;;  %v7354_v11 = vld [vmem:[#allocation2 + $0x92] sm:$0xff] }
 0x10a   : > { %11150 = vst [vmem:[#allocation55_spill] sm:$0xff] %v7337_v28  ;;  %v7356_v28 = vld [vmem:[#allocation2 + $0xaa] sm:$0xff] }
 0x10b   : > { %11157 = vst [vmem:[#allocation62_spill] sm:$0xff] %v7354_v11 }
 0x10c   : > { %11158 = vst [vmem:[#allocation63_spill] sm:$0xff] %v7356_v28 }
 0x10d   : > { %1000 = vperm.xlu1 %6699, %v7339_v2  }
 0x10e   : > { %1010 = vperm.xlu0 %6698, %v7341_v18   ;;  %v7373_v18 = vld [vmem:[#allocation2 + $0xe2] sm:$0xff] }
 0x10f   : > { %v7347_v15 = vpop.permute.xlu1 %588  ;;  %1020 = vperm.xlu2 %6700, %v7343_v30   ;;  %11165 = vst [vmem:[#allocation70_spill] sm:$0xff] %v7373_v18 }
 0x110   : > { %11154 = vst [vmem:[#allocation59_spill] sm:$0xff] %v7347_v15  ;;  %v7350_v4 = vpop.permute.xlu0 %699 }
 0x111   : > { %11155 = vst [vmem:[#allocation60_spill] sm:$0xff] %v7350_v4  ;;  %v7352_v21 = vpop.permute.xlu2 %754  ;;  %v7369_v4 = vld [vmem:[#allocation2 + $0xb2] sm:$0xff] }
 0x112   : > { %11156 = vst [vmem:[#allocation61_spill] sm:$0xff] %v7352_v21  ;;  %v7371_v21 = vld [vmem:[#allocation2 + $0xca] sm:$0xff] }
 0x113   : > { %11163 = vst [vmem:[#allocation68_spill] sm:$0xff] %v7369_v4 }
 0x114   : > { %11164 = vst [vmem:[#allocation69_spill] sm:$0xff] %v7371_v21 }
 0x115   : > { %1015 = vperm.xlu1 %6699, %v7354_v11  }
 0x116   : > { %1025 = vperm.xlu0 %6698, %v7356_v28   ;;  %v7388_v28 = vld [vmem:[#allocation2 + $0x10a] sm:$0xff] }
 0x117   : > { %v7362_v2 = vpop.permute.xlu1 %704  ;;  %1035 = vperm.xlu2 %6700, %v7358_v27   ;;  %11171 = vst [vmem:[#allocation76_spill] sm:$0xff] %v7388_v28 }
 0x118   : > { %11160 = vst [vmem:[#allocation65_spill] sm:$0xff] %v7362_v2  ;;  %v7365_v15 = vpop.permute.xlu0 %714 }
 0x119   : > { %11161 = vst [vmem:[#allocation66_spill] sm:$0xff] %v7365_v15  ;;  %v7367_v30 = vpop.permute.xlu2 %769  ;;  %v7384_v15 = vld [vmem:[#allocation2 + $0xda] sm:$0xff] }
 0x11a   : > { %11162 = vst [vmem:[#allocation67_spill] sm:$0xff] %v7367_v30  ;;  %v7386_v30 = vld [vmem:[#allocation2 + $0xf2] sm:$0xff] }
 0x11b   : > { %11169 = vst [vmem:[#allocation74_spill] sm:$0xff] %v7384_v15 }
 0x11c   : > { %11170 = vst [vmem:[#allocation75_spill] sm:$0xff] %v7386_v30 }
 0x11d   : > { %1030 = vperm.xlu1 %6699, %v7369_v4  }
 0x11e   : > { %1040 = vperm.xlu0 %6698, %v7371_v21   ;;  %v7403_v21 = vld [vmem:[#allocation2 + $0x12a] sm:$0xff] }
 0x11f   : > { %v7377_v11 = vpop.permute.xlu1 %719  ;;  %1050 = vperm.xlu2 %6700, %v7373_v18   ;;  %11177 = vst [vmem:[#allocation82_spill] sm:$0xff] %v7403_v21 }
 0x120   : > { %11166 = vst [vmem:[#allocation71_spill] sm:$0xff] %v7377_v11  ;;  %v7380_v2 = vpop.permute.xlu0 %729 }
 0x121   : > { %11167 = vst [vmem:[#allocation72_spill] sm:$0xff] %v7380_v2  ;;  %v7382_v27 = vpop.permute.xlu2 %784  ;;  %v7399_v2 = vld [vmem:[#allocation2 + $0xfa] sm:$0xff] }
 0x122   : > { %11168 = vst [vmem:[#allocation73_spill] sm:$0xff] %v7382_v27  ;;  %v7401_v27 = vld [vmem:[#allocation2 + $0x112] sm:$0xff] }
 0x123   : > { %11175 = vst [vmem:[#allocation80_spill] sm:$0xff] %v7399_v2 }
 0x124   : > { %11176 = vst [vmem:[#allocation81_spill] sm:$0xff] %v7401_v27 }
 0x125   : > { %1045 = vperm.xlu1 %6699, %v7384_v15  }
 0x126   : > { %1055 = vperm.xlu0 %6698, %v7386_v30   ;;  %v7418_v30 = vld [vmem:[#allocation2 + $0x152] sm:$0xff] }
 0x127   : > { %v7392_v4 = vpop.permute.xlu1 %734  ;;  %1065 = vperm.xlu2 %6700, %v7388_v28   ;;  %11183 = vst [vmem:[#allocation88_spill] sm:$0xff] %v7418_v30 }
 0x128   : > { %11172 = vst [vmem:[#allocation77_spill] sm:$0xff] %v7392_v4  ;;  %v7395_v11 = vpop.permute.xlu0 %744 }
 0x129   : > { %11173 = vst [vmem:[#allocation78_spill] sm:$0xff] %v7395_v11  ;;  %v7397_v18 = vpop.permute.xlu2 %799  ;;  %v7414_v11 = vld [vmem:[#allocation2 + $0x122] sm:$0xff] }
 0x12a   : > { %11174 = vst [vmem:[#allocation79_spill] sm:$0xff] %v7397_v18  ;;  %v7416_v18 = vld [vmem:[#allocation2 + $0x13a] sm:$0xff] }
 0x12b   : > { %11181 = vst [vmem:[#allocation86_spill] sm:$0xff] %v7414_v11 }
 0x12c   : > { %11182 = vst [vmem:[#allocation87_spill] sm:$0xff] %v7416_v18 }
 0x12d   : > { %1060 = vperm.xlu1 %6699, %v7399_v2  }
 0x12e   : > { %1070 = vperm.xlu0 %6698, %v7401_v27   ;;  %v7433_v27 = vld [vmem:[#allocation2 + $0x172] sm:$0xff] }
 0x12f   : > { %v7407_v15 = vpop.permute.xlu1 %749  ;;  %1080 = vperm.xlu2 %6700, %v7403_v21  }
 0x130   : > { %11178 = vst [vmem:[#allocation83_spill] sm:$0xff] %v7407_v15  ;;  %v7410_v4 = vpop.permute.xlu0 %759 }
 0x131   : > { %11179 = vst [vmem:[#allocation84_spill] sm:$0xff] %v7410_v4  ;;  %v7412_v28 = vpop.permute.xlu2 %814  ;;  %v7429_v4 = vld [vmem:[#allocation2 + $0x142] sm:$0xff] }
 0x132   : > { %11180 = vst [vmem:[#allocation85_spill] sm:$0xff] %v7412_v28  ;;  %v7431_v28 = vld [vmem:[#allocation2 + $0x15a] sm:$0xff] }
 0x133   : > { %11187 = vst [vmem:[#allocation92_spill] sm:$0xff] %v7431_v28 }
 0x135   : > { %1075 = vperm.xlu1 %6699, %v7414_v11  }
 0x136   : > { %1085 = vperm.xlu0 %6698, %v7416_v18  }
 0x137   : > { %v7422_v2 = vpop.permute.xlu1 %764  ;;  %1095 = vperm.xlu2 %6700, %v7418_v30  }
 0x138   : > { %11184 = vst [vmem:[#allocation89_spill] sm:$0xff] %v7422_v2  ;;  %v7425_v15 = vpop.permute.xlu0 %774 }
 0x139   : > { %11185 = vst [vmem:[#allocation90_spill] sm:$0xff] %v7425_v15  ;;  %v7427_v21 = vpop.permute.xlu2 %829  ;;  %v7444_v15 = vld [vmem:[#allocation2 + $0x16a] sm:$0xff] }
 0x13a   : > { %11186 = vst [vmem:[#allocation91_spill] sm:$0xff] %v7427_v21 }
 0x13d   : > { %1090 = vperm.xlu1 %6699, %v7429_v4  }
 0x13e   : > { %1100 = vperm.xlu0 %6698, %v7431_v28  }
 0x13f   : > { %v7437_v11 = vpop.permute.xlu1 %779  ;;  %1110 = vperm.xlu2 %6700, %v7433_v27  }
 0x140   : > { %11188 = vst [vmem:[#allocation93_spill] sm:$0xff] %v7437_v11  ;;  %v7440_v2 = vpop.permute.xlu0 %789 }
 0x141   : > { %11189 = vst [vmem:[#allocation94_spill] sm:$0xff] %v7440_v2  ;;  %v7442_v30 = vpop.permute.xlu2 %844 }
 0x142   : > { %11190 = vst [vmem:[#allocation95_spill] sm:$0xff] %v7442_v30 }
 0x145   : > { %1105 = vperm.xlu1 %6699, %v7444_v15  }
 0x146   : > { %1216 = vperm.xlu0 %6698, %v6988_v8  }
 0x147   : > { %v7448_v21 = vpop.permute.xlu1 %794  ;;  %1226 = vperm.xlu2 %6700, %v6983_v7  }
 0x148   : > { %v7451_v18 = vpop.permute.xlu0 %804 }
 0x149   : > { %v7453_v28 = vpop.permute.xlu2 %960 }
 0x14d   : > { %1221 = vperm.xlu1 %6699, %v7037_v20  }
 0x14e   : > { %1231 = vperm.xlu0 %6698, %v7001_v9  }
 0x14f   : > { %v7457_v2 = vpop.permute.xlu1 %809  ;;  %1241 = vperm.xlu2 %6700, %v7058_v29  }
 0x150   : > { %v7460_v30 = vpop.permute.xlu0 %819 }
 0x151   : > { %v7462_v11 = vpop.permute.xlu2 %975 }
 0x155   : > { %1236 = vperm.xlu1 %6699, %v7042_v22  }
 0x156   : > { %1246 = vperm.xlu0 %6698, %v7047_v24  }
 0x157   : > { %v7466_v7 = vpop.permute.xlu1 %824  ;;  %1256 = vperm.xlu2 %6700, %v7078_v36   ;;  %v363_v36 = vld [vmem:[%s6957_s17 + $0xf0] sm:$0xff] }
 0x158   : > { %v7469_v8 = vpop.permute.xlu0 %834  ;;  %396 = vst.msk [vmem:[#allocation2 + $0x181] sm:$0xff] %vm277_vm0, %v363_v36 }
 0x159   : > { %v7471_v9 = vpop.permute.xlu2 %990 }
 0x15d   : > { %1251 = vperm.xlu1 %6699, %v7062_v31  }
 0x15e   : > { %1261 = vperm.xlu0 %6698, %v7065_v32  }
 0x15f   : > { %v7475_v20 = vpop.permute.xlu1 %839  ;;  %1271 = vperm.xlu2 %6700, %v7093_v42  }
 0x160   : > { %v7478_v22 = vpop.permute.xlu0 %849 }
 0x161   : > { %v7480_v24 = vpop.permute.xlu2 %1005 }
 0x165   : > { %1266 = vperm.xlu1 %6699, %v7080_v37  }
 0x166   : > { %1276 = vperm.xlu0 %6698, %v7082_v38  }
 0x167   : > { %v7484_v29 = vpop.permute.xlu1 %955  ;;  %1286 = vperm.xlu2 %6700, %v7108_v48   ;;  %v364_v48 = vld [vmem:[%s6957_s17 + $0xf8] sm:$0xff]  ;;  %s6797_s17 = smov 40  }
 0x168   : > { %11191 = vst [vmem:[#allocation96_spill] sm:$0xff] %v7484_v29  ;;  %v7487_v31 = vpop.permute.xlu0 %965  ;;  %v11439_v29 = vld [vmem:[#allocation85_spill] sm:$0xff] }
 0x169   : > { %11192 = vst [vmem:[#allocation97_spill] sm:$0xff] %v7487_v31  ;;  %v7489_v32 = vpop.permute.xlu2 %1020  ;;  %v11438_v31 = vld [vmem:[#allocation84_spill] sm:$0xff] }
 0x16a   : > { %11193 = vst [vmem:[#allocation98_spill] sm:$0xff] %v7489_v32 }
 0x16b   : > { %397 = vst.msk [vmem:[#allocation2 + $0x189] sm:$0xff] %vm277_vm0, %v364_v48 }
 0x16d   : > { %1281 = vperm.xlu1 %6699, %v7095_v43  }
 0x16e   : > { %1291 = vperm.xlu0 %6698, %v7097_v44  }
 0x16f   : > { %v7494_v42 = vpop.permute.xlu1 %970  ;;  %1301 = vperm.xlu2 %6700, %v7119_v52  }
 0x170   : > { %11194 = vst [vmem:[#allocation99_spill] sm:$0xff] %v7494_v42  ;;  %v7498_v37 = vpop.permute.xlu0 %980 }
 0x171   : > { %11195 = vst [vmem:[#allocation100_spill] sm:$0xff] %v7498_v37  ;;  %v7500_v38 = vpop.permute.xlu2 %1035  ;;  %v11435_v37 = vld [vmem:[#allocation78_spill] sm:$0xff] }
 0x172   : > { %11196 = vst [vmem:[#allocation101_spill] sm:$0xff] %v7500_v38  ;;  %v11434_v38 = vld [vmem:[#allocation77_spill] sm:$0xff] }
 0x175   : > { %1296 = vperm.xlu1 %6699, %v7110_v49  }
 0x176   : > { %1306 = vperm.xlu0 %6698, %v7112_v50  }
 0x177   : > { %v7506_v43 = vpop.permute.xlu1 %985  ;;  %1316 = vperm.xlu2 %6700, %v7128_v55  }
 0x178   : > { %11197 = vst [vmem:[#allocation102_spill] sm:$0xff] %v7506_v43  ;;  %v7509_v44 = vpop.permute.xlu0 %995  ;;  %v11433_v43 = vld [vmem:[#allocation73_spill] sm:$0xff] }
 0x179   : > { %11198 = vst [vmem:[#allocation103_spill] sm:$0xff] %v7509_v44  ;;  %v7511_v52 = vpop.permute.xlu2 %1050  ;;  %v11430_v44 = vld [vmem:[#allocation67_spill] sm:$0xff] }
 0x17a   : > { %11199 = vst [vmem:[#allocation104_spill] sm:$0xff] %v7511_v52 }
 0x17d   : > { %1311 = vperm.xlu1 %6699, %v7121_v53  }
 0x17e   : > { %1321 = vperm.xlu0 %6698, %v7123_v54  }
 0x17f   : > { %v7515_v36 = vpop.permute.xlu1 %1000  ;;  %1331 = vperm.xlu2 %6700, %v7137_v58  }
 0x180   : > { %11200 = vst [vmem:[#allocation105_spill] sm:$0xff] %v7515_v36  ;;  %v7518_v49 = vpop.permute.xlu0 %1010 }
 0x181   : > { %11201 = vst [vmem:[#allocation106_spill] sm:$0xff] %v7518_v49  ;;  %v7520_v48 = vpop.permute.xlu2 %1065 }
 0x182   : > { %11202 = vst [vmem:[#allocation107_spill] sm:$0xff] %v7520_v48 }
 0x185   : > { %1326 = vperm.xlu1 %6699, %v7130_v56  }
 0x186   : > { %1336 = vperm.xlu0 %6698, %v7132_v57   ;;  %v7540_v57 = vld [vmem:[#allocation2 + $0x180] sm:$0xff] }
 0x187   : > { %v7524_v50 = vpop.permute.xlu1 %1015  ;;  %1346 = vperm.xlu2 %6700, %v7146_v61  }
 0x188   : > { %11203 = vst [vmem:[#allocation108_spill] sm:$0xff] %v7524_v50  ;;  %v7527_v55 = vpop.permute.xlu0 %1025 }
 0x189   : > { %11204 = vst [vmem:[#allocation109_spill] sm:$0xff] %v7527_v55  ;;  %v7529_v53 = vpop.permute.xlu2 %1080 }
 0x18a   : > { %11205 = vst [vmem:[#allocation110_spill] sm:$0xff] %v7529_v53  ;;  %v11405_v53 = vld [vmem:[#allocation33_spill] sm:$0xff] }
 0x18d   : > { %1341 = vperm.xlu1 %6699, %v7139_v59  }
 0x18e   : > { %1351 = vperm.xlu0 %6698, %v7141_v60  }
 0x18f   : > { %v7533_v54 = vpop.permute.xlu1 %1030  ;;  %1361 = vperm.xlu2 %6700, %v7152_v0  }
 0x190   : > { %11206 = vst [vmem:[#allocation111_spill] sm:$0xff] %v7533_v54  ;;  %v7536_v58 = vpop.permute.xlu0 %1040  ;;  %v7551_v54 = vld [vmem:[#allocation2 + $0x188] sm:$0xff] }
 0x191   : > { %11207 = vst [vmem:[#allocation112_spill] sm:$0xff] %v7536_v58  ;;  %v7538_v56 = vpop.permute.xlu2 %1095 }
 0x192   : > { %11208 = vst [vmem:[#allocation113_spill] sm:$0xff] %v7538_v56 }
 0x195   : > { %1356 = vperm.xlu1 %6699, %v7148_v62  }
 0x196   : > { %1366 = vperm.xlu0 %6698, %v7540_v57  }
 0x197   : > { %v7544_v61 = vpop.permute.xlu1 %1045  ;;  %1477 = vperm.xlu2 %6700, %v7160_v5  }
 0x198   : > { %11209 = vst [vmem:[#allocation114_spill] sm:$0xff] %v7544_v61  ;;  %v7547_v59 = vpop.permute.xlu0 %1055 }
 0x199   : > { %11210 = vst [vmem:[#allocation115_spill] sm:$0xff] %v7547_v59  ;;  %v7549_v60 = vpop.permute.xlu2 %1110 }
 0x19a   : > { %11211 = vst [vmem:[#allocation116_spill] sm:$0xff] %v7549_v60 }
 0x19d   : > { %1371 = vperm.xlu1 %6699, %v7551_v54  }
 0x19e   : > { %1482 = vperm.xlu0 %6698, %v7154_v3  }
 0x19f   : > { %v7555_v0 = vpop.permute.xlu1 %1060  ;;  %1492 = vperm.xlu2 %6700, %v7171_v12  }
 0x1a0   : > { %11212 = vst [vmem:[#allocation117_spill] sm:$0xff] %v7555_v0  ;;  %v7558_v62 = vpop.permute.xlu0 %1070  ;;  %v11402_v0 = vld [vmem:[#allocation55_spill] sm:$0xff] }
 0x1a1   : > { %11213 = vst [vmem:[#allocation118_spill] sm:$0xff] %v7558_v62  ;;  %v7560_v56 = vpop.permute.xlu2 %1226  ;;  %v11401_v62 = vld [vmem:[#allocation49_spill] sm:$0xff] }
 0x1a2   : > { %11214 = vst [vmem:[#allocation119_spill] sm:$0xff] %v7560_v56 }
 0x1a5   : > { %1487 = vperm.xlu1 %6699, %v7162_v6  }
 0x1a6   : > { %1497 = vperm.xlu0 %6698, %v7164_v10  }
 0x1a7   : > { %v7564_v5 = vpop.permute.xlu1 %1075  ;;  %1507 = vperm.xlu2 %6700, %v7182_v16  }
 0x1a8   : > { %11215 = vst [vmem:[#allocation120_spill] sm:$0xff] %v7564_v5  ;;  %v7567_v60 = vpop.permute.xlu0 %1085 }
 0x1a9   : > { %11216 = vst [vmem:[#allocation121_spill] sm:$0xff] %v7567_v60  ;;  %v7569_v59 = vpop.permute.xlu2 %1241  ;;  %v11398_v60 = vld [vmem:[#allocation43_spill] sm:$0xff] }
 0x1aa   : > { %11217 = vst [vmem:[#allocation122_spill] sm:$0xff] %v7569_v59 }
 0x1ad   : > { %1502 = vperm.xlu1 %6699, %v7173_v13  }
 0x1ae   : > { %1512 = vperm.xlu0 %6698, %v7175_v14  }
 0x1af   : > { %v7573_v3 = vpop.permute.xlu1 %1090  ;;  %1522 = vperm.xlu2 %6700, %v7195_v23  }
 0x1b0   : > { %11218 = vst [vmem:[#allocation123_spill] sm:$0xff] %v7573_v3  ;;  %v7576_v12 = vpop.permute.xlu0 %1100 }
 0x1b1   : > { %11219 = vst [vmem:[#allocation124_spill] sm:$0xff] %v7576_v12  ;;  %v7578_v6 = vpop.permute.xlu2 %1256  ;;  %v11395_v12 = vld [vmem:[#allocation22_spill] sm:$0xff] }
 0x1b2   : > { %11220 = vst [vmem:[#allocation125_spill] sm:$0xff] %v7578_v6  ;;  %v2496_v6 = vld [vmem:[#allocation2 + $0xaa] sm:$0xff] }
 0x1b5   : > { %1517 = vperm.xlu1 %6699, %v7184_v17  }
 0x1b6   : > { %1527 = vperm.xlu0 %6698, %v7188_v19  }
 0x1b7   : > { %v7582_v10 = vpop.permute.xlu1 %1105  ;;  %1537 = vperm.xlu2 %6700, %v7210_v33  }
 0x1b8   : > { %11221 = vst [vmem:[#allocation126_spill] sm:$0xff] %v7582_v10  ;;  %v7585_v16 = vpop.permute.xlu0 %1216  ;;  %v11394_v10 = vld [vmem:[#allocation38_spill] sm:$0xff] }
 0x1b9   : > { %11222 = vst [vmem:[#allocation127_spill] sm:$0xff] %v7585_v16  ;;  %v7587_v13 = vpop.permute.xlu2 %1271  ;;  %v11393_v16 = vld [vmem:[#allocation21_spill] sm:$0xff] }
 0x1ba   : > { %11223 = vst [vmem:[#allocation128_spill] sm:$0xff] %v7587_v13 }
 0x1bd   : > { %1532 = vperm.xlu1 %6699, %v7197_v25  }
 0x1be   : > { %1542 = vperm.xlu0 %6698, %v7199_v26  }
 0x1bf   : > { %v7591_v14 = vpop.permute.xlu1 %1221  ;;  %1552 = vperm.xlu2 %6700, %v7225_v45  }
 0x1c0   : > { %11224 = vst [vmem:[#allocation129_spill] sm:$0xff] %v7591_v14  ;;  %v7594_v23 = vpop.permute.xlu0 %1231 }
 0x1c1   : > { %11225 = vst [vmem:[#allocation130_spill] sm:$0xff] %v7594_v23  ;;  %v7596_v17 = vpop.permute.xlu2 %1286  ;;  %v2494_v23 = vld [vmem:[#allocation2 + $0x92] sm:$0xff] }
 0x1c2   : > { %11226 = vst [vmem:[#allocation131_spill] sm:$0xff] %v7596_v17  ;;  %v11390_v17 = vld [vmem:[#allocation18_spill] sm:$0xff] }
 0x1c5   : > { %1547 = vperm.xlu1 %6699, %v7212_v34  }
 0x1c6   : > { %1557 = vperm.xlu0 %6698, %v7214_v35  }
 0x1c7   : > { %v7600_v19 = vpop.permute.xlu1 %1236  ;;  %1567 = vperm.xlu2 %6700, %v7240_v1  }
 0x1c8   : > { %11227 = vst [vmem:[#allocation132_spill] sm:$0xff] %v7600_v19  ;;  %v7603_v33 = vpop.permute.xlu0 %1246  ;;  %v11389_v19 = vld [vmem:[#allocation17_spill] sm:$0xff] }
 0x1c9   : > { %11228 = vst [vmem:[#allocation133_spill] sm:$0xff] %v7603_v33  ;;  %v7605_v25 = vpop.permute.xlu2 %1301 }
 0x1ca   : > { %11229 = vst [vmem:[#allocation134_spill] sm:$0xff] %v7605_v25  ;;  %v11257_v25 = vld [vmem:[#allocation45_spill] sm:$0xff] }
 0x1cd   : > { %1562 = vperm.xlu1 %6699, %v7227_v46  }
 0x1ce   : > { %1572 = vperm.xlu0 %6698, %v7229_v47   ;;  %v11236_v47 = vld [vmem:[#allocation25_spill] sm:$0xff] }
 0x1cf   : > { %v7609_v26 = vpop.permute.xlu1 %1251  ;;  %1582 = vperm.xlu2 %6700, %v7255_v63  }
 0x1d0   : > { %11230 = vst [vmem:[#allocation135_spill] sm:$0xff] %v7609_v26  ;;  %v7612_v45 = vpop.permute.xlu0 %1261  ;;  %v11237_v26 = vld [vmem:[#allocation26_spill] sm:$0xff] }
 0x1d1   : > { %11231 = vst [vmem:[#allocation136_spill] sm:$0xff] %v7612_v45  ;;  %v7614_v34 = vpop.permute.xlu2 %1316 }
 0x1d2   : > { %11232 = vst [vmem:[#allocation137_spill] sm:$0xff] %v7614_v34 }
 0x1d5   : > { %1577 = vperm.xlu1 %6699, %v7242_v41  }
 0x1d6   : > { %1587 = vperm.xlu0 %6698, %v7244_v40   ;;  %v7634_v40 = vld [vmem:[#allocation2 + $0x181] sm:$0xff] }
 0x1d7   : > { %v7618_v1 = vpop.permute.xlu1 %1266  ;;  %1597 = vperm.xlu2 %6700, %v7270_v51   ;;  %v11242_v51 = vld [vmem:[#allocation31_spill] sm:$0xff] }
 0x1d8   : > { %11233 = vst [vmem:[#allocation138_spill] sm:$0xff] %v7618_v1  ;;  %v7621_v35 = vpop.permute.xlu0 %1276  ;;  %v11241_v1 = vld [vmem:[#allocation30_spill] sm:$0xff] }
 0x1d9   : > { %11234 = vst [vmem:[#allocation139_spill] sm:$0xff] %v7621_v35  ;;  %v7623_v46 = vpop.permute.xlu2 %1331 }
 0x1da   : > { %11235 = vst [vmem:[#allocation140_spill] sm:$0xff] %v7623_v46  ;;  %v11252_v46 = vld [vmem:[#allocation40_spill] sm:$0xff] }
 0x1dd   : > { %1592 = vperm.xlu1 %6699, %v11236_v47  }
 0x1de   : > { %1602 = vperm.xlu0 %6698, %v11237_v26  }
 0x1df   : > { %v7627_v63 = vpop.permute.xlu1 %1281  ;;  %1612 = vperm.xlu2 %6700, %v7285_v39   ;;  %v11246_v39 = vld [vmem:[#allocation35_spill] sm:$0xff] }
 0x1e0   : > { %11238 = vst [vmem:[#allocation25_spill] sm:$0xff] %v7627_v63  ;;  %v7630_v34 = vpop.permute.xlu0 %1291  ;;  %v7645_v63 = vld [vmem:[#allocation2 + $0x189] sm:$0xff] }
 0x1e1   : > { %11239 = vst [vmem:[#allocation26_spill] sm:$0xff] %v7630_v34  ;;  %v7632_v41 = vpop.permute.xlu2 %1346  ;;  %v11248_v34 = vld [vmem:[#allocation44_spill] sm:$0xff] }
 0x1e2   : > { %11240 = vst [vmem:[#allocation141_spill] sm:$0xff] %v7632_v41 }
 0x1e5   : > { %1607 = vperm.xlu1 %6699, %v11241_v1  }
 0x1e6   : > { %1617 = vperm.xlu0 %6698, %v11242_v51  }
 0x1e7   : > { %v7638_v35 = vpop.permute.xlu1 %1296  ;;  %1627 = vperm.xlu2 %6700, %v7634_v40  }
 0x1e8   : > { %11243 = vst [vmem:[#allocation30_spill] sm:$0xff] %v7638_v35  ;;  %v7641_v47 = vpop.permute.xlu0 %1306  ;;  %v11251_v35 = vld [vmem:[#allocation39_spill] sm:$0xff] }
 0x1e9   : > { %11244 = vst [vmem:[#allocation31_spill] sm:$0xff] %v7641_v47  ;;  %v7643_v26 = vpop.permute.xlu2 %1361 }
 0x1ea   : > { %11245 = vst [vmem:[#allocation142_spill] sm:$0xff] %v7643_v26  ;;  %v11254_v26 = vld [vmem:[#allocation50_spill] sm:$0xff] }
 0x1ed   : > { %1622 = vperm.xlu1 %6699, %v11246_v39  }
 0x1ee   : > { %1632 = vperm.xlu0 %6698, %v7645_v63  }
 0x1ef   : > { %v7649_v41 = vpop.permute.xlu1 %1311  ;;  %1743 = vperm.xlu2 %6700, %v11248_v34  }
 0x1f0   : > { %11247 = vst [vmem:[#allocation35_spill] sm:$0xff] %v7649_v41  ;;  %v7652_v1 = vpop.permute.xlu0 %1321  ;;  %v11258_v41 = vld [vmem:[#allocation46_spill] sm:$0xff] }
 0x1f1   : > { %11249 = vst [vmem:[#allocation44_spill] sm:$0xff] %v7652_v1  ;;  %v7654_v51 = vpop.permute.xlu2 %1477  ;;  %v11260_v1 = vld [vmem:[#allocation56_spill] sm:$0xff] }
 0x1f2   : > { %11250 = vst [vmem:[#allocation143_spill] sm:$0xff] %v7654_v51 }
 0x1f5   : > { %1738 = vperm.xlu1 %6699, %v11251_v35  }
 0x1f6   : > { %1748 = vperm.xlu0 %6698, %v11252_v46   ;;  %v11263_v46 = vld [vmem:[#allocation51_spill] sm:$0xff] }
 0x1f7   : > { %v7658_v47 = vpop.permute.xlu1 %1326  ;;  %1758 = vperm.xlu2 %6700, %v11254_v26  }
 0x1f8   : > { %11253 = vst [vmem:[#allocation39_spill] sm:$0xff] %v7658_v47  ;;  %v7661_v45 = vpop.permute.xlu0 %1336  ;;  %v11264_v47 = vld [vmem:[#allocation52_spill] sm:$0xff] }
 0x1f9   : > { %11255 = vst [vmem:[#allocation40_spill] sm:$0xff] %v7661_v45  ;;  %v7663_v39 = vpop.permute.xlu2 %1492  ;;  %v11266_v45 = vld [vmem:[#allocation62_spill] sm:$0xff] }
 0x1fa   : > { %11256 = vst [vmem:[#allocation50_spill] sm:$0xff] %v7663_v39 }
 0x1fd   : > { %1753 = vperm.xlu1 %6699, %v11257_v25  }
 0x1fe   : > { %1763 = vperm.xlu0 %6698, %v11258_v41   ;;  %v11269_v41 = vld [vmem:[#allocation57_spill] sm:$0xff] }
 0x1ff   : > { %v7667_v34 = vpop.permute.xlu1 %1341  ;;  %1773 = vperm.xlu2 %6700, %v11260_v1  }
 0x200   : > { %11259 = vst [vmem:[#allocation45_spill] sm:$0xff] %v7667_v34  ;;  %v7670_v51 = vpop.permute.xlu0 %1351  ;;  %v11270_v34 = vld [vmem:[#allocation58_spill] sm:$0xff] }
 0x201   : > { %11261 = vst [vmem:[#allocation46_spill] sm:$0xff] %v7670_v51  ;;  %v7672_v35 = vpop.permute.xlu2 %1507  ;;  %v11272_v51 = vld [vmem:[#allocation68_spill] sm:$0xff] }
 0x202   : > { %11262 = vst [vmem:[#allocation56_spill] sm:$0xff] %v7672_v35 }
 0x205   : > { %1768 = vperm.xlu1 %6699, %v11263_v46  }
 0x206   : > { %1778 = vperm.xlu0 %6698, %v11264_v47   ;;  %v11275_v47 = vld [vmem:[#allocation63_spill] sm:$0xff] }
 0x207   : > { %v7676_v26 = vpop.permute.xlu1 %1356  ;;  %1788 = vperm.xlu2 %6700, %v11266_v45  }
 0x208   : > { %11265 = vst [vmem:[#allocation51_spill] sm:$0xff] %v7676_v26  ;;  %v7679_v39 = vpop.permute.xlu0 %1366  ;;  %v11276_v26 = vld [vmem:[#allocation64_spill] sm:$0xff] }
 0x209   : > { %11267 = vst [vmem:[#allocation52_spill] sm:$0xff] %v7679_v39  ;;  %v7681_v25 = vpop.permute.xlu2 %1522  ;;  %v11278_v39 = vld [vmem:[#allocation74_spill] sm:$0xff] }
 0x20a   : > { %11268 = vst [vmem:[#allocation62_spill] sm:$0xff] %v7681_v25 }
 0x20d   : > { %1783 = vperm.xlu1 %6699, %v11269_v41  }
 0x20e   : > { %1793 = vperm.xlu0 %6698, %v11270_v34   ;;  %v11281_v34 = vld [vmem:[#allocation69_spill] sm:$0xff] }
 0x20f   : > { %v7685_v1 = vpop.permute.xlu1 %1371  ;;  %1803 = vperm.xlu2 %6700, %v11272_v51  }
 0x210   : > { %11271 = vst [vmem:[#allocation57_spill] sm:$0xff] %v7685_v1  ;;  %v7688_v35 = vpop.permute.xlu0 %1482  ;;  %v11282_v1 = vld [vmem:[#allocation70_spill] sm:$0xff] }
 0x211   : > { %11273 = vst [vmem:[#allocation58_spill] sm:$0xff] %v7688_v35  ;;  %v7690_v46 = vpop.permute.xlu2 %1537  ;;  %v11284_v35 = vld [vmem:[#allocation80_spill] sm:$0xff] }
 0x212   : > { %11274 = vst [vmem:[#allocation68_spill] sm:$0xff] %v7690_v46 }
 0x215   : > { %1798 = vperm.xlu1 %6699, %v11275_v47  }
 0x216   : > { %1808 = vperm.xlu0 %6698, %v11276_v26   ;;  %v11287_v26 = vld [vmem:[#allocation75_spill] sm:$0xff] }
 0x217   : > { %v7694_v45 = vpop.permute.xlu1 %1487  ;;  %1818 = vperm.xlu2 %6700, %v11278_v39  }
 0x218   : > { %11277 = vst [vmem:[#allocation63_spill] sm:$0xff] %v7694_v45  ;;  %v7697_v25 = vpop.permute.xlu0 %1497  ;;  %v11288_v45 = vld [vmem:[#allocation76_spill] sm:$0xff] }
 0x219   : > { %11279 = vst [vmem:[#allocation64_spill] sm:$0xff] %v7697_v25  ;;  %v7699_v41 = vpop.permute.xlu2 %1552  ;;  %v11290_v25 = vld [vmem:[#allocation86_spill] sm:$0xff] }
 0x21a   : > { %11280 = vst [vmem:[#allocation74_spill] sm:$0xff] %v7699_v41 }
 0x21d   : > { %1813 = vperm.xlu1 %6699, %v11281_v34  }
 0x21e   : > { %1823 = vperm.xlu0 %6698, %v11282_v1   ;;  %v11293_v1 = vld [vmem:[#allocation81_spill] sm:$0xff] }
 0x21f   : > { %v7703_v51 = vpop.permute.xlu1 %1502  ;;  %1833 = vperm.xlu2 %6700, %v11284_v35  }
 0x220   : > { %11283 = vst [vmem:[#allocation69_spill] sm:$0xff] %v7703_v51  ;;  %v7706_v46 = vpop.permute.xlu0 %1512  ;;  %v11294_v51 = vld [vmem:[#allocation82_spill] sm:$0xff] }
 0x221   : > { %11285 = vst [vmem:[#allocation70_spill] sm:$0xff] %v7706_v46  ;;  %v7708_v47 = vpop.permute.xlu2 %1567 }
 0x222   : > { %11286 = vst [vmem:[#allocation80_spill] sm:$0xff] %v7708_v47 }
 0x225   : > { %1828 = vperm.xlu1 %6699, %v11287_v26  }
 0x226   : > { %1838 = vperm.xlu0 %6698, %v11288_v45   ;;  %v11298_v45 = vld [vmem:[#allocation87_spill] sm:$0xff] }
 0x227   : > { %v7712_v39 = vpop.permute.xlu1 %1517  ;;  %1848 = vperm.xlu2 %6700, %v11290_v25  }
 0x228   : > { %11289 = vst [vmem:[#allocation75_spill] sm:$0xff] %v7712_v39  ;;  %v7715_v41 = vpop.permute.xlu0 %1527  ;;  %v11299_v39 = vld [vmem:[#allocation88_spill] sm:$0xff] }
 0x229   : > { %11291 = vst [vmem:[#allocation76_spill] sm:$0xff] %v7715_v41  ;;  %v7717_v34 = vpop.permute.xlu2 %1582  ;;  %v1970_v41 = vld [vmem:[#allocation2 + $0x78] sm:$0xff] }
 0x22a   : > { %11292 = vst [vmem:[#allocation86_spill] sm:$0xff] %v7717_v34 }
 0x22d   : > { %1843 = vperm.xlu1 %6699, %v11293_v1  }
 0x22e   : > { %1853 = vperm.xlu0 %6698, %v11294_v51   ;;  %v1733_v51 = vld [vmem:[#allocation2 + $0x18a] sm:$0xff] }
 0x22f   : > { %v7721_v35 = vpop.permute.xlu1 %1532  ;;  %1863 = vperm.xlu2 %6700, %v7429_v4  }
 0x230   : > { %11295 = vst [vmem:[#allocation81_spill] sm:$0xff] %v7721_v35  ;;  %v7724_v47 = vpop.permute.xlu0 %1542  ;;  %v11303_v35 = vld [vmem:[#allocation92_spill] sm:$0xff] }
 0x231   : > { %11296 = vst [vmem:[#allocation82_spill] sm:$0xff] %v7724_v47  ;;  %v7726_v26 = vpop.permute.xlu2 %1597 }
 0x232   : > { %11297 = vst [vmem:[#allocation144_spill] sm:$0xff] %v7726_v26 }
 0x235   : > { %1858 = vperm.xlu1 %6699, %v11298_v45  }
 0x236   : > { %1868 = vperm.xlu0 %6698, %v11299_v39   ;;  %v7745_v39 = vld [vmem:[#allocation2 + $0x182] sm:$0xff] }
 0x237   : > { %v7730_v25 = vpop.permute.xlu1 %1547  ;;  %1878 = vperm.xlu2 %6700, %v7444_v15   ;;  %11307 = vst [vmem:[#allocation148_spill] sm:$0xff] %v7745_v39  ;;  %v1966_v15 = vld [vmem:[#allocation2 + $0x48] sm:$0xff] }
 0x238   : > { %11300 = vst [vmem:[#allocation87_spill] sm:$0xff] %v7730_v25  ;;  %v7733_v34 = vpop.permute.xlu0 %1557  ;;  %v1964_v25 = vld [vmem:[#allocation2 + $0x30] sm:$0xff] }
 0x239   : > { %11301 = vst [vmem:[#allocation88_spill] sm:$0xff] %v7733_v34  ;;  %v7735_v1 = vpop.permute.xlu2 %1612  ;;  %v1969_v34 = vld [vmem:[#allocation2 + $0x68] sm:$0xff] }
 0x23a   : > { %11302 = vst [vmem:[#allocation145_spill] sm:$0xff] %v7735_v1 }
 0x23d   : > { %1873 = vperm.xlu1 %6699, %v11303_v35  }
 0x23e   : > { %1883 = vperm.xlu0 %6698, %v7433_v27  }
 0x23f   : > { %v7739_v4 = vpop.permute.xlu1 %1562  ;;  %1893 = vperm.xlu2 %6700, %v1733_v51   ;;  %v1967_v51 = vld [vmem:[#allocation2 + $0x50] sm:$0xff] }
 0x240   : > { %11304 = vst [vmem:[#allocation92_spill] sm:$0xff] %v7739_v4  ;;  %v7741_v26 = vpop.permute.xlu0 %1572  ;;  %v1965_v4 = vld [vmem:[#allocation2 + $0x38] sm:$0xff] }
 0x241   : > { %11305 = vst [vmem:[#allocation146_spill] sm:$0xff] %v7741_v26  ;;  %v7743_v45 = vpop.permute.xlu2 %1627 }
 0x242   : > { %11306 = vst [vmem:[#allocation147_spill] sm:$0xff] %v7743_v45 }
 0x245   : > { %1888 = vperm.xlu1 %6699, %v7745_v39   ;;  %v11387_v39 = vld [vmem:[#allocation15_spill] sm:$0xff] }
 0x246   : > { %2000 = vperm.xlu0 %6698, %v1964_v25   ;;  %v1968_v25 = vld [vmem:[#allocation2 + $0x60] sm:$0xff] }
 0x247   : > { %v7748_v1 = vpop.permute.xlu1 %1577  ;;  %2010 = vperm.xlu2 %6700, %v1966_v15  }
 0x248   : > { %11308 = vst [vmem:[#allocation149_spill] sm:$0xff] %v7748_v1  ;;  %v7750_v35 = vpop.permute.xlu0 %1587  ;;  %v1972_v1 = vld [vmem:[#allocation2 + $0x90] sm:$0xff] }
 0x249   : > { %11309 = vst [vmem:[#allocation150_spill] sm:$0xff] %v7750_v35  ;;  %v7752_v27 = vpop.permute.xlu2 %1743 }
 0x24a   : > { %11310 = vst [vmem:[#allocation151_spill] sm:$0xff] %v7752_v27 }
 0x24d   : > { %2005 = vperm.xlu1 %6699, %v1965_v4   ;;  %v1971_v4 = vld [vmem:[#allocation2 + $0x80] sm:$0xff] }
 0x24e   : > { %2015 = vperm.xlu0 %6698, %v1967_v51   ;;  %v1973_v51 = vld [vmem:[#allocation2 + $0x98] sm:$0xff] }
 0x24f   : > { %v7754_v45 = vpop.permute.xlu1 %1592  ;;  %2025 = vperm.xlu2 %6700, %v1969_v34  }
 0x250   : > { %11311 = vst [vmem:[#allocation152_spill] sm:$0xff] %v7754_v45  ;;  %v7756_v26 = vpop.permute.xlu0 %1602  ;;  %v1975_v45 = vld [vmem:[#allocation2 + $0xb0] sm:$0xff] }
 0x251   : > { %11312 = vst [vmem:[#allocation153_spill] sm:$0xff] %v7756_v26  ;;  %v7758_v47 = vpop.permute.xlu2 %1758 }
 0x252   : > { %11313 = vst [vmem:[#allocation154_spill] sm:$0xff] %v7758_v47 }
 0x255   : > { %2020 = vperm.xlu1 %6699, %v1968_v25   ;;  %v1976_v25 = vld [vmem:[#allocation2 + $0xc0] sm:$0xff] }
 0x256   : > { %2030 = vperm.xlu0 %6698, %v1970_v41   ;;  %v1974_v41 = vld [vmem:[#allocation2 + $0xa8] sm:$0xff] }
 0x257   : > { %v7760_v15 = vpop.permute.xlu1 %1607  ;;  %2040 = vperm.xlu2 %6700, %v1972_v1  }
 0x258   : > { %11314 = vst [vmem:[#allocation155_spill] sm:$0xff] %v7760_v15  ;;  %v7762_v35 = vpop.permute.xlu0 %1617  ;;  %v1978_v15 = vld [vmem:[#allocation2 + $0xd8] sm:$0xff] }
 0x259   : > { %11315 = vst [vmem:[#allocation156_spill] sm:$0xff] %v7762_v35  ;;  %v7764_v27 = vpop.permute.xlu2 %1773 }
 0x25a   : > { %11316 = vst [vmem:[#allocation157_spill] sm:$0xff] %v7764_v27 }
 0x25d   : > { %2035 = vperm.xlu1 %6699, %v1971_v4   ;;  %v1977_v4 = vld [vmem:[#allocation2 + $0xc8] sm:$0xff] }
 0x25e   : > { %2045 = vperm.xlu0 %6698, %v1973_v51   ;;  %v1979_v51 = vld [vmem:[#allocation2 + $0xe0] sm:$0xff] }
 0x25f   : > { %v7766_v34 = vpop.permute.xlu1 %1622  ;;  %2055 = vperm.xlu2 %6700, %v1975_v45  }
 0x260   : > { %11317 = vst [vmem:[#allocation158_spill] sm:$0xff] %v7766_v34  ;;  %v7768_v47 = vpop.permute.xlu0 %1632  ;;  %v1981_v34 = vld [vmem:[#allocation2 + $0xf8] sm:$0xff] }
 0x261   : > { %11318 = vst [vmem:[#allocation159_spill] sm:$0xff] %v7768_v47  ;;  %v7770_v26 = vpop.permute.xlu2 %1788 }
 0x262   : > { %11319 = vst [vmem:[#allocation160_spill] sm:$0xff] %v7770_v26 }
 0x265   : > { %2050 = vperm.xlu1 %6699, %v1974_v41   ;;  %v1980_v41 = vld [vmem:[#allocation2 + $0xf0] sm:$0xff] }
 0x266   : > { %2060 = vperm.xlu0 %6698, %v1976_v25   ;;  %v1982_v25 = vld [vmem:[#allocation2 + $0x108] sm:$0xff] }
 0x267   : > { %v7772_v1 = vpop.permute.xlu1 %1738  ;;  %2070 = vperm.xlu2 %6700, %v1978_v15  }
 0x268   : > { %11320 = vst [vmem:[#allocation161_spill] sm:$0xff] %v7772_v1  ;;  %v7774_v27 = vpop.permute.xlu0 %1748  ;;  %v1984_v1 = vld [vmem:[#allocation2 + $0x120] sm:$0xff] }
 0x269   : > { %11321 = vst [vmem:[#allocation162_spill] sm:$0xff] %v7774_v27  ;;  %v7776_v35 = vpop.permute.xlu2 %1803 }
 0x26a   : > { %11322 = vst [vmem:[#allocation163_spill] sm:$0xff] %v7776_v35 }
 0x26d   : > { %2065 = vperm.xlu1 %6699, %v1977_v4   ;;  %v1983_v4 = vld [vmem:[#allocation2 + $0x110] sm:$0xff] }
 0x26e   : > { %2075 = vperm.xlu0 %6698, %v1979_v51   ;;  %v1985_v51 = vld [vmem:[#allocation2 + $0x128] sm:$0xff] }
 0x26f   : > { %v7778_v45 = vpop.permute.xlu1 %1753  ;;  %2085 = vperm.xlu2 %6700, %v1981_v34  }
 0x270   : > { %11323 = vst [vmem:[#allocation164_spill] sm:$0xff] %v7778_v45  ;;  %v7780_v26 = vpop.permute.xlu0 %1763  ;;  %v1987_v45 = vld [vmem:[#allocation2 + $0x140] sm:$0xff] }
 0x271   : > { %11324 = vst [vmem:[#allocation165_spill] sm:$0xff] %v7780_v26  ;;  %v7782_v47 = vpop.permute.xlu2 %1818 }
 0x272   : > { %11325 = vst [vmem:[#allocation166_spill] sm:$0xff] %v7782_v47 }
 0x275   : > { %2080 = vperm.xlu1 %6699, %v1980_v41   ;;  %v1986_v41 = vld [vmem:[#allocation2 + $0x138] sm:$0xff] }
 0x276   : > { %2090 = vperm.xlu0 %6698, %v1982_v25   ;;  %v1988_v25 = vld [vmem:[#allocation2 + $0x150] sm:$0xff] }
 0x277   : > { %v7784_v15 = vpop.permute.xlu1 %1768  ;;  %2100 = vperm.xlu2 %6700, %v1984_v1  }
 0x278   : > { %11326 = vst [vmem:[#allocation167_spill] sm:$0xff] %v7784_v15  ;;  %v7786_v35 = vpop.permute.xlu0 %1778  ;;  %v1990_v15 = vld [vmem:[#allocation2 + $0x168] sm:$0xff] }
 0x279   : > { %11327 = vst [vmem:[#allocation168_spill] sm:$0xff] %v7786_v35  ;;  %v7788_v27 = vpop.permute.xlu2 %1833 }
 0x27a   : > { %11328 = vst [vmem:[#allocation169_spill] sm:$0xff] %v7788_v27 }
 0x27d   : > { %2095 = vperm.xlu1 %6699, %v1983_v4   ;;  %v1989_v4 = vld [vmem:[#allocation2 + $0x158] sm:$0xff] }
 0x27e   : > { %2105 = vperm.xlu0 %6698, %v1985_v51   ;;  %v1991_v51 = vld [vmem:[#allocation2 + $0x170] sm:$0xff] }
 0x27f   : > { %v7790_v34 = vpop.permute.xlu1 %1783  ;;  %2115 = vperm.xlu2 %6700, %v1987_v45  }
 0x280   : > { %11329 = vst [vmem:[#allocation170_spill] sm:$0xff] %v7790_v34  ;;  %v7792_v47 = vpop.permute.xlu0 %1793  ;;  %v2249_v34 = vld [vmem:[#allocation2 + $0x151] sm:$0xff] }
 0x281   : > { %11330 = vst [vmem:[#allocation171_spill] sm:$0xff] %v7792_v47  ;;  %v7794_v26 = vpop.permute.xlu2 %1848 }
 0x282   : > { %11331 = vst [vmem:[#allocation172_spill] sm:$0xff] %v7794_v26 }
 0x285   : > { %2110 = vperm.xlu1 %6699, %v1986_v41   ;;  %v1994_v41 = vld [vmem:[#allocation2 + $0x198] sm:$0xff] }
 0x286   : > { %2120 = vperm.xlu0 %6698, %v1988_v25   ;;  %v2225_v25 = vld [vmem:[#allocation2 + $0x31] sm:$0xff] }
 0x287   : > { %v7796_v1 = vpop.permute.xlu1 %1798  ;;  %2130 = vperm.xlu2 %6700, %v1990_v15  }
 0x288   : > { %11332 = vst [vmem:[#allocation173_spill] sm:$0xff] %v7796_v1  ;;  %v7798_v27 = vpop.permute.xlu0 %1808  ;;  %v2246_v1 = vld [vmem:[#allocation2 + $0x129] sm:$0xff] }
 0x289   : > { %11333 = vst [vmem:[#allocation174_spill] sm:$0xff] %v7798_v27  ;;  %v7800_v35 = vpop.permute.xlu2 %1863  ;;  %v2228_v27 = vld [vmem:[#allocation2 + $0x51] sm:$0xff] }
 0x28a   : > { %11334 = vst [vmem:[#allocation175_spill] sm:$0xff] %v7800_v35 }
 0x28d   : > { %2125 = vperm.xlu1 %6699, %v1989_v4  }
 0x28e   : > { %2135 = vperm.xlu0 %6698, %v1991_v51   ;;  %v1995_v51 = vld [vmem:[#allocation2 + $0x1a0] sm:$0xff] }
 0x28f   : > { %v7802_v45 = vpop.permute.xlu1 %1813  ;;  %2145 = vperm.xlu2 %6700, %v7551_v54  }
 0x290   : > { %11335 = vst [vmem:[#allocation176_spill] sm:$0xff] %v7802_v45  ;;  %v7805_v26 = vpop.permute.xlu0 %1823  ;;  %v2226_v45 = vld [vmem:[#allocation2 + $0x39] sm:$0xff] }
 0x291   : > { %11336 = vst [vmem:[#allocation177_spill] sm:$0xff] %v7805_v26  ;;  %v7807_v47 = vpop.permute.xlu2 %1878 }
 0x292   : > { %11337 = vst [vmem:[#allocation178_spill] sm:$0xff] %v7807_v47 }
 0x295   : > { %2140 = vperm.xlu1 %6699, %v7540_v57   ;;  %v2227_v57 = vld [vmem:[#allocation2 + $0x49] sm:$0xff] }
 0x296   : > { %2150 = vperm.xlu0 %6698, %v1994_v41   ;;  %v2229_v41 = vld [vmem:[#allocation2 + $0x61] sm:$0xff] }
 0x297   : > { %v7810_v15 = vpop.permute.xlu1 %1828  ;;  %2261 = vperm.xlu2 %6700, %v2225_v25  }
 0x298   : > { %11338 = vst [vmem:[#allocation179_spill] sm:$0xff] %v7810_v15  ;;  %v7812_v35 = vpop.permute.xlu0 %1838  ;;  %v2231_v15 = vld [vmem:[#allocation2 + $0x79] sm:$0xff] }
 0x299   : > { %11339 = vst [vmem:[#allocation180_spill] sm:$0xff] %v7812_v35  ;;  %v7814_v4 = vpop.permute.xlu2 %1893 }
 0x29a   : > { %11340 = vst [vmem:[#allocation181_spill] sm:$0xff] %v7814_v4 }
 0x29d   : > { %2155 = vperm.xlu1 %6699, %v1995_v51   ;;  %v2232_v51 = vld [vmem:[#allocation2 + $0x81] sm:$0xff] }
 0x29e   : > { %2266 = vperm.xlu0 %6698, %v2226_v45   ;;  %v2230_v45 = vld [vmem:[#allocation2 + $0x69] sm:$0xff] }
 0x29f   : > { %v7816_v54 = vpop.permute.xlu1 %1843  ;;  %2276 = vperm.xlu2 %6700, %v2228_v27  }
 0x2a0   : > { %11341 = vst [vmem:[#allocation182_spill] sm:$0xff] %v7816_v54  ;;  %v7818_v47 = vpop.permute.xlu0 %1853  ;;  %v2234_v54 = vld [vmem:[#allocation2 + $0x99] sm:$0xff] }
 0x2a1   : > { %11342 = vst [vmem:[#allocation183_spill] sm:$0xff] %v7818_v47  ;;  %v7820_v26 = vpop.permute.xlu2 %2010 }
 0x2a2   : > { %11343 = vst [vmem:[#allocation184_spill] sm:$0xff] %v7820_v26 }
 0x2a5   : > { %2271 = vperm.xlu1 %6699, %v2227_v57   ;;  %v2233_v57 = vld [vmem:[#allocation2 + $0x91] sm:$0xff] }
 0x2a6   : > { %2281 = vperm.xlu0 %6698, %v2229_v41   ;;  %v2235_v41 = vld [vmem:[#allocation2 + $0xa9] sm:$0xff] }
 0x2a7   : > { %v7822_v25 = vpop.permute.xlu1 %1858  ;;  %2291 = vperm.xlu2 %6700, %v2231_v15  }
 0x2a8   : > { %11344 = vst [vmem:[#allocation185_spill] sm:$0xff] %v7822_v25  ;;  %v7824_v4 = vpop.permute.xlu0 %1868  ;;  %v2237_v25 = vld [vmem:[#allocation2 + $0xc1] sm:$0xff] }
 0x2a9   : > { %11345 = vst [vmem:[#allocation186_spill] sm:$0xff] %v7824_v4  ;;  %v7826_v35 = vpop.permute.xlu2 %2025 }
 0x2aa   : > { %11346 = vst [vmem:[#allocation187_spill] sm:$0xff] %v7826_v35 }
 0x2ad   : > { %2286 = vperm.xlu1 %6699, %v2230_v45   ;;  %v2236_v45 = vld [vmem:[#allocation2 + $0xb1] sm:$0xff] }
 0x2ae   : > { %2296 = vperm.xlu0 %6698, %v2232_v51   ;;  %v2238_v51 = vld [vmem:[#allocation2 + $0xc9] sm:$0xff] }
 0x2af   : > { %v7828_v27 = vpop.permute.xlu1 %1873  ;;  %2306 = vperm.xlu2 %6700, %v2234_v54  }
 0x2b0   : > { %11347 = vst [vmem:[#allocation188_spill] sm:$0xff] %v7828_v27  ;;  %v7830_v26 = vpop.permute.xlu0 %1883  ;;  %v2240_v27 = vld [vmem:[#allocation2 + $0xe1] sm:$0xff] }
 0x2b1   : > { %11348 = vst [vmem:[#allocation189_spill] sm:$0xff] %v7830_v26  ;;  %v7832_v47 = vpop.permute.xlu2 %2040 }
 0x2b2   : > { %11349 = vst [vmem:[#allocation190_spill] sm:$0xff] %v7832_v47 }
 0x2b5   : > { %2301 = vperm.xlu1 %6699, %v2233_v57   ;;  %v2239_v57 = vld [vmem:[#allocation2 + $0xd9] sm:$0xff] }
 0x2b6   : > { %2311 = vperm.xlu0 %6698, %v2235_v41   ;;  %v2241_v41 = vld [vmem:[#allocation2 + $0xf1] sm:$0xff] }
 0x2b7   : > { %v7834_v15 = vpop.permute.xlu1 %1888  ;;  %2321 = vperm.xlu2 %6700, %v2237_v25  }
 0x2b8   : > { %11350 = vst [vmem:[#allocation191_spill] sm:$0xff] %v7834_v15  ;;  %v7836_v4 = vpop.permute.xlu0 %2000  ;;  %v2243_v15 = vld [vmem:[#allocation2 + $0x109] sm:$0xff] }
 0x2b9   : > { %11351 = vst [vmem:[#allocation192_spill] sm:$0xff] %v7836_v4  ;;  %v7838_v35 = vpop.permute.xlu2 %2055 }
 0x2ba   : > { %11352 = vst [vmem:[#allocation193_spill] sm:$0xff] %v7838_v35 }
 0x2bd   : > { %2316 = vperm.xlu1 %6699, %v2236_v45   ;;  %v2242_v45 = vld [vmem:[#allocation2 + $0xf9] sm:$0xff] }
 0x2be   : > { %2326 = vperm.xlu0 %6698, %v2238_v51   ;;  %v2244_v51 = vld [vmem:[#allocation2 + $0x111] sm:$0xff] }
 0x2bf   : > { %v7840_v54 = vpop.permute.xlu1 %2005  ;;  %2336 = vperm.xlu2 %6700, %v2240_v27  }
 0x2c0   : > { %11353 = vst [vmem:[#allocation194_spill] sm:$0xff] %v7840_v54  ;;  %v7842_v26 = vpop.permute.xlu0 %2015 }
 0x2c1   : > { %11354 = vst [vmem:[#allocation195_spill] sm:$0xff] %v7842_v26  ;;  %v7844_v47 = vpop.permute.xlu2 %2070 }
 0x2c2   : > { %11355 = vst [vmem:[#allocation196_spill] sm:$0xff] %v7844_v47 }
 0x2c5   : > { %2331 = vperm.xlu1 %6699, %v2239_v57   ;;  %v2245_v57 = vld [vmem:[#allocation2 + $0x121] sm:$0xff] }
 0x2c6   : > { %2341 = vperm.xlu0 %6698, %v2241_v41   ;;  %v2247_v41 = vld [vmem:[#allocation2 + $0x139] sm:$0xff] }
 0x2c7   : > { %v7846_v25 = vpop.permute.xlu1 %2020  ;;  %2351 = vperm.xlu2 %6700, %v2243_v15  }
 0x2c8   : > { %11356 = vst [vmem:[#allocation197_spill] sm:$0xff] %v7846_v25  ;;  %v7848_v35 = vpop.permute.xlu0 %2030  ;;  %v11385_v25 = vld [vmem:[#allocation12_spill] sm:$0xff] }
 0x2c9   : > { %11357 = vst [vmem:[#allocation198_spill] sm:$0xff] %v7848_v35  ;;  %v7850_v4 = vpop.permute.xlu2 %2085 }
 0x2ca   : > { %11358 = vst [vmem:[#allocation199_spill] sm:$0xff] %v7850_v4 }
 0x2cd   : > { %2346 = vperm.xlu1 %6699, %v2242_v45   ;;  %v2248_v45 = vld [vmem:[#allocation2 + $0x141] sm:$0xff] }
 0x2ce   : > { %2356 = vperm.xlu0 %6698, %v2244_v51   ;;  %v2250_v51 = vld [vmem:[#allocation2 + $0x159] sm:$0xff] }
 0x2cf   : > { %v7852_v27 = vpop.permute.xlu1 %2035  ;;  %2366 = vperm.xlu2 %6700, %v2246_v1  }
 0x2d0   : > { %11359 = vst [vmem:[#allocation200_spill] sm:$0xff] %v7852_v27  ;;  %v7854_v47 = vpop.permute.xlu0 %2045  ;;  %v2252_v27 = vld [vmem:[#allocation2 + $0x171] sm:$0xff] }
 0x2d1   : > { %11360 = vst [vmem:[#allocation201_spill] sm:$0xff] %v7854_v47  ;;  %v7856_v26 = vpop.permute.xlu2 %2100 }
 0x2d2   : > { %11361 = vst [vmem:[#allocation202_spill] sm:$0xff] %v7856_v26 }
 0x2d5   : > { %2361 = vperm.xlu1 %6699, %v2245_v57   ;;  %v2251_v57 = vld [vmem:[#allocation2 + $0x169] sm:$0xff] }
 0x2d6   : > { %2371 = vperm.xlu0 %6698, %v2247_v41   ;;  %v2255_v41 = vld [vmem:[#allocation2 + $0x199] sm:$0xff] }
 0x2d7   : > { %v7858_v15 = vpop.permute.xlu1 %2050  ;;  %2381 = vperm.xlu2 %6700, %v2249_v34  }
 0x2d8   : > { %11362 = vst [vmem:[#allocation203_spill] sm:$0xff] %v7858_v15  ;;  %v7860_v4 = vpop.permute.xlu0 %2060 }
 0x2d9   : > { %11363 = vst [vmem:[#allocation204_spill] sm:$0xff] %v7860_v4  ;;  %v7862_v35 = vpop.permute.xlu2 %2115 }
 0x2da   : > { %11364 = vst [vmem:[#allocation205_spill] sm:$0xff] %v7862_v35 }
 0x2dd   : > { %2376 = vperm.xlu1 %6699, %v2248_v45   ;;  %v2256_v45 = vld [vmem:[#allocation2 + $0x1a1] sm:$0xff] }
 0x2de   : > { %2386 = vperm.xlu0 %6698, %v2250_v51   ;;  %v2487_v51 = vld [vmem:[#allocation2 + $0x3a] sm:$0xff] }
 0x2df   : > { %v7864_v1 = vpop.permute.xlu1 %2065  ;;  %2396 = vperm.xlu2 %6700, %v2252_v27  }
 0x2e0   : > { %11365 = vst [vmem:[#allocation206_spill] sm:$0xff] %v7864_v1  ;;  %v7866_v26 = vpop.permute.xlu0 %2075 }
 0x2e1   : > { %11366 = vst [vmem:[#allocation207_spill] sm:$0xff] %v7866_v26  ;;  %v7868_v47 = vpop.permute.xlu2 %2130  ;;  %v2488_v26 = vld [vmem:[#allocation2 + $0x4a] sm:$0xff] }
 0x2e2   : > { %11367 = vst [vmem:[#allocation208_spill] sm:$0xff] %v7868_v47 }
 0x2e5   : > { %2391 = vperm.xlu1 %6699, %v2251_v57  }
 0x2e6   : > { %2401 = vperm.xlu0 %6698, %v7634_v40   ;;  %v2486_v40 = vld [vmem:[#allocation2 + $0x32] sm:$0xff] }
 0x2e7   : > { %v7871_v34 = vpop.permute.xlu1 %2080  ;;  %2411 = vperm.xlu2 %6700, %v2255_v41  }
 0x2e8   : > { %11368 = vst [vmem:[#allocation209_spill] sm:$0xff] %v7871_v34  ;;  %v7873_v35 = vpop.permute.xlu0 %2090  ;;  %v2490_v34 = vld [vmem:[#allocation2 + $0x62] sm:$0xff] }
 0x2e9   : > { %11369 = vst [vmem:[#allocation210_spill] sm:$0xff] %v7873_v35  ;;  %v7875_v4 = vpop.permute.xlu2 %2145 }
 0x2ea   : > { %11370 = vst [vmem:[#allocation211_spill] sm:$0xff] %v7875_v4 }
 0x2ed   : > { %2406 = vperm.xlu1 %6699, %v7645_v63   ;;  %v2489_v63 = vld [vmem:[#allocation2 + $0x52] sm:$0xff] }
 0x2ee   : > { %2416 = vperm.xlu0 %6698, %v2256_v45   ;;  %v2491_v45 = vld [vmem:[#allocation2 + $0x6a] sm:$0xff] }
 0x2ef   : > { %v7878_v27 = vpop.permute.xlu1 %2095  ;;  %2527 = vperm.xlu2 %6700, %v2487_v51   ;;  %v6701_v51 = vld [vmem:[%s11041_s1] ss:$0 sm:$0xff] }
 0x2f0   : > { %11371 = vst [vmem:[#allocation212_spill] sm:$0xff] %v7878_v27  ;;  %v7880_v47 = vpop.permute.xlu0 %2105  ;;  %v2493_v27 = vld [vmem:[#allocation2 + $0x82] sm:$0xff]  ;;  %v7918_v54 = vmul.f32 %v6701_v51, %v11385_v25 }
 0x2f1   : > { %11372 = vst [vmem:[#allocation213_spill] sm:$0xff] %v7880_v47  ;;  %v7882_v57 = vpop.permute.xlu2 %2261  ;;  %v11392_v25 = vld [vmem:[#allocation20_spill] sm:$0xff] }
 0x2f2   : > { %11373 = vst [vmem:[#allocation214_spill] sm:$0xff] %v7882_v57  ;;  %v11381_v57 = vld [vmem:[#allocation14_spill] sm:$0xff]  ;;  %v603_v13 = vmul.f32 %v6701_v51, %v11392_v25  ;;  %v11399_v25 = vld [vmem:[#allocation27_spill] sm:$0xff] }
 0x2f3   : > { %v7907_v1 = vmul.f32 %v6701_v51, %v11381_v57  ;;  %v11388_v57 = vld [vmem:[#allocation16_spill] sm:$0xff]  ;;  %v7950_v5 = vmul.f32 %v6701_v51, %v11399_v25 }
 0x2f4   : > { %v597_v33 = vmul.f32 %v6701_v51, %v11388_v57  ;;  %v7941_v57 = vmul.f32 %v6701_v51, %v11395_v12 }
 0x2f5   : > { %2522 = vperm.xlu1 %6699, %v2486_v40   ;;  %v11379_v40 = vld [vmem:[#allocation8_spill] sm:$0xff] }
 0x2f6   : > { %2532 = vperm.xlu0 %6698, %v2488_v26   ;;  %v7898_v26 = vld [vmem:[%s11041_s1 + $0x1] ss:$0 sm:$0xff] }
 0x2f7   : > { %v7884_v41 = vpop.permute.xlu1 %2110  ;;  %2542 = vperm.xlu2 %6700, %v2490_v34   ;;  %v864_v12 = vmul.f32 %v7898_v26, %v11402_v0  ;;  %v865_v42 = vmul.f32 %v7898_v26, %v11435_v37 }
 0x2f8   : > { %11374 = vst [vmem:[#allocation215_spill] sm:$0xff] %v7884_v41  ;;  %v7886_v4 = vpop.permute.xlu0 %2120  ;;  %v11380_v41 = vld [vmem:[#allocation11_spill] sm:$0xff] }
 0x2f9   : > { %11375 = vst [vmem:[#allocation216_spill] sm:$0xff] %v7886_v4  ;;  %v7888_v35 = vpop.permute.xlu2 %2276  ;;  %v7903_v4 = vmul.f32 %v6701_v51, %v11379_v40  ;;  %v2492_v40 = vld [vmem:[#allocation2 + $0x7a] sm:$0xff] }
 0x2fa   : > { %11376 = vst [vmem:[#allocation217_spill] sm:$0xff] %v7888_v35  ;;  %v594_v35 = vmul.f32 %v6701_v51, %v11380_v41  ;;  %v7924_v41 = vmul.f32 %v6701_v51, %v11387_v39  ;;  %v855_v39 = vmul.f32 %v7898_v26, %v11394_v10  ;;  %v861_v10 = vmul.f32 %v7898_v26, %v11401_v62  ;;  %v11410_v62 = vld [vmem:[#allocation37_spill] sm:$0xff] }
 0x2fb   : > { %v615_v48 = vmul.f32 %v6701_v51, %v11410_v62 }
 0x2fc   : > { %v7971_v0 = vadd.f32 %v855_v39, %v594_v35  ;;  %v11420_v35 = vld [vmem:[#allocation53_spill] sm:$0xff] }
 0x2fd   : > { %2537 = vperm.xlu1 %6699, %v2489_v63   ;;  %v7992_v39 = vmul.f32 %v6701_v51, %v11420_v35  ;;  %v2497_v35 = vld [vmem:[#allocation2 + $0xb2] sm:$0xff] }
 0x2fe   : > { %2547 = vperm.xlu0 %6698, %v2491_v45   ;;  %v11383_v45 = vld [vmem:[#allocation9_spill] sm:$0xff] }
 0x2ff   : > { %v7893_v47 = vpop.permute.xlu1 %2125  ;;  %2557 = vperm.xlu2 %6700, %v2493_v27   ;;  %v11384_v27 = vld [vmem:[#allocation10_spill] sm:$0xff]  ;;  %11411 = vst [vmem:[#allocation9_spill] sm:$0xff] %v7971_v0 }
 0x300   : > { %11377 = vst [vmem:[#allocation218_spill] sm:$0xff] %v7893_v47  ;;  %v7900_v34 = vpop.permute.xlu0 %2135  ;;  %v7912_v47 = vmul.f32 %v6701_v51, %v11383_v45  ;;  %v7915_v15 = vmul.f32 %v6701_v51, %v11384_v27  ;;  %v7929_v45 = vmul.f32 %v6701_v51, %v11390_v17  ;;  %v11391_v27 = vld [vmem:[#allocation19_spill] sm:$0xff]  ;;  %v11397_v17 = vld [vmem:[#allocation24_spill] sm:$0xff] }
 0x301   : > { %11378 = vst [vmem:[#allocation219_spill] sm:$0xff] %v7900_v34  ;;  %v7909_v63 = vpop.permute.xlu2 %2291  ;;  %v11386_v34 = vld [vmem:[#allocation13_spill] sm:$0xff]  ;;  %v7932_v14 = vmul.f32 %v6701_v51, %v11391_v27  ;;  %v7945_v59 = vmul.f32 %v6701_v51, %v11397_v17  ;;  %v858_v27 = vmul.f32 %v7898_v26, %v11398_v60  ;;  %v11404_v17 = vld [vmem:[#allocation32_spill] sm:$0xff]  ;;  %v612_v60 = vmul.f32 %v6701_v51, %v11405_v53 }
 0x302   : > { %11382 = vst [vmem:[#allocation8_spill] sm:$0xff] %v7909_v63  ;;  %v7921_v46 = vmul.f32 %v6701_v51, %v11386_v34  ;;  %v600_v63 = vmul.f32 %v6701_v51, %v11389_v19  ;;  %v7936_v34 = vmul.f32 %v6701_v51, %v11393_v16  ;;  %v11396_v19 = vld [vmem:[#allocation23_spill] sm:$0xff]  ;;  %v11400_v16 = vld [vmem:[#allocation28_spill] sm:$0xff]  ;;  %v610_v58 = vmul.f32 %v6701_v51, %v11404_v17  ;;  %v11414_v17 = vld [vmem:[#allocation42_spill] sm:$0xff] }
 0x303   : > { %v606_v3 = vmul.f32 %v6701_v51, %v11396_v19  ;;  %v609_v56 = vmul.f32 %v6701_v51, %v11400_v16  ;;  %v11403_v19 = vld [vmem:[#allocation29_spill] sm:$0xff]  ;;  %v11409_v16 = vld [vmem:[#allocation36_spill] sm:$0xff]  ;;  %v618_v53 = vmul.f32 %v6701_v51, %v11414_v17  ;;  %v7979_v36 = vadd.f32 %v858_v27, %v597_v33  ;;  %11421 = vst [vmem:[#allocation16_spill] sm:$0xff] %v7992_v39  ;;  %v11424_v27 = vld [vmem:[#allocation59_spill] sm:$0xff] }
 0x304   : > { %v7958_v61 = vmul.f32 %v6701_v51, %v11403_v19  ;;  %v7968_v50 = vmul.f32 %v6701_v51, %v11409_v16  ;;  %v7989_v62 = vadd.f32 %v861_v10, %v600_v63  ;;  %v2495_v33 = vld [vmem:[#allocation2 + $0x9a] sm:$0xff]  ;;  %v8000_v17 = vmul.f32 %v6701_v51, %v11424_v27  ;;  %v11428_v63 = vld [vmem:[#allocation65_spill] sm:$0xff] }
 0x305   : > { %2552 = vperm.xlu1 %6699, %v2492_v40   ;;  %v11406_v40 = vld [vmem:[#allocation34_spill] sm:$0xff]  ;;  %11415 = vst [vmem:[#allocation12_spill] sm:$0xff] %v7979_v36  ;;  %v11427_v36 = vld [vmem:[#allocation61_spill] sm:$0xff]  ;;  %v857_v10 = vmul.f32 %v7898_v26, %v11428_v63  ;;  %v11432_v27 = vld [vmem:[#allocation72_spill] sm:$0xff]  ;;  %v863_v63 = vmul.f32 %v7898_v26, %v11434_v38 }
 0x306   : > { %2562 = vperm.xlu0 %6698, %v2494_v23   ;;  %v7963_v55 = vmul.f32 %v6701_v51, %v11406_v40  ;;  %v11412_v23 = vld [vmem:[#allocation41_spill] sm:$0xff]  ;;  %v11416_v40 = vld [vmem:[#allocation47_spill] sm:$0xff]  ;;  %11419 = vst [vmem:[#allocation15_spill] sm:$0xff] %v7989_v62  ;;  %v11429_v62 = vld [vmem:[#allocation66_spill] sm:$0xff] }
 0x307   : > { %v7965_v25 = vpop.permute.xlu1 %2140  ;;  %2572 = vperm.xlu2 %6700, %v2496_v6   ;;  %v7974_v19 = vmul.f32 %v6701_v51, %v11412_v23  ;;  %v7982_v52 = vmul.f32 %v6701_v51, %v11416_v40  ;;  %v11417_v6 = vld [vmem:[#allocation48_spill] sm:$0xff]  ;;  %v11422_v23 = vld [vmem:[#allocation54_spill] sm:$0xff]  ;;  %11425 = vst [vmem:[#allocation18_spill] sm:$0xff] %v8000_v17  ;;  %v879_v17 = vmul.f32 %v7898_v26, %v11439_v29 }
 0x308   : > { %11407 = vst [vmem:[#allocation11_spill] sm:$0xff] %v7963_v55  ;;  %v7976_v49 = vpop.permute.xlu0 %2150  ;;  %v7995_v0 = vmul.f32 %v6701_v51, %v11422_v23  ;;  %v11426_v40 = vld [vmem:[#allocation60_spill] sm:$0xff]  ;;  %v859_v23 = vmul.f32 %v7898_v26, %v11429_v62  ;;  %v11436_v62 = vld [vmem:[#allocation79_spill] sm:$0xff] }
 0x309   : > { %11408 = vst [vmem:[#allocation14_spill] sm:$0xff] %v7965_v25  ;;  %v7985_v25 = vmul.f32 %v6701_v51, %v11417_v6  ;;  %v7987_v16 = vpop.permute.xlu2 %2306  ;;  %v856_v6 = vmul.f32 %v7898_v26, %v11426_v40  ;;  %v2499_v40 = vld [vmem:[#allocation2 + $0xca] sm:$0xff]  ;;  %v876_v32 = vmul.f32 %v7898_v26, %v11436_v62  ;;  %v8036_v62 = vadd.f32 %v857_v10, %v7921_v46 }
 0x30a   : > { %11413 = vst [vmem:[#allocation10_spill] sm:$0xff] %v7976_v49  ;;  %v7997_v49 = vadd.f32 %v864_v12, %v603_v13  ;;  %v870_v13 = vmul.f32 %v7898_v26, %v11430_v44  ;;  %v11431_v12 = vld [vmem:[#allocation71_spill] sm:$0xff]  ;;  %v8072_v10 = vadd.f32 %v879_v17, %v618_v53 }
 0x30b   : > { %11418 = vst [vmem:[#allocation13_spill] sm:$0xff] %v7987_v16  ;;  %v867_v16 = vmul.f32 %v7898_v26, %v11427_v36  ;;  %v860_v51 = vmul.f32 %v7898_v26, %v11431_v12  ;;  %v873_v36 = vmul.f32 %v7898_v26, %v11433_v43  ;;  %v11437_v44 = vld [vmem:[#allocation83_spill] sm:$0xff]  ;;  %v11440_v43 = vld [vmem:[#allocation89_spill] sm:$0xff]  ;;  %v888_v38 = vadd.f32 %v856_v6, %v7907_v1 }
 0x30c   : > { %11423 = vst [vmem:[#allocation17_spill] sm:$0xff] %v7997_v49  ;;  %v862_v49 = vmul.f32 %v7898_v26, %v11432_v27  ;;  %v866_v12 = vmul.f32 %v7898_v26, %v11437_v44  ;;  %v868_v27 = vmul.f32 %v7898_v26, %v11438_v31  ;;  %v869_v55 = vmul.f32 %v7898_v26, %v11440_v43  ;;  %v2502_v17 = vld [vmem:[#allocation2 + $0xf2] sm:$0xff] }
 0x30d   : > { %2567 = vperm.xlu1 %6699, %v2495_v33   ;;  %v8033_v37 = vadd.f32 %v867_v16, %v606_v3  ;;  %v11441_v33 = vld [vmem:[#allocation90_spill] sm:$0xff]  ;;  %v891_v31 = vadd.f32 %v859_v23, %v7903_v4  ;;  %v8043_v29 = vadd.f32 %v870_v13, %v609_v56  ;;  %v8046_v43 = vadd.f32 %v860_v51, %v7912_v47  ;;  %v8052_v3 = vld [vmem:[%s11041_s1 + $0x2] ss:$0 sm:$0xff]  ;;  %v11444_v23 = vld [vmem:[#allocation91_spill] sm:$0xff] }
 0x30e   : > { %2577 = vperm.xlu0 %6698, %v2497_v35   ;;  %v871_v44 = vmul.f32 %v7898_v26, %v11441_v33  ;;  %v894_v1 = vadd.f32 %v862_v49, %v7932_v14  ;;  %v8056_v16 = vadd.f32 %v873_v36, %v612_v60  ;;  %v8059_v6 = vadd.f32 %v863_v63, %v7915_v15  ;;  %v2498_v35 = vld [vmem:[#allocation2 + $0xc2] sm:$0xff]  ;;  %v2500_v13 = vld [vmem:[#allocation2 + $0xda] sm:$0xff] }
 0x30f   : > { %v8040_v39 = vpop.permute.xlu1 %2155  ;;  %2587 = vperm.xlu2 %6700, %v2499_v40   ;;  %v897_v56 = vadd.f32 %v865_v42, %v7941_v57  ;;  %v8062_v4 = vadd.f32 %v876_v32, %v615_v48  ;;  %v8067_v49 = vadd.f32 %v866_v12, %v7918_v54  ;;  %v8070_v14 = vadd.f32 %v868_v27, %v7950_v5  ;;  %v11445_v42 = vld [vmem:[#allocation93_spill] sm:$0xff]  ;;  %v11446_v57 = vld [vmem:[#allocation94_spill] sm:$0xff]  ;;  %v11447_v5 = vld [vmem:[#allocation95_spill] sm:$0xff] }
 0x310   : > { %11442 = vst [vmem:[#allocation19_spill] sm:$0xff] %v8040_v39  ;;  %v8054_v46 = vpop.permute.xlu0 %2266  ;;  %v8075_v60 = vadd.f32 %v869_v55, %v7924_v41  ;;  %v8077_v15 = vadd.f32 %v871_v44, %v610_v58  ;;  %v882_v32 = vmul.f32 %v7898_v26, %v11444_v23  ;;  %v872_v48 = vmul.f32 %v7898_v26, %v11445_v42  ;;  %v2501_v23 = vld [vmem:[#allocation2 + $0xe2] sm:$0xff] }
 0x311   : > { %v8064_v47 = vpop.permute.xlu2 %2321  ;;  %v874_v54 = vmul.f32 %v7898_v26, %v11446_v57  ;;  %v885_v53 = vmul.f32 %v7898_v26, %v11447_v5  ;;  %v875_v55 = vmul.f32 %v7898_v26, %v7448_v21  ;;  %v877_v58 = vmul.f32 %v7898_v26, %v7451_v18  ;;  %v11456_v5 = vld [vmem:[#allocation100_spill] sm:$0xff]  ;;  %v11487_v39 = vld [vmem:[#allocation125_spill] sm:$0xff] }
 0x312   : > { %11443 = vst [vmem:[#allocation20_spill] sm:$0xff] %v8064_v47  ;;  %v1117_v41 = vmul.f32 %v8052_v3, %v7453_v28  ;;  %v878_v51 = vmul.f32 %v7898_v26, %v7457_v2  ;;  %v880_v40 = vmul.f32 %v7898_v26, %v7460_v30  ;;  %v1120_v36 = vmul.f32 %v8052_v3, %v7462_v11 }
 0x313   : > { %v881_v63 = vmul.f32 %v7898_v26, %v7466_v7  ;;  %v883_v18 = vmul.f32 %v7898_v26, %v7469_v8  ;;  %v1123_v21 = vmul.f32 %v8052_v3, %v7471_v9  ;;  %v884_v28 = vmul.f32 %v7898_v26, %v7475_v20 }
 0x314   : > { %v886_v2 = vmul.f32 %v7898_v26, %v7478_v22  ;;  %v8110_v30 = vadd.f32 %v882_v32, %v7985_v25  ;;  %v8113_v11 = vadd.f32 %v872_v48, %v7929_v45  ;;  %v906_v7 = vadd.f32 %v874_v54, %v7968_v50  ;;  %v11453_v32 = vld [vmem:[#allocation97_spill] sm:$0xff]  ;;  %v11454_v48 = vld [vmem:[#allocation98_spill] sm:$0xff]  ;;  %v11455_v54 = vld [vmem:[#allocation99_spill] sm:$0xff] }
 0x315   : > { %2582 = vperm.xlu1 %6699, %v2498_v35   ;;  %v1126_v8 = vmul.f32 %v8052_v3, %v7480_v24  ;;  %v8121_v9 = vadd.f32 %v885_v53, %v7995_v0  ;;  %v8124_v20 = vadd.f32 %v875_v55, %v7936_v34  ;;  %v909_v22 = vadd.f32 %v877_v58, %v7974_v19  ;;  %v11449_v34 = vld [vmem:[#allocation16_spill] sm:$0xff]  ;;  %v11451_v35 = vld [vmem:[#allocation18_spill] sm:$0xff]  ;;  %v11457_v55 = vld [vmem:[#allocation101_spill] sm:$0xff] }
 0x316   : > { %2592 = vperm.xlu0 %6698, %v2500_v13   ;;  %v8127_v26 = vadd.f32 %v1117_v41, %v888_v38  ;;  %v8132_v50 = vadd.f32 %v878_v51, %v7945_v59  ;;  %v912_v24 = vadd.f32 %v880_v40, %v7982_v52  ;;  %v8135_v25 = vadd.f32 %v1120_v36, %v891_v31  ;;  %v11450_v38 = vld [vmem:[#allocation11_spill] sm:$0xff]  ;;  %v11452_v31 = vld [vmem:[#allocation96_spill] sm:$0xff]  ;;  %v11458_v58 = vld [vmem:[#allocation102_spill] sm:$0xff] }
 0x317   : > { %v8118_v12 = vpop.permute.xlu1 %2271  ;;  %2602 = vperm.xlu2 %6700, %v2502_v17   ;;  %v8138_v27 = vadd.f32 %v881_v63, %v7958_v61  ;;  %v8143_v33 = vadd.f32 %v883_v18, %v11449_v34  ;;  %v8145_v19 = vadd.f32 %v1123_v21, %v894_v1  ;;  %v8148_v44 = vadd.f32 %v884_v28, %v11450_v38  ;;  %v2503_v1 = vld [vmem:[#allocation2 + $0xfa] sm:$0xff]  ;;  %v2505_v17 = vld [vmem:[#allocation2 + $0x112] sm:$0xff]  ;;  %v11461_v18 = vld [vmem:[#allocation105_spill] sm:$0xff] }
 0x318   : > { %v8129_v45 = vpop.permute.xlu0 %2281  ;;  %v8151_v59 = vadd.f32 %v886_v2, %v11451_v35  ;;  %v8153_v52 = vadd.f32 %v1126_v8, %v897_v56  ;;  %v1116_v61 = vmul.f32 %v8052_v3, %v11452_v31  ;;  %v1118_v42 = vmul.f32 %v8052_v3, %v11453_v32  ;;  %v11459_v51 = vld [vmem:[#allocation103_spill] sm:$0xff]  ;;  %v11460_v36 = vld [vmem:[#allocation104_spill] sm:$0xff]  ;;  %v11462_v28 = vld [vmem:[#allocation106_spill] sm:$0xff] }
 0x319   : > { %v8140_v0 = vpop.permute.xlu2 %2336  ;;  %v1129_v57 = vmul.f32 %v8052_v3, %v11454_v48  ;;  %v1119_v13 = vmul.f32 %v8052_v3, %v11455_v54  ;;  %v1121_v53 = vmul.f32 %v8052_v3, %v11456_v5  ;;  %v1132_v56 = vmul.f32 %v8052_v3, %v11457_v55  ;;  %v11463_v8 = vld [vmem:[#allocation107_spill] sm:$0xff]  ;;  %v11464_v38 = vld [vmem:[#allocation108_spill] sm:$0xff]  ;;  %v11465_v31 = vld [vmem:[#allocation109_spill] sm:$0xff] }
 0x31a   : > { %11448 = vst [vmem:[#allocation21_spill] sm:$0xff] %v8140_v0  ;;  %v1122_v41 = vmul.f32 %v8052_v3, %v11458_v58  ;;  %v1124_v40 = vmul.f32 %v8052_v3, %v11459_v51  ;;  %v1135_v63 = vmul.f32 %v8052_v3, %v11460_v36  ;;  %v1125_v21 = vmul.f32 %v8052_v3, %v11461_v18  ;;  %v11466_v48 = vld [vmem:[#allocation110_spill] sm:$0xff]  ;;  %v11467_v5 = vld [vmem:[#allocation9_spill] sm:$0xff]  ;;  %v11468_v51 = vld [vmem:[#allocation111_spill] sm:$0xff] }
 0x31b   : > { %v1127_v2 = vmul.f32 %v8052_v3, %v11462_v28  ;;  %v1138_v34 = vmul.f32 %v8052_v3, %v11463_v8  ;;  %v1128_v35 = vmul.f32 %v8052_v3, %v11464_v38  ;;  %v1130_v32 = vmul.f32 %v8052_v3, %v11465_v31  ;;  %v11470_v28 = vld [vmem:[#allocation12_spill] sm:$0xff] }
 0x31c   : > { %v1141_v54 = vmul.f32 %v8052_v3, %v11466_v48  ;;  %v8186_v55 = vadd.f32 %v1116_v61, %v11467_v5  ;;  %v1150_v58 = vadd.f32 %v1118_v42, %v8036_v62  ;;  %v1131_v36 = vmul.f32 %v8052_v3, %v11468_v51  ;;  %v11471_v61 = vld [vmem:[#allocation15_spill] sm:$0xff] }
 0x31d   : > { %2597 = vperm.xlu1 %6699, %v2501_v23   ;;  %v8190_v23 = vadd.f32 %v1129_v57, %v8070_v14  ;;  %v8197_v8 = vadd.f32 %v1119_v13, %v11470_v28  ;;  %v1153_v38 = vadd.f32 %v1121_v53, %v8046_v43  ;;  %v8204_v31 = vadd.f32 %v1122_v41, %v11471_v61  ;;  %v11472_v57 = vld [vmem:[#allocation17_spill] sm:$0xff]  ;;  %v8220_v43 = vld [vmem:[%s11041_s1 + $0x3] ss:$0 sm:$0xff]  ;;  %v2508_v51 = vld [vmem:[#allocation2 + $0x13a] sm:$0xff] }
 0x31e   : > { %2607 = vperm.xlu0 %6698, %v2503_v1   ;;  %v8201_v1 = vadd.f32 %v1132_v56, %v8077_v15  ;;  %v1156_v14 = vadd.f32 %v1124_v40, %v8059_v6  ;;  %v8209_v42 = vadd.f32 %v1135_v63, %v906_v7  ;;  %v8212_v48 = vadd.f32 %v1125_v21, %v11472_v57  ;;  %v2504_v41 = vld [vmem:[#allocation2 + $0x10a] sm:$0xff]  ;;  %v11482_v61 = vld [vmem:[#allocation120_spill] sm:$0xff] }
 0x31f   : > { %v8194_v18 = vpop.permute.xlu1 %2286  ;;  %2617 = vperm.xlu2 %6700, %v2505_v17   ;;  %v8215_v13 = vadd.f32 %v1127_v2, %v8067_v49  ;;  %v8224_v53 = vadd.f32 %v1138_v34, %v909_v22  ;;  %v8227_v56 = vadd.f32 %v1128_v35, %v8033_v37  ;;  %v8230_v6 = vadd.f32 %v1130_v32, %v8075_v60  ;;  %v11474_v17 = vld [vmem:[#allocation112_spill] sm:$0xff]  ;;  %v11475_v63 = vld [vmem:[#allocation113_spill] sm:$0xff]  ;;  %v11476_v22 = vld [vmem:[#allocation114_spill] sm:$0xff] }
 0x320   : > { %11469 = vst [vmem:[#allocation38_spill] sm:$0xff] %v8194_v18  ;;  %v8206_v62 = vpop.permute.xlu0 %2296  ;;  %v8232_v7 = vadd.f32 %v1141_v54, %v912_v24  ;;  %v8235_v49 = vadd.f32 %v1131_v36, %v8043_v29  ;;  %v1133_v40 = vmul.f32 %v8052_v3, %v11474_v17  ;;  %v1144_v21 = vmul.f32 %v8052_v3, %v11475_v63  ;;  %v2506_v37 = vld [vmem:[#allocation2 + $0x122] sm:$0xff]  ;;  %v11477_v34 = vld [vmem:[#allocation115_spill] sm:$0xff]  ;;  %v11480_v54 = vld [vmem:[#allocation118_spill] sm:$0xff] }
 0x321   : > { %v8222_v15 = vpop.permute.xlu2 %2351  ;;  %v1134_v2 = vmul.f32 %v8052_v3, %v11476_v22  ;;  %v1136_v60 = vmul.f32 %v8052_v3, %v11477_v34  ;;  %v11478_v35 = vld [vmem:[#allocation116_spill] sm:$0xff]  ;;  %v11479_v32 = vld [vmem:[#allocation117_spill] sm:$0xff]  ;;  %v1139_v5 = vmul.f32 %v8052_v3, %v11480_v54  ;;  %v11481_v36 = vld [vmem:[#allocation119_spill] sm:$0xff]  ;;  %v1140_v57 = vmul.f32 %v8052_v3, %v11482_v61 }
 0x322   : > { %11473 = vst [vmem:[#allocation22_spill] sm:$0xff] %v8222_v15  ;;  %v1147_v24 = vmul.f32 %v8052_v3, %v11478_v35  ;;  %v1137_v29 = vmul.f32 %v8052_v3, %v11479_v32  ;;  %v1379_v28 = vmul.f32 %v8220_v43, %v11481_v36  ;;  %v11483_v17 = vld [vmem:[#allocation121_spill] sm:$0xff]  ;;  %v11484_v22 = vld [vmem:[#allocation122_spill] sm:$0xff]  ;;  %v11485_v35 = vld [vmem:[#allocation123_spill] sm:$0xff]  ;;  %v1385_v0 = vmul.f32 %v8220_v43, %v11487_v39 }
 0x323   : > { %v1142_v63 = vmul.f32 %v8052_v3, %v11483_v17  ;;  %v1382_v34 = vmul.f32 %v8220_v43, %v11484_v22  ;;  %v1143_v32 = vmul.f32 %v8052_v3, %v11485_v35  ;;  %v11486_v15 = vld [vmem:[#allocation124_spill] sm:$0xff]  ;;  %v11488_v36 = vld [vmem:[#allocation126_spill] sm:$0xff]  ;;  %v1165_v61 = vadd.f32 %v1133_v40, %v8113_v11  ;;  %v11489_v22 = vld [vmem:[#allocation127_spill] sm:$0xff] }
 0x324   : > { %v1145_v54 = vmul.f32 %v8052_v3, %v11486_v15  ;;  %v1146_v47 = vmul.f32 %v8052_v3, %v11488_v36  ;;  %v8269_v17 = vadd.f32 %v1144_v21, %v8143_v33  ;;  %v1377_v35 = vmul.f32 %v8220_v43, %v11489_v22  ;;  %v11502_v22 = vld [vmem:[#allocation137_spill] sm:$0xff] }
 0x325   : > { %2612 = vperm.xlu1 %6699, %v2504_v41   ;;  %v8272_v41 = vadd.f32 %v1134_v2, %v8056_v16  ;;  %v1168_v39 = vadd.f32 %v1136_v60, %v8124_v20  ;;  %v8280_v15 = vadd.f32 %v1147_v24, %v8151_v59  ;;  %v8283_v3 = vadd.f32 %v1137_v29, %v8062_v4  ;;  %v11493_v60 = vld [vmem:[#allocation129_spill] sm:$0xff] }
 0x326   : > { %2622 = vperm.xlu0 %6698, %v2506_v37   ;;  %v1171_v11 = vadd.f32 %v1139_v5, %v8132_v50  ;;  %v8288_v16 = vadd.f32 %v1379_v28, %v1150_v58  ;;  %v8291_v40 = vadd.f32 %v1140_v57, %v8072_v10  ;;  %v8294_v21 = vadd.f32 %v1142_v63, %v8138_v27  ;;  %v2507_v10 = vld [vmem:[#allocation2 + $0x12a] sm:$0xff]  ;;  %v11492_v27 = vld [vmem:[#allocation128_spill] sm:$0xff]  ;;  %v11495_v5 = vld [vmem:[#allocation131_spill] sm:$0xff] }
 0x327   : > { %v8276_v18 = vpop.permute.xlu1 %2301  ;;  %2632 = vperm.xlu2 %6700, %v2508_v51   ;;  %v8296_v2 = vadd.f32 %v1382_v34, %v1153_v38  ;;  %v8301_v59 = vadd.f32 %v1143_v32, %v8110_v30  ;;  %v8304_v4 = vadd.f32 %v1145_v54, %v8148_v44  ;;  %v8306_v50 = vadd.f32 %v1385_v0, %v1156_v14  ;;  %v11494_v30 = vld [vmem:[#allocation130_spill] sm:$0xff]  ;;  %v2509_v44 = vld [vmem:[#allocation2 + $0x142] sm:$0xff]  ;;  %v11499_v63 = vld [vmem:[#allocation135_spill] sm:$0xff] }
 0x328   : > { %v8286_v33 = vpop.permute.xlu0 %2311  ;;  %v8309_v58 = vadd.f32 %v1146_v47, %v8121_v9  ;;  %v8312_v37 = vadd.f32 %v1377_v35, %v8186_v55  ;;  %v1388_v38 = vmul.f32 %v8220_v43, %v11492_v27  ;;  %v1378_v24 = vmul.f32 %v8220_v43, %v11493_v60  ;;  %v11496_v14 = vld [vmem:[#allocation132_spill] sm:$0xff]  ;;  %v11497_v55 = vld [vmem:[#allocation133_spill] sm:$0xff]  ;;  %v11498_v28 = vld [vmem:[#allocation134_spill] sm:$0xff] }
 0x329   : > { %v8298_v20 = vpop.permute.xlu2 %2366  ;;  %v1380_v29 = vmul.f32 %v8220_v43, %v11494_v30  ;;  %v1391_v0 = vmul.f32 %v8220_v43, %v11495_v5  ;;  %v1381_v47 = vmul.f32 %v8220_v43, %v11496_v14  ;;  %v2511_v9 = vld [vmem:[#allocation2 + $0x15a] sm:$0xff]  ;;  %v1383_v51 = vmul.f32 %v8220_v43, %v11497_v55  ;;  %v11503_v27 = vld [vmem:[#allocation138_spill] sm:$0xff]  ;;  %v11506_v55 = vld [vmem:[#allocation25_spill] sm:$0xff] }
 0x32a   : > { %11490 = vst [vmem:[#allocation23_spill] sm:$0xff] %v8298_v20  ;;  %v1394_v57 = vmul.f32 %v8220_v43, %v11498_v28  ;;  %v1384_v34 = vmul.f32 %v8220_v43, %v11499_v63  ;;  %v11500_v32 = vmov 0.0   ;;  %v11501_v54 = vld [vmem:[#allocation136_spill] sm:$0xff]  ;;  %v1397_v35 = vmul.f32 %v8220_v43, %v11502_v22  ;;  %v11504_v30 = vld [vmem:[#allocation139_spill] sm:$0xff] }
 0x32b   : > { %11491 = vst [vmem:[#allocation24_spill] sm:$0xff] %v8309_v58  ;;  %v1386_v36 = vmul.f32 %v8220_v43, %v11501_v54  ;;  %v1387_v60 = vmul.f32 %v8220_v43, %v11503_v27  ;;  %v1389_v5 = vmul.f32 %v8220_v43, %v11504_v30  ;;  %v1390_v28 = vmul.f32 %v8220_v43, %v11506_v55  ;;  %v11507_v27 = vld [vmem:[#allocation26_spill] sm:$0xff] }
 0x32c   : > { %2921 = vst.msk [vmem:[#allocation3 + $0x20] sm:$0xff] %vm2915_vm2, %v11500_v32  ;;  %v8354_v54 = vadd.f32 %v1378_v24, %v8127_v26  ;;  %v1412_v22 = vadd.f32 %v1380_v29, %v8197_v8  ;;  %v1392_v30 = vmul.f32 %v8220_v43, %v11507_v27  ;;  %v8367_v55 = vadd.f32 %v1381_v47, %v8135_v25  ;;  %v8375_v8 = vld [vmem:[%s11041_s1 + $0x4] ss:$0 sm:$0xff] }
 0x32d   : > { %2627 = vperm.xlu1 %6699, %v2507_v10   ;;  %2922 = vst.msk [vmem:[#allocation3 + $0x28] sm:$0x3] %vm2918_vm3, %v11500_v32  ;;  %v11505_v10 = vld [vmem:[#allocation140_spill] sm:$0xff]  ;;  %v8370_v26 = vadd.f32 %v1394_v57, %v1165_v61  ;;  %v1418_v25 = vadd.f32 %v1386_v36, %v8212_v48  ;;  %v8385_v24 = vadd.f32 %v1397_v35, %v1168_v39  ;;  %v2510_v61 = vld [vmem:[#allocation2 + $0x152] sm:$0xff]  ;;  %v2512_v39 = vld [vmem:[#allocation2 + $0x16a] sm:$0xff] }
 0x32e   : > { %2637 = vperm.xlu0 %6698, %v2509_v44   ;;  %v1400_v14 = vmul.f32 %v8220_v43, %v11505_v10  ;;  %2916 = vst.msk [vmem:[#allocation3] sm:$0xff] %vm2915_vm2, %v11500_v32  ;;  %v8351_v44 = vadd.f32 %v1388_v38, %v8215_v13  ;;  %v1415_v13 = vadd.f32 %v1383_v51, %v8204_v31  ;;  %v11510_v51 = vld [vmem:[#allocation30_spill] sm:$0xff]  ;;  %v11513_v36 = vld [vmem:[#allocation35_spill] sm:$0xff] }
 0x32f   : > { %v8346_v63 = vpop.permute.xlu1 %2316  ;;  %2647 = vperm.xlu2 %6700, %v2511_v9   ;;  %2917 = vst.msk [vmem:[#allocation3 + $0x8] sm:$0xff] %vm2915_vm2, %v11500_v32  ;;  %v8364_v9 = vadd.f32 %v1391_v0, %v8230_v6  ;;  %v8382_v6 = vadd.f32 %v1384_v34, %v8145_v19  ;;  %v8388_v31 = vadd.f32 %v1387_v60, %v8153_v52  ;;  %v11509_v19 = vld [vmem:[#allocation141_spill] sm:$0xff]  ;;  %v11512_v34 = vld [vmem:[#allocation142_spill] sm:$0xff]  ;;  %v11514_v60 = vld [vmem:[#allocation44_spill] sm:$0xff] }
 0x330   : > { %v8359_v10 = vpop.permute.xlu0 %2326  ;;  %2919 = vst.msk [vmem:[#allocation3 + $0x10] sm:$0x3] %vm2918_vm3, %v11500_v32  ;;  %v8393_v29 = vadd.f32 %v1389_v5, %v8227_v56  ;;  %v8395_v0 = vadd.f32 %v1400_v14, %v1171_v11  ;;  %v8398_v47 = vadd.f32 %v1390_v28, %v8190_v23  ;;  %v1403_v48 = vmul.f32 %v8220_v43, %v11509_v19  ;;  %v11511_v56 = vld [vmem:[#allocation31_spill] sm:$0xff] }
 0x331   : > { %v8377_v38 = vpop.permute.xlu2 %2381  ;;  %2920 = vst.msk [vmem:[#allocation3 + $0x18] sm:$0xff] %vm2915_vm2, %v11500_v32  ;;  %v8405_v52 = vadd.f32 %v1392_v30, %v8235_v49  ;;  %v1393_v57 = vmul.f32 %v8220_v43, %v11510_v51  ;;  %v1395_v11 = vmul.f32 %v8220_v43, %v11511_v56  ;;  %v1406_v23 = vmul.f32 %v8220_v43, %v11512_v34  ;;  %v11515_v49 = vld [vmem:[#allocation143_spill] sm:$0xff]  ;;  %v11517_v30 = vld [vmem:[#allocation40_spill] sm:$0xff]  ;;  %v11518_v51 = vld [vmem:[#allocation50_spill] sm:$0xff] }
 0x332   : > { %11508 = vst [vmem:[#allocation43_spill] sm:$0xff] %v8377_v38  ;;  %v1396_v35 = vmul.f32 %v8220_v43, %v11513_v36  ;;  %v1398_v5 = vmul.f32 %v8220_v43, %v11514_v60  ;;  %v1638_v14 = vmul.f32 %v8375_v8, %v11515_v49  ;;  %v11516_v28 = vld [vmem:[#allocation39_spill] sm:$0xff]  ;;  %v1401_v19 = vmul.f32 %v8220_v43, %v11517_v30  ;;  %v11519_v34 = vld [vmem:[#allocation45_spill] sm:$0xff]  ;;  %v11521_v49 = vld [vmem:[#allocation56_spill] sm:$0xff] }
 0x333   : > { %2923 = vst.msk [vmem:[#allocation3 + $0x30] sm:$0xff] %vm2915_vm2, %v11500_v32  ;;  %v1399_v27 = vmul.f32 %v8220_v43, %v11516_v28  ;;  %v1641_v56 = vmul.f32 %v8375_v8, %v11518_v51  ;;  %v1402_v36 = vmul.f32 %v8220_v43, %v11519_v34  ;;  %v1644_v58 = vmul.f32 %v8375_v8, %v11521_v49  ;;  %v11523_v38 = vld [vmem:[#allocation148_spill] sm:$0xff] }
 0x334   : > { %2924 = vst.msk [vmem:[#allocation3 + $0x38] sm:$0xff] %vm2915_vm2, %v11500_v32  ;;  %v8446_v30 = vadd.f32 %v1393_v57, %v8201_v1  ;;  %v8449_v51 = vadd.f32 %v1395_v11, %v8272_v41  ;;  %v8452_v34 = vadd.f32 %v1406_v23, %v8304_v4  ;;  %v11526_v57 = vld [vmem:[#allocation62_spill] sm:$0xff]  ;;  %v8473_v4 = vadd.f32 %v1638_v14, %v8312_v37  ;;  %v11528_v23 = vld [vmem:[#allocation57_spill] sm:$0xff] }
 0x335   : > { %2642 = vperm.xlu1 %6699, %v2510_v61   ;;  %2925 = vst.msk [vmem:[#allocation3 + $0x40] sm:$0x3] %vm2918_vm3, %v11500_v32  ;;  %v11520_v61 = vld [vmem:[#allocation46_spill] sm:$0xff]  ;;  %v1647_v41 = vmul.f32 %v8375_v8, %v11526_v57  ;;  %v8485_v49 = vadd.f32 %v1641_v56, %v1412_v22  ;;  %v11533_v22 = vld [vmem:[#allocation68_spill] sm:$0xff] }
 0x336   : > { %2652 = vperm.xlu0 %6698, %v2512_v39   ;;  %2926 = vst.msk [vmem:[#allocation3 + $0x48] sm:$0xff] %vm2915_vm2, %v11500_v32  ;;  %v1404_v60 = vmul.f32 %v8220_v43, %v11520_v61  ;;  %v8443_v39 = vadd.f32 %v1403_v48, %v8294_v21  ;;  %v8462_v21 = vadd.f32 %v1398_v5, %v8283_v3  ;;  %v11525_v48 = vld [vmem:[#allocation51_spill] sm:$0xff] }
 0x337   : > { %v8437_v28 = vpop.permute.xlu1 %2331  ;;  %2662 = vperm.xlu2 %6700, %v11523_v38   ;;  %2927 = vst.msk [vmem:[#allocation3 + $0x50] sm:$0xff] %vm2915_vm2, %v11500_v32  ;;  %v8459_v38 = vadd.f32 %v1396_v35, %v8209_v42  ;;  %v1405_v1 = vmul.f32 %v8220_v43, %v11525_v48  ;;  %v8476_v42 = vadd.f32 %v1399_v27, %v8224_v53  ;;  %v2513_v5 = vld [vmem:[#allocation2 + $0x172] sm:$0xff] }
 0x338   : > { %11522 = vst [vmem:[#allocation27_spill] sm:$0xff] %v8437_v28  ;;  %v8454_v61 = vpop.permute.xlu0 %2341  ;;  %v8479_v3 = vadd.f32 %v1401_v19, %v8291_v40  ;;  %v1408_v35 = vmul.f32 %v8220_v43, %v11528_v23  ;;  %v8488_v48 = vadd.f32 %v1402_v36, %v8232_v7  ;;  %v8491_v37 = vadd.f32 %v1404_v60, %v8301_v59  ;;  %v11530_v40 = vld [vmem:[#allocation52_spill] sm:$0xff]  ;;  %v11532_v27 = vld [vmem:[#allocation58_spill] sm:$0xff]  ;;  %v11534_v7 = vld [vmem:[#allocation63_spill] sm:$0xff] }
 0x339   : > { %11524 = vst [vmem:[#allocation28_spill] sm:$0xff] %v8452_v34  ;;  %v8468_v11 = vpop.permute.xlu2 %2396  ;;  %v8493_v53 = vadd.f32 %v1644_v58, %v1415_v13  ;;  %v8499_v14 = vmul.f32 %v8220_v43, %v11530_v40  ;;  %v1639_v19 = vmul.f32 %v8375_v8, %v11532_v27  ;;  %v1650_v56 = vmul.f32 %v8375_v8, %v11533_v22  ;;  %v2517_v59 = vld [vmem:[#allocation2 + $0x1a2] sm:$0xff]  ;;  %v11536_v23 = vld [vmem:[#allocation74_spill] sm:$0xff] }
 0x33a   : > { %2928 = vst.msk [vmem:[#allocation3 + $0x58] sm:$0x3] %vm2918_vm3, %v11500_v32  ;;  %v1640_v36 = vmul.f32 %v8375_v8, %v11534_v7  ;;  %v8510_v58 = vadd.f32 %v1405_v1, %v8269_v17  ;;  %v8512_v13 = vadd.f32 %v1647_v41, %v1418_v25  ;;  %v11535_v43 = vld [vmem:[#allocation64_spill] sm:$0xff]  ;;  %v8519_v57 = vadd.f32 %v1408_v35, %v8280_v15  ;;  %v11537_v27 = vld [vmem:[#allocation69_spill] sm:$0xff]  ;;  %v11538_v1 = vld [vmem:[#allocation70_spill] sm:$0xff] }
 0x33b   : > { %11527 = vst [vmem:[#allocation49_spill] sm:$0xff] %v8468_v11  ;;  %v1642_v60 = vmul.f32 %v8375_v8, %v11535_v43  ;;  %v1653_v40 = vmul.f32 %v8375_v8, %v11536_v23  ;;  %v1643_v22 = vmul.f32 %v8375_v8, %v11537_v27  ;;  %v8528_v17 = vld [vmem:[%s11041_s1 + $0x5] ss:$0 sm:$0xff]  ;;  %v6714_v25 = vld [vmem:[#allocation2 + $0x18a] sm:$0xff]  ;;  %v1645_v15 = vmul.f32 %v8375_v8, %v11538_v1  ;;  %v11548_v11 = vld [vmem:[#allocation151_spill] sm:$0xff] }
 0x33c   : > { %2929 = vst.msk [vmem:[#allocation3 + $0x60] sm:$0xff] %vm2915_vm2, %v11500_v32  ;;  %v11539_v41 = vld [vmem:[#allocation80_spill] sm:$0xff]  ;;  %v1671_v23 = vadd.f32 %v1639_v19, %v8354_v54  ;;  %v8544_v27 = vadd.f32 %v1650_v56, %v8393_v29  ;;  %v11544_v19 = vld [vmem:[#allocation81_spill] sm:$0xff]  ;;  %v11545_v56 = vld [vmem:[#allocation82_spill] sm:$0xff] }
 0x33d   : > { %2930 = vst.msk [vmem:[#allocation3 + $0x68] sm:$0xff] %vm2915_vm2, %v11500_v32  ;;  %2657 = vperm.xlu1 %6699, %v2513_v5   ;;  %v1656_v35 = vmul.f32 %v8375_v8, %v11539_v41  ;;  %v11540_v5 = vld [vmem:[#allocation75_spill] sm:$0xff]  ;;  %v11542_v1 = vld [vmem:[#allocation76_spill] sm:$0xff]  ;;  %v1649_v29 = vmul.f32 %v8375_v8, %v11544_v19  ;;  %v1900_v19 = vmul.f32 %v8528_v17, %v11548_v11 }
 0x33e   : > { %11529 = vst [vmem:[#allocation55_spill] sm:$0xff] %v8491_v37  ;;  %2667 = vperm.xlu0 %6698, %v6714_v25   ;;  %v1646_v7 = vmul.f32 %v8375_v8, %v11540_v5  ;;  %v8547_v25 = vadd.f32 %v1640_v36, %v8288_v16  ;;  %v1648_v41 = vmul.f32 %v8375_v8, %v11542_v1  ;;  %v11543_v5 = vld [vmem:[#allocation86_spill] sm:$0xff]  ;;  %v11550_v37 = vld [vmem:[#allocation88_spill] sm:$0xff] }
 0x33f   : > { %2931 = vst.msk [vmem:[#allocation3 + $0x70] sm:$0x3] %vm2918_vm3, %v11500_v32  ;;  %v8538_v43 = vpop.permute.xlu1 %2346  ;;  %2677 = vperm.xlu2 %6700, %v2517_v59   ;;  %v8556_v59 = vadd.f32 %v1642_v60, %v8367_v55  ;;  %v1659_v54 = vmul.f32 %v8375_v8, %v11543_v5  ;;  %v1651_v16 = vmul.f32 %v8375_v8, %v11545_v56  ;;  %v11547_v60 = vld [vmem:[#allocation144_spill] sm:$0xff] }
 0x340   : > { %11531 = vst [vmem:[#allocation29_spill] sm:$0xff] %v8499_v14  ;;  %v8551_v14 = vpop.permute.xlu0 %2356  ;;  %v8569_v1 = vadd.f32 %v1653_v40, %v8405_v52  ;;  %v8572_v55 = vadd.f32 %v1643_v22, %v8296_v2  ;;  %v1662_v5 = vmul.f32 %v8375_v8, %v11547_v60  ;;  %v8581_v56 = vld [vmem:[%s11041_s1 + $0x6] ss:$0 sm:$0xff]  ;;  %v8586_v52 = vadd.f32 %v1645_v15, %v8382_v6  ;;  %v11549_v22 = vld [vmem:[#allocation87_spill] sm:$0xff] }
 0x341   : > { %2932 = vst.msk [vmem:[#allocation3 + $0x78] sm:$0xff] %vm2915_vm2, %v11500_v32  ;;  %v8564_v36 = vpop.permute.xlu2 %2411  ;;  %v8589_v2 = vadd.f32 %v1656_v35, %v8449_v51  ;;  %v8592_v40 = vadd.f32 %v1646_v7, %v8306_v50  ;;  %v1652_v11 = vmul.f32 %v8375_v8, %v11549_v22  ;;  %v3068_v60 = vld [vmem:[#allocation3 + $0x1] sm:$0xff]  ;;  %v8599_v34 = vadd.f32 %v1648_v41, %v8388_v31  ;;  %v11551_v15 = vld [vmem:[#allocation92_spill] sm:$0xff] }
 0x342   : > { %2933 = vst.msk [vmem:[#allocation3 + $0x80] sm:$0xff] %vm2915_vm2, %v11500_v32  ;;  %v1654_v6 = vmul.f32 %v8375_v8, %v11550_v37  ;;  %v1655_v51 = vmul.f32 %v8375_v8, %v11551_v15  ;;  %v11552_v35 = vld [vmem:[#allocation194_spill] sm:$0xff]  ;;  %v8610_v7 = vld [vmem:[%s11041_s1 + $0x7] ss:$0 sm:$0xff]  ;;  %v8615_v31 = vadd.f32 %v1659_v54, %v8462_v21  ;;  %v8618_v41 = vadd.f32 %v1649_v29, %v8351_v44  ;;  %v8633_v21 = vld [vmem:[%s11041_s1 + $0x8] ss:$0 sm:$0xff] }
 0x343   : > { %2934 = vst.msk [vmem:[#allocation3 + $0x88] sm:$0x3] %vm2918_vm3, %v11500_v32  ;;  %v2162_v50 = vmul.f32 %v8581_v56, %v11552_v35  ;;  %v8621_v37 = vadd.f32 %v1651_v16, %v8398_v47  ;;  %v8626_v22 = vadd.f32 %v1662_v5, %v8479_v3  ;;  %v1932_v15 = vadd.f32 %v1900_v19, %v1671_v23  ;;  %v11554_v47 = vld [vmem:[#allocation146_spill] sm:$0xff]  ;;  %v11555_v23 = vld [vmem:[#allocation149_spill] sm:$0xff] }
 0x344   : > { %11541 = vst [vmem:[#allocation32_spill] sm:$0xff] %v8538_v43  ;;  %v2423_v35 = vmul.f32 %v8610_v7, %v8054_v46  ;;  %v8639_v44 = vadd.f32 %v1652_v11, %v8364_v9  ;;  %v1657_v3 = vmul.f32 %v8375_v8, %v11554_v47  ;;  %v1658_v46 = vmul.f32 %v8375_v8, %v11555_v23  ;;  %v11556_v54 = vld [vmem:[#allocation150_spill] sm:$0xff]  ;;  %v11558_v5 = vld [vmem:[#allocation145_spill] sm:$0xff]  ;;  %v11560_v47 = vld [vmem:[#allocation152_spill] sm:$0xff] }
 0x345   : > { %2935 = vst.msk [vmem:[#allocation3 + $0x90] sm:$0xff] %vm2915_vm2, %v11500_v32  ;;  %v1660_v29 = vmul.f32 %v8375_v8, %v11556_v54  ;;  %v8656_v9 = vmul.f32 %v8375_v8, %v11558_v5  ;;  %v8659_v19 = vadd.f32 %v1655_v51, %v8370_v26  ;;  %v2194_v11 = vadd.f32 %v2162_v50, %v1932_v15  ;;  %v11561_v54 = vld [vmem:[#allocation153_spill] sm:$0xff]  ;;  %v11563_v5 = vld [vmem:[#allocation155_spill] sm:$0xff]  ;;  %v11564_v51 = vld [vmem:[#allocation156_spill] sm:$0xff] }
 0x346   : > { %2936 = vst.msk [vmem:[#allocation3 + $0x98] sm:$0xff] %vm2915_vm2, %v11500_v32  ;;  %3132 = vrot.lane.b32.xlu0 %v3068_v60, %s6793_s22  ;;  %v1661_v23 = vmul.f32 %v8375_v8, %v11560_v47  ;;  %v1666_v50 = vmul.f32 %v8375_v8, %v11564_v51  ;;  %v11565_v15 = vld [vmem:[#allocation157_spill] sm:$0xff] }
 0x347   : > { %11546 = vst [vmem:[#allocation33_spill] sm:$0xff] %v8564_v36  ;;  %v2516_v36 = vld [vmem:[#allocation2 + $0x19a] sm:$0xff]  ;;  %v8647_v16 = vpop.permute.xlu1 %2361  ;;  %v1906_v20 = vmul.f32 %v8528_v17, %v11565_v15  ;;  %v2455_v47 = vadd.f32 %v2423_v35, %v2194_v11  ;;  %v8694_v51 = vadd.f32 %v1660_v29, %v8476_v42  ;;  %v11568_v43 = vld [vmem:[#allocation161_spill] sm:$0xff] }
 0x348   : > { %2937 = vst.msk [vmem:[#allocation3 + $0xa0] sm:$0x3] %vm2918_vm3, %v11500_v32  ;;  %2672 = vperm.xlu1 %6699, %v2516_v36   ;;  %v8652_v36 = vadd.f32 %v1654_v6, %v8446_v30  ;;  %v8661_v60 = vpop.permute.xlu0 %2371  ;;  %v1663_v30 = vmul.f32 %v8375_v8, %v11561_v54  ;;  %v11562_v6 = vld [vmem:[#allocation154_spill] sm:$0xff]  ;;  %v8682_v54 = vld [vmem:[%s11042_s2] ss:$0 sm:$0xff]  ;;  %v11566_v35 = vld [vmem:[#allocation159_spill] sm:$0xff]  ;;  %v1899_v28 = vmul.f32 %v8528_v17, %v11568_v43 }
 0x349   : > { %2938 = vst.msk [vmem:[#allocation3 + $0xa8] sm:$0xff] %vm2915_vm2, %v11500_v32  ;;  %v2528_v26 = vpop.permute.xlu2 %2527  ;;  %v1669_v11 = vmul.f32 %v8375_v8, %v11566_v35  ;;  %v11567_v15 = vld [vmem:[#allocation160_spill] sm:$0xff]  ;;  %v8726_v35 = vadd.f32 %v1666_v50, %v8510_v58 }
 0x34a   : > { %2939 = vst.msk [vmem:[#allocation3 + $0xb0] sm:$0xff] %vm2915_vm2, %v11500_v32 }
 0x34b   : > { %2940 = vst.msk [vmem:[#allocation3 + $0xb8] sm:$0x3] %vm2918_vm3, %v11500_v32 }
 0x34c   : > { %2941 = vst.msk [vmem:[#allocation3 + $0xc0] sm:$0xff] %vm2915_vm2, %v11500_v32 }
 0x34d   : > { %11553 = vst [vmem:[#allocation34_spill] sm:$0xff] %v8626_v22  ;;  %v1903_v22 = vmul.f32 %v8528_v17, %v11562_v6  ;;  %v2684_v6 = vmul.f32 %v8633_v21, %v2528_v26  ;;  %v1909_v26 = vmul.f32 %v8528_v17, %v11567_v15 }
 0x34e   : > { %2942 = vst.msk [vmem:[#allocation3 + $0xc8] sm:$0xff] %vm2915_vm2, %v11500_v32 }
 0x34f   : > { %11557 = vst [vmem:[#allocation36_spill] sm:$0xff] %v8647_v16  ;;  %v8691_v16 = vadd.f32 %v1658_v46, %v8385_v24  ;;  %v8709_v24 = vld [vmem:[%s11043_s3] ss:$0 sm:$0xff]  ;;  %v2716_v42 = vadd.f32 %v2684_v6, %v2455_v47  ;;  %v8717_v46 = vadd.f32 %v1663_v30, %v8488_v48  ;;  %v1935_v43 = vadd.f32 %v1903_v22, %v8556_v59  ;;  %v11572_v22 = vld [vmem:[#allocation163_spill] sm:$0xff] }
 0x350   : > { %2943 = vst.msk [vmem:[#allocation3 + $0xd0] sm:$0x3] %vm2918_vm3, %v11500_v32  ;;  %v1938_v47 = vadd.f32 %v1906_v20, %v8586_v52  ;;  %v8735_v48 = vadd.f32 %v1669_v11, %v8519_v57  ;;  %v1912_v58 = vmul.f32 %v8528_v17, %v11572_v22  ;;  %v8748_v52 = vadd.f32 %v1909_v26, %v8599_v34  ;;  %v8756_v6 = vpop.permute.xlu0 %2386  ;;  %v11574_v11 = vld [vmem:[#allocation165_spill] sm:$0xff]  ;;  %v11577_v26 = vld [vmem:[#allocation168_spill] sm:$0xff] }
 0x351   : > { %11559 = vst [vmem:[#allocation37_spill] sm:$0xff] %v8656_v9  ;;  %v1664_v9 = vmul.f32 %v8375_v8, %v11563_v5  ;;  %v8688_v5 = vadd.f32 %v1657_v3, %v8459_v38  ;;  %v11569_v38 = vld [vmem:[#allocation197_spill] sm:$0xff]  ;;  %v8714_v8 = vadd.f32 %v1661_v23, %v8395_v0  ;;  %v2426_v0 = vmul.f32 %v8610_v7, %v8129_v45  ;;  %v8745_v45 = vpop.permute.xlu1 %2376 }
 0x352   : > { %2944 = vst.msk [vmem:[#allocation3 + $0xd8] sm:$0xff] %vm2915_vm2, %v11500_v32  ;;  %v2165_v3 = vmul.f32 %v8581_v56, %v11569_v38  ;;  %v2752_v23 = vmul.f32 %v8682_v54, %v2716_v42  ;;  %v8751_v57 = vadd.f32 %v1899_v28, %v8473_v4  ;;  %v1904_v15 = vmul.f32 %v8528_v17, %v11574_v11  ;;  %v11575_v38 = vld [vmem:[#allocation166_spill] sm:$0xff]  ;;  %v2543_v4 = vpop.permute.xlu2 %2542 }
 0x353   : > { %2945 = vst.msk [vmem:[#allocation3 + $0xe0] sm:$0xff] %vm2915_vm2, %v11500_v32  ;;  %v8721_v29 = vadd.f32 %v1664_v9, %v8443_v39  ;;  %v11571_v39 = vld [vmem:[#allocation162_spill] sm:$0xff]  ;;  %v11573_v9 = vld [vmem:[#allocation164_spill] sm:$0xff]  ;;  %v1915_v42 = vmul.f32 %v8528_v17, %v11575_v38  ;;  %v1907_v28 = vmul.f32 %v8528_v17, %v11577_v26  ;;  %v11578_v38 = vld [vmem:[#allocation169_spill] sm:$0xff] }
 0x354   : > { %2946 = vst.msk [vmem:[#allocation3 + $0xe8] sm:$0x3] %vm2918_vm3, %v11500_v32  ;;  %v1901_v59 = vmul.f32 %v8528_v17, %v11571_v39  ;;  %v1902_v20 = vmul.f32 %v8528_v17, %v11573_v9  ;;  %v2197_v30 = vadd.f32 %v2165_v3, %v1935_v43  ;;  %v2788_v50 = vadd.f32 %v8709_v24, %v2752_v23  ;;  %v11576_v39 = vld [vmem:[#allocation167_spill] sm:$0xff]  ;;  %v11580_v26 = vld [vmem:[#allocation200_spill] sm:$0xff] }
 0x355   : > { %2947 = vst.msk [vmem:[#allocation3 + $0xf0] sm:$0xff] %vm2915_vm2, %v11500_v32  ;;  %v1905_v34 = vmul.f32 %v8528_v17, %v11576_v39  ;;  %v2687_v23 = vmul.f32 %v8633_v21, %v2543_v4  ;;  %v8775_v9 = vadd.f32 %v1912_v58, %v8621_v37  ;;  %v1918_v39 = vmul.f32 %v8528_v17, %v11578_v38  ;;  %v3069_v38 = vld [vmem:[#allocation3 + $0x9] sm:$0xff] }
 0x356   : > { %2948 = vst.msk [vmem:[#allocation3 + $0xf8] sm:$0xff] %vm2915_vm2, %v11500_v32  ;;  %v2458_v3 = vadd.f32 %v2426_v0, %v2197_v30  ;;  %vm2820_vm4 = vcmp.gt.f32.partialorder %v2788_v50, 0.0  ;;  %v2852_v43 = vmul.f32 0.01, %v2788_v50  ;;  %v8772_v22 = vadd.f32 %v1901_v59, %v8547_v25  ;;  %v11579_v0 = vld [vmem:[#allocation170_spill] sm:$0xff]  ;;  %3134 = vrot.lane.b32.xlu1 %v3069_v38, %s6793_s22  ;;  %v11588_v38 = vld [vmem:[#allocation177_spill] sm:$0xff] }
 0x357   : > { %11570 = vst [vmem:[#allocation41_spill] sm:$0xff] %v8721_v29  ;;  %v8778_v11 = vadd.f32 %v1902_v20, %v8485_v49  ;;  %v1908_v30 = vmul.f32 %v8528_v17, %v11579_v0  ;;  %v2168_v4 = vmul.f32 %v8581_v56, %v11580_v26  ;;  %v8791_v49 = vadd.f32 %v1904_v15, %v8572_v55  ;;  %v11583_v15 = vld [vmem:[#allocation173_spill] sm:$0xff]  ;;  %v11586_v0 = vld [vmem:[#allocation175_spill] sm:$0xff] }
 0x358   : > { %2949 = vst.msk [vmem:[#allocation3 + $0x100] sm:$0x3] %vm2918_vm3, %v11500_v32  ;;  %v2884_v25 = vsel %vm2820_vm4, %v2788_v50, %v2852_v43  ;;  %v2719_v37 = vadd.f32 %v2687_v23, %v2458_v3  ;;  %v8794_v59 = vadd.f32 %v1915_v42, %v8652_v36  ;;  %v8797_v58 = vadd.f32 %v1905_v34, %v8493_v53  ;;  %v11581_v50 = vld [vmem:[#allocation171_spill] sm:$0xff]  ;;  %v11584_v34 = vld [vmem:[#allocation174_spill] sm:$0xff]  ;;  %v11592_v29 = vld [vmem:[#allocation181_spill] sm:$0xff] }
 0x359   : > { %2950 = vst.msk [vmem:[#allocation3 + $0x108] sm:$0xff] %vm2915_vm2, %v11500_v32  ;;  %v8800_v20 = vadd.f32 %v1907_v28, %v8592_v40  ;;  %v1910_v43 = vmul.f32 %v8528_v17, %v11581_v50  ;;  %v2429_v3 = vmul.f32 %v8610_v7, %v8206_v62  ;;  %v8812_v53 = vadd.f32 %v1918_v39, %v8688_v5  ;;  %v11582_v40 = vld [vmem:[#allocation172_spill] sm:$0xff]  ;;  %v8822_v62 = vpop.permute.xlu1 %2391 }
 0x35a   : > { %2951 = vst.msk [vmem:[#allocation3 + $0x110] sm:$0xff] %vm2915_vm2, %v11500_v32  ;;  %v2755_v55 = vmul.f32 %v8682_v54, %v2719_v37  ;;  %v1921_v36 = vmul.f32 %v8528_v17, %v11582_v40  ;;  %v1911_v42 = vmul.f32 %v8528_v17, %v11583_v15  ;;  %v1913_v28 = vmul.f32 %v8528_v17, %v11584_v34  ;;  %v11587_v39 = vld [vmem:[#allocation176_spill] sm:$0xff]  ;;  %v8833_v37 = vpop.permute.xlu0 %2401  ;;  %v11589_v40 = vld [vmem:[#allocation178_spill] sm:$0xff] }
 0x35b   : > { %2952 = vst.msk [vmem:[#allocation3 + $0x118] sm:$0x3] %vm2918_vm3, %v11500_v32  ;;  %v8825_v23 = vadd.f32 %v1908_v30, %v8512_v13  ;;  %v1924_v5 = vmul.f32 %v8528_v17, %v11586_v0  ;;  %v1914_v26 = vmul.f32 %v8528_v17, %v11587_v39  ;;  %v1916_v50 = vmul.f32 %v8528_v17, %v11588_v38  ;;  %v11590_v13 = vld [vmem:[#allocation179_spill] sm:$0xff]  ;;  %v11591_v0 = vld [vmem:[#allocation180_spill] sm:$0xff] }
 0x35c   : > { %2953 = vst.msk [vmem:[#allocation3 + $0x120] sm:$0xff] %vm2915_vm2, %v11500_v32  ;;  %v1927_v15 = vmul.f32 %v8528_v17, %v11589_v40  ;;  %v1917_v30 = vmul.f32 %v8528_v17, %v11590_v13  ;;  %v2791_v34 = vadd.f32 %v8709_v24, %v2755_v55  ;;  %v1919_v39 = vmul.f32 %v8528_v17, %v11591_v0 }
 0x35d   : > { %2954 = vst.msk [vmem:[#allocation3 + $0x128] sm:$0xff] %vm2915_vm2, %v11500_v32  ;;  %v8853_v40 = vadd.f32 %v1921_v36, %v8694_v51  ;;  %v8856_v13 = vadd.f32 %v1911_v42, %v8544_v27  ;;  %v1945_v55 = vadd.f32 %v1913_v28, %v8639_v44  ;;  %v8874_v36 = vadd.f32 %v1916_v50, %v8659_v19 }
 0x35e   : > { %2955 = vst.msk [vmem:[#allocation3 + $0x130] sm:$0x3] %vm2918_vm3, %v11500_v32  ;;  %v8886_v42 = vadd.f32 %v1919_v39, %v8691_v16  ;;  %v2432_v28 = vmul.f32 %v8610_v7, %v8286_v33  ;;  %vm2823_vm5 = vcmp.gt.f32.partialorder %v2791_v34, 0.0  ;;  %v11596_v16 = vld [vmem:[#allocation184_spill] sm:$0xff] }
 0x35f   : > { %2956 = vst.msk [vmem:[#allocation3 + $0x138] sm:$0xff] %vm2915_vm2, %v11500_v32  ;;  %v2163_v50 = vmul.f32 %v8581_v56, %v11596_v16 }
 0x360   : > { %2973 = vst.msk [vmem:[#allocation3 + $0x21] sm:$0xff] %vm2915_vm2, %v2884_v25  ;;  %v2200_v25 = vadd.f32 %v2168_v4, %v1938_v47  ;;  %v2558_v47 = vpop.permute.xlu2 %2557  ;;  %v8845_v4 = vadd.f32 %v1910_v43, %v8618_v41  ;;  %v1930_v41 = vmul.f32 %v8528_v17, %v11592_v29  ;;  %v8864_v43 = vadd.f32 %v1924_v5, %v8717_v46  ;;  %v11595_v5 = vld [vmem:[#allocation183_spill] sm:$0xff] }
 0x361   : > { %2957 = vst.msk [vmem:[#allocation3 + $0x140] sm:$0xff] %vm2915_vm2, %v11500_v32  ;;  %v2690_v38 = vmul.f32 %v8633_v21, %v2558_v47  ;;  %v8877_v29 = vadd.f32 %v1927_v15, %v8726_v35  ;;  %v8880_v46 = vadd.f32 %v1917_v30, %v8589_v2  ;;  %v11594_v35 = vld [vmem:[#allocation182_spill] sm:$0xff]  ;;  %v8906_v33 = vpop.permute.xlu1 %2406  ;;  %v11598_v15 = vld [vmem:[#allocation187_spill] sm:$0xff] }
 0x362   : > { %2958 = vst.msk [vmem:[#allocation3 + $0x148] sm:$0x3] %vm2918_vm3, %v11500_v32  ;;  %v8894_v2 = vadd.f32 %v1930_v41, %v8735_v48  ;;  %v2166_v30 = vmul.f32 %v8581_v56, %v11598_v15  ;;  %v11599_v48 = vld [vmem:[#allocation190_spill] sm:$0xff]  ;;  %v11600_v41 = vld [vmem:[#allocation192_spill] sm:$0xff] }
 0x363   : > { %11585 = vst [vmem:[#allocation42_spill] sm:$0xff] %v8822_v62  ;;  %v2461_v62 = vadd.f32 %v2429_v3, %v2200_v25  ;;  %v8867_v3 = vadd.f32 %v1914_v26, %v8569_v1  ;;  %v11593_v25 = vld [vmem:[#allocation203_spill] sm:$0xff]  ;;  %v2855_v1 = vmul.f32 0.01, %v2791_v34  ;;  %v8900_v26 = vmul.f32 %v8528_v17, %v11595_v5 }
 0x364   : > { %2959 = vst.msk [vmem:[#allocation3 + $0x150] sm:$0xff] %vm2915_vm2, %v11500_v32  ;;  %v2171_v51 = vmul.f32 %v8581_v56, %v11593_v25  ;;  %v2169_v47 = vmul.f32 %v8581_v56, %v11599_v48  ;;  %v2161_v25 = vmul.f32 %v8581_v56, %v11600_v41  ;;  %v2195_v41 = vadd.f32 %v2163_v50, %v8772_v22 }
 0x365   : > { %2960 = vst.msk [vmem:[#allocation3 + $0x158] sm:$0xff] %vm2915_vm2, %v11500_v32  ;;  %v2722_v27 = vadd.f32 %v2690_v38, %v2461_v62  ;;  %v1920_v62 = vmul.f32 %v8528_v17, %v11594_v35  ;;  %v8916_v38 = vpop.permute.xlu0 %2416  ;;  %v11602_v35 = vld [vmem:[#allocation195_spill] sm:$0xff] }
 0x366   : > { %2961 = vst.msk [vmem:[#allocation3 + $0x160] sm:$0x3] %vm2918_vm3, %v11500_v32  ;;  %v2203_v0 = vadd.f32 %v2171_v51, %v8748_v52  ;;  %v2164_v5 = vmul.f32 %v8581_v56, %v11602_v35  ;;  %v2887_v52 = vsel %vm2823_vm5, %v2791_v34, %v2855_v1  ;;  %v11605_v1 = vld [vmem:[#allocation185_spill] sm:$0xff]  ;;  %v8949_v50 = vadd.f32 %v2169_v47, %v8800_v20  ;;  %v11607_v20 = vld [vmem:[#allocation198_spill] sm:$0xff] }
 0x367   : > { %2962 = vst.msk [vmem:[#allocation3 + $0x168] sm:$0xff] %vm2915_vm2, %v11500_v32  ;;  %v3071_v44 = vld [vmem:[#allocation3 + $0x21] sm:$0xff]  ;;  %v2758_v19 = vmul.f32 %v8682_v54, %v2722_v27  ;;  %v11601_v27 = vld [vmem:[#allocation193_spill] sm:$0xff]  ;;  %v8931_v48 = vadd.f32 %v1920_v62, %v8615_v31  ;;  %v2198_v62 = vadd.f32 %v2166_v30, %v8791_v49  ;;  %v2167_v47 = vmul.f32 %v8581_v56, %v11607_v20 }
 0x368   : > { %2963 = vst.msk [vmem:[#allocation3 + $0x170] sm:$0xff] %vm2915_vm2, %v11500_v32  ;;  %3138 = vrot.lane.b32.xlu0 %v3071_v44, %s6793_s22  ;;  %v2172_v44 = vmul.f32 %v8581_v56, %v11601_v27  ;;  %v2573_v51 = vpop.permute.xlu2 %2572  ;;  %v2464_v16 = vadd.f32 %v2432_v28, %v2203_v0  ;;  %v11603_v27 = vld [vmem:[#allocation196_spill] sm:$0xff]  ;;  %v8942_v28 = vmul.f32 %v8528_v17, %v11605_v1  ;;  %v11606_v0 = vld [vmem:[#allocation214_spill] sm:$0xff] }
 0x369   : > { %2964 = vst.msk [vmem:[#allocation3 + $0x178] sm:$0x3] %vm2918_vm3, %v11500_v32  ;;  %v2794_v39 = vadd.f32 %v8709_v24, %v2758_v19  ;;  %v2693_v15 = vmul.f32 %v8633_v21, %v2573_v51  ;;  %v2175_v35 = vmul.f32 %v8581_v56, %v11603_v27  ;;  %v2422_v51 = vmul.f32 %v8610_v7, %v11606_v0 }
 0x36a   : > { %2965 = vst.msk [vmem:[#allocation3 + $0x180] sm:$0xff] %vm2915_vm2, %v11500_v32  ;;  %v2193_v17 = vadd.f32 %v2161_v25, %v8751_v57  ;;  %v8958_v27 = vadd.f32 %v2172_v44, %v8845_v4 }
 0x36b   : > { %2966 = vst.msk [vmem:[#allocation3 + $0x188] sm:$0xff] %vm2915_vm2, %v11500_v32  ;;  %vm2826_vm6 = vcmp.gt.f32.partialorder %v2794_v39, 0.0  ;;  %v2858_v19 = vmul.f32 0.01, %v2794_v39  ;;  %v2725_v22 = vadd.f32 %v2693_v15, %v2464_v16  ;;  %v8962_v30 = vadd.f32 %v2175_v35, %v1945_v55  ;;  %v2523_v16 = vpop.permute.xlu1 %2522  ;;  %v11610_v55 = vld [vmem:[#allocation217_spill] sm:$0xff] }
 0x36c   : > { %11597 = vst [vmem:[#allocation47_spill] sm:$0xff] %v8906_v33  ;;  %v11604_v33 = vld [vmem:[#allocation206_spill] sm:$0xff]  ;;  %v2454_v4 = vadd.f32 %v2422_v51, %v2193_v17  ;;  %v2199_v51 = vadd.f32 %v2167_v47, %v8797_v58  ;;  %v11612_v58 = vld [vmem:[#allocation201_spill] sm:$0xff] }
 0x36d   : > { %2967 = vst.msk [vmem:[#allocation3 + $0x190] sm:$0x3] %vm2918_vm3, %v11500_v32  ;;  %v2174_v34 = vmul.f32 %v8581_v56, %v11604_v33  ;;  %v2890_v31 = vsel %vm2826_vm6, %v2794_v39, %v2858_v19  ;;  %v2424_v33 = vmul.f32 %v8610_v7, %v8118_v12  ;;  %v2196_v39 = vadd.f32 %v2164_v5, %v8778_v11  ;;  %v11608_v12 = vld [vmem:[#allocation199_spill] sm:$0xff]  ;;  %v11609_v19 = vld [vmem:[#allocation209_spill] sm:$0xff]  ;;  %v2533_v44 = vpop.permute.xlu0 %2532  ;;  %v11611_v17 = vld [vmem:[#allocation38_spill] sm:$0xff] }
 0x36e   : > { %2968 = vst.msk [vmem:[#allocation3 + $0x198] sm:$0xff] %vm2915_vm2, %v11500_v32  ;;  %v2761_v49 = vmul.f32 %v8682_v54, %v2725_v22  ;;  %v2177_v57 = vmul.f32 %v8581_v56, %v11609_v19  ;;  %v2683_v11 = vmul.f32 %v8633_v21, %v2523_v16  ;;  %v2425_v5 = vmul.f32 %v8610_v7, %v11610_v55  ;;  %v11613_v47 = vld [vmem:[#allocation202_spill] sm:$0xff] }
 0x36f   : > { %2969 = vst.msk [vmem:[#allocation3 + $0x1a0] sm:$0xff] %vm2915_vm2, %v11500_v32  ;;  %v2456_v15 = vadd.f32 %v2424_v33, %v2195_v41  ;;  %v2685_v1 = vmul.f32 %v8633_v21, %v2533_v44 }
 0x370   : > { %2970 = vst.msk [vmem:[#allocation3 + $0x1a8] sm:$0x3] %vm2918_vm3, %v11500_v32  ;;  %v2435_v32 = vmul.f32 %v8610_v7, %v8359_v10  ;;  %v2206_v10 = vadd.f32 %v2174_v34, %v8775_v9  ;;  %v2797_v25 = vadd.f32 %v8709_v24, %v2761_v49  ;;  %v2588_v0 = vpop.permute.xlu2 %2587  ;;  %v2715_v34 = vadd.f32 %v2683_v11, %v2454_v4  ;;  %v11614_v4 = vld [vmem:[#allocation212_spill] sm:$0xff] }
 0x371   : > { %2976 = vst.msk [vmem:[#allocation3 + $0x49] sm:$0xff] %vm2915_vm2, %v2887_v52  ;;  %v2178_v52 = vmul.f32 %v8581_v56, %v11608_v12  ;;  %v2427_v49 = vmul.f32 %v8610_v7, %v11611_v17  ;;  %v2717_v20 = vadd.f32 %v2685_v1, %v2456_v15  ;;  %v2209_v16 = vadd.f32 %v2177_v57, %v8794_v59  ;;  %v11615_v15 = vld [vmem:[#allocation8_spill] sm:$0xff] }
 0x372   : > { %2979 = vst.msk [vmem:[#allocation3 + $0x69] sm:$0xff] %vm2915_vm2, %v2890_v31  ;;  %v2467_v35 = vadd.f32 %v2435_v32, %v2206_v10  ;;  %vm2829_vm7 = vcmp.gt.f32.partialorder %v2797_v25, 0.0  ;;  %v2861_v9 = vmul.f32 0.01, %v2797_v25  ;;  %v2696_v31 = vmul.f32 %v8633_v21, %v2588_v0 }
 0x373   : > { %v8979_v22 = vadd.f32 %v2178_v52, %v8874_v36  ;;  %v2751_v32 = vmul.f32 %v8682_v54, %v2715_v34  ;;  %v2170_v36 = vmul.f32 %v8581_v56, %v11612_v58  ;;  %v2181_v52 = vmul.f32 %v8581_v56, %v11613_v47  ;;  %v2538_v57 = vpop.permute.xlu1 %2537 }
 0x374   : > { %v2893_v33 = vsel %vm2829_vm7, %v2797_v25, %v2861_v9  ;;  %v2728_v10 = vadd.f32 %v2696_v31, %v2467_v35  ;;  %v2753_v19 = vmul.f32 %v8682_v54, %v2717_v20  ;;  %v2180_v25 = vmul.f32 %v8581_v56, %v11614_v4 }
 0x375   : > { %2982 = vst.msk [vmem:[#allocation3 + $0x91] sm:$0xff] %vm2915_vm2, %v2893_v33  ;;  %v2457_v11 = vadd.f32 %v2425_v5, %v2196_v39  ;;  %v2787_v44 = vadd.f32 %v8709_v24, %v2751_v32  ;;  %v2428_v35 = vmul.f32 %v8610_v7, %v11615_v15  ;;  %v2459_v1 = vadd.f32 %v2427_v49, %v2198_v62  ;;  %v2548_v5 = vpop.permute.xlu0 %2547 }
 0x376   : > { %v2764_v55 = vmul.f32 %v8682_v54, %v2728_v10  ;;  %v2438_v0 = vmul.f32 %v8610_v7, %v8454_v61  ;;  %v2789_v59 = vadd.f32 %v8709_v24, %v2753_v19  ;;  %v2686_v39 = vmul.f32 %v8633_v21, %v2538_v57 }
 0x377   : > { %vm2819_vm8 = vcmp.gt.f32.partialorder %v2787_v44, 0.0  ;;  %v2851_v9 = vmul.f32 0.01, %v2787_v44  ;;  %v2430_v31 = vmul.f32 %v8610_v7, %v8276_v18  ;;  %v2688_v62 = vmul.f32 %v8633_v21, %v2548_v5 }
 0x378   : > { %v3074_v12 = vld [vmem:[#allocation3 + $0x49] sm:$0xff]  ;;  %v2800_v34 = vadd.f32 %v8709_v24, %v2764_v55  ;;  %vm2821_vm9 = vcmp.gt.f32.partialorder %v2789_v59, 0.0  ;;  %v2853_v17 = vmul.f32 0.01, %v2789_v59  ;;  %v2603_v20 = vpop.permute.xlu2 %2602  ;;  %v2718_v33 = vadd.f32 %v2686_v39, %v2457_v11 }
 0x379   : > { %v8983_v41 = vld [vmem:[#allocation3 + $0x48] sm:$0xff]  ;;  %3144 = vrot.lane.b32.xlu0 %v3074_v12, %s6793_s22  ;;  %v2883_v61 = vsel %vm2819_vm8, %v2787_v44, %v2851_v9  ;;  %v2470_v32 = vadd.f32 %v2438_v0, %v2209_v16  ;;  %v2720_v58 = vadd.f32 %v2688_v62, %v2459_v1  ;;  %v2699_v47 = vmul.f32 %v8633_v21, %v2603_v20 }
 0x37a   : > { %3042 = vst.msk [vmem:[#allocation4 + $0x30] sm:$0xff] %vm2915_vm2, %v8983_v41  ;;  %v3077_v49 = vld [vmem:[#allocation3 + $0x69] sm:$0xff]  ;;  %vm2832_vm10 = vcmp.gt.f32.partialorder %v2800_v34, 0.0  ;;  %v2864_v12 = vmul.f32 0.01, %v2800_v34  ;;  %v2885_v10 = vsel %vm2821_vm9, %v2789_v59, %v2853_v17  ;;  %v2202_v19 = vadd.f32 %v2170_v36, %v8825_v23 }
 0x37b   : > { %2972 = vst.msk [vmem:[#allocation3 + $0x19] sm:$0xff] %vm2915_vm2, %v2883_v61  ;;  %v2754_v4 = vmul.f32 %v8682_v54, %v2718_v33  ;;  %v9019_v11 = vadd.f32 %v2181_v52, %v8886_v42  ;;  %v2212_v16 = vadd.f32 %v2180_v25, %v8812_v53  ;;  %v2756_v55 = vmul.f32 %v8682_v54, %v2720_v58  ;;  %v11616_v23 = vld [vmem:[#allocation215_spill] sm:$0xff]  ;;  %v11617_v42 = vld [vmem:[#allocation13_spill] sm:$0xff]  ;;  %v2553_v9 = vpop.permute.xlu1 %2552 }
 0x37c   : > { %2974 = vst.msk [vmem:[#allocation3 + $0x31] sm:$0xff] %vm2915_vm2, %v2885_v10  ;;  %v2896_v18 = vsel %vm2832_vm10, %v2800_v34, %v2864_v12  ;;  %v9016_v44 = vld [vmem:[#allocation3 + $0x90] sm:$0xff]  ;;  %v2731_v15 = vadd.f32 %v2699_v47, %v2470_v32  ;;  %v2183_v36 = vmul.f32 %v8581_v56, %v11616_v23  ;;  %v2460_v1 = vadd.f32 %v2428_v35, %v2199_v51 }
 0x37d   : > { %2985 = vst.msk [vmem:[#allocation3 + $0xb1] sm:$0xff] %vm2915_vm2, %v2896_v18  ;;  %v2441_v0 = vmul.f32 %v8610_v7, %v8551_v14  ;;  %v2790_v59 = vadd.f32 %v8709_v24, %v2754_v4  ;;  %v2431_v53 = vmul.f32 %v8610_v7, %v11617_v42  ;;  %v2462_v52 = vadd.f32 %v2430_v31, %v8949_v50  ;;  %v2563_v34 = vpop.permute.xlu0 %2562  ;;  %v3080_v50 = vld [vmem:[#allocation3 + $0x91] sm:$0xff]  ;;  %v11620_v42 = vld [vmem:[#allocation218_spill] sm:$0xff] }
 0x37e   : > { %3048 = vst.msk [vmem:[#allocation4 + $0x60] sm:$0xff] %vm2915_vm2, %v9016_v44  ;;  %v2792_v25 = vadd.f32 %v8709_v24, %v2756_v55  ;;  %v2767_v57 = vmul.f32 %v8682_v54, %v2731_v15  ;;  %v2433_v51 = vmul.f32 %v8610_v7, %v8346_v63  ;;  %v2689_v35 = vmul.f32 %v8633_v21, %v2553_v9  ;;  %v11618_v47 = vld [vmem:[#allocation204_spill] sm:$0xff] }
 0x37f   : > { %vm2822_vm11 = vcmp.gt.f32.partialorder %v2790_v59, 0.0  ;;  %v2854_v14 = vmul.f32 0.01, %v2790_v59  ;;  %v2691_v17 = vmul.f32 %v8633_v21, %v2563_v34  ;;  %v2473_v62 = vadd.f32 %v2441_v0, %v2212_v16 }
 0x380   : > { %vm2824_vm12 = vcmp.gt.f32.partialorder %v2792_v25, 0.0  ;;  %v2856_v39 = vmul.f32 0.01, %v2792_v25  ;;  %v2803_v5 = vadd.f32 %v8709_v24, %v2767_v57  ;;  %v2618_v31 = vpop.permute.xlu2 %2617  ;;  %v2721_v20 = vadd.f32 %v2689_v35, %v2460_v1 }
 0x381   : > { %3150 = vrot.lane.b32.xlu0 %v3077_v49, %s6793_s22  ;;  %v2886_v49 = vsel %vm2822_vm11, %v2790_v59, %v2854_v14  ;;  %v2702_v12 = vmul.f32 %v8633_v21, %v2618_v31  ;;  %v2723_v10 = vadd.f32 %v2691_v17, %v2462_v52  ;;  %v2173_v18 = vmul.f32 %v8581_v56, %v11618_v47  ;;  %v11622_v14 = vld [vmem:[#allocation27_spill] sm:$0xff] }
 0x382   : > { %v3070_v61 = vld [vmem:[#allocation3 + $0x19] sm:$0xff]  ;;  %2975 = vst.msk [vmem:[#allocation3 + $0x39] sm:$0xff] %vm2915_vm2, %v2886_v49  ;;  %v2888_v33 = vsel %vm2824_vm12, %v2792_v25, %v2856_v39  ;;  %vm2835_vm13 = vcmp.gt.f32.partialorder %v2803_v5, 0.0  ;;  %v2867_v32 = vmul.f32 0.01, %v2803_v5  ;;  %v2757_v4 = vmul.f32 %v8682_v54, %v2721_v20 }
 0x383   : > { %v9042_v63 = vld [vmem:[#allocation3 + $0x20] sm:$0xff]  ;;  %3136 = vrot.lane.b32.xlu2 %v3070_v61, %s6793_s22  ;;  %v3072_v58 = vld [vmem:[#allocation3 + $0x31] sm:$0xff]  ;;  %2977 = vst.msk [vmem:[#allocation3 + $0x51] sm:$0xff] %vm2915_vm2, %v2888_v33  ;;  %v2734_v16 = vadd.f32 %v2702_v12, %v2473_v62  ;;  %v2215_v15 = vadd.f32 %v2183_v36, %v8853_v40  ;;  %v2444_v23 = vmul.f32 %v8610_v7, %v8661_v60  ;;  %v2568_v39 = vpop.permute.xlu1 %2567 }
 0x384   : > { %3140 = vrot.lane.b32.xlu1 %v3072_v58, %s6793_s22  ;;  %v9052_v55 = vld [vmem:[#allocation3 + $0x18] sm:$0xff]  ;;  %v2899_v1 = vsel %vm2835_vm13, %v2803_v5, %v2867_v32  ;;  %v2759_v0 = vmul.f32 %v8682_v54, %v2723_v10  ;;  %3039 = vst.msk [vmem:[#allocation4 + $0x18] sm:$0xff] %vm2915_vm2, %v9042_v63  ;;  %v9060_v59 = vld [vmem:[#allocation3 + $0x30] sm:$0xff]  ;;  %v2186_v52 = vmul.f32 %v8581_v56, %v11620_v42 }
 0x385   : > { %11619 = vst [vmem:[#allocation48_spill] sm:$0xff] %v9060_v59  ;;  %v2463_v25 = vadd.f32 %v2431_v53, %v2202_v19  ;;  %v2793_v57 = vadd.f32 %v8709_v24, %v2757_v4  ;;  %v2770_v40 = vmul.f32 %v8682_v54, %v2734_v16  ;;  %v11621_v36 = vld [vmem:[#allocation20_spill] sm:$0xff]  ;;  %v2465_v9 = vadd.f32 %v2433_v51, %v8958_v27  ;;  %v2578_v17 = vpop.permute.xlu0 %2577 }
 0x386   : > { %2988 = vst.msk [vmem:[#allocation3 + $0xd9] sm:$0xff] %vm2915_vm2, %v2899_v1  ;;  %v2434_v60 = vmul.f32 %v8610_v7, %v11621_v36  ;;  %v2436_v35 = vmul.f32 %v8610_v7, %v11622_v14  ;;  %v2795_v34 = vadd.f32 %v8709_v24, %v2759_v0  ;;  %v2692_v5 = vmul.f32 %v8633_v21, %v2568_v39  ;;  %v3083_v31 = vld [vmem:[#allocation3 + $0xb1] sm:$0xff]  ;;  %v11624_v1 = vld [vmem:[#allocation207_spill] sm:$0xff] }
 0x387   : > { %3038 = vst.msk [vmem:[#allocation4 + $0x10] sm:$0xff] %vm2915_vm2, %v9052_v55  ;;  %vm2825_vm14 = vcmp.gt.f32.partialorder %v2793_v57, 0.0  ;;  %v2857_v19 = vmul.f32 0.01, %v2793_v57  ;;  %v2806_v53 = vadd.f32 %v8709_v24, %v2770_v40  ;;  %v2476_v27 = vadd.f32 %v2444_v23, %v2215_v15 }
 0x388   : > { %3040 = vst.msk [vmem:[#allocation4 + $0x20] sm:$0xff] %vm2915_vm2, %v9060_v59  ;;  %vm2827_vm15 = vcmp.gt.f32.partialorder %v2795_v34, 0.0  ;;  %v2859_v51 = vmul.f32 0.01, %v2795_v34  ;;  %v2633_v62 = vpop.permute.xlu2 %2632  ;;  %v2724_v61 = vadd.f32 %v2692_v5, %v2463_v25  ;;  %v2205_v47 = vadd.f32 %v2173_v18, %v8856_v13 }
 0x389   : > { %3156 = vrot.lane.b32.xlu0 %v3080_v50, %s6793_s22  ;;  %v2694_v50 = vmul.f32 %v8633_v21, %v2578_v17  ;;  %v2889_v49 = vsel %vm2825_vm14, %v2793_v57, %v2857_v19  ;;  %vm2838_vm0 = vcmp.gt.f32.partialorder %v2806_v53, 0.0  ;;  %v2870_v20 = vmul.f32 0.01, %v2806_v53  ;;  %v3073_v12 = vld [vmem:[#allocation3 + $0x39] sm:$0xff] }
 0x38a   : > { %2978 = vst.msk [vmem:[#allocation3 + $0x61] sm:$0xff] %vm2915_vm2, %v2889_v49  ;;  %v2891_v33 = vsel %vm2827_vm15, %v2795_v34, %v2859_v51  ;;  %v3075_v10 = vld [vmem:[#allocation3 + $0x51] sm:$0xff]  ;;  %v2705_v58 = vmul.f32 %v8633_v21, %v2633_v62  ;;  %v2760_v16 = vmul.f32 %v8682_v54, %v2724_v61  ;;  %v2176_v0 = vmul.f32 %v8581_v56, %v11624_v1  ;;  %v11625_v57 = vld [vmem:[#allocation14_spill] sm:$0xff] }
 0x38b   : > { %v2726_v32 = vadd.f32 %v2694_v50, %v2465_v9  ;;  %3142 = vrot.lane.b32.xlu2 %v3073_v12, %s6793_s22  ;;  %2980 = vst.msk [vmem:[#allocation3 + $0x79] sm:$0xff] %vm2915_vm2, %v2891_v33  ;;  %v2902_v4 = vsel %vm2838_vm0, %v2806_v53, %v2870_v20  ;;  %v9088_v15 = vld [vmem:[#allocation3 + $0x38] sm:$0xff]  ;;  %v9090_v23 = vld [vmem:[#allocation3 + $0x50] sm:$0xff]  ;;  %v2218_v42 = vadd.f32 %v2186_v52, %v8864_v43  ;;  %v2583_v53 = vpop.permute.xlu1 %2582 }
 0x38c   : > { %3146 = vrot.lane.b32.xlu1 %v3075_v10, %s6793_s22  ;;  %11623 = vst [vmem:[#allocation53_spill] sm:$0xff] %v9090_v23  ;;  %v2737_v18 = vadd.f32 %v2705_v58, %v2476_v27  ;;  %v2189_v40 = vmul.f32 %v8581_v56, %v11625_v57  ;;  %v2466_v36 = vadd.f32 %v2434_v60, %v2205_v47  ;;  %v11626_v43 = vld [vmem:[#allocation21_spill] sm:$0xff]  ;;  %v11627_v60 = vld [vmem:[#allocation32_spill] sm:$0xff] }
 0x38d   : > { %2991 = vst.msk [vmem:[#allocation3 + $0xf9] sm:$0xff] %vm2915_vm2, %v2902_v4  ;;  %v2762_v13 = vmul.f32 %v8682_v54, %v2726_v32  ;;  %v9097_v25 = vld [vmem:[#allocation3 + $0xd8] sm:$0xff]  ;;  %v2447_v9 = vmul.f32 %v8610_v7, %v8756_v6  ;;  %v2796_v14 = vadd.f32 %v8709_v24, %v2760_v16  ;;  %v2437_v52 = vmul.f32 %v8610_v7, %v11626_v43  ;;  %v2593_v27 = vpop.permute.xlu0 %2592 }
 0x38e   : > { %3041 = vst.msk [vmem:[#allocation4 + $0x28] sm:$0xff] %vm2915_vm2, %v9088_v15  ;;  %v2468_v34 = vadd.f32 %v2436_v35, %v8962_v30  ;;  %v2773_v19 = vmul.f32 %v8682_v54, %v2737_v18  ;;  %v2439_v6 = vmul.f32 %v8610_v7, %v11627_v60  ;;  %v2695_v17 = vmul.f32 %v8633_v21, %v2583_v53  ;;  %v3086_v50 = vld [vmem:[#allocation3 + $0xd9] sm:$0xff] }
 0x38f   : > { %v2798_v39 = vadd.f32 %v8709_v24, %v2762_v13  ;;  %3043 = vst.msk [vmem:[#allocation4 + $0x38] sm:$0xff] %vm2915_vm2, %v9090_v23  ;;  %vm2828_vm1 = vcmp.gt.f32.partialorder %v2796_v14, 0.0  ;;  %v2860_v5 = vmul.f32 0.01, %v2796_v14  ;;  %v2697_v51 = vmul.f32 %v8633_v21, %v2593_v27  ;;  %v11628_v13 = vld [vmem:[#allocation210_spill] sm:$0xff] }
 0x390   : > { %3054 = vst.msk [vmem:[#allocation4 + $0x90] sm:$0xff] %vm2915_vm2, %v9097_v25  ;;  %v2809_v35 = vadd.f32 %v8709_v24, %v2773_v19  ;;  %v2479_v62 = vadd.f32 %v2447_v9, %v2218_v42  ;;  %v2727_v20 = vadd.f32 %v2695_v17, %v2466_v36  ;;  %v2208_v4 = vadd.f32 %v2176_v0, %v8867_v3  ;;  %v11630_v19 = vld [vmem:[#allocation22_spill] sm:$0xff] }
 0x391   : > { %3162 = vrot.lane.b32.xlu0 %v3083_v31, %s6793_s22  ;;  %vm2830_vm3 = vcmp.gt.f32.partialorder %v2798_v39, 0.0  ;;  %v2862_v30 = vmul.f32 0.01, %v2798_v39  ;;  %v2648_v31 = vpop.permute.xlu2 %2647  ;;  %v2892_v49 = vsel %vm2828_vm1, %v2796_v14, %v2860_v5  ;;  %v9120_v61 = vld [vmem:[#allocation3 + $0x61] sm:$0xff]  ;;  %v2729_v58 = vadd.f32 %v2697_v51, %v2468_v34 }
 0x392   : > { %v2708_v12 = vmul.f32 %v8633_v21, %v2648_v31  ;;  %v9123_v33 = vld [vmem:[#allocation3 + $0x68] sm:$0xff]  ;;  %2981 = vst.msk [vmem:[#allocation3 + $0x81] sm:$0xff] %vm2915_vm2, %v2892_v49  ;;  %vm2841_vm4 = vcmp.gt.f32.partialorder %v2809_v35, 0.0  ;;  %v2873_v10 = vmul.f32 0.01, %v2809_v35  ;;  %v3078_v47 = vld [vmem:[#allocation3 + $0x79] sm:$0xff]  ;;  %v2763_v16 = vmul.f32 %v8682_v54, %v2727_v20 }
 0x393   : > { %v2894_v32 = vsel %vm2830_vm3, %v2798_v39, %v2862_v30  ;;  %3148 = vrot.lane.b32.xlu2 %v9120_v61, %s6793_s22  ;;  %v9133_v42 = vld [vmem:[#allocation3 + $0x60] sm:$0xff]  ;;  %v2179_v18 = vmul.f32 %v8581_v56, %v11628_v13  ;;  %v2450_v57 = vmul.f32 %v8610_v7, %v8833_v37  ;;  %v2765_v3 = vmul.f32 %v8682_v54, %v2729_v58  ;;  %v9142_v0 = vld [vmem:[#allocation3 + $0x78] sm:$0xff]  ;;  %v11629_v14 = vld [vmem:[#allocation19_spill] sm:$0xff]  ;;  %v2598_v17 = vpop.permute.xlu1 %2597 }
 0x394   : > { %2983 = vst.msk [vmem:[#allocation3 + $0x99] sm:$0xff] %vm2915_vm2, %v2894_v32  ;;  %3152 = vrot.lane.b32.xlu1 %v3078_v47, %s6793_s22  ;;  %v2740_v1 = vadd.f32 %v2708_v12, %v2479_v62  ;;  %v2905_v36 = vsel %vm2841_vm4, %v2809_v35, %v2873_v10  ;;  %v2221_v9 = vadd.f32 %v2189_v40, %v8877_v29  ;;  %v11631_v58 = vld [vmem:[#allocation36_spill] sm:$0xff]  ;;  %vm3228_vm4 = vcmask 130112  }
 0x395   : > { %3045 = vst.msk [vmem:[#allocation4 + $0x48] sm:$0xff] %vm2915_vm2, %v9123_v33  ;;  %v2192_v43 = vmul.f32 %v8581_v56, %v11629_v14  ;;  %v2799_v34 = vadd.f32 %v8709_v24, %v2763_v16  ;;  %v2469_v37 = vadd.f32 %v2437_v52, %v2208_v4  ;;  %v2440_v53 = vmul.f32 %v8610_v7, %v11630_v19  ;;  %v2608_v30 = vpop.permute.xlu0 %2607 }
 0x396   : > { %2994 = vst.msk [vmem:[#allocation3 + $0x121] sm:$0xff] %vm2915_vm2, %v2905_v36  ;;  %v2776_v39 = vmul.f32 %v8682_v54, %v2740_v1  ;;  %v2471_v60 = vadd.f32 %v2439_v6, %v8979_v22  ;;  %v2801_v5 = vadd.f32 %v8709_v24, %v2765_v3  ;;  %v2698_v27 = vmul.f32 %v8633_v21, %v2598_v17  ;;  %v3089_v6 = vld [vmem:[#allocation3 + $0xf9] sm:$0xff] }
 0x397   : > { %3044 = vst.msk [vmem:[#allocation4 + $0x40] sm:$0xff] %vm2915_vm2, %v9133_v42  ;;  %vm2831_vm5 = vcmp.gt.f32.partialorder %v2799_v34, 0.0  ;;  %v2863_v29 = vmul.f32 0.01, %v2799_v34  ;;  %v2482_v52 = vadd.f32 %v2450_v57, %v2221_v9  ;;  %v2700_v22 = vmul.f32 %v8633_v21, %v2608_v30  ;;  %v11632_v57 = vld [vmem:[#allocation205_spill] sm:$0xff] }
 0x398   : > { %v2812_v40 = vadd.f32 %v8709_v24, %v2776_v39  ;;  %3046 = vst.msk [vmem:[#allocation4 + $0x50] sm:$0xff] %vm2915_vm2, %v9142_v0  ;;  %vm2833_vm6 = vcmp.gt.f32.partialorder %v2801_v5, 0.0  ;;  %v2865_v35 = vmul.f32 0.01, %v2801_v5  ;;  %v2730_v62 = vadd.f32 %v2698_v27, %v2469_v37  ;;  %v11633_v39 = vld [vmem:[#allocation213_spill] sm:$0xff] }
 0x399   : > { %3168 = vrot.lane.b32.xlu0 %v3086_v50, %s6793_s22  ;;  %v2663_v51 = vpop.permute.xlu2 %2662  ;;  %v2895_v50 = vsel %vm2831_vm5, %v2799_v34, %v2863_v29  ;;  %v9161_v49 = vld [vmem:[#allocation3 + $0x81] sm:$0xff]  ;;  %v2732_v12 = vadd.f32 %v2700_v22, %v2471_v60  ;;  %v2442_v47 = vmul.f32 %v8610_v7, %v11631_v58  ;;  %v2184_v36 = vmul.f32 %v8581_v56, %v11632_v57 }
 0x39a   : > { %vm2844_vm7 = vcmp.gt.f32.partialorder %v2812_v40, 0.0  ;;  %v2876_v31 = vmul.f32 0.01, %v2812_v40  ;;  %2984 = vst.msk [vmem:[#allocation3 + $0xa9] sm:$0xff] %vm2915_vm2, %v2895_v50  ;;  %v2897_v20 = vsel %vm2833_vm6, %v2801_v5, %v2865_v35  ;;  %v2711_v10 = vmul.f32 %v8633_v21, %v2663_v51  ;;  %v9176_v1 = vld [vmem:[#allocation3 + $0x80] sm:$0xff] }
 0x39b   : > { %3154 = vrot.lane.b32.xlu2 %v9161_v49, %s6793_s22  ;;  %v9166_v32 = vld [vmem:[#allocation3 + $0x99] sm:$0xff]  ;;  %2986 = vst.msk [vmem:[#allocation3 + $0xc1] sm:$0xff] %vm2915_vm2, %v2897_v20  ;;  %v2766_v16 = vmul.f32 %v8682_v54, %v2730_v62  ;;  %v2211_v3 = vadd.f32 %v2179_v18, %v8880_v46  ;;  %v2768_v9 = vmul.f32 %v8682_v54, %v2732_v12  ;;  %v11634_v18 = vld [vmem:[#allocation23_spill] sm:$0xff]  ;;  %v2613_v27 = vpop.permute.xlu1 %2612 }
 0x39c   : > { %v2908_v4 = vsel %vm2844_vm7, %v2812_v40, %v2876_v31  ;;  %3158 = vrot.lane.b32.xlu1 %v9166_v32, %s6793_s22  ;;  %v9178_v13 = vld [vmem:[#allocation3 + $0x98] sm:$0xff]  ;;  %v2743_v14 = vadd.f32 %v2711_v10, %v2482_v52  ;;  %v2182_v37 = vmul.f32 %v8581_v56, %v11633_v39  ;;  %v2224_v19 = vadd.f32 %v2192_v43, %v8894_v2  ;;  %v11635_v39 = vld [vmem:[#allocation34_spill] sm:$0xff] }
 0x39d   : > { %2997 = vst.msk [vmem:[#allocation3 + $0x141] sm:$0xff] %vm2915_vm2, %v2908_v4  ;;  %v9185_v34 = vld [vmem:[#allocation3 + $0x120] sm:$0xff]  ;;  %v2453_v60 = vmul.f32 %v8610_v7, %v8916_v38  ;;  %v2802_v5 = vadd.f32 %v8709_v24, %v2766_v16  ;;  %v2472_v46 = vadd.f32 %v2440_v53, %v2211_v3  ;;  %v2443_v17 = vmul.f32 %v8610_v7, %v11634_v18  ;;  %v2623_v43 = vpop.permute.xlu0 %2622 }
 0x39e   : > { %3047 = vst.msk [vmem:[#allocation4 + $0x58] sm:$0xff] %vm2915_vm2, %v9176_v1  ;;  %v2804_v29 = vadd.f32 %v8709_v24, %v2768_v9  ;;  %v2779_v40 = vmul.f32 %v8682_v54, %v2743_v14  ;;  %v2474_v56 = vadd.f32 %v2442_v47, %v9019_v11  ;;  %v2701_v38 = vmul.f32 %v8633_v21, %v2613_v27  ;;  %v3092_v35 = vld [vmem:[#allocation3 + $0x121] sm:$0xff] }
 0x39f   : > { %3049 = vst.msk [vmem:[#allocation4 + $0x68] sm:$0xff] %vm2915_vm2, %v9178_v13  ;;  %vm2834_vm8 = vcmp.gt.f32.partialorder %v2802_v5, 0.0  ;;  %v2866_v2 = vmul.f32 0.01, %v2802_v5  ;;  %v2703_v52 = vmul.f32 %v8633_v21, %v2623_v43  ;;  %v1954_v47 = vadd.f32 %v8900_v26, %v8714_v8 }
 0x3a0   : > { %3060 = vst.msk [vmem:[#allocation4 + $0xc0] sm:$0xff] %vm2915_vm2, %v9185_v34  ;;  %vm2836_vm9 = vcmp.gt.f32.partialorder %v2804_v29, 0.0  ;;  %v2868_v53 = vmul.f32 0.01, %v2804_v29  ;;  %v2815_v30 = vadd.f32 %v8709_v24, %v2779_v40  ;;  %v2733_v50 = vadd.f32 %v2701_v38, %v2472_v46  ;;  %v9249_v46 = vld [vmem:[%s11041_s1 + $0x6] ss:$0 sm:$0xff] }
 0x3a1   : > { %3174 = vrot.lane.b32.xlu0 %v3089_v6, %s6793_s22  ;;  %v2678_v22 = vpop.permute.xlu2 %2677  ;;  %v2485_v6 = vadd.f32 %v2453_v60, %v2224_v19  ;;  %v2898_v51 = vsel %vm2834_vm8, %v2802_v5, %v2866_v2  ;;  %v9207_v11 = vld [vmem:[#allocation3 + $0xa9] sm:$0xff]  ;;  %v2735_v10 = vadd.f32 %v2703_v52, %v2474_v56  ;;  %v2214_v3 = vadd.f32 %v2182_v37, %v8931_v48  ;;  %v9239_v60 = vld [vmem:[%s11041_s1 + $0x5] ss:$0 sm:$0xff]  ;;  %v11636_v48 = vld [vmem:[#allocation186_spill] sm:$0xff] }
 0x3a2   : > { %v2714_v31 = vmul.f32 %v8633_v21, %v2678_v22  ;;  %v9210_v62 = vld [vmem:[#allocation3 + $0xb0] sm:$0xff]  ;;  %2987 = vst.msk [vmem:[#allocation3 + $0xc9] sm:$0xff] %vm2915_vm2, %v2898_v51  ;;  %v2900_v20 = vsel %vm2836_vm9, %v2804_v29, %v2868_v53  ;;  %vm2847_vm10 = vcmp.gt.f32.partialorder %v2815_v30, 0.0  ;;  %v2879_v12 = vmul.f32 0.01, %v2815_v30  ;;  %v9215_v58 = vld [vmem:[#allocation3 + $0xc1] sm:$0xff] }
 0x3a3   : > { %3160 = vrot.lane.b32.xlu2 %v9207_v11, %s6793_s22  ;;  %2989 = vst.msk [vmem:[#allocation3 + $0xe1] sm:$0xff] %vm2915_vm2, %v2900_v20  ;;  %v2769_v4 = vmul.f32 %v8682_v54, %v2733_v50  ;;  %v9224_v57 = vld [vmem:[#allocation3 + $0xa8] sm:$0xff]  ;;  %v2445_v9 = vmul.f32 %v8610_v7, %v8745_v45  ;;  %v2771_v8 = vmul.f32 %v8682_v54, %v2735_v10  ;;  %v9232_v26 = vld [vmem:[#allocation3 + $0xc0] sm:$0xff]  ;;  %v2628_v27 = vpop.permute.xlu1 %2627  ;;  %v11638_v51 = vld [vmem:[#allocation208_spill] sm:$0xff]  ;;  %vm3614_vm7 = vcmask 261312  }
 0x3a4   : > { %3164 = vrot.lane.b32.xlu1 %v9215_v58, %s6793_s22  ;;  %v2746_v16 = vadd.f32 %v2714_v31, %v2485_v6  ;;  %v2911_v14 = vsel %vm2847_vm10, %v2815_v30, %v2879_v12  ;;  %3051 = vst.msk [vmem:[#allocation4 + $0x78] sm:$0xff] %vm2915_vm2, %v9210_v62  ;;  %v1955_v19 = vadd.f32 %v8942_v28, %v11635_v39  ;;  %v11637_v28 = vld [vmem:[#allocation216_spill] sm:$0xff]  ;;  %v9266_v52 = vld [vmem:[#allocation3 + $0x141] sm:$0xff]  ;;  %v11641_v39 = vld [vmem:[#allocation37_spill] sm:$0xff]  ;;  %vm3807_vm8 = vcmask 326912  }
 0x3a5   : > { %v1925_v37 = vmul.f32 %v9239_v60, %v11636_v48  ;;  %3000 = vst.msk [vmem:[#allocation3 + $0x169] sm:$0xff] %vm2915_vm2, %v2911_v14  ;;  %v2805_v7 = vadd.f32 %v8709_v24, %v2769_v4  ;;  %v2216_v5 = vadd.f32 %v2184_v36, %v1954_v47  ;;  %v2185_v18 = vmul.f32 %v9249_v46, %v11637_v28  ;;  %v2638_v38 = vpop.permute.xlu0 %2637  ;;  %v9280_v10 = vld [vmem:[%s11041_s1 + $0x7] ss:$0 sm:$0xff]  ;;  %v11639_v47 = vld [vmem:[#allocation43_spill] sm:$0xff] }
 0x3a6   : > { %v2782_v45 = vmul.f32 %v8682_v54, %v2746_v16  ;;  %v2475_v29 = vadd.f32 %v2443_v17, %v2214_v3  ;;  %v2807_v40 = vadd.f32 %v8709_v24, %v2771_v8  ;;  %3050 = vst.msk [vmem:[#allocation4 + $0x70] sm:$0xff] %vm2915_vm2, %v9224_v57  ;;  %v2704_v36 = vmul.f32 %v8633_v21, %v2628_v27  ;;  %v9263_v17 = vld [vmem:[%s11041_s1 + $0x8] ss:$0 sm:$0xff]  ;;  %v11640_v8 = vld [vmem:[#allocation55_spill] sm:$0xff]  ;;  %v6720_v27 = vld [vmem:[%s11041_s1 + $0x4] ss:$0 sm:$0xff] }
 0x3a7   : > { %vm2837_vm11 = vcmp.gt.f32.partialorder %v2805_v7, 0.0  ;;  %v2869_v56 = vmul.f32 0.01, %v2805_v7  ;;  %3052 = vst.msk [vmem:[#allocation4 + $0x80] sm:$0xff] %vm2915_vm2, %v9232_v26  ;;  %v2477_v43 = vadd.f32 %v2445_v9, %v2216_v5  ;;  %v2706_v30 = vmul.f32 %v9263_v17, %v2638_v38  ;;  %v11643_v5 = vld [vmem:[#allocation42_spill] sm:$0xff] }
 0x3a8   : > { %v2818_v2 = vadd.f32 %v8709_v24, %v2782_v45  ;;  %vm2839_vm12 = vcmp.gt.f32.partialorder %v2807_v40, 0.0  ;;  %v2871_v53 = vmul.f32 0.01, %v2807_v40  ;;  %v2736_v21 = vadd.f32 %v2704_v36, %v2475_v29 }
 0x3a9   : > { %3180 = vrot.lane.b32.xlu0 %v3092_v35, %s6793_s22  ;;  %v2901_v35 = vsel %vm2837_vm11, %v2805_v7, %v2869_v56  ;;  %v9268_v6 = vld [vmem:[#allocation3 + $0xc9] sm:$0xff]  ;;  %v2187_v50 = vmul.f32 %v9249_v46, %v11638_v51  ;;  %v2738_v20 = vadd.f32 %v2706_v30, %v2477_v43  ;;  %v2446_v4 = vmul.f32 %v9280_v10, %v11639_v47  ;;  %v11642_v7 = vld [vmem:[#allocation41_spill] sm:$0xff] }
 0x3aa   : > { %vm2850_vm13 = vcmp.gt.f32.partialorder %v2818_v2, 0.0  ;;  %v2882_v22 = vmul.f32 0.01, %v2818_v2  ;;  %2990 = vst.msk [vmem:[#allocation3 + $0xf1] sm:$0xff] %vm2915_vm2, %v2901_v35  ;;  %v2903_v31 = vsel %vm2839_vm12, %v2807_v40, %v2871_v53  ;;  %v9275_v12 = vld [vmem:[#allocation3 + $0xe1] sm:$0xff]  ;;  %v2772_v3 = vmul.f32 %v8682_v54, %v2736_v21  ;;  %v11646_v53 = vld [vmem:[#allocation188_spill] sm:$0xff] }
 0x3ab   : > { %3166 = vrot.lane.b32.xlu2 %v9268_v6, %s6793_s22  ;;  %2992 = vst.msk [vmem:[#allocation3 + $0x109] sm:$0xff] %vm2915_vm2, %v2903_v31  ;;  %v9290_v9 = vld [vmem:[#allocation3 + $0xc8] sm:$0xff]  ;;  %v9292_v14 = vld [vmem:[#allocation3 + $0xe0] sm:$0xff]  ;;  %v1697_v48 = vadd.f32 %v11641_v39, %v11640_v8  ;;  %v1957_v45 = vadd.f32 %v1925_v37, %v11642_v7  ;;  %v2448_v28 = vmul.f32 %v9280_v10, %v11643_v5  ;;  %v9303_v54 = vld [vmem:[%s11042_s2] ss:$0 sm:$0xff]  ;;  %vm4000_vm9 = vcmask 392512  }
 0x3ac   : > { %v2914_v16 = vsel %vm2850_vm13, %v2818_v2, %v2882_v22  ;;  %3170 = vrot.lane.b32.xlu1 %v9275_v12, %s6793_s22  ;;  %v2774_v29 = vmul.f32 %v9303_v54, %v2738_v20  ;;  %v9306_v40 = vld [vmem:[#allocation3 + $0x168] sm:$0xff]  ;;  %v11645_v2 = vld [vmem:[#allocation158_spill] sm:$0xff]  ;;  %v2217_v38 = vadd.f32 %v2185_v18, %v1955_v19  ;;  %v2808_v43 = vadd.f32 %v8709_v24, %v2772_v3  ;;  %v11647_v35 = vld [vmem:[#allocation189_spill] sm:$0xff]  ;;  %v2643_v19 = vpop.permute.xlu1 %2642 }
 0x3ad   : > { %3003 = vst.msk [vmem:[#allocation3 + $0x189] sm:$0xff] %vm2915_vm2, %v2914_v16  ;;  %v11644_v56 = vld [vmem:[#allocation147_spill] sm:$0xff]  ;;  %v1667_v36 = vmul.f32 %v6720_v27, %v11645_v2  ;;  %v1926_v30 = vmul.f32 %v9239_v60, %v11646_v53  ;;  %v1928_v22 = vmul.f32 %v9239_v60, %v11647_v35  ;;  %v2219_v21 = vadd.f32 %v2187_v50, %v1957_v45  ;;  %v9323_v51 = vld [vmem:[%s11043_s3] ss:$0 sm:$0xff]  ;;  %v2653_v47 = vpop.permute.xlu0 %2652 }
 0x3ae   : > { %v1668_v37 = vmul.f32 %v6720_v27, %v11644_v56  ;;  %3053 = vst.msk [vmem:[#allocation4 + $0x88] sm:$0xff] %vm2915_vm2, %v9290_v9  ;;  %v2810_v31 = vadd.f32 %v9323_v51, %v2774_v29  ;;  %v2478_v24 = vadd.f32 %v2446_v4, %v2217_v38  ;;  %vm2840_vm14 = vcmp.gt.f32.partialorder %v2808_v43, 0.0  ;;  %v9332_v8 = vld [vmem:[#allocation3 + $0x169] sm:$0xff] }
 0x3af   : > { %3055 = vst.msk [vmem:[#allocation4 + $0x98] sm:$0xff] %vm2915_vm2, %v9292_v14  ;;  %v2872_v18 = vmul.f32 0.01, %v2808_v43  ;;  %v2707_v20 = vmul.f32 %v9263_v17, %v2643_v19  ;;  %v2480_v50 = vadd.f32 %v2448_v28, %v2219_v21  ;;  %v2709_v3 = vmul.f32 %v9263_v17, %v2653_v47  ;;  %v11648_v39 = vld [vmem:[#allocation28_spill] sm:$0xff]  ;;  %v11649_v45 = vld [vmem:[#allocation219_spill] sm:$0xff]  ;;  %v11651_v21 = vld [vmem:[#allocation49_spill] sm:$0xff] }
 0x3b0   : > { %3066 = vst.msk [vmem:[#allocation4 + $0xf0] sm:$0xff] %vm2915_vm2, %v9306_v40  ;;  %vm2842_vm15 = vcmp.gt.f32.partialorder %v2810_v31, 0.0  ;;  %v2874_v16 = vmul.f32 0.01, %v2810_v31  ;;  %v1699_v7 = vadd.f32 %v1667_v36, %v11648_v39  ;;  %v2188_v4 = vmul.f32 %v9249_v46, %v11649_v45  ;;  %v11650_v56 = vld [vmem:[#allocation211_spill] sm:$0xff] }
 0x3b1   : > { %3186 = vrot.lane.b32.xlu0 %v9266_v52, %s6793_s22  ;;  %v2904_v5 = vsel %vm2840_vm14, %v2808_v43, %v2872_v18  ;;  %v2739_v29 = vadd.f32 %v2707_v20, %v2478_v24  ;;  %v9337_v27 = vld [vmem:[#allocation3 + $0xf1] sm:$0xff]  ;;  %v2190_v2 = vmul.f32 %v9249_v46, %v11650_v56  ;;  %v2741_v38 = vadd.f32 %v2709_v3, %v2480_v50  ;;  %v11655_v39 = vld [vmem:[#allocation191_spill] sm:$0xff] }
 0x3b2   : > { %2993 = vst.msk [vmem:[#allocation3 + $0x111] sm:$0xff] %vm2915_vm2, %v2904_v5  ;;  %v2906_v28 = vsel %vm2842_vm15, %v2810_v31, %v2874_v16  ;;  %v9344_v53 = vld [vmem:[#allocation3 + $0x109] sm:$0xff]  ;;  %v9346_v36 = vld [vmem:[#allocation3 + $0xf8] sm:$0xff]  ;;  %v1958_v35 = vadd.f32 %v1926_v30, %v1697_v48  ;;  %v2449_v43 = vmul.f32 %v9280_v10, %v11651_v21  ;;  %v3004_v31 = vld [vmem:[#allocation3] sm:$0xff]  ;;  %v1960_v48 = vadd.f32 %v1928_v22, %v1699_v7 }
 0x3b3   : > { %3172 = vrot.lane.b32.xlu2 %v9337_v27, %s6793_s22  ;;  %2995 = vst.msk [vmem:[#allocation3 + $0x129] sm:$0xff] %vm2915_vm2, %v2906_v28  ;;  %v2775_v19 = vmul.f32 %v9303_v54, %v2739_v29  ;;  %v9356_v24 = vld [vmem:[#allocation3 + $0xf0] sm:$0xff]  ;;  %v11653_v20 = vld [vmem:[#allocation29_spill] sm:$0xff]  ;;  %v11654_v30 = vld [vmem:[#allocation47_spill] sm:$0xff]  ;;  %v2777_v16 = vmul.f32 %v9303_v54, %v2741_v38  ;;  %v1929_v45 = vmul.f32 %v9239_v60, %v11655_v39  ;;  %vm4194_vm10 = vcmask 458112  }
 0x3b4   : > { %3176 = vrot.lane.b32.xlu1 %v9344_v53, %s6793_s22  ;;  %v11652_v18 = vld [vmem:[#allocation24_spill] sm:$0xff]  ;;  %v2451_v50 = vmul.f32 %v9280_v10, %v11654_v30  ;;  %3036 = vst.msk [vmem:[#allocation4] sm:$0xff] %vm2915_vm2, %v3004_v31  ;;  %v9364_v3 = vld [vmem:[#allocation3 + $0x108] sm:$0xff]  ;;  %v2220_v5 = vadd.f32 %v2188_v4, %v1958_v35  ;;  %v2222_v22 = vadd.f32 %v2190_v2, %v1960_v48  ;;  %v11656_v7 = vld [vmem:[#allocation10_spill] sm:$0xff]  ;;  %v2658_v21 = vpop.permute.xlu1 %2657  ;;  %vm4387_vm11 = vcmask 523712  }
 0x3b5   : > { %v1439_v47 = vadd.f32 %v11653_v20, %v11652_v18  ;;  %v2811_v29 = vadd.f32 %v9323_v51, %v2775_v19  ;;  %3057 = vst.msk [vmem:[#allocation4 + $0xa8] sm:$0xff] %vm2915_vm2, %v9346_v36  ;;  %v2191_v28 = vmul.f32 %v9249_v46, %v11656_v7  ;;  %v2813_v38 = vadd.f32 %v9323_v51, %v2777_v16  ;;  %v2668_v35 = vpop.permute.xlu0 %2667  ;;  %v3262_v19 = vld [vmem:[#allocation3 + $0xa] sm:$0xff] }
 0x3b6   : > { %3056 = vst.msk [vmem:[#allocation4 + $0xa0] sm:$0xff] %vm2915_vm2, %v9356_v24  ;;  %v2481_v31 = vadd.f32 %v2449_v43, %v2220_v5  ;;  %v2710_v4 = vmul.f32 %v9263_v17, %v2658_v21  ;;  %v2712_v46 = vmul.f32 %v9263_v17, %v2668_v35  ;;  %v11657_v43 = vld [vmem:[#allocation33_spill] sm:$0xff]  ;;  %vm4580_vm12 = vcmask 589312  }
 0x3b7   : > { %v1700_v56 = vadd.f32 %v1668_v37, %v1439_v47  ;;  %vm2843_vm0 = vcmp.gt.f32.partialorder %v2811_v29, 0.0  ;;  %v2875_v60 = vmul.f32 0.01, %v2811_v29  ;;  %3058 = vst.msk [vmem:[#allocation4 + $0xb0] sm:$0xff] %vm2915_vm2, %v9364_v3  ;;  %v2483_v37 = vadd.f32 %v2451_v50, %v2222_v22 }
 0x3b8   : > { %vm2845_vm1 = vcmp.gt.f32.partialorder %v2813_v38, 0.0  ;;  %v2877_v2 = vmul.f32 0.01, %v2813_v38  ;;  %v2742_v47 = vadd.f32 %v2710_v4, %v2481_v31  ;;  %v2452_v30 = vmul.f32 %v9280_v10, %v11657_v43 }
 0x3b9   : > { %3192 = vrot.lane.b32.xlu0 %v9332_v8, %s6793_s22  ;;  %v1961_v18 = vadd.f32 %v1929_v45, %v1700_v56  ;;  %v2907_v20 = vsel %vm2843_vm0, %v2811_v29, %v2875_v60  ;;  %v9380_v48 = vld [vmem:[#allocation3 + $0x111] sm:$0xff]  ;;  %v2744_v39 = vadd.f32 %v2712_v46, %v2483_v37  ;;  %vm4654_vm13 = vcmask 588800  }
 0x3ba   : > { %2996 = vst.msk [vmem:[#allocation3 + $0x139] sm:$0xff] %vm2915_vm2, %v2907_v20  ;;  %v2909_v16 = vsel %vm2845_vm1, %v2813_v38, %v2877_v2  ;;  %v9387_v50 = vld [vmem:[#allocation3 + $0x129] sm:$0xff]  ;;  %v2778_v45 = vmul.f32 %v9303_v54, %v2742_v47  ;;  %vm5256_vm15 = vcmask 123904   ;;  %vm6153_vm1 = vcmask 130048  }
 0x3bb   : > { %3178 = vrot.lane.b32.xlu2 %v9380_v48, %s6793_s22  ;;  %2998 = vst.msk [vmem:[#allocation3 + $0x151] sm:$0xff] %vm2915_vm2, %v2909_v16  ;;  %v9394_v10 = vld [vmem:[#allocation3 + $0x110] sm:$0xff]  ;;  %v9396_v5 = vld [vmem:[#allocation3 + $0x128] sm:$0xff]  ;;  %v2223_v29 = vadd.f32 %v2191_v28, %v1961_v18  ;;  %v2780_v56 = vmul.f32 %v9303_v54, %v2744_v39 }
 0x3bc   : > { %3182 = vrot.lane.b32.xlu1 %v9387_v50, %s6793_s22  ;;  %3059 = vst.msk [vmem:[#allocation4 + $0xb8] sm:$0xff] %vm2915_vm2, %v9394_v10  ;;  %v2814_v22 = vadd.f32 %v9323_v51, %v2778_v45  ;;  %v2673_v21 = vpop.permute.xlu1 %2672  ;;  %v9412_v18 = vld [vmem:[#allocation3 + $0x32] sm:$0xff] }
 0x3bd   : > { %3061 = vst.msk [vmem:[#allocation4 + $0xc8] sm:$0xff] %vm2915_vm2, %v9396_v5  ;;  %v2484_v7 = vadd.f32 %v2452_v30, %v2223_v29  ;;  %v2816_v38 = vadd.f32 %v9323_v51, %v2780_v56  ;;  %v2713_v60 = vmul.f32 %v9263_v17, %v2673_v21  ;;  %v3133_v28 = vpop.permute.xlu0 %3132  ;;  %v9438_v45 = vld [vmem:[#allocation3 + $0x52] sm:$0xff]  ;;  %v9458_v21 = vld [vmem:[#allocation3 + $0x7a] sm:$0xff] }
 0x3be   : > { %vm2846_vm3 = vcmp.gt.f32.partialorder %v2814_v22, 0.0  ;;  %v2878_v31 = vmul.f32 0.01, %v2814_v22  ;;  %3229 = vst.msk [vmem:[#allocation4] sm:$0xff] %vm3228_vm4, %v3133_v28  ;;  %v9468_v28 = vld [vmem:[#allocation3 + $0x22] sm:$0xff] }
 0x3bf   : > { %vm2848_vm5 = vcmp.gt.f32.partialorder %v2816_v38, 0.0  ;;  %v2880_v4 = vmul.f32 0.01, %v2816_v38  ;;  %v2745_v37 = vadd.f32 %v2713_v60, %v2484_v7  ;;  %v3261_v7 = vld [vmem:[#allocation3 + $0x2] sm:$0xff]  ;;  %11658 = vst [vmem:[#allocation54_spill] sm:$0xff] %v9458_v21 }
 0x3c0   : > { %v2910_v35 = vsel %vm2846_vm3, %v2814_v22, %v2878_v31  ;;  %v3005_v22 = vld [vmem:[#allocation3 + $0x8] sm:$0xff]  ;;  %v9461_v31 = vld [vmem:[#allocation3 + $0x1a] sm:$0xff] }
 0x3c1   : > { %3327 = vrot.lane.b32.xlu0 %v3262_v19, %s6794_s14  ;;  %v9407_v2 = vld [vmem:[#allocation3 + $0x139] sm:$0xff]  ;;  %2999 = vst.msk [vmem:[#allocation3 + $0x159] sm:$0xff] %vm2915_vm2, %v2910_v35  ;;  %v2912_v19 = vsel %vm2848_vm5, %v2816_v38, %v2880_v4  ;;  %v2781_v47 = vmul.f32 %v9303_v54, %v2745_v37 }
 0x3c2   : > { %v9409_v46 = vld [vmem:[#allocation3 + $0x140] sm:$0xff]  ;;  %v9416_v17 = vld [vmem:[#allocation3 + $0x151] sm:$0xff]  ;;  %3001 = vst.msk [vmem:[#allocation3 + $0x171] sm:$0xff] %vm2915_vm2, %v2912_v19 }
 0x3c3   : > { %3184 = vrot.lane.b32.xlu2 %v9407_v2, %s6793_s22  ;;  %v9418_v20 = vld [vmem:[#allocation3 + $0x138] sm:$0xff]  ;;  %v9426_v43 = vld [vmem:[#allocation3 + $0x150] sm:$0xff]  ;;  %3063 = vst.msk [vmem:[#allocation4 + $0xd8] sm:$0xff] %vm2915_vm2, %v9409_v46  ;;  %v2817_v30 = vadd.f32 %v9323_v51, %v2781_v47  ;;  %v9483_v47 = vld [vmem:[#allocation3 + $0xc2] sm:$0xff] }
 0x3c4   : > { %3188 = vrot.lane.b32.xlu1 %v9416_v17, %s6793_s22  ;;  %3062 = vst.msk [vmem:[#allocation4 + $0xd0] sm:$0xff] %vm2915_vm2, %v9418_v20  ;;  %v9470_v4 = vld [vmem:[#allocation3 + $0x9a] sm:$0xff]  ;;  %v9481_v19 = vld [vmem:[#allocation3 + $0x4a] sm:$0xff] }
 0x3c5   : > { %3064 = vst.msk [vmem:[#allocation4 + $0xe0] sm:$0xff] %vm2915_vm2, %v9426_v43  ;;  %vm2849_vm6 = vcmp.gt.f32.partialorder %v2817_v30, 0.0  ;;  %v2881_v54 = vmul.f32 0.01, %v2817_v30  ;;  %v9474_v35 = vld [vmem:[#allocation3 + $0x3a] sm:$0xff] }
 0x3c6   : > { %3037 = vst.msk [vmem:[#allocation4 + $0x8] sm:$0xff] %vm2915_vm2, %v3005_v22  ;;  %v9495_v22 = vld [vmem:[#allocation3 + $0x6a] sm:$0xff] }
 0x3c7   : > { %v2913_v16 = vsel %vm2849_vm6, %v2817_v30, %v2881_v54  ;;  %11659 = vst [vmem:[#allocation59_spill] sm:$0xff] %v9470_v4  ;;  %v9487_v30 = vld [vmem:[#allocation3 + $0x62] sm:$0xff] }
 0x3c8   : > { %v9435_v39 = vld [vmem:[#allocation3 + $0x159] sm:$0xff]  ;;  %3002 = vst.msk [vmem:[#allocation3 + $0x181] sm:$0xff] %vm2915_vm2, %v2913_v16  ;;  %v3135_v38 = vpop.permute.xlu1 %3134 }
 0x3c9   : > { %3333 = vrot.lane.b32.xlu0 %v9412_v18, %s6794_s14  ;;  %v9442_v29 = vld [vmem:[#allocation3 + $0x171] sm:$0xff]  ;;  %3230 = vst.msk [vmem:[#allocation4 + $0x8] sm:$0xff] %vm3228_vm4, %v3135_v38  ;;  %v9501_v38 = vld [vmem:[#allocation3 + $0x82] sm:$0xff] }
 0x3ca   : > { %v9448_v51 = vld [vmem:[#allocation3 + $0x158] sm:$0xff]  ;;  %v9450_v56 = vld [vmem:[#allocation3 + $0x170] sm:$0xff]  ;;  %11660 = vst [vmem:[#allocation60_spill] sm:$0xff] %v9483_v47 }
 0x3cb   : > { %3190 = vrot.lane.b32.xlu2 %v9435_v39, %s6793_s22  ;;  %3065 = vst.msk [vmem:[#allocation4 + $0xe8] sm:$0xff] %vm2915_vm2, %v9448_v51 }
 0x3cc   : > { %3194 = vrot.lane.b32.xlu1 %v9442_v29, %s6793_s22  ;;  %3067 = vst.msk [vmem:[#allocation4 + $0xf8] sm:$0xff] %vm2915_vm2, %v9450_v56  ;;  %vm3421_vm2 = vcmask 195712  }
 0x3cd   : > { %11662 = vst [vmem:[#allocation65_spill] sm:$0xff] %v9501_v38 }
 0x3d1   : > { %3339 = vrot.lane.b32.xlu0 %v9438_v45, %s6794_s14 }
 0x3d3   : > { %3325 = vrot.lane.b32.xlu2 %v3261_v7, %s6794_s14  ;;  %v9497_v7 = vld [vmem:[#allocation3 + $0xe2] sm:$0xff] }
 0x3d4   : > { %3329 = vrot.lane.b32.xlu1 %v9461_v31, %s6794_s14  ;;  %11661 = vst [vmem:[#allocation61_spill] sm:$0xff] %v9497_v7 }
 0x3d9   : > { %3345 = vrot.lane.b32.xlu0 %v9458_v21, %s6794_s14  ;;  %v9541_v21 = vld [vmem:[#allocation3 + $0x152] sm:$0xff] }
 0x3da   : > { %v3139_v60 = vpop.permute.xlu0 %3138  ;;  %11668 = vst [vmem:[#allocation77_spill] sm:$0xff] %v9541_v21 }
 0x3db   : > { %3232 = vst.msk [vmem:[#allocation4 + $0x18] sm:$0xff] %vm3228_vm4, %v3139_v60  ;;  %3331 = vrot.lane.b32.xlu2 %v9468_v28, %s6794_s14 }
 0x3dc   : > { %3335 = vrot.lane.b32.xlu1 %v9474_v35, %s6794_s14 }
 0x3dd   : > { %v3137_v37 = vpop.permute.xlu2 %3136 }
 0x3de   : > { %3231 = vst.msk [vmem:[#allocation4 + $0x10] sm:$0xff] %vm3228_vm4, %v3137_v37 }
 0x3e1   : > { %3351 = vrot.lane.b32.xlu0 %v9470_v4, %s6794_s14 }
 0x3e3   : > { %3337 = vrot.lane.b32.xlu2 %v9481_v19, %s6794_s14 }
 0x3e4   : > { %3341 = vrot.lane.b32.xlu1 %v9487_v30, %s6794_s14 }
 0x3e5   : > { %v3143_v54 = vpop.permute.xlu2 %3142 }
 0x3e6   : > { %3234 = vst.msk [vmem:[#allocation4 + $0x28] sm:$0xff] %vm3228_vm4, %v3143_v54  ;;  %v9509_v54 = vld [vmem:[#allocation3 + $0x92] sm:$0xff] }
 0x3e9   : > { %3357 = vrot.lane.b32.xlu0 %v9483_v47, %s6794_s14  ;;  %v9515_v47 = vld [vmem:[#allocation3 + $0xaa] sm:$0xff] }
 0x3ea   : > { %11664 = vst [vmem:[#allocation67_spill] sm:$0xff] %v9515_v47 }
 0x3eb   : > { %v3145_v16 = vpop.permute.xlu0 %3144  ;;  %3343 = vrot.lane.b32.xlu2 %v9495_v22, %s6794_s14 }
 0x3ec   : > { %3235 = vst.msk [vmem:[#allocation4 + $0x30] sm:$0xff] %vm3228_vm4, %v3145_v16  ;;  %3347 = vrot.lane.b32.xlu1 %v9501_v38, %s6794_s14  ;;  %v9511_v16 = vld [vmem:[#allocation3 + $0x10a] sm:$0xff] }
 0x3ed   : > { %v3149_v60 = vpop.permute.xlu2 %3148  ;;  %11663 = vst [vmem:[#allocation66_spill] sm:$0xff] %v9511_v16  ;;  %v9526_v38 = vld [vmem:[#allocation3 + $0x12a] sm:$0xff] }
 0x3ee   : > { %3237 = vst.msk [vmem:[#allocation4 + $0x40] sm:$0xff] %vm3228_vm4, %v3149_v60 }
 0x3ef   : > { %11665 = vst [vmem:[#allocation71_spill] sm:$0xff] %v9526_v38 }
 0x3f1   : > { %3363 = vrot.lane.b32.xlu0 %v9497_v7, %s6794_s14 }
 0x3f3   : > { %v3151_v37 = vpop.permute.xlu0 %3150  ;;  %3349 = vrot.lane.b32.xlu2 %v9509_v54, %s6794_s14 }
 0x3f4   : > { %3238 = vst.msk [vmem:[#allocation4 + $0x48] sm:$0xff] %vm3228_vm4, %v3151_v37  ;;  %3353 = vrot.lane.b32.xlu1 %v9515_v47, %s6794_s14  ;;  %v9524_v37 = vld [vmem:[#allocation3 + $0xb2] sm:$0xff] }
 0x3f5   : > { %v3155_v7 = vpop.permute.xlu2 %3154 }
 0x3f6   : > { %3240 = vst.msk [vmem:[#allocation4 + $0x58] sm:$0xff] %vm3228_vm4, %v3155_v7  ;;  %v3141_v60 = vpop.permute.xlu1 %3140 }
 0x3f7   : > { %3233 = vst.msk [vmem:[#allocation4 + $0x20] sm:$0xff] %vm3228_vm4, %v3141_v60  ;;  %v9539_v60 = vld [vmem:[#allocation3 + $0xda] sm:$0xff] }
 0x3f8   : > { %11667 = vst [vmem:[#allocation73_spill] sm:$0xff] %v9539_v60 }
 0x3f9   : > { %3369 = vrot.lane.b32.xlu0 %v9511_v16, %s6794_s14  ;;  %v9530_v16 = vld [vmem:[#allocation3 + $0xca] sm:$0xff] }
 0x3fa   : > { %11666 = vst [vmem:[#allocation72_spill] sm:$0xff] %v9530_v16 }
 0x3fb   : > { %v3157_v4 = vpop.permute.xlu0 %3156  ;;  %3355 = vrot.lane.b32.xlu2 %v9524_v37, %s6794_s14 }
 0x3fc   : > { %3241 = vst.msk [vmem:[#allocation4 + $0x60] sm:$0xff] %vm3228_vm4, %v3157_v4  ;;  %3359 = vrot.lane.b32.xlu1 %v9530_v16, %s6794_s14 }
 0x3fd   : > { %v3161_v7 = vpop.permute.xlu2 %3160 }
 0x3fe   : > { %3243 = vst.msk [vmem:[#allocation4 + $0x70] sm:$0xff] %vm3228_vm4, %v3161_v7  ;;  %v3147_v4 = vpop.permute.xlu1 %3146 }
 0x3ff   : > { %3236 = vst.msk [vmem:[#allocation4 + $0x38] sm:$0xff] %vm3228_vm4, %v3147_v4  ;;  %v9554_v4 = vld [vmem:[#allocation3 + $0xfa] sm:$0xff] }
 0x400   : > { %11670 = vst [vmem:[#allocation79_spill] sm:$0xff] %v9554_v4 }
 0x401   : > { %3375 = vrot.lane.b32.xlu0 %v9526_v38, %s6794_s14  ;;  %v9545_v38 = vld [vmem:[#allocation3 + $0xf2] sm:$0xff] }
 0x402   : > { %11669 = vst [vmem:[#allocation78_spill] sm:$0xff] %v9545_v38 }
 0x403   : > { %v3163_v47 = vpop.permute.xlu0 %3162  ;;  %3361 = vrot.lane.b32.xlu2 %v9539_v60, %s6794_s14  ;;  %v9556_v60 = vld [vmem:[#allocation3 + $0x172] sm:$0xff] }
 0x404   : > { %3244 = vst.msk [vmem:[#allocation4 + $0x78] sm:$0xff] %vm3228_vm4, %v3163_v47  ;;  %3365 = vrot.lane.b32.xlu1 %v9545_v38, %s6794_s14 }
 0x405   : > { %v3167_v7 = vpop.permute.xlu2 %3166  ;;  %11671 = vst [vmem:[#allocation83_spill] sm:$0xff] %v9556_v60 }
 0x406   : > { %3246 = vst.msk [vmem:[#allocation4 + $0x88] sm:$0xff] %vm3228_vm4, %v3167_v7  ;;  %v3153_v47 = vpop.permute.xlu1 %3152 }
 0x407   : > { %3239 = vst.msk [vmem:[#allocation4 + $0x50] sm:$0xff] %vm3228_vm4, %v3153_v47  ;;  %v9569_v47 = vld [vmem:[#allocation3 + $0x122] sm:$0xff] }
 0x409   : > { %3381 = vrot.lane.b32.xlu0 %v9541_v21, %s6794_s14  ;;  %v9560_v21 = vld [vmem:[#allocation3 + $0x112] sm:$0xff] }
 0x40a   : > { %11672 = vst [vmem:[#allocation84_spill] sm:$0xff] %v9560_v21 }
 0x40b   : > { %v3169_v16 = vpop.permute.xlu0 %3168  ;;  %3367 = vrot.lane.b32.xlu2 %v9554_v4, %s6794_s14  ;;  %v9573_v4 = vld [vmem:[#allocation3 + $0x13a] sm:$0xff] }
 0x40c   : > { %3247 = vst.msk [vmem:[#allocation4 + $0x90] sm:$0xff] %vm3228_vm4, %v3169_v16  ;;  %3371 = vrot.lane.b32.xlu1 %v9560_v21, %s6794_s14  ;;  %v9586_v21 = vld [vmem:[#allocation3 + $0x15a] sm:$0xff] }
 0x40d   : > { %v3173_v7 = vpop.permute.xlu2 %3172  ;;  %11673 = vst [vmem:[#allocation85_spill] sm:$0xff] %v9586_v21 }
 0x40e   : > { %3249 = vst.msk [vmem:[#allocation4 + $0xa0] sm:$0xff] %vm3228_vm4, %v3173_v7  ;;  %v3159_v16 = vpop.permute.xlu1 %3158 }
 0x40f   : > { %3242 = vst.msk [vmem:[#allocation4 + $0x68] sm:$0xff] %vm3228_vm4, %v3159_v16  ;;  %v9582_v16 = vld [vmem:[#allocation3 + $0x142] sm:$0xff] }
 0x411   : > { %3387 = vrot.lane.b32.xlu0 %v9556_v60, %s6794_s14 }
 0x413   : > { %v3175_v38 = vpop.permute.xlu0 %3174  ;;  %3373 = vrot.lane.b32.xlu2 %v9569_v47, %s6794_s14 }
 0x414   : > { %3250 = vst.msk [vmem:[#allocation4 + $0xa8] sm:$0xff] %vm3228_vm4, %v3175_v38  ;;  %3377 = vrot.lane.b32.xlu1 %v9573_v4, %s6794_s14 }
 0x415   : > { %v3179_v7 = vpop.permute.xlu2 %3178 }
 0x416   : > { %3252 = vst.msk [vmem:[#allocation4 + $0xb8] sm:$0xff] %vm3228_vm4, %v3179_v7  ;;  %v3165_v38 = vpop.permute.xlu1 %3164 }
 0x417   : > { %3245 = vst.msk [vmem:[#allocation4 + $0x80] sm:$0xff] %vm3228_vm4, %v3165_v38  ;;  %v9595_v38 = vld [vmem:[#allocation3 + $0x16a] sm:$0xff] }
 0x419   : > { %3522 = vrot.lane.b32.xlu0 %v9060_v59, %s6795_s15 }
 0x41b   : > { %v3181_v60 = vpop.permute.xlu0 %3180  ;;  %3379 = vrot.lane.b32.xlu2 %v9582_v16, %s6794_s14 }
 0x41c   : > { %3253 = vst.msk [vmem:[#allocation4 + $0xc0] sm:$0xff] %vm3228_vm4, %v3181_v60  ;;  %3383 = vrot.lane.b32.xlu1 %v9586_v21, %s6794_s14 }
 0x41d   : > { %v3185_v59 = vpop.permute.xlu2 %3184 }
 0x41e   : > { %3255 = vst.msk [vmem:[#allocation4 + $0xd0] sm:$0xff] %vm3228_vm4, %v3185_v59  ;;  %v3171_v60 = vpop.permute.xlu1 %3170 }
 0x41f   : > { %3248 = vst.msk [vmem:[#allocation4 + $0x98] sm:$0xff] %vm3228_vm4, %v3171_v60 }
 0x421   : > { %3528 = vrot.lane.b32.xlu0 %v9090_v23, %s6795_s15 }
 0x423   : > { %v3187_v7 = vpop.permute.xlu0 %3186  ;;  %3385 = vrot.lane.b32.xlu2 %v9595_v38, %s6794_s14 }
 0x424   : > { %3256 = vst.msk [vmem:[#allocation4 + $0xd8] sm:$0xff] %vm3228_vm4, %v3187_v7  ;;  %3518 = vrot.lane.b32.xlu1 %v9052_v55, %s6795_s15 }
 0x425   : > { %v3191_v23 = vpop.permute.xlu2 %3190 }
 0x426   : > { %3258 = vst.msk [vmem:[#allocation4 + $0xe8] sm:$0xff] %vm3228_vm4, %v3191_v23  ;;  %v3177_v59 = vpop.permute.xlu1 %3176 }
 0x427   : > { %3251 = vst.msk [vmem:[#allocation4 + $0xb0] sm:$0xff] %vm3228_vm4, %v3177_v59 }
 0x429   : > { %3534 = vrot.lane.b32.xlu0 %v9142_v0, %s6795_s15 }
 0x42b   : > { %v3193_v21 = vpop.permute.xlu0 %3192  ;;  %3520 = vrot.lane.b32.xlu2 %v9042_v63, %s6795_s15 }
 0x42c   : > { %3259 = vst.msk [vmem:[#allocation4 + $0xf0] sm:$0xff] %vm3228_vm4, %v3193_v21  ;;  %3524 = vrot.lane.b32.xlu1 %v9088_v15, %s6795_s15 }
 0x42d   : > { %v3326_v55 = vpop.permute.xlu2 %3325 }
 0x42e   : > { %3422 = vst.msk [vmem:[#allocation4] sm:$0xff] %vm3421_vm2, %v3326_v55  ;;  %v3183_v23 = vpop.permute.xlu1 %3182  ;;  %v3647_v55 = vld [vmem:[#allocation3 + $0x19] sm:$0xff] }
 0x42f   : > { %3254 = vst.msk [vmem:[#allocation4 + $0xc8] sm:$0xff] %vm3228_vm4, %v3183_v23  ;;  %v6722_v23 = vld [vmem:[#allocation3 + $0x39] sm:$0xff] }
 0x431   : > { %3540 = vrot.lane.b32.xlu0 %v9178_v13, %s6795_s15 }
 0x433   : > { %v3328_v7 = vpop.permute.xlu0 %3327  ;;  %3526 = vrot.lane.b32.xlu2 %v8983_v41, %s6795_s15 }
 0x434   : > { %3423 = vst.msk [vmem:[#allocation4 + $0x8] sm:$0xff] %vm3421_vm2, %v3328_v7  ;;  %3530 = vrot.lane.b32.xlu1 %v9133_v42, %s6795_s15 }
 0x435   : > { %v3332_v63 = vpop.permute.xlu2 %3331 }
 0x436   : > { %3425 = vst.msk [vmem:[#allocation4 + $0x18] sm:$0xff] %vm3421_vm2, %v3332_v63  ;;  %v3189_v13 = vpop.permute.xlu1 %3188 }
 0x437   : > { %3257 = vst.msk [vmem:[#allocation4 + $0xe0] sm:$0xff] %vm3228_vm4, %v3189_v13 }
 0x439   : > { %3546 = vrot.lane.b32.xlu0 %v9232_v26, %s6795_s15 }
 0x43b   : > { %v3334_v15 = vpop.permute.xlu0 %3333  ;;  %3532 = vrot.lane.b32.xlu2 %v9123_v33, %s6795_s15 }
 0x43c   : > { %3426 = vst.msk [vmem:[#allocation4 + $0x20] sm:$0xff] %vm3421_vm2, %v3334_v15  ;;  %3536 = vrot.lane.b32.xlu1 %v9176_v1, %s6795_s15  ;;  %v9687_v15 = vld [vmem:[#allocation3 + $0x180] sm:$0xff] }
 0x43d   : > { %v3338_v41 = vpop.permute.xlu2 %3337 }
 0x43e   : > { %3428 = vst.msk [vmem:[#allocation4 + $0x30] sm:$0xff] %vm3421_vm2, %v3338_v41  ;;  %v3195_v26 = vpop.permute.xlu1 %3194 }
 0x43f   : > { %3260 = vst.msk [vmem:[#allocation4 + $0xf8] sm:$0xff] %vm3228_vm4, %v3195_v26  ;;  %v3648_v26 = vld [vmem:[#allocation3 + $0x21] sm:$0xff] }
 0x441   : > { %3552 = vrot.lane.b32.xlu0 %v9292_v14, %s6795_s15 }
 0x443   : > { %v3340_v42 = vpop.permute.xlu0 %3339  ;;  %3538 = vrot.lane.b32.xlu2 %v9016_v44, %s6795_s15 }
 0x444   : > { %3429 = vst.msk [vmem:[#allocation4 + $0x38] sm:$0xff] %vm3421_vm2, %v3340_v42  ;;  %3542 = vrot.lane.b32.xlu1 %v9224_v57, %s6795_s15  ;;  %v9696_v42 = vld [vmem:[#allocation3 + $0x188] sm:$0xff] }
 0x445   : > { %v3344_v14 = vpop.permute.xlu2 %3343 }
 0x446   : > { %3431 = vst.msk [vmem:[#allocation4 + $0x48] sm:$0xff] %vm3421_vm2, %v3344_v14  ;;  %v3330_v21 = vpop.permute.xlu1 %3329 }
 0x447   : > { %3424 = vst.msk [vmem:[#allocation4 + $0x10] sm:$0xff] %vm3421_vm2, %v3330_v21  ;;  %v9706_v21 = vld [vmem:[#allocation3 + $0x31] sm:$0xff] }
 0x449   : > { %3558 = vrot.lane.b32.xlu0 %v9364_v3, %s6795_s15 }
 0x44b   : > { %v3346_v1 = vpop.permute.xlu0 %3345  ;;  %3544 = vrot.lane.b32.xlu2 %v9210_v62, %s6795_s15 }
 0x44c   : > { %3432 = vst.msk [vmem:[#allocation4 + $0x50] sm:$0xff] %vm3421_vm2, %v3346_v1  ;;  %3548 = vrot.lane.b32.xlu1 %v9290_v9, %s6795_s15 }
 0x44d   : > { %v3350_v44 = vpop.permute.xlu2 %3349 }
 0x44e   : > { %3434 = vst.msk [vmem:[#allocation4 + $0x60] sm:$0xff] %vm3421_vm2, %v3350_v44  ;;  %v3336_v3 = vpop.permute.xlu1 %3335  ;;  %v9710_v44 = vld [vmem:[#allocation3 + $0x49] sm:$0xff] }
 0x44f   : > { %3427 = vst.msk [vmem:[#allocation4 + $0x28] sm:$0xff] %vm3421_vm2, %v3336_v3 }
 0x451   : > { %3564 = vrot.lane.b32.xlu0 %v9396_v5, %s6795_s15 }
 0x453   : > { %v3352_v57 = vpop.permute.xlu0 %3351  ;;  %3550 = vrot.lane.b32.xlu2 %v9097_v25, %s6795_s15 }
 0x454   : > { %3435 = vst.msk [vmem:[#allocation4 + $0x68] sm:$0xff] %vm3421_vm2, %v3352_v57  ;;  %3554 = vrot.lane.b32.xlu1 %v9356_v24, %s6795_s15 }
 0x455   : > { %v3356_v62 = vpop.permute.xlu2 %3355 }
 0x456   : > { %3437 = vst.msk [vmem:[#allocation4 + $0x78] sm:$0xff] %vm3421_vm2, %v3356_v62  ;;  %v3342_v5 = vpop.permute.xlu1 %3341  ;;  %v9719_v62 = vld [vmem:[#allocation3 + $0x51] sm:$0xff] }
 0x457   : > { %3430 = vst.msk [vmem:[#allocation4 + $0x40] sm:$0xff] %vm3421_vm2, %v3342_v5 }
 0x459   : > { %3570 = vrot.lane.b32.xlu0 %v9426_v43, %s6795_s15 }
 0x45b   : > { %v3358_v9 = vpop.permute.xlu0 %3357  ;;  %3556 = vrot.lane.b32.xlu2 %v9346_v36, %s6795_s15 }
 0x45c   : > { %3438 = vst.msk [vmem:[#allocation4 + $0x80] sm:$0xff] %vm3421_vm2, %v3358_v9  ;;  %3560 = vrot.lane.b32.xlu1 %v9394_v10, %s6795_s15  ;;  %v3654_v9 = vld [vmem:[#allocation3 + $0x69] sm:$0xff] }
 0x45d   : > { %v3362_v25 = vpop.permute.xlu2 %3361 }
 0x45e   : > { %3440 = vst.msk [vmem:[#allocation4 + $0x90] sm:$0xff] %vm3421_vm2, %v3362_v25  ;;  %v3348_v59 = vpop.permute.xlu1 %3347 }
 0x45f   : > { %3433 = vst.msk [vmem:[#allocation4 + $0x58] sm:$0xff] %vm3421_vm2, %v3348_v59  ;;  %v9730_v59 = vld [vmem:[#allocation3 + $0x91] sm:$0xff] }
 0x461   : > { %3576 = vrot.lane.b32.xlu0 %v9450_v56, %s6795_s15 }
 0x463   : > { %v3364_v60 = vpop.permute.xlu0 %3363  ;;  %3562 = vrot.lane.b32.xlu2 %v9185_v34, %s6795_s15 }
 0x464   : > { %3441 = vst.msk [vmem:[#allocation4 + $0x98] sm:$0xff] %vm3421_vm2, %v3364_v60  ;;  %3566 = vrot.lane.b32.xlu1 %v9418_v20, %s6795_s15  ;;  %v3655_v60 = vld [vmem:[#allocation3 + $0x79] sm:$0xff] }
 0x465   : > { %v3368_v10 = vpop.permute.xlu2 %3367 }
 0x466   : > { %3443 = vst.msk [vmem:[#allocation4 + $0xa8] sm:$0xff] %vm3421_vm2, %v3368_v10  ;;  %v3354_v7 = vpop.permute.xlu1 %3353 }
 0x467   : > { %3436 = vst.msk [vmem:[#allocation4 + $0x70] sm:$0xff] %vm3421_vm2, %v3354_v7 }
 0x469   : > { %3711 = vrot.lane.b32.xlu0 %v3647_v55, %s6796_s16 }
 0x46b   : > { %v3370_v56 = vpop.permute.xlu0 %3369  ;;  %3568 = vrot.lane.b32.xlu2 %v9409_v46, %s6795_s15 }
 0x46c   : > { %3444 = vst.msk [vmem:[#allocation4 + $0xb0] sm:$0xff] %vm3421_vm2, %v3370_v56  ;;  %3572 = vrot.lane.b32.xlu1 %v9448_v51, %s6795_s15  ;;  %v9741_v56 = vld [vmem:[#allocation3 + $0xb1] sm:$0xff] }
 0x46d   : > { %v3374_v34 = vpop.permute.xlu2 %3373 }
 0x46e   : > { %3446 = vst.msk [vmem:[#allocation4 + $0xc0] sm:$0xff] %vm3421_vm2, %v3374_v34  ;;  %v3360_v63 = vpop.permute.xlu1 %3359 }
 0x46f   : > { %3439 = vst.msk [vmem:[#allocation4 + $0x88] sm:$0xff] %vm3421_vm2, %v3360_v63  ;;  %v9760_v63 = vld [vmem:[#allocation3 + $0xf9] sm:$0xff] }
 0x471   : > { %3717 = vrot.lane.b32.xlu0 %v6722_v23, %s6796_s16 }
 0x473   : > { %v3376_v20 = vpop.permute.xlu0 %3375  ;;  %3574 = vrot.lane.b32.xlu2 %v9306_v40, %s6795_s15 }
 0x474   : > { %3447 = vst.msk [vmem:[#allocation4 + $0xc8] sm:$0xff] %vm3421_vm2, %v3376_v20  ;;  %3578 = vrot.lane.b32.xlu1 %v9687_v15, %s6795_s15 }
 0x475   : > { %v3380_v46 = vpop.permute.xlu2 %3379 }
 0x476   : > { %3449 = vst.msk [vmem:[#allocation4 + $0xd8] sm:$0xff] %vm3421_vm2, %v3380_v46  ;;  %v3366_v41 = vpop.permute.xlu1 %3365 }
 0x477   : > { %3442 = vst.msk [vmem:[#allocation4 + $0xa0] sm:$0xff] %vm3421_vm2, %v3366_v41 }
 0x479   : > { %3723 = vrot.lane.b32.xlu0 %v9120_v61, %s6796_s16 }
 0x47b   : > { %v3382_v13 = vpop.permute.xlu0 %3381  ;;  %3580 = vrot.lane.b32.xlu2 %v9696_v42, %s6795_s15 }
 0x47c   : > { %3450 = vst.msk [vmem:[#allocation4 + $0xe0] sm:$0xff] %vm3421_vm2, %v3382_v13  ;;  %3713 = vrot.lane.b32.xlu1 %v3648_v26, %s6796_s16  ;;  %v9769_v13 = vld [vmem:[#allocation3 + $0x181] sm:$0xff] }
 0x47d   : > { %v3386_v61 = vpop.permute.xlu2 %3385 }
 0x47e   : > { %3452 = vst.msk [vmem:[#allocation4 + $0xf0] sm:$0xff] %vm3421_vm2, %v3386_v61  ;;  %v3372_v1 = vpop.permute.xlu1 %3371 }
 0x47f   : > { %3445 = vst.msk [vmem:[#allocation4 + $0xb8] sm:$0xff] %vm3421_vm2, %v3372_v1  ;;  %v9802_v1 = vld [vmem:[#allocation3 + $0x189] sm:$0xff] }
 0x481   : > { %3729 = vrot.lane.b32.xlu0 %v9161_v49, %s6796_s16 }
 0x483   : > { %v3388_v14 = vpop.permute.xlu0 %3387  ;;  %3715 = vrot.lane.b32.xlu2 %v9706_v21, %s6796_s16 }
 0x484   : > { %3453 = vst.msk [vmem:[#allocation4 + $0xf8] sm:$0xff] %vm3421_vm2, %v3388_v14  ;;  %3719 = vrot.lane.b32.xlu1 %v9710_v44, %s6796_s16 }
 0x485   : > { %v3521_v49 = vpop.permute.xlu2 %3520 }
 0x486   : > { %3616 = vst.msk [vmem:[#allocation4 + $0x8] sm:$0xff] %vm3614_vm7, %v3521_v49  ;;  %v3378_v3 = vpop.permute.xlu1 %3377 }
 0x487   : > { %3448 = vst.msk [vmem:[#allocation4 + $0xd0] sm:$0xff] %vm3421_vm2, %v3378_v3 }
 0x489   : > { %3735 = vrot.lane.b32.xlu0 %v9207_v11, %s6796_s16 }
 0x48b   : > { %v3523_v57 = vpop.permute.xlu0 %3522  ;;  %3721 = vrot.lane.b32.xlu2 %v9719_v62, %s6796_s16 }
 0x48c   : > { %3617 = vst.msk [vmem:[#allocation4 + $0x10] sm:$0xff] %vm3614_vm7, %v3523_v57  ;;  %3725 = vrot.lane.b32.xlu1 %v3654_v9, %s6796_s16  ;;  %v11676_v9 = vld [vmem:[#allocation65_spill] sm:$0xff] }
 0x48d   : > { %v3527_v11 = vpop.permute.xlu2 %3526 }
 0x48e   : > { %3619 = vst.msk [vmem:[#allocation4 + $0x20] sm:$0xff] %vm3614_vm7, %v3527_v11  ;;  %v3384_v25 = vpop.permute.xlu1 %3383  ;;  %v11678_v11 = vld [vmem:[#allocation59_spill] sm:$0xff] }
 0x48f   : > { %3451 = vst.msk [vmem:[#allocation4 + $0xe8] sm:$0xff] %vm3421_vm2, %v3384_v25 }
 0x491   : > { %3741 = vrot.lane.b32.xlu0 %v9268_v6, %s6796_s16 }
 0x493   : > { %v3529_v5 = vpop.permute.xlu0 %3528  ;;  %3727 = vrot.lane.b32.xlu2 %v3655_v60, %s6796_s16 }
 0x494   : > { %3620 = vst.msk [vmem:[#allocation4 + $0x28] sm:$0xff] %vm3614_vm7, %v3529_v5  ;;  %3731 = vrot.lane.b32.xlu1 %v9730_v59, %s6796_s16 }
 0x495   : > { %v3533_v6 = vpop.permute.xlu2 %3532 }
 0x496   : > { %3622 = vst.msk [vmem:[#allocation4 + $0x38] sm:$0xff] %vm3614_vm7, %v3533_v6  ;;  %v3519_v10 = vpop.permute.xlu1 %3518  ;;  %v11679_v6 = vld [vmem:[#allocation67_spill] sm:$0xff] }
 0x497   : > { %3615 = vst.msk [vmem:[#allocation4] sm:$0xff] %vm3614_vm7, %v3519_v10 }
 0x499   : > { %3747 = vrot.lane.b32.xlu0 %v9337_v27, %s6796_s16 }
 0x49b   : > { %v3535_v55 = vpop.permute.xlu0 %3534  ;;  %3733 = vrot.lane.b32.xlu2 %v9166_v32, %s6796_s16  ;;  %v3663_v32 = vld [vmem:[#allocation3 + $0xd9] sm:$0xff] }
 0x49c   : > { %3623 = vst.msk [vmem:[#allocation4 + $0x40] sm:$0xff] %vm3614_vm7, %v3535_v55  ;;  %3737 = vrot.lane.b32.xlu1 %v9741_v56, %s6796_s16  ;;  %v11680_v55 = vld [vmem:[#allocation60_spill] sm:$0xff] }
 0x49d   : > { %v3539_v27 = vpop.permute.xlu2 %3538 }
 0x49e   : > { %3625 = vst.msk [vmem:[#allocation4 + $0x50] sm:$0xff] %vm3614_vm7, %v3539_v27  ;;  %v3525_v23 = vpop.permute.xlu1 %3524 }
 0x49f   : > { %3618 = vst.msk [vmem:[#allocation4 + $0x18] sm:$0xff] %vm3614_vm7, %v3525_v23  ;;  %v11681_v23 = vld [vmem:[#allocation72_spill] sm:$0xff] }
 0x4a1   : > { %3753 = vrot.lane.b32.xlu0 %v9380_v48, %s6796_s16 }
 0x4a3   : > { %v3541_v7 = vpop.permute.xlu0 %3540  ;;  %3739 = vrot.lane.b32.xlu2 %v9215_v58, %s6796_s16 }
 0x4a4   : > { %3626 = vst.msk [vmem:[#allocation4 + $0x58] sm:$0xff] %vm3614_vm7, %v3541_v7  ;;  %3743 = vrot.lane.b32.xlu1 %v3663_v32, %s6796_s16 }
 0x4a5   : > { %v3545_v48 = vpop.permute.xlu2 %3544 }
 0x4a6   : > { %3628 = vst.msk [vmem:[#allocation4 + $0x68] sm:$0xff] %vm3614_vm7, %v3545_v48  ;;  %v3531_v20 = vpop.permute.xlu1 %3530 }
 0x4a7   : > { %3621 = vst.msk [vmem:[#allocation4 + $0x30] sm:$0xff] %vm3614_vm7, %v3531_v20  ;;  %v11683_v20 = vld [vmem:[#allocation78_spill] sm:$0xff] }
 0x4a9   : > { %3759 = vrot.lane.b32.xlu0 %v9407_v2, %s6796_s16 }
 0x4ab   : > { %v3547_v34 = vpop.permute.xlu0 %3546  ;;  %3745 = vrot.lane.b32.xlu2 %v9275_v12, %s6796_s16  ;;  %v9773_v12 = vld [vmem:[#allocation3 + $0x121] sm:$0xff] }
 0x4ac   : > { %3629 = vst.msk [vmem:[#allocation4 + $0x70] sm:$0xff] %vm3614_vm7, %v3547_v34  ;;  %3749 = vrot.lane.b32.xlu1 %v9760_v63, %s6796_s16 }
 0x4ad   : > { %v3551_v58 = vpop.permute.xlu2 %3550 }
 0x4ae   : > { %3631 = vst.msk [vmem:[#allocation4 + $0x80] sm:$0xff] %vm3614_vm7, %v3551_v58  ;;  %v3537_v46 = vpop.permute.xlu1 %3536 }
 0x4af   : > { %3624 = vst.msk [vmem:[#allocation4 + $0x48] sm:$0xff] %vm3614_vm7, %v3537_v46 }
 0x4b1   : > { %3765 = vrot.lane.b32.xlu0 %v9435_v39, %s6796_s16 }
 0x4b3   : > { %v3553_v2 = vpop.permute.xlu0 %3552  ;;  %3751 = vrot.lane.b32.xlu2 %v9344_v53, %s6796_s16 }
 0x4b4   : > { %3632 = vst.msk [vmem:[#allocation4 + $0x88] sm:$0xff] %vm3614_vm7, %v3553_v2  ;;  %3755 = vrot.lane.b32.xlu1 %v9773_v12, %s6796_s16 }
 0x4b5   : > { %v3557_v39 = vpop.permute.xlu2 %3556 }
 0x4b6   : > { %3634 = vst.msk [vmem:[#allocation4 + $0x98] sm:$0xff] %vm3614_vm7, %v3557_v39  ;;  %v3543_v26 = vpop.permute.xlu1 %3542  ;;  %v9874_v39 = vld [vmem:[#allocation3 + $0x18a] sm:$0xff] }
 0x4b7   : > { %3627 = vst.msk [vmem:[#allocation4 + $0x60] sm:$0xff] %vm3614_vm7, %v3543_v26  ;;  %v11686_v26 = vld [vmem:[#allocation71_spill] sm:$0xff] }
 0x4b9   : > { %3771 = vrot.lane.b32.xlu0 %v9769_v13, %s6796_s16 }
 0x4bb   : > { %v3559_v41 = vpop.permute.xlu0 %3558  ;;  %3757 = vrot.lane.b32.xlu2 %v9387_v50, %s6796_s16 }
 0x4bc   : > { %3635 = vst.msk [vmem:[#allocation4 + $0xa0] sm:$0xff] %vm3614_vm7, %v3559_v41  ;;  %3761 = vrot.lane.b32.xlu1 %v9266_v52, %s6796_s16  ;;  %v11685_v41 = vld [vmem:[#allocation84_spill] sm:$0xff] }
 0x4bd   : > { %v3563_v53 = vpop.permute.xlu2 %3562 }
 0x4be   : > { %3637 = vst.msk [vmem:[#allocation4 + $0xb0] sm:$0xff] %vm3614_vm7, %v3563_v53  ;;  %v3549_v14 = vpop.permute.xlu1 %3548 }
 0x4bf   : > { %3630 = vst.msk [vmem:[#allocation4 + $0x78] sm:$0xff] %vm3614_vm7, %v3549_v14 }
 0x4c1   : > { %3906 = vrot.lane.b32.xlu0 %v9468_v28, %s6797_s17 }
 0x4c3   : > { %v3565_v61 = vpop.permute.xlu0 %3564  ;;  %3763 = vrot.lane.b32.xlu2 %v9416_v17, %s6796_s16 }
 0x4c4   : > { %3638 = vst.msk [vmem:[#allocation4 + $0xb8] sm:$0xff] %vm3614_vm7, %v3565_v61  ;;  %3767 = vrot.lane.b32.xlu1 %v9332_v8, %s6796_s16 }
 0x4c5   : > { %v3569_v50 = vpop.permute.xlu2 %3568 }
 0x4c6   : > { %3640 = vst.msk [vmem:[#allocation4 + $0xc8] sm:$0xff] %vm3614_vm7, %v3569_v50  ;;  %v3555_v28 = vpop.permute.xlu1 %3554  ;;  %v4036_v50 = vld [vmem:[#allocation3 + $0x48] sm:$0xff] }
 0x4c7   : > { %3633 = vst.msk [vmem:[#allocation4 + $0x90] sm:$0xff] %vm3614_vm7, %v3555_v28 }
 0x4c9   : > { %3912 = vrot.lane.b32.xlu0 %v9481_v19, %s6797_s17 }
 0x4cb   : > { %v3571_v52 = vpop.permute.xlu0 %3570  ;;  %3769 = vrot.lane.b32.xlu2 %v9442_v29, %s6796_s16 }
 0x4cc   : > { %3641 = vst.msk [vmem:[#allocation4 + $0xd0] sm:$0xff] %vm3614_vm7, %v3571_v52  ;;  %3773 = vrot.lane.b32.xlu1 %v9802_v1, %s6796_s16  ;;  %v11687_v52 = vld [vmem:[#allocation77_spill] sm:$0xff] }
 0x4cd   : > { %v3575_v8 = vpop.permute.xlu2 %3574 }
 0x4ce   : > { %3643 = vst.msk [vmem:[#allocation4 + $0xe0] sm:$0xff] %vm3614_vm7, %v3575_v8  ;;  %v3561_v19 = vpop.permute.xlu1 %3560 }
 0x4cf   : > { %3636 = vst.msk [vmem:[#allocation4 + $0xa8] sm:$0xff] %vm3614_vm7, %v3561_v19  ;;  %v11688_v19 = vld [vmem:[#allocation85_spill] sm:$0xff] }
 0x4d1   : > { %3918 = vrot.lane.b32.xlu0 %v9495_v22, %s6797_s17 }
 0x4d3   : > { %v3577_v17 = vpop.permute.xlu0 %3576  ;;  %3904 = vrot.lane.b32.xlu2 %v9461_v31, %s6797_s17 }
 0x4d4   : > { %3644 = vst.msk [vmem:[#allocation4 + $0xe8] sm:$0xff] %vm3614_vm7, %v3577_v17  ;;  %3908 = vrot.lane.b32.xlu1 %v9412_v18, %s6797_s17 }
 0x4d5   : > { %v3581_v29 = vpop.permute.xlu2 %3580 }
 0x4d6   : > { %3646 = vst.msk [vmem:[#allocation4 + $0xf8] sm:$0xff] %vm3614_vm7, %v3581_v29  ;;  %v3567_v49 = vpop.permute.xlu1 %3566 }
 0x4d7   : > { %3639 = vst.msk [vmem:[#allocation4 + $0xc0] sm:$0xff] %vm3614_vm7, %v3567_v49 }
 0x4d9   : > { %3924 = vrot.lane.b32.xlu0 %v9509_v54, %s6797_s17 }
 0x4db   : > { %v3712_v22 = vpop.permute.xlu0 %3711  ;;  %3910 = vrot.lane.b32.xlu2 %v9474_v35, %s6797_s17  ;;  %v11674_v35 = vld [vmem:[#allocation73_spill] sm:$0xff] }
 0x4dc   : > { %3808 = vst.msk [vmem:[#allocation4] sm:$0xff] %vm3807_vm8, %v3712_v22  ;;  %3914 = vrot.lane.b32.xlu1 %v9438_v45, %s6797_s17 }
 0x4dd   : > { %v3716_v31 = vpop.permute.xlu2 %3715 }
 0x4de   : > { %3810 = vst.msk [vmem:[#allocation4 + $0x10] sm:$0xff] %vm3807_vm8, %v3716_v31  ;;  %v3573_v54 = vpop.permute.xlu1 %3572  ;;  %v9902_v31 = vld [vmem:[#allocation3 + $0x182] sm:$0xff] }
 0x4df   : > { %3642 = vst.msk [vmem:[#allocation4 + $0xd8] sm:$0xff] %vm3614_vm7, %v3573_v54 }
 0x4e1   : > { %3930 = vrot.lane.b32.xlu0 %v9524_v37, %s6797_s17  ;;  %v11675_v37 = vld [vmem:[#allocation54_spill] sm:$0xff] }
 0x4e3   : > { %v3718_v18 = vpop.permute.xlu0 %3717  ;;  %3916 = vrot.lane.b32.xlu2 %v9487_v30, %s6797_s17  ;;  %v11677_v30 = vld [vmem:[#allocation79_spill] sm:$0xff] }
 0x4e4   : > { %3811 = vst.msk [vmem:[#allocation4 + $0x18] sm:$0xff] %vm3807_vm8, %v3718_v18  ;;  %3920 = vrot.lane.b32.xlu1 %v11675_v37, %s6797_s17  ;;  %v4035_v37 = vld [vmem:[#allocation3 + $0x38] sm:$0xff] }
 0x4e5   : > { %v3722_v57 = vpop.permute.xlu2 %3721 }
 0x4e6   : > { %3813 = vst.msk [vmem:[#allocation4 + $0x28] sm:$0xff] %vm3807_vm8, %v3722_v57  ;;  %v3579_v3 = vpop.permute.xlu1 %3578  ;;  %v4251_v57 = vld [vmem:[#allocation3 + $0x151] sm:$0xff] }
 0x4e7   : > { %3645 = vst.msk [vmem:[#allocation4 + $0xf0] sm:$0xff] %vm3614_vm7, %v3579_v3 }
 0x4e9   : > { %3936 = vrot.lane.b32.xlu0 %v11674_v35, %s6797_s17 }
 0x4eb   : > { %v3724_v45 = vpop.permute.xlu0 %3723  ;;  %3922 = vrot.lane.b32.xlu2 %v11676_v9, %s6797_s17 }
 0x4ec   : > { %3814 = vst.msk [vmem:[#allocation4 + $0x30] sm:$0xff] %vm3807_vm8, %v3724_v45  ;;  %3926 = vrot.lane.b32.xlu1 %v11678_v11, %s6797_s17  ;;  %v4042_v11 = vld [vmem:[#allocation3 + $0x90] sm:$0xff] }
 0x4ed   : > { %v3728_v5 = vpop.permute.xlu2 %3727 }
 0x4ee   : > { %3816 = vst.msk [vmem:[#allocation4 + $0x40] sm:$0xff] %vm3807_vm8, %v3728_v5  ;;  %v3714_v60 = vpop.permute.xlu1 %3713 }
 0x4ef   : > { %3809 = vst.msk [vmem:[#allocation4 + $0x8] sm:$0xff] %vm3807_vm8, %v3714_v60 }
 0x4f1   : > { %3942 = vrot.lane.b32.xlu0 %v11677_v30, %s6797_s17  ;;  %v4038_v30 = vld [vmem:[#allocation3 + $0x60] sm:$0xff] }
 0x4f3   : > { %v3730_v25 = vpop.permute.xlu0 %3729  ;;  %3928 = vrot.lane.b32.xlu2 %v11679_v6, %s6797_s17  ;;  %v4041_v6 = vld [vmem:[#allocation3 + $0x80] sm:$0xff] }
 0x4f4   : > { %3817 = vst.msk [vmem:[#allocation4 + $0x48] sm:$0xff] %vm3807_vm8, %v3730_v25  ;;  %3932 = vrot.lane.b32.xlu1 %v11680_v55, %s6797_s17 }
 0x4f5   : > { %v3734_v10 = vpop.permute.xlu2 %3733 }
 0x4f6   : > { %3819 = vst.msk [vmem:[#allocation4 + $0x58] sm:$0xff] %vm3807_vm8, %v3734_v10  ;;  %v3720_v7 = vpop.permute.xlu1 %3719 }
 0x4f7   : > { %3812 = vst.msk [vmem:[#allocation4 + $0x20] sm:$0xff] %vm3807_vm8, %v3720_v7  ;;  %v4428_v7 = vld [vmem:[#allocation3 + $0x92] sm:$0xff] }
 0x4f9   : > { %3948 = vrot.lane.b32.xlu0 %v9569_v47, %s6797_s17  ;;  %v11682_v47 = vld [vmem:[#allocation61_spill] sm:$0xff] }
 0x4fb   : > { %v3736_v27 = vpop.permute.xlu0 %3735  ;;  %3934 = vrot.lane.b32.xlu2 %v11681_v23, %s6797_s17  ;;  %v4436_v23 = vld [vmem:[#allocation3 + $0xf2] sm:$0xff] }
 0x4fc   : > { %3820 = vst.msk [vmem:[#allocation4 + $0x60] sm:$0xff] %vm3807_vm8, %v3736_v27  ;;  %3938 = vrot.lane.b32.xlu1 %v11682_v47, %s6797_s17  ;;  %v4243_v27 = vld [vmem:[#allocation3 + $0xf1] sm:$0xff] }
 0x4fd   : > { %v3740_v32 = vpop.permute.xlu2 %3739 }
 0x4fe   : > { %3822 = vst.msk [vmem:[#allocation4 + $0x70] sm:$0xff] %vm3807_vm8, %v3740_v32  ;;  %v3726_v34 = vpop.permute.xlu1 %3725  ;;  %v4444_v32 = vld [vmem:[#allocation3 + $0x152] sm:$0xff] }
 0x4ff   : > { %3815 = vst.msk [vmem:[#allocation4 + $0x38] sm:$0xff] %vm3807_vm8, %v3726_v34 }
 0x501   : > { %3954 = vrot.lane.b32.xlu0 %v9582_v16, %s6797_s17  ;;  %v11684_v16 = vld [vmem:[#allocation66_spill] sm:$0xff] }
 0x503   : > { %v3742_v48 = vpop.permute.xlu0 %3741  ;;  %3940 = vrot.lane.b32.xlu2 %v11683_v20, %s6797_s17 }
 0x504   : > { %3823 = vst.msk [vmem:[#allocation4 + $0x78] sm:$0xff] %vm3807_vm8, %v3742_v48  ;;  %3944 = vrot.lane.b32.xlu1 %v11684_v16, %s6797_s17  ;;  %v4437_v48 = vld [vmem:[#allocation3 + $0xfa] sm:$0xff] }
 0x505   : > { %v3746_v58 = vpop.permute.xlu2 %3745 }
 0x506   : > { %3825 = vst.msk [vmem:[#allocation4 + $0x88] sm:$0xff] %vm3807_vm8, %v3746_v58  ;;  %v3732_v46 = vpop.permute.xlu1 %3731  ;;  %v4228_v58 = vld [vmem:[#allocation3 + $0x39] sm:$0xff] }
 0x507   : > { %3818 = vst.msk [vmem:[#allocation4 + $0x50] sm:$0xff] %vm3807_vm8, %v3732_v46 }
 0x509   : > { %3960 = vrot.lane.b32.xlu0 %v9595_v38, %s6797_s17 }
 0x50b   : > { %v3748_v2 = vpop.permute.xlu0 %3747  ;;  %3946 = vrot.lane.b32.xlu2 %v11685_v41, %s6797_s17  ;;  %v4420_v41 = vld [vmem:[#allocation3 + $0x32] sm:$0xff] }
 0x50c   : > { %3826 = vst.msk [vmem:[#allocation4 + $0x90] sm:$0xff] %vm3807_vm8, %v3748_v2  ;;  %3950 = vrot.lane.b32.xlu1 %v11686_v26, %s6797_s17 }
 0x50d   : > { %v3752_v53 = vpop.permute.xlu2 %3751 }
 0x50e   : > { %3828 = vst.msk [vmem:[#allocation4 + $0xa0] sm:$0xff] %vm3807_vm8, %v3752_v53  ;;  %v3738_v14 = vpop.permute.xlu1 %3737  ;;  %v4252_v53 = vld [vmem:[#allocation3 + $0x159] sm:$0xff] }
 0x50f   : > { %3821 = vst.msk [vmem:[#allocation4 + $0x68] sm:$0xff] %vm3807_vm8, %v3738_v14  ;;  %v4445_v14 = vld [vmem:[#allocation3 + $0x15a] sm:$0xff] }
 0x511   : > { %3966 = vrot.lane.b32.xlu0 %v9874_v39, %s6797_s17 }
 0x513   : > { %v3754_v61 = vpop.permute.xlu0 %3753  ;;  %3952 = vrot.lane.b32.xlu2 %v9573_v4, %s6797_s17  ;;  %v11689_v4 = vld [vmem:[#allocation83_spill] sm:$0xff] }
 0x514   : > { %3829 = vst.msk [vmem:[#allocation4 + $0xa8] sm:$0xff] %vm3807_vm8, %v3754_v61  ;;  %3956 = vrot.lane.b32.xlu1 %v11687_v52, %s6797_s17  ;;  %v4245_v61 = vld [vmem:[#allocation3 + $0x109] sm:$0xff]  ;;  %v4043_v52 = vld [vmem:[#allocation3 + $0x98] sm:$0xff] }
 0x515   : > { %v3758_v28 = vpop.permute.xlu2 %3757 }
 0x516   : > { %3831 = vst.msk [vmem:[#allocation4 + $0xb8] sm:$0xff] %vm3807_vm8, %v3758_v28  ;;  %v3744_v17 = vpop.permute.xlu1 %3743  ;;  %v4236_v28 = vld [vmem:[#allocation3 + $0x99] sm:$0xff] }
 0x517   : > { %3824 = vst.msk [vmem:[#allocation4 + $0x80] sm:$0xff] %vm3807_vm8, %v3744_v17 }
 0x519   : > { %4102 = vrot.lane.b32.xlu0 %v4036_v50, %s6798_s18 }
 0x51b   : > { %v3760_v8 = vpop.permute.xlu0 %3759  ;;  %3958 = vrot.lane.b32.xlu2 %v11688_v19, %s6797_s17 }
 0x51c   : > { %3832 = vst.msk [vmem:[#allocation4 + $0xc0] sm:$0xff] %vm3807_vm8, %v3760_v8  ;;  %3962 = vrot.lane.b32.xlu1 %v11689_v4, %s6797_s17  ;;  %v4052_v4 = vld [vmem:[#allocation3 + $0x108] sm:$0xff] }
 0x51d   : > { %v3764_v29 = vpop.permute.xlu2 %3763 }
 0x51e   : > { %3834 = vst.msk [vmem:[#allocation4 + $0xd0] sm:$0xff] %vm3807_vm8, %v3764_v29  ;;  %v3750_v49 = vpop.permute.xlu1 %3749  ;;  %v4237_v29 = vld [vmem:[#allocation3 + $0xa9] sm:$0xff] }
 0x51f   : > { %3827 = vst.msk [vmem:[#allocation4 + $0x98] sm:$0xff] %vm3807_vm8, %v3750_v49 }
 0x521   : > { %4108 = vrot.lane.b32.xlu0 %v9123_v33, %s6798_s18  ;;  %v11690_v33 = vld [vmem:[#allocation48_spill] sm:$0xff] }
 0x523   : > { %v3766_v22 = vpop.permute.xlu0 %3765  ;;  %3964 = vrot.lane.b32.xlu2 %v9902_v31, %s6797_s17  ;;  %s269_s17 = sand.u32 1, %s6781_s25  }
 0x524   : > { %3835 = vst.msk [vmem:[#allocation4 + $0xd8] sm:$0xff] %vm3807_vm8, %v3766_v22  ;;  %4098 = vrot.lane.b32.xlu1 %v11690_v33, %s6798_s18  ;;  %v4421_v22 = vld [vmem:[#allocation3 + $0x3a] sm:$0xff]  ;;  %s6571_s21 = sshll.u32 %s269_s17, 6  ;;  %s6490_s8 = scalar_lea.sflag [#allocation6], %s269_s17 }
 0x525   : > { %v3770_v18 = vpop.permute.xlu2 %3769  ;;  %s10559_s13 = scalar_lea.vmem [#allocation5], %s6571_s21 }
 0x526   : > { %3837 = vst.msk [vmem:[#allocation4 + $0xe8] sm:$0xff] %vm3807_vm8, %v3770_v18  ;;  %v3756_v35 = vpop.permute.xlu1 %3755  ;;  %v4429_v18 = vld [vmem:[#allocation3 + $0x9a] sm:$0xff]  ;;  %s6502_s23 = sshll.u32 %s10559_s13, 4  ;;  %s6503_s23 = int_to_ptr.vmem [resolvable:$true] %s6502_s23 }
 0x527   : > { %3830 = vst.msk [vmem:[#allocation4 + $0xb0] sm:$0xff] %vm3807_vm8, %v3756_v35  ;;  %v4253_v35 = vld [vmem:[#allocation3 + $0x169] sm:$0xff] }
 0x529   : > { %4130 = vrot.lane.b32.xlu0 %v9356_v24, %s6798_s18  ;;  %v11691_v24 = vld [vmem:[#allocation53_spill] sm:$0xff] }
 0x52b   : > { %v3772_v54 = vpop.permute.xlu0 %3771  ;;  %4100 = vrot.lane.b32.xlu2 %v4035_v37, %s6798_s18 }
 0x52c   : > { %3838 = vst.msk [vmem:[#allocation4 + $0xf0] sm:$0xff] %vm3807_vm8, %v3772_v54  ;;  %4104 = vrot.lane.b32.xlu1 %v11691_v24, %s6798_s18  ;;  %v4422_v54 = vld [vmem:[#allocation3 + $0x4a] sm:$0xff] }
 0x52d   : > { %v3905_v45 = vpop.permute.xlu2 %3904 }
 0x52e   : > { %4001 = vst.msk [vmem:[#allocation4] sm:$0xff] %vm4000_vm9, %v3905_v45  ;;  %v3762_v9 = vpop.permute.xlu1 %3761  ;;  %v4438_v45 = vld [vmem:[#allocation3 + $0x10a] sm:$0xff] }
 0x52f   : > { %3833 = vst.msk [vmem:[#allocation4 + $0xc8] sm:$0xff] %vm3807_vm8, %v3762_v9  ;;  %v4044_v9 = vld [vmem:[#allocation3 + $0xa8] sm:$0xff] }
 0x531   : > { %4339 = vrot.lane.b32.xlu0 %v4251_v57, %s6799_s19 }
 0x533   : > { %v3907_v3 = vpop.permute.xlu0 %3906  ;;  %4106 = vrot.lane.b32.xlu2 %v4038_v30, %s6798_s18 }
 0x534   : > { %4002 = vst.msk [vmem:[#allocation4 + $0x8] sm:$0xff] %vm4000_vm9, %v3907_v3  ;;  %4110 = vrot.lane.b32.xlu1 %v9142_v0, %s6798_s18  ;;  %v4254_v3 = vld [vmem:[#allocation3 + $0x171] sm:$0xff] }
 0x535   : > { %v3911_v5 = vpop.permute.xlu2 %3910 }
 0x536   : > { %4004 = vst.msk [vmem:[#allocation4 + $0x18] sm:$0xff] %vm4000_vm9, %v3911_v5  ;;  %v3768_v60 = vpop.permute.xlu1 %3767 }
 0x537   : > { %3836 = vst.msk [vmem:[#allocation4 + $0xe0] sm:$0xff] %vm3807_vm8, %v3768_v60  ;;  %v4652_v60 = vld [vmem:[%s11044_s4 + $0x38] sm:$0xff] }
 0x539   : > { %4114 = vrot.lane.b32.xlu0 %v4042_v11, %s6798_s18 }
 0x53b   : > { %v3913_v25 = vpop.permute.xlu0 %3912  ;;  %4112 = vrot.lane.b32.xlu2 %v4041_v6, %s6798_s18  ;;  %v4045_v6 = vld [vmem:[#allocation3 + $0xb0] sm:$0xff] }
 0x53c   : > { %4005 = vst.msk [vmem:[#allocation4 + $0x20] sm:$0xff] %vm4000_vm9, %v3913_v25  ;;  %4146 = vrot.lane.b32.xlu1 %v9426_v43, %s6798_s18  ;;  %v4653_v25 = vld [vmem:[%s11044_s4 + $0x40] sm:$0xff] }
 0x53d   : > { %v3917_v55 = vpop.permute.xlu2 %3916  ;;  %6623 = vmatpush.msra.mxu3 %v4653_v25  ;;  %6621 = vmatpush.msra.mxu1 %v4653_v25 }
 0x53e   : > { %4007 = vst.msk [vmem:[#allocation4 + $0x30] sm:$0xff] %vm4000_vm9, %v3917_v55  ;;  %v3774_v10 = vpop.permute.xlu1 %3773  ;;  %6622 = vmatpush.msra.mxu2 %v4653_v25  ;;  %4758 = vmatpush.msra.mxu0 %v4653_v25  ;;  %v4053_v55 = vld [vmem:[#allocation3 + $0x110] sm:$0xff] }
 0x53f   : > { %3839 = vst.msk [vmem:[#allocation4 + $0xf8] sm:$0xff] %vm3807_vm8, %v3774_v10  ;;  %6626 = vmatpush.msra.mxu3 %v4652_v60  ;;  %6624 = vmatpush.msra.mxu1 %v4652_v60  ;;  %vm6410_vm8 = vcmask 1041409  }
 0x540   : > { %6625 = vmatpush.msra.mxu2 %v4652_v60  ;;  %4759 = vmatpush.msra.mxu0 %v4652_v60  ;;  %v4257_v60 = vld [vmem:[#allocation3 + $0x199] sm:$0xff] }
 0x541   : > { %4132 = vrot.lane.b32.xlu0 %v9346_v36, %s6798_s18 }
 0x543   : > { %v3919_v0 = vpop.permute.xlu0 %3918  ;;  %4323 = vrot.lane.b32.xlu2 %v4243_v27, %s6799_s19 }
 0x544   : > { %4008 = vst.msk [vmem:[#allocation4 + $0x38] sm:$0xff] %vm4000_vm9, %v3919_v0  ;;  %4516 = vrot.lane.b32.xlu1 %v4436_v23, %s6800_s20  ;;  %v4651_v0 = vld [vmem:[%s11044_s4 + $0x30] sm:$0xff]  ;;  %v4061_v23 = vld [vmem:[#allocation3 + $0x170] sm:$0xff] }
 0x545   : > { %v3923_v36 = vpop.permute.xlu2 %3922  ;;  %6629 = vmatpush.msra.mxu3 %v4651_v0  ;;  %6627 = vmatpush.msra.mxu1 %v4651_v0 }
 0x546   : > { %4010 = vst.msk [vmem:[#allocation4 + $0x48] sm:$0xff] %vm4000_vm9, %v3923_v36  ;;  %v3909_v47 = vpop.permute.xlu1 %3908  ;;  %6628 = vmatpush.msra.mxu2 %v4651_v0  ;;  %4760 = vmatpush.msra.mxu0 %v4651_v0  ;;  %v4649_v36 = vld [vmem:[%s11044_s4 + $0x20] sm:$0xff] }
 0x547   : > { %4003 = vst.msk [vmem:[#allocation4 + $0x10] sm:$0xff] %vm4000_vm9, %v3909_v47  ;;  %v4054_v47 = vld [vmem:[#allocation3 + $0x120] sm:$0xff] }
 0x549   : > { %4500 = vrot.lane.b32.xlu0 %v4428_v7, %s6800_s20 }
 0x54b   : > { %v3925_v43 = vpop.permute.xlu0 %3924  ;;  %4532 = vrot.lane.b32.xlu2 %v4444_v32, %s6800_s20  ;;  %v4430_v32 = vld [vmem:[#allocation3 + $0xaa] sm:$0xff] }
 0x54c   : > { %4011 = vst.msk [vmem:[#allocation4 + $0x50] sm:$0xff] %vm4000_vm9, %v3925_v43  ;;  %4291 = vrot.lane.b32.xlu1 %v9706_v21, %s6799_s19  ;;  %v4648_v43 = vld [vmem:[%s11044_s4 + $0x18] sm:$0xff] }
 0x54d   : > { %v3929_v34 = vpop.permute.xlu2 %3928 }
 0x54e   : > { %4013 = vst.msk [vmem:[#allocation4 + $0x60] sm:$0xff] %vm4000_vm9, %v3929_v34  ;;  %v3915_v16 = vpop.permute.xlu1 %3914 }
 0x54f   : > { %4006 = vst.msk [vmem:[#allocation4 + $0x28] sm:$0xff] %vm4000_vm9, %v3915_v16 }
 0x551   : > { %4518 = vrot.lane.b32.xlu0 %v4437_v48, %s6800_s20  ;;  %v4647_v48 = vld [vmem:[%s11044_s4 + $0x10] sm:$0xff] }
 0x553   : > { %v3931_v20 = vpop.permute.xlu0 %3930  ;;  %4307 = vrot.lane.b32.xlu2 %v9730_v59, %s6799_s19 }
 0x554   : > { %4014 = vst.msk [vmem:[#allocation4 + $0x68] sm:$0xff] %vm4000_vm9, %v3931_v20  ;;  %4148 = vrot.lane.b32.xlu1 %v9448_v51, %s6798_s18 }
 0x555   : > { %v3935_v2 = vpop.permute.xlu2 %3934 }
 0x556   : > { %4016 = vst.msk [vmem:[#allocation4 + $0x78] sm:$0xff] %vm4000_vm9, %v3935_v2  ;;  %v3921_v46 = vpop.permute.xlu1 %3920  ;;  %v4645_v2 = vld [vmem:[%s11044_s4] sm:$0xff] }
 0x557   : > { %4009 = vst.msk [vmem:[#allocation4 + $0x40] sm:$0xff] %vm4000_vm9, %v3921_v46  ;;  %v4431_v46 = vld [vmem:[#allocation3 + $0xb2] sm:$0xff] }
 0x559   : > { %4293 = vrot.lane.b32.xlu0 %v4228_v58, %s6799_s19  ;;  %v4646_v58 = vld [vmem:[%s11044_s4 + $0x8] sm:$0xff] }
 0x55b   : > { %v3937_v21 = vpop.permute.xlu0 %3936  ;;  %4484 = vrot.lane.b32.xlu2 %v4420_v41, %s6800_s20  ;;  %v4439_v41 = vld [vmem:[#allocation3 + $0x112] sm:$0xff] }
 0x55c   : > { %4017 = vst.msk [vmem:[#allocation4 + $0x80] sm:$0xff] %vm4000_vm9, %v3937_v21  ;;  %4325 = vrot.lane.b32.xlu1 %v9760_v63, %s6799_s19  ;;  %v4246_v21 = vld [vmem:[#allocation3 + $0x111] sm:$0xff] }
 0x55d   : > { %v3941_v59 = vpop.permute.xlu2 %3940 }
 0x55e   : > { %4019 = vst.msk [vmem:[#allocation4 + $0x90] sm:$0xff] %vm4000_vm9, %v3941_v59  ;;  %v3927_v26 = vpop.permute.xlu1 %3926 }
 0x55f   : > { %4012 = vst.msk [vmem:[#allocation4 + $0x58] sm:$0xff] %vm4000_vm9, %v3927_v26 }
 0x561   : > { %4150 = vrot.lane.b32.xlu0 %v9306_v40, %s6798_s18 }
 0x563   : > { %v3943_v51 = vpop.permute.xlu0 %3942  ;;  %4341 = vrot.lane.b32.xlu2 %v4252_v53, %s6799_s19  ;;  %v4447_v53 = vld [vmem:[#allocation3 + $0x172] sm:$0xff] }
 0x564   : > { %4020 = vst.msk [vmem:[#allocation4 + $0x98] sm:$0xff] %vm4000_vm9, %v3943_v51  ;;  %4534 = vrot.lane.b32.xlu1 %v4445_v14, %s6800_s20 }
 0x565   : > { %v3947_v40 = vpop.permute.xlu2 %3946 }
 0x566   : > { %4022 = vst.msk [vmem:[#allocation4 + $0xa8] sm:$0xff] %vm4000_vm9, %v3947_v40  ;;  %v3933_v50 = vpop.permute.xlu1 %3932 }
 0x567   : > { %4015 = vst.msk [vmem:[#allocation4 + $0x70] sm:$0xff] %vm4000_vm9, %v3933_v50  ;;  %v4231_v50 = vld [vmem:[#allocation3 + $0x61] sm:$0xff] }
 0x569   : > { %4327 = vrot.lane.b32.xlu0 %v4245_v61, %s6799_s19  ;;  %v4440_v61 = vld [vmem:[#allocation3 + $0x122] sm:$0xff] }
 0x56b   : > { %v3949_v63 = vpop.permute.xlu0 %3948  ;;  %4116 = vrot.lane.b32.xlu2 %v4043_v52, %s6798_s18 }
 0x56c   : > { %4023 = vst.msk [vmem:[#allocation4 + $0xb0] sm:$0xff] %vm4000_vm9, %v3949_v63  ;;  %4309 = vrot.lane.b32.xlu1 %v4236_v28, %s6799_s19 }
 0x56d   : > { %v3953_v8 = vpop.permute.xlu2 %3952 }
 0x56e   : > { %4025 = vst.msk [vmem:[#allocation4 + $0xc0] sm:$0xff] %vm4000_vm9, %v3953_v8  ;;  %v3939_v19 = vpop.permute.xlu1 %3938 }
 0x56f   : > { %4018 = vst.msk [vmem:[#allocation4 + $0x88] sm:$0xff] %vm4000_vm9, %v3939_v19 }
 0x571   : > { %4536 = vrot.lane.b32.xlu0 %v9595_v38, %s6800_s20 }
 0x573   : > { %v3955_v17 = vpop.permute.xlu0 %3954  ;;  %4134 = vrot.lane.b32.xlu2 %v4052_v4, %s6798_s18  ;;  %v4248_v4 = vld [vmem:[#allocation3 + $0x129] sm:$0xff] }
 0x574   : > { %4026 = vst.msk [vmem:[#allocation4 + $0xc8] sm:$0xff] %vm4000_vm9, %v3955_v17  ;;  %4486 = vrot.lane.b32.xlu1 %v4421_v22, %s6800_s20 }
 0x575   : > { %v3959_v38 = vpop.permute.xlu2 %3958 }
 0x576   : > { %4028 = vst.msk [vmem:[#allocation4 + $0xd8] sm:$0xff] %vm4000_vm9, %v3959_v38  ;;  %v3945_v33 = vpop.permute.xlu1 %3944 }
 0x577   : > { %4021 = vst.msk [vmem:[#allocation4 + $0xa0] sm:$0xff] %vm4000_vm9, %v3945_v33 }
 0x579   : > { %4311 = vrot.lane.b32.xlu0 %v4237_v29, %s6799_s19 }
 0x57b   : > { %v3961_v49 = vpop.permute.xlu0 %3960  ;;  %4502 = vrot.lane.b32.xlu2 %v4429_v18, %s6800_s20 }
 0x57c   : > { %4029 = vst.msk [vmem:[#allocation4 + $0xe0] sm:$0xff] %vm4000_vm9, %v3961_v49  ;;  %4343 = vrot.lane.b32.xlu1 %v4253_v35, %s6799_s19  ;;  %v4046_v49 = vld [vmem:[#allocation3 + $0xc0] sm:$0xff]  ;;  %v4055_v35 = vld [vmem:[#allocation3 + $0x128] sm:$0xff] }
 0x57d   : > { %v3965_v37 = vpop.permute.xlu2 %3964 }
 0x57e   : > { %4031 = vst.msk [vmem:[#allocation4 + $0xf0] sm:$0xff] %vm4000_vm9, %v3965_v37  ;;  %v3951_v24 = vpop.permute.xlu1 %3950  ;;  %v4240_v37 = vld [vmem:[#allocation3 + $0xc9] sm:$0xff] }
 0x57f   : > { %4024 = vst.msk [vmem:[#allocation4 + $0xb8] sm:$0xff] %vm4000_vm9, %v3951_v24 }
 0x581   : > { %4488 = vrot.lane.b32.xlu0 %v4422_v54, %s6800_s20 }
 0x583   : > { %v3967_v57 = vpop.permute.xlu0 %3966  ;;  %4520 = vrot.lane.b32.xlu2 %v4438_v45, %s6800_s20 }
 0x584   : > { %4032 = vst.msk [vmem:[#allocation4 + $0xf8] sm:$0xff] %vm4000_vm9, %v3967_v57  ;;  %4118 = vrot.lane.b32.xlu1 %v4044_v9, %s6798_s18  ;;  %v4425_v9 = vld [vmem:[#allocation3 + $0x6a] sm:$0xff] }
 0x585   : > { %v4101_v30 = vpop.permute.xlu2 %4100 }
 0x586   : > { %4196 = vst.msk [vmem:[#allocation4 + $0x8] sm:$0xff] %vm4194_vm10, %v4101_v30  ;;  %v3957_v5 = vpop.permute.xlu1 %3956 }
 0x587   : > { %4027 = vst.msk [vmem:[#allocation4 + $0xd0] sm:$0xff] %vm4000_vm9, %v3957_v5 }
 0x589   : > { %4345 = vrot.lane.b32.xlu0 %v4254_v3, %s6799_s19  ;;  %v4432_v3 = vld [vmem:[#allocation3 + $0xc2] sm:$0xff] }
 0x58b   : > { %v4103_v11 = vpop.permute.xlu0 %4102  ;;  %4295 = vrot.lane.b32.xlu2 %v9710_v44, %s6799_s19  ;;  %v4650_v44 = vld [vmem:[%s11044_s4 + $0x28] sm:$0xff] }
 0x58c   : > { %4197 = vst.msk [vmem:[#allocation4 + $0x10] sm:$0xff] %vm4194_vm10, %v4103_v11  ;;  %4136 = vrot.lane.b32.xlu1 %v4053_v55, %s6798_s18  ;;  %6632 = vmatpush.msra.mxu3 %v4650_v44  ;;  %v4047_v55 = vld [vmem:[#allocation3 + $0xc8] sm:$0xff] }
 0x58d   : > { %v4107_v10 = vpop.permute.xlu2 %4106  ;;  %6630 = vmatpush.msra.mxu1 %v4650_v44  ;;  %6631 = vmatpush.msra.mxu2 %v4650_v44 }
 0x58e   : > { %4199 = vst.msk [vmem:[#allocation4 + $0x20] sm:$0xff] %vm4194_vm10, %v4107_v10  ;;  %v3963_v7 = vpop.permute.xlu1 %3962  ;;  %6635 = vmatpush.msra.mxu3 %v4649_v36  ;;  %4761 = vmatpush.msra.mxu0 %v4650_v44  ;;  %v4048_v44 = vld [vmem:[#allocation3 + $0xd8] sm:$0xff] }
 0x58f   : > { %4030 = vst.msk [vmem:[#allocation4 + $0xe8] sm:$0xff] %vm4000_vm9, %v3963_v7  ;;  %6633 = vmatpush.msra.mxu1 %v4649_v36  ;;  %6634 = vmatpush.msra.mxu2 %v4649_v36  ;;  %v4232_v7 = vld [vmem:[#allocation3 + $0x69] sm:$0xff] }
 0x590   : > { %6638 = vmatpush.msra.mxu3 %v4648_v43  ;;  %4762 = vmatpush.msra.mxu0 %v4649_v36 }
 0x591   : > { %4120 = vrot.lane.b32.xlu0 %v4045_v6, %s6798_s18  ;;  %6636 = vmatpush.msra.mxu1 %v4648_v43  ;;  %v4441_v6 = vld [vmem:[#allocation3 + $0x12a] sm:$0xff] }
 0x592   : > { %6641 = vmatpush.msra.mxu3 %v4647_v48  ;;  %6637 = vmatpush.msra.mxu2 %v4648_v43 }
 0x593   : > { %v4109_v27 = vpop.permute.xlu0 %4108  ;;  %4152 = vrot.lane.b32.xlu2 %v4061_v23, %s6798_s18  ;;  %6639 = vmatpush.msra.mxu1 %v4647_v48  ;;  %v4056_v23 = vld [vmem:[#allocation3 + $0x138] sm:$0xff] }
 0x594   : > { %4200 = vst.msk [vmem:[#allocation4 + $0x28] sm:$0xff] %vm4194_vm10, %v4109_v27  ;;  %4504 = vrot.lane.b32.xlu1 %v4430_v32, %s6800_s20  ;;  %6644 = vmatpush.msra.mxu3 %v4646_v58 }
 0x595   : > { %v4113_v34 = vpop.permute.xlu2 %4112  ;;  %6640 = vmatpush.msra.mxu2 %v4647_v48  ;;  %4763 = vmatpush.msra.mxu0 %v4648_v43 }
 0x596   : > { %4202 = vst.msk [vmem:[#allocation4 + $0x38] sm:$0xff] %vm4194_vm10, %v4113_v34  ;;  %v4099_v16 = vpop.permute.xlu1 %4098  ;;  %6647 = vmatpush.msra.mxu3 %v4645_v2  ;;  %6642 = vmatpush.msra.mxu1 %v4646_v58  ;;  %v4064_v34 = vld [vmem:[#allocation3 + $0x198] sm:$0xff] }
 0x597   : > { %4195 = vst.msk [vmem:[#allocation4] sm:$0xff] %vm4194_vm10, %v4099_v16  ;;  %6643 = vmatpush.msra.mxu2 %v4646_v58  ;;  %4764 = vmatpush.msra.mxu0 %v4647_v48  ;;  %v4433_v16 = vld [vmem:[#allocation3 + $0xca] sm:$0xff] }
 0x598   : > { %6645 = vmatpush.msra.mxu1 %v4645_v2 }
 0x599   : > { %4138 = vrot.lane.b32.xlu0 %v4054_v47, %s6798_s18  ;;  %6646 = vmatpush.msra.mxu2 %v4645_v2 }
 0x59a   : > { %4765 = vmatpush.msra.mxu0 %v4646_v58 }
 0x59b   : > { %v4131_v20 = vpop.permute.xlu0 %4130  ;;  %4329 = vrot.lane.b32.xlu2 %v4246_v21, %s6799_s19 }
 0x59c   : > { %4211 = vst.msk [vmem:[#allocation4 + $0x80] sm:$0xff] %vm4194_vm10, %v4131_v20  ;;  %4522 = vrot.lane.b32.xlu1 %v4439_v41, %s6800_s20  ;;  %4766 = vmatpush.msra.mxu0 %v4645_v2  ;;  %v4057_v20 = vld [vmem:[#allocation3 + $0x140] sm:$0xff] }
 0x59d   : > { %v4324_v59 = vpop.permute.xlu2 %4323  ;;  %v4249_v41 = vld [vmem:[#allocation3 + $0x139] sm:$0xff] }
 0x59e   : > { %4404 = vst.msk [vmem:[#allocation4 + $0x80] sm:$0xff] %vm4387_vm11, %v4324_v59  ;;  %v4105_v26 = vpop.permute.xlu1 %4104  ;;  %v4434_v59 = vld [vmem:[#allocation3 + $0xda] sm:$0xff] }
 0x59f   : > { %4198 = vst.msk [vmem:[#allocation4 + $0x18] sm:$0xff] %vm4194_vm10, %v4105_v26 }
 0x5a1   : > { %4506 = vrot.lane.b32.xlu0 %v4431_v46, %s6800_s20 }
 0x5a3   : > { %v4340_v51 = vpop.permute.xlu0 %4339  ;;  %4538 = vrot.lane.b32.xlu2 %v4447_v53, %s6800_s20 }
 0x5a4   : > { %4297 = vrot.lane.b32.xlu1 %v9719_v62, %s6799_s19 }
 0x5a5   : > { %v4533_v14 = vpop.permute.xlu2 %4532 }
 0x5a6   : > { %v4111_v63 = vpop.permute.xlu1 %4110 }
 0x5a7   : > { %4201 = vst.msk [vmem:[#allocation4 + $0x30] sm:$0xff] %vm4194_vm10, %v4111_v63  ;;  %v4450_v63 = vld [vmem:[#allocation3 + $0x19a] sm:$0xff] }
 0x5a9   : > { %4524 = vrot.lane.b32.xlu0 %v4440_v61, %s6800_s20 }
 0x5ab   : > { %v4115_v40 = vpop.permute.xlu0 %4114  ;;  %4313 = vrot.lane.b32.xlu2 %v9741_v56, %s6799_s19  ;;  %v4423_v56 = vld [vmem:[#allocation3 + $0x52] sm:$0xff] }
 0x5ac   : > { %4203 = vst.msk [vmem:[#allocation4 + $0x40] sm:$0xff] %vm4194_vm10, %v4115_v40  ;;  %4154 = vrot.lane.b32.xlu1 %v9687_v15, %s6798_s18 }
 0x5ad   : > { %v4308_v52 = vpop.permute.xlu2 %4307 }
 0x5ae   : > { %4396 = vst.msk [vmem:[#allocation4 + $0x40] sm:$0xff] %vm4387_vm11, %v4308_v52  ;;  %v4147_v62 = vpop.permute.xlu1 %4146  ;;  %v4233_v52 = vld [vmem:[#allocation3 + $0x79] sm:$0xff] }
 0x5af   : > { %4219 = vst.msk [vmem:[#allocation4 + $0xc0] sm:$0xff] %vm4194_vm10, %v4147_v62 }
 0x5b0   : > { %4412 = vst.msk [vmem:[#allocation4 + $0xc0] sm:$0xff] %vm4387_vm11, %v4340_v51  ;;  %v4442_v51 = vld [vmem:[#allocation3 + $0x13a] sm:$0xff] }
 0x5b1   : > { %4299 = vrot.lane.b32.xlu0 %v4231_v50, %s6799_s19  ;;  %4605 = vst.msk [vmem:[#allocation4 + $0xc0] sm:$0xff] %vm4580_vm12, %v4533_v14  ;;  %v4443_v50 = vld [vmem:[#allocation3 + $0x142] sm:$0xff] }
 0x5b3   : > { %v4133_v28 = vpop.permute.xlu0 %4132  ;;  %4490 = vrot.lane.b32.xlu2 %v4423_v56, %s6800_s20 }
 0x5b4   : > { %4212 = vst.msk [vmem:[#allocation4 + $0x88] sm:$0xff] %vm4194_vm10, %v4133_v28  ;;  %4331 = vrot.lane.b32.xlu1 %v9773_v12, %s6799_s19 }
 0x5b5   : > { %v4485_v15 = vpop.permute.xlu2 %4484 }
 0x5b6   : > { %v4517_v17 = vpop.permute.xlu1 %4516 }
 0x5b7   : > { %4597 = vst.msk [vmem:[#allocation4 + $0x80] sm:$0xff] %vm4580_vm12, %v4517_v17  ;;  %v4234_v17 = vld [vmem:[#allocation3 + $0x81] sm:$0xff] }
 0x5b8   : > { %v4637_v19 = vld [vmem:[#allocation4 + $0xc0] sm:$0xff] }
 0x5b9   : > { %4156 = vrot.lane.b32.xlu0 %v9696_v42, %s6798_s18  ;;  %6606 = vmatmul.msk.f32.vlgmr.msra.gmra.mxu3 %vm4654_vm13, %v4637_v19 }
 0x5bb   : > { %v4501_v8 = vpop.permute.xlu0 %4500  ;;  %4347 = vrot.lane.b32.xlu2 %v9769_v13, %s6799_s19  ;;  %v4239_v13 = vld [vmem:[#allocation3 + $0xc1] sm:$0xff] }
 0x5bc   : > { %4589 = vst.msk [vmem:[#allocation4 + $0x40] sm:$0xff] %vm4580_vm12, %v4501_v8  ;;  %4540 = vrot.lane.b32.xlu1 %v9902_v31, %s6800_s20  ;;  %v4241_v8 = vld [vmem:[#allocation3 + $0xd9] sm:$0xff] }
 0x5bd   : > { %v4342_v42 = vpop.permute.xlu2 %4341 }
 0x5be   : > { %v4292_v22 = vpop.permute.xlu1 %4291  ;;  %v4629_v38 = vld [vmem:[#allocation4 + $0x80] sm:$0xff] }
 0x5bf   : > { %4388 = vst.msk [vmem:[#allocation4] sm:$0xff] %vm4387_vm11, %v4292_v22  ;;  %6598 = vmatmul.msk.f32.vlgmr.msra.gmra.mxu2 %vm4654_vm13, %v4629_v38  ;;  %v4435_v22 = vld [vmem:[#allocation3 + $0xe2] sm:$0xff] }
 0x5c0   : > { %4581 = vst.msk [vmem:[#allocation4] sm:$0xff] %vm4580_vm12, %v4485_v15  ;;  %v4065_v15 = vld [vmem:[#allocation3 + $0x1a0] sm:$0xff] }
 0x5c1   : > { %4333 = vrot.lane.b32.xlu0 %v4248_v4, %s6799_s19  ;;  %v4250_v38 = vld [vmem:[#allocation3 + $0x141] sm:$0xff] }
 0x5c3   : > { %v4519_v12 = vpop.permute.xlu0 %4518  ;;  %v4621_v29 = vld [vmem:[#allocation4 + $0x40] sm:$0xff]  ;;  %4122 = vrot.lane.b32.xlu2 %v4046_v49, %s6798_s18 }
 0x5c4   : > { %6590 = vmatmul.msk.f32.vlgmr.msra.gmra.mxu1 %vm4654_vm13, %v4621_v29  ;;  %4315 = vrot.lane.b32.xlu1 %v4239_v13, %s6799_s19  ;;  %v4426_v29 = vld [vmem:[#allocation3 + $0x7a] sm:$0xff] }
 0x5c5   : > { %v4117_v31 = vpop.permute.xlu2 %4116 }
 0x5c6   : > { %4204 = vst.msk [vmem:[#allocation4 + $0x48] sm:$0xff] %vm4194_vm10, %v4117_v31  ;;  %v4149_v18 = vpop.permute.xlu1 %4148 }
 0x5c7   : > { %v4613_v54 = vld [vmem:[#allocation4] sm:$0xff]  ;;  %4220 = vst.msk [vmem:[#allocation4 + $0xc8] sm:$0xff] %vm4194_vm10, %v4149_v18  ;;  %v4258_v18 = vld [vmem:[#allocation3 + $0x1a1] sm:$0xff] }
 0x5c8   : > { %6582 = vmatmul.msk.f32.vlgmr.msra.gmra.mxu0 %vm4654_vm13, %v4613_v54  ;;  %4413 = vst.msk [vmem:[#allocation4 + $0xc8] sm:$0xff] %vm4387_vm11, %v4342_v42  ;;  %v4451_v54 = vld [vmem:[#allocation3 + $0x1a2] sm:$0xff] }
 0x5c9   : > { %4542 = vrot.lane.b32.xlu0 %v9874_v39, %s6800_s20  ;;  %v4424_v39 = vld [vmem:[#allocation3 + $0x62] sm:$0xff] }
 0x5cb   : > { %v4294_v33 = vpop.permute.xlu0 %4293  ;;  %4140 = vrot.lane.b32.xlu2 %v4055_v35, %s6798_s18 }
 0x5cc   : > { %4389 = vst.msk [vmem:[#allocation4 + $0x8] sm:$0xff] %vm4387_vm11, %v4294_v33  ;;  %4492 = vrot.lane.b32.xlu1 %v4424_v39, %s6800_s20 }
 0x5cd   : > { %v4135_v57 = vpop.permute.xlu2 %4134 }
 0x5ce   : > { %4213 = vst.msk [vmem:[#allocation4 + $0x90] sm:$0xff] %vm4194_vm10, %v4135_v57  ;;  %v4326_v45 = vpop.permute.xlu1 %4325 }
 0x5cf   : > { %4405 = vst.msk [vmem:[#allocation4 + $0x88] sm:$0xff] %vm4387_vm11, %v4326_v45  ;;  %v4049_v45 = vld [vmem:[#allocation3 + $0xe0] sm:$0xff] }
 0x5d0   : > { %4598 = vst.msk [vmem:[#allocation4 + $0x88] sm:$0xff] %vm4580_vm12, %v4519_v12 }
 0x5d1   : > { %4317 = vrot.lane.b32.xlu0 %v4240_v37, %s6799_s19 }
 0x5d3   : > { %v4151_v24 = vpop.permute.xlu0 %4150  ;;  %4508 = vrot.lane.b32.xlu2 %v4432_v3, %s6800_s20  ;;  %v4242_v3 = vld [vmem:[#allocation3 + $0xe1] sm:$0xff] }
 0x5d4   : > { %4221 = vst.msk [vmem:[#allocation4 + $0xd0] sm:$0xff] %vm4194_vm10, %v4151_v24  ;;  %4349 = vrot.lane.b32.xlu1 %v9802_v1, %s6799_s19 }
 0x5d5   : > { %v4503_v30 = vpop.permute.xlu2 %4502 }
 0x5d6   : > { %v4535_v5 = vpop.permute.xlu1 %4534 }
 0x5d7   : > { %4606 = vst.msk [vmem:[#allocation4 + $0xc8] sm:$0xff] %vm4580_vm12, %v4535_v5  ;;  %v4630_v25 = vld [vmem:[#allocation4 + $0x88] sm:$0xff] }
 0x5d8   : > { %6599 = vmatmul.msk.f32.gmra.mxu2 %vm4654_vm13, %v4630_v25  ;;  %v4427_v25 = vld [vmem:[#allocation3 + $0x82] sm:$0xff] }
 0x5d9   : > { %4494 = vrot.lane.b32.xlu0 %v4425_v9, %s6800_s20 }
 0x5db   : > { %v4328_v11 = vpop.permute.xlu0 %4327  ;;  %4526 = vrot.lane.b32.xlu2 %v4441_v6, %s6800_s20 }
 0x5dc   : > { %4406 = vst.msk [vmem:[#allocation4 + $0x90] sm:$0xff] %vm4387_vm11, %v4328_v11  ;;  %4124 = vrot.lane.b32.xlu1 %v4047_v55, %s6798_s18 }
 0x5dd   : > { %v4521_v1 = vpop.permute.xlu2 %4520 }
 0x5de   : > { %4599 = vst.msk [vmem:[#allocation4 + $0x90] sm:$0xff] %vm4580_vm12, %v4521_v1  ;;  %v4310_v10 = vpop.permute.xlu1 %4309  ;;  %v4638_v27 = vld [vmem:[#allocation4 + $0xc8] sm:$0xff] }
 0x5df   : > { %4397 = vst.msk [vmem:[#allocation4 + $0x48] sm:$0xff] %vm4387_vm11, %v4310_v10  ;;  %6607 = vmatmul.msk.f32.gmra.mxu3 %vm4654_vm13, %v4638_v27 }
 0x5e0   : > { %4590 = vst.msk [vmem:[#allocation4 + $0x48] sm:$0xff] %vm4580_vm12, %v4503_v30 }
 0x5e1   : > { %4351 = vrot.lane.b32.xlu0 %v4257_v60, %s6799_s19 }
 0x5e3   : > { %v4537_v0 = vpop.permute.xlu0 %4536  ;;  %4301 = vrot.lane.b32.xlu2 %v4232_v7, %s6799_s19 }
 0x5e4   : > { %4142 = vrot.lane.b32.xlu1 %v4056_v23, %s6798_s18 }
 0x5e5   : > { %v4296_v36 = vpop.permute.xlu2 %4295  ;;  %v4631_v43 = vld [vmem:[#allocation4 + $0x90] sm:$0xff] }
 0x5e6   : > { %4390 = vst.msk [vmem:[#allocation4 + $0x10] sm:$0xff] %vm4387_vm11, %v4296_v36  ;;  %6600 = vmatmul.msk.f32.gmra.mxu2 %vm4654_vm13, %v4631_v43  ;;  %v4487_v32 = vpop.permute.xlu1 %4486  ;;  %v10174_v43 = vld [vmem:[%s11045_s5] ss:$0 sm:$0xff] }
 0x5e7   : > { %4582 = vst.msk [vmem:[#allocation4 + $0x8] sm:$0xff] %vm4580_vm12, %v4487_v32  ;;  %v4622_v48 = vld [vmem:[#allocation4 + $0x48] sm:$0xff] }
 0x5e8   : > { %6591 = vmatmul.msk.f32.gmra.mxu1 %vm4654_vm13, %v4622_v48 }
 0x5e9   : > { %4126 = vrot.lane.b32.xlu0 %v4048_v44, %s6798_s18 }
 0x5eb   : > { %v4312_v47 = vpop.permute.xlu0 %4311  ;;  %4158 = vrot.lane.b32.xlu2 %v4064_v34, %s6798_s18 }
 0x5ec   : > { %4510 = vrot.lane.b32.xlu1 %v4433_v16, %s6800_s20 }
 0x5ed   : > { %v4153_v58 = vpop.permute.xlu2 %4152 }
 0x5ee   : > { %4222 = vst.msk [vmem:[#allocation4 + $0xd8] sm:$0xff] %vm4194_vm10, %v4153_v58  ;;  %v4344_v21 = vpop.permute.xlu1 %4343  ;;  %v4614_v46 = vld [vmem:[#allocation4 + $0x8] sm:$0xff] }
 0x5ef   : > { %6583 = vmatmul.msk.f32.gmra.mxu0 %vm4654_vm13, %v4614_v46  ;;  %4414 = vst.msk [vmem:[#allocation4 + $0xd0] sm:$0xff] %vm4387_vm11, %v4344_v21 }
 0x5f0   : > { %4607 = vst.msk [vmem:[#allocation4 + $0xd0] sm:$0xff] %vm4580_vm12, %v4537_v0 }
 0x5f1   : > { %4144 = vrot.lane.b32.xlu0 %v4057_v20, %s6798_s18 }
 0x5f3   : > { %v4489_v2 = vpop.permute.xlu0 %4488  ;;  %4335 = vrot.lane.b32.xlu2 %v4249_v41, %s6799_s19 }
 0x5f4   : > { %4583 = vst.msk [vmem:[#allocation4 + $0x10] sm:$0xff] %vm4580_vm12, %v4489_v2  ;;  %4528 = vrot.lane.b32.xlu1 %v4442_v51, %s6800_s20 }
 0x5f5   : > { %v4330_v26 = vpop.permute.xlu2 %4329 }
 0x5f6   : > { %v4119_v61 = vpop.permute.xlu1 %4118 }
 0x5f7   : > { %4205 = vst.msk [vmem:[#allocation4 + $0x50] sm:$0xff] %vm4194_vm10, %v4119_v61  ;;  %v4639_v40 = vld [vmem:[#allocation4 + $0xd0] sm:$0xff] }
 0x5f8   : > { %4398 = vst.msk [vmem:[#allocation4 + $0x50] sm:$0xff] %vm4387_vm11, %v4312_v47  ;;  %6608 = vmatmul.msk.f32.gmra.mxu3 %vm4654_vm13, %v4639_v40  ;;  %v10179_v47 = vld [vmem:[%s11046_s6] ss:$0 sm:$0xff] }
 0x5f9   : > { %4512 = vrot.lane.b32.xlu0 %v4434_v59, %s6800_s20 }
 0x5fb   : > { %v4346_v53 = vpop.permute.xlu0 %4345  ;;  %v4615_v14 = vld [vmem:[#allocation4 + $0x10] sm:$0xff]  ;;  %4544 = vrot.lane.b32.xlu2 %v4450_v63, %s6800_s20 }
 0x5fc   : > { %4415 = vst.msk [vmem:[#allocation4 + $0xd8] sm:$0xff] %vm4387_vm11, %v4346_v53  ;;  %6584 = vmatmul.msk.f32.gmra.mxu0 %vm4654_vm13, %v4615_v14  ;;  %4303 = vrot.lane.b32.xlu1 %v4233_v52, %s6799_s19 }
 0x5fd   : > { %v4539_v28 = vpop.permute.xlu2 %4538 }
 0x5fe   : > { %4608 = vst.msk [vmem:[#allocation4 + $0xd8] sm:$0xff] %vm4580_vm12, %v4539_v28  ;;  %v4137_v56 = vpop.permute.xlu1 %4136 }
 0x5ff   : > { %4214 = vst.msk [vmem:[#allocation4 + $0x98] sm:$0xff] %vm4194_vm10, %v4137_v56 }
 0x600   : > { %4407 = vst.msk [vmem:[#allocation4 + $0x98] sm:$0xff] %vm4387_vm11, %v4330_v26 }
 0x601   : > { %4530 = vrot.lane.b32.xlu0 %v4443_v50, %s6800_s20 }
 0x603   : > { %v4121_v62 = vpop.permute.xlu0 %4120  ;;  %4319 = vrot.lane.b32.xlu2 %v4241_v8, %s6799_s19 }
 0x604   : > { %4206 = vst.msk [vmem:[#allocation4 + $0x58] sm:$0xff] %vm4194_vm10, %v4121_v62  ;;  %4160 = vrot.lane.b32.xlu1 %v4065_v15, %s6798_s18 }
 0x605   : > { %v4314_v19 = vpop.permute.xlu2 %4313  ;;  %v4640_v4 = vld [vmem:[#allocation4 + $0xd8] sm:$0xff] }
 0x606   : > { %4399 = vst.msk [vmem:[#allocation4 + $0x58] sm:$0xff] %vm4387_vm11, %v4314_v19  ;;  %6609 = vmatmul.msk.f32.gmra.mxu3 %vm4654_vm13, %v4640_v4  ;;  %v4505_v12 = vpop.permute.xlu1 %4504 }
 0x607   : > { %4591 = vst.msk [vmem:[#allocation4 + $0x50] sm:$0xff] %vm4580_vm12, %v4505_v12 }
 0x609   : > { %4305 = vrot.lane.b32.xlu0 %v4234_v17, %s6799_s19 }
 0x60b   : > { %v4139_v42 = vpop.permute.xlu0 %4138  ;;  %4496 = vrot.lane.b32.xlu2 %v4426_v29, %s6800_s20 }
 0x60c   : > { %4215 = vst.msk [vmem:[#allocation4 + $0xa0] sm:$0xff] %vm4194_vm10, %v4139_v42  ;;  %4337 = vrot.lane.b32.xlu1 %v4250_v38, %s6799_s19 }
 0x60d   : > { %v4491_v49 = vpop.permute.xlu2 %4490 }
 0x60e   : > { %v4523_v31 = vpop.permute.xlu1 %4522  ;;  %v4623_v33 = vld [vmem:[#allocation4 + $0x50] sm:$0xff] }
 0x60f   : > { %4600 = vst.msk [vmem:[#allocation4 + $0x98] sm:$0xff] %vm4580_vm12, %v4523_v31  ;;  %6592 = vmatmul.msk.f32.gmra.mxu1 %vm4654_vm13, %v4623_v33 }
 0x611   : > { %4514 = vrot.lane.b32.xlu0 %v4435_v22, %s6800_s20 }
 0x613   : > { %v4507_v13 = vpop.permute.xlu0 %4506  ;;  %4353 = vrot.lane.b32.xlu2 %v4258_v18, %s6799_s19 }
 0x614   : > { %4592 = vst.msk [vmem:[#allocation4 + $0x58] sm:$0xff] %vm4580_vm12, %v4507_v13  ;;  %4546 = vrot.lane.b32.xlu1 %v4451_v54, %s6800_s20 }
 0x615   : > { %v4348_v35 = vpop.permute.xlu2 %4347 }
 0x616   : > { %v4298_v39 = vpop.permute.xlu1 %4297  ;;  %v4632_v24 = vld [vmem:[#allocation4 + $0x98] sm:$0xff] }
 0x617   : > { %4391 = vst.msk [vmem:[#allocation4 + $0x18] sm:$0xff] %vm4387_vm11, %v4298_v39  ;;  %6601 = vmatmul.msk.f32.gmra.mxu2 %vm4654_vm13, %v4632_v24 }
 0x618   : > { %4584 = vst.msk [vmem:[#allocation4 + $0x18] sm:$0xff] %vm4580_vm12, %v4491_v49 }
 0x61b   : > { %v4525_v37 = vpop.permute.xlu0 %4524  ;;  %v4624_v57 = vld [vmem:[#allocation4 + $0x58] sm:$0xff]  ;;  %4128 = vrot.lane.b32.xlu2 %v4049_v45, %s6798_s18 }
 0x61c   : > { %6593 = vmatmul.msk.f32.gmra.mxu1 %vm4654_vm13, %v4624_v57  ;;  %4321 = vrot.lane.b32.xlu1 %v4242_v3, %s6799_s19  ;;  %s6747_s19 = scalar_lea.hbm %s11047_s7, 128 }
 0x61d   : > { %v4123_v9 = vpop.permute.xlu2 %4122 }
 0x61e   : > { %4207 = vst.msk [vmem:[#allocation4 + $0x60] sm:$0xff] %vm4194_vm10, %v4123_v9  ;;  %v4155_v11 = vpop.permute.xlu1 %4154 }
 0x61f   : > { %v4616_v5 = vld [vmem:[#allocation4 + $0x18] sm:$0xff]  ;;  %4223 = vst.msk [vmem:[#allocation4 + $0xe0] sm:$0xff] %vm4194_vm10, %v4155_v11 }
 0x620   : > { %6585 = vmatmul.msk.f32.gmra.mxu0 %vm4654_vm13, %v4616_v5  ;;  %4416 = vst.msk [vmem:[#allocation4 + $0xe0] sm:$0xff] %vm4387_vm11, %v4348_v35 }
 0x623   : > { %v4300_v30 = vpop.permute.xlu0 %4299  ;;  %4498 = vrot.lane.b32.xlu2 %v4427_v25, %s6800_s20  ;;  %s6620_s20 = sshll.u32 %s6863_s28, 6 }
 0x624   : > { %4392 = vst.msk [vmem:[#allocation4 + $0x20] sm:$0xff] %vm4387_vm11, %v4300_v30  ;;  %s6501_s21 = scalar_lea.hbm %s11047_s7, %s6620_s20 }
 0x625   : > { %v4141_v60 = vpop.permute.xlu2 %4140  ;;  %s6504_s29 = sshll.u32 %s6501_s21, 4  ;;  %s6505_s29 = int_to_ptr.hbm [resolvable:$true] %s6504_s29 }
 0x626   : > { %4216 = vst.msk [vmem:[#allocation4 + $0xa8] sm:$0xff] %vm4194_vm10, %v4141_v60  ;;  %v4332_v55 = vpop.permute.xlu1 %4331  ;;  %s6741_s9 = sshra.s32 %s6505_s29, 4  ;;  %s6742_s9 = int_to_ptr.hbm [resolvable:$true] %s6741_s9 }
 0x627   : > { %4408 = vst.msk [vmem:[#allocation4 + $0xa0] sm:$0xff] %vm4387_vm11, %v4332_v55  ;;  %s6743_s14 = scalar_lea.hbm %s6742_s9, 64  ;;  %p6748_p0 = scmp.lt.s32.totalorder %s6742_s9, %s11047_s7 }
 0x628   : > { %4601 = vst.msk [vmem:[#allocation4 + $0xa0] sm:$0xff] %vm4580_vm12, %v4525_v37  ;;  %p6744_p11 = scmp.ne.s32.totalorder %s6742_s9, %s6743_s14  ;;  %p6749_p1 = scmp.lt.s32.totalorder %s6747_s19, %s6743_s14 }
 0x62a   : > { %p6745_p12 = pnand %p6744_p11, %p6880_p5  ;;  %p6750_p2 = por %p6749_p1, %p6748_p0 }
 0x62b   : > { %v4157_v6 = vpop.permute.xlu0 %4156 }
 0x62c   : > { %4224 = vst.msk [vmem:[#allocation4 + $0xe8] sm:$0xff] %vm4194_vm10, %v4157_v6  ;;  %p6746_p13 = pneg %p6745_p12 }
 0x62d   : > { %v4509_v1 = vpop.permute.xlu2 %4508 }
 0x62e   : > { %v4541_v10 = vpop.permute.xlu1 %4540  ;;  %p6751_p3 = pnand %p6750_p2, %p6746_p13 }
 0x62f   : > { %4609 = vst.msk [vmem:[#allocation4 + $0xe0] sm:$0xff] %vm4580_vm12, %v4541_v10  ;;  %v4633_v27 = vld [vmem:[#allocation4 + $0xa0] sm:$0xff] }
 0x630   : > { %6602 = vmatmul.msk.f32.gmra.mxu2 %vm4654_vm13, %v4633_v27 }
 0x633   : > { %v4334_v0 = vpop.permute.xlu0 %4333 }
 0x634   : > { %4409 = vst.msk [vmem:[#allocation4 + $0xa8] sm:$0xff] %vm4387_vm11, %v4334_v0 }
 0x635   : > { %v4527_v7 = vpop.permute.xlu2 %4526 }
 0x636   : > { %4602 = vst.msk [vmem:[#allocation4 + $0xa8] sm:$0xff] %vm4580_vm12, %v4527_v7  ;;  %v4316_v23 = vpop.permute.xlu1 %4315  ;;  %v4641_v36 = vld [vmem:[#allocation4 + $0xe0] sm:$0xff] }
 0x637   : > { %4400 = vst.msk [vmem:[#allocation4 + $0x60] sm:$0xff] %vm4387_vm11, %v4316_v23  ;;  %6610 = vmatmul.msk.f32.gmra.mxu3 %vm4654_vm13, %v4641_v36 }
 0x638   : > { %4593 = vst.msk [vmem:[#allocation4 + $0x60] sm:$0xff] %vm4580_vm12, %v4509_v1 }
 0x63b   : > { %v4543_v44 = vpop.permute.xlu0 %4542 }
 0x63c   : > { %v4840_v20 = vpop.f32.mrf.mxu3 }
 0x63d   : > { %v4302_v34 = vpop.permute.xlu2 %4301  ;;  %v4634_v16 = vld [vmem:[#allocation4 + $0xa8] sm:$0xff]  ;;  %v4892_v2 = vmul.f32 %v10174_v43, %v4840_v20 }
 0x63e   : > { %4393 = vst.msk [vmem:[#allocation4 + $0x28] sm:$0xff] %vm4387_vm11, %v4302_v34  ;;  %6603 = vmatmul.msk.f32.gmra.mxu2 %vm4654_vm13, %v4634_v16  ;;  %v4493_v21 = vpop.permute.xlu1 %4492 }
 0x63f   : > { %4585 = vst.msk [vmem:[#allocation4 + $0x20] sm:$0xff] %vm4580_vm12, %v4493_v21  ;;  %v4625_v41 = vld [vmem:[#allocation4 + $0x60] sm:$0xff]  ;;  %v4928_v59 = vadd.f32 %v10179_v47, %v4892_v2 }
 0x640   : > { %6594 = vmatmul.msk.f32.gmra.mxu1 %vm4654_vm13, %v4625_v41 }
 0x641   : > { %v4792_v32 = vpop.f32.mrf.mxu1  ;;  %vm4960_vm0 = vcmp.gt.f32.partialorder %v4928_v59, 0.0  ;;  %v4992_v26 = vmul.f32 0.01, %v4928_v59 }
 0x642   : > { %v4876_v48 = vmul.f32 %v10174_v43, %v4792_v32  ;;  %v4816_v6 = vpop.f32.mrf.mxu2 }
 0x643   : > { %v10182_v58 = vpop.permute.xlu0 %4317  ;;  %v5024_v52 = vsel %vm4960_vm0, %v4928_v59, %v4992_v26  ;;  %v4884_v20 = vmul.f32 %v10174_v43, %v4816_v6  ;;  %vm6414_vm0 = vcmask 1043459  }
 0x644   : > { %v4912_v46 = vadd.f32 %v10179_v47, %v4876_v48  ;;  %v5136_v8 = vrot.slane %v5024_v52, 2  ;;  %v5137_v38 = vrot.slane %v5024_v52, 4  ;;  %v5138_v49 = vrot.slane %v5024_v52, 6 }
 0x645   : > { %v4159_v28 = vpop.permute.xlu2 %4158  ;;  %v5929_v13 = vsel %vm5256_vm15, %v5024_v52, -inf  ;;  %v4768_v26 = vpop.f32.mrf.mxu0 }
 0x646   : > { %vm4944_vm14 = vcmp.gt.f32.partialorder %v4912_v46, 0.0  ;;  %v4976_v51 = vmul.f32 0.01, %v4912_v46  ;;  %4225 = vst.msk [vmem:[#allocation4 + $0xf0] sm:$0xff] %vm4194_vm10, %v4159_v28  ;;  %v4350_v19 = vpop.permute.xlu1 %4349  ;;  %v4617_v4 = vld [vmem:[#allocation4 + $0x20] sm:$0xff]  ;;  %v5936_v31 = vsel %vm5256_vm15, %v5136_v8, -inf }
 0x647   : > { %6586 = vmatmul.msk.f32.gmra.mxu0 %vm4654_vm13, %v4617_v4  ;;  %4417 = vst.msk [vmem:[#allocation4 + $0xe8] sm:$0xff] %vm4387_vm11, %v4350_v19  ;;  %v5930_v37 = vrot.slane %v5929_v13, 4  ;;  %v5937_v39 = vrot.slane %v5936_v31, 4  ;;  %v5943_v57 = vsel %vm5256_vm15, %v5137_v38, -inf  ;;  %v5950_v24 = vsel %vm5256_vm15, %v5138_v49, -inf }
 0x648   : > { %v5008_v53 = vsel %vm4944_vm14, %v4912_v46, %v4976_v51  ;;  %4610 = vst.msk [vmem:[#allocation4 + $0xe8] sm:$0xff] %vm4580_vm12, %v4543_v44  ;;  %v5944_v25 = vrot.slane %v5943_v57, 4  ;;  %v5951_v60 = vrot.slane %v5950_v24, 4  ;;  %vm6412_vm14 = vcmask 1042434  }
 0x649   : > { %v5088_v61 = vrot.slane %v5008_v53, 2  ;;  %v5089_v14 = vrot.slane %v5008_v53, 4  ;;  %v5090_v40 = vrot.slane %v5008_v53, 6  ;;  %v5481_v63 = vsel %vm5256_vm15, %v5008_v53, -inf }
 0x64a   : > { %v5482_v50 = vrot.slane %v5481_v63, 4  ;;  %v5931_v11 = vmax.f32 %v5929_v13, %v5930_v37  ;;  %v5938_v5 = vmax.f32 %v5936_v31, %v5937_v39  ;;  %v5945_v7 = vmax.f32 %v5943_v57, %v5944_v25 }
 0x64b   : > { %v5488_v62 = vsel %vm5256_vm15, %v5088_v61, -inf  ;;  %v5495_v56 = vsel %vm5256_vm15, %v5089_v14, -inf  ;;  %v5502_v15 = vsel %vm5256_vm15, %v5090_v40, -inf  ;;  %v4495_v17 = vpop.permute.xlu0 %4494  ;;  %v5952_v44 = vmax.f32 %v5950_v24, %v5951_v60 }
 0x64c   : > { %v5483_v42 = vmax.f32 %v5481_v63, %v5482_v50  ;;  %v5489_v12 = vrot.slane %v5488_v62, 4  ;;  %v5496_v29 = vrot.slane %v5495_v56, 4  ;;  %v5503_v22 = vrot.slane %v5502_v15, 4  ;;  %4586 = vst.msk [vmem:[#allocation4 + $0x28] sm:$0xff] %vm4580_vm12, %v4495_v17 }
 0x64d   : > { %v4336_v0 = vpop.permute.xlu2 %4335  ;;  %v5932_v48 = vrot.slane %v5931_v11, 2  ;;  %v5939_v34 = vrot.slane %v5938_v5, 2  ;;  %v5946_v2 = vrot.slane %v5945_v7, 2  ;;  %v5953_v51 = vrot.slane %v5952_v44, 2 }
 0x64e   : > { %v5484_v33 = vrot.slane %v5483_v42, 2  ;;  %v5490_v18 = vmax.f32 %v5488_v62, %v5489_v12  ;;  %v5497_v54 = vmax.f32 %v5495_v56, %v5496_v29  ;;  %v5504_v35 = vmax.f32 %v5502_v15, %v5503_v22  ;;  %v4125_v36 = vpop.permute.xlu1 %4124 }
 0x64f   : > { %4208 = vst.msk [vmem:[#allocation4 + $0x68] sm:$0xff] %vm4194_vm10, %v4125_v36  ;;  %v4642_v21 = vld [vmem:[#allocation4 + $0xe8] sm:$0xff]  ;;  %v10211_v53 = vmax.f32 %v5931_v11, %v5932_v48  ;;  %v10213_v61 = vmax.f32 %v5938_v5, %v5939_v34  ;;  %v4920_v14 = vadd.f32 %v10179_v47, %v4884_v20  ;;  %v10216_v63 = vmax.f32 %v5945_v7, %v5946_v2 }
 0x650   : > { %v5485_v45 = vmax.f32 %v5483_v42, %v5484_v33  ;;  %v5491_v3 = vrot.slane %v5490_v18, 2  ;;  %v5498_v9 = vrot.slane %v5497_v54, 2  ;;  %v5505_v30 = vrot.slane %v5504_v35, 2  ;;  %4401 = vst.msk [vmem:[#allocation4 + $0x68] sm:$0xff] %vm4387_vm11, %v10182_v58  ;;  %6611 = vmatmul.msk.f32.gmra.mxu3 %vm4654_vm13, %v4642_v21 }
 0x651   : > { %vm4952_vm3 = vcmp.gt.f32.partialorder %v4920_v14, 0.0  ;;  %v4984_v50 = vmul.f32 0.01, %v4920_v14  ;;  %v4868_v58 = vmul.f32 %v10174_v43, %v4768_v26  ;;  %v10226_v15 = vmax.f32 %v5952_v44, %v5953_v51 }
 0x652   : > { %v5486_v55 = vrot.slane %v5485_v45, 1  ;;  %v5492_v1 = vmax.f32 %v5490_v18, %v5491_v3  ;;  %v5499_v10 = vmax.f32 %v5497_v54, %v5498_v9  ;;  %v5506_v27 = vmax.f32 %v5504_v35, %v5505_v30 }
 0x653   : > { %v4352_v23 = vpop.permute.xlu0 %4351  ;;  %v4618_v32 = vld [vmem:[#allocation4 + $0x28] sm:$0xff]  ;;  %v5934_v19 = vrot.slane %v10211_v53, 1  ;;  %v5941_v4 = vrot.slane %v10213_v61, 1  ;;  %v5016_v42 = vsel %vm4952_vm3, %v4920_v14, %v4984_v50  ;;  %v4904_v12 = vadd.f32 %v10179_v47, %v4868_v58 }
 0x654   : > { %4418 = vst.msk [vmem:[#allocation4 + $0xf0] sm:$0xff] %vm4387_vm11, %v4352_v23  ;;  %6587 = vmatmul.msk.f32.gmra.mxu0 %vm4654_vm13, %v4618_v32  ;;  %v5493_v16 = vrot.slane %v5492_v1, 1  ;;  %v5487_v46 = vmax.f32 %v5485_v45, %v5486_v55  ;;  %v5500_v41 = vrot.slane %v5499_v10, 1  ;;  %v5507_v59 = vrot.slane %v5506_v27, 1 }
 0x655   : > { %v4545_v52 = vpop.permute.xlu2 %4544  ;;  %v5948_v22 = vrot.slane %v10216_v63, 1  ;;  %v5112_v38 = vrot.slane %v5016_v42, 2  ;;  %v5113_v49 = vrot.slane %v5016_v42, 4  ;;  %v5114_v13 = vrot.slane %v5016_v42, 6 }
 0x656   : > { %v5494_v40 = vmax.f32 %v5492_v1, %v5493_v16  ;;  %v10219_v28 = vmax.f32 %v5499_v10, %v5500_v41  ;;  %v10221_v62 = vmax.f32 %v5506_v27, %v5507_v59  ;;  %v10224_v56 = vsel %vm6153_vm1, %v5487_v46, -inf  ;;  %4611 = vst.msk [vmem:[#allocation4 + $0xf0] sm:$0xff] %vm4580_vm12, %v4545_v52  ;;  %v4143_v17 = vpop.permute.xlu1 %4142 }
 0x657   : > { %4217 = vst.msk [vmem:[#allocation4 + $0xb0] sm:$0xff] %vm4194_vm10, %v4143_v17  ;;  %v5705_v31 = vsel %vm5256_vm15, %v5016_v42, -inf  ;;  %vm4936_vm4 = vcmp.gt.f32.partialorder %v4904_v12, 0.0  ;;  %v4968_v33 = vmul.f32 0.01, %v4904_v12  ;;  %v5955_v18 = vrot.slane %v10226_v15, 1 }
 0x658   : > { %v10234_v29 = vsel %vm6153_vm1, %v5494_v40, -inf  ;;  %4410 = vst.msk [vmem:[#allocation4 + $0xb0] sm:$0xff] %vm4387_vm11, %v4336_v0  ;;  %v5706_v54 = vrot.slane %v5705_v31, 4  ;;  %v5712_v35 = vsel %vm5256_vm15, %v5112_v38, -inf  ;;  %v5719_v37 = vsel %vm5256_vm15, %v5113_v49, -inf }
 0x659   : > { %v5713_v39 = vrot.slane %v5712_v35, 4  ;;  %v5720_v57 = vrot.slane %v5719_v37, 4  ;;  %v5726_v24 = vsel %vm5256_vm15, %v5114_v13, -inf  ;;  %v5000_v45 = vsel %vm4936_vm4, %v4904_v12, %v4968_v33 }
 0x65a   : > { %v5707_v3 = vmax.f32 %v5705_v31, %v5706_v54  ;;  %v5727_v9 = vrot.slane %v5726_v24, 4  ;;  %v5064_v30 = vrot.slane %v5000_v45, 2  ;;  %v5065_v11 = vrot.slane %v5000_v45, 4 }
 0x65b   : > { %v4127_v8 = vpop.permute.xlu0 %4126  ;;  %v5714_v5 = vmax.f32 %v5712_v35, %v5713_v39  ;;  %v5721_v25 = vmax.f32 %v5719_v37, %v5720_v57  ;;  %v5066_v60 = vrot.slane %v5000_v45, 6  ;;  %v5257_v6 = vsel %vm5256_vm15, %v5000_v45, -inf  ;;  %v4819_v26 = vpop.f32.mrf.mxu2 }
 0x65c   : > { %4209 = vst.msk [vmem:[#allocation4 + $0x70] sm:$0xff] %vm4194_vm10, %v4127_v8  ;;  %v5708_v0 = vrot.slane %v5707_v3, 2  ;;  %v5728_v10 = vmax.f32 %v5726_v24, %v5727_v9  ;;  %v5258_v27 = vrot.slane %v5257_v6, 4  ;;  %v5264_v7 = vsel %vm5256_vm15, %v5064_v30, -inf }
 0x65d   : > { %v4320_v55 = vpop.permute.xlu2 %4319  ;;  %v4643_v1 = vld [vmem:[#allocation4 + $0xf0] sm:$0xff]  ;;  %v5715_v36 = vrot.slane %v5714_v5, 2  ;;  %v5722_v32 = vrot.slane %v5721_v25, 2  ;;  %v5265_v48 = vrot.slane %v5264_v7, 4  ;;  %v5271_v34 = vsel %vm5256_vm15, %v5065_v11, -inf }
 0x65e   : > { %4402 = vst.msk [vmem:[#allocation4 + $0x70] sm:$0xff] %vm4387_vm11, %v4320_v55  ;;  %6612 = vmatmul.msk.f32.gmra.mxu3 %vm4654_vm13, %v4643_v1  ;;  %v4511_v23 = vpop.permute.xlu1 %4510  ;;  %v5709_v20 = vmax.f32 %v5707_v3, %v5708_v0  ;;  %v5729_v16 = vrot.slane %v5728_v10, 2  ;;  %v5259_v2 = vmax.f32 %v5257_v6, %v5258_v27  ;;  %v5272_v21 = vrot.slane %v5271_v34, 4 }
 0x65f   : > { %4594 = vst.msk [vmem:[#allocation4 + $0x68] sm:$0xff] %vm4580_vm12, %v4511_v23  ;;  %v5716_v46 = vmax.f32 %v5714_v5, %v5715_v36  ;;  %v5723_v41 = vmax.f32 %v5721_v25, %v5722_v32  ;;  %v5266_v59 = vmax.f32 %v5264_v7, %v5265_v48  ;;  %v5278_v51 = vsel %vm5256_vm15, %v5066_v60, -inf }
 0x660   : > { %v5935_v14 = vmax.f32 %v10211_v53, %v5934_v19  ;;  %v5942_v40 = vmax.f32 %v10213_v61, %v5941_v4  ;;  %v5260_v50 = vrot.slane %v5259_v2, 2  ;;  %v5273_v58 = vmax.f32 %v5271_v34, %v5272_v21 }
 0x661   : > { %v5710_v52 = vrot.slane %v5709_v20, 1  ;;  %v5730_v8 = vmax.f32 %v5728_v10, %v5729_v16  ;;  %v5267_v17 = vrot.slane %v5266_v59, 2  ;;  %v5279_v42 = vrot.slane %v5278_v51, 4 }
 0x662   : > { %v5949_v12 = vmax.f32 %v10216_v63, %v5948_v22  ;;  %v5956_v38 = vmax.f32 %v10226_v15, %v5955_v18  ;;  %v5717_v49 = vrot.slane %v5716_v46, 1  ;;  %v5274_v13 = vrot.slane %v5273_v58, 2  ;;  %v4843_v31 = vpop.f32.mrf.mxu3 }
 0x663   : > { %v4145_v44 = vpop.permute.xlu0 %4144  ;;  %v10258_v33 = vsel %vm6153_vm1, %v10219_v28, -inf  ;;  %v10262_v53 = vsel %vm6153_vm1, %v10221_v62, -inf  ;;  %v5724_v61 = vrot.slane %v5723_v41, 1  ;;  %v5280_v19 = vmax.f32 %v5278_v51, %v5279_v42 }
 0x664   : > { %4218 = vst.msk [vmem:[#allocation4 + $0xb8] sm:$0xff] %vm4194_vm10, %v4145_v44  ;;  %v10267_v63 = vsel %vm6153_vm1, %v5935_v14, -inf  ;;  %v5261_v15 = vmax.f32 %v5259_v2, %v5260_v50  ;;  %v5268_v22 = vmax.f32 %v5266_v59, %v5267_v17  ;;  %v5275_v18 = vmax.f32 %v5273_v58, %v5274_v13 }
 0x665   : > { %v10264_v4 = vpop.permute.xlu2 %4496  ;;  %v4795_v54 = vpop.f32.mrf.mxu1  ;;  %v10270_v28 = vsel %vm6153_vm1, %v5942_v40, -inf  ;;  %v5711_v39 = vmax.f32 %v5709_v20, %v5710_v52  ;;  %v5731_v57 = vrot.slane %v5730_v8, 1  ;;  %v5281_v62 = vrot.slane %v5280_v19, 2 }
 0x666   : > { %v4529_v37 = vpop.permute.xlu1 %4528  ;;  %v4626_v24 = vld [vmem:[#allocation4 + $0x68] sm:$0xff]  ;;  %v10274_v45 = vsel %vm6153_vm1, %v5949_v12, -inf  ;;  %v10277_v3 = vsel %vm6153_vm1, %v5956_v38, -inf  ;;  %v5718_v9 = vmax.f32 %v5716_v46, %v5717_v49  ;;  %v4885_v30 = vmul.f32 %v10174_v43, %v4819_v26 }
 0x667   : > { %4603 = vst.msk [vmem:[#allocation4 + $0xb0] sm:$0xff] %vm4580_vm12, %v4529_v37  ;;  %6595 = vmatmul.msk.f32.gmra.mxu1 %vm4654_vm13, %v4626_v24  ;;  %v5725_v11 = vmax.f32 %v5723_v41, %v5724_v61  ;;  %v5282_v5 = vmax.f32 %v5280_v19, %v5281_v62  ;;  %v4893_v25 = vmul.f32 %v10174_v43, %v4843_v31  ;;  %v5262_v55 = vrot.slane %v5261_v15, 1 }
 0x668   : > { %v4877_v60 = vmul.f32 %v10174_v43, %v4795_v54  ;;  %v5269_v1 = vrot.slane %v5268_v22, 1  ;;  %v5276_v0 = vrot.slane %v5275_v18, 1  ;;  %v4921_v10 = vadd.f32 %v10179_v47, %v4885_v30 }
 0x669   : > { %v4822_v6 = vpop.f32.mrf.mxu2  ;;  %v10285_v27 = vmax.f32 %v5730_v8, %v5731_v57  ;;  %v10288_v7 = vsel %vm6153_vm1, %v5711_v39, -inf  ;;  %v4929_v44 = vadd.f32 %v10179_v47, %v4893_v25  ;;  %v5283_v36 = vrot.slane %v5282_v5, 1 }
 0x66a   : > { %v4886_v23 = vmul.f32 %v10174_v43, %v4822_v6  ;;  %vm4953_vm5 = vcmp.gt.f32.partialorder %v4921_v10, 0.0  ;;  %v4985_v32 = vmul.f32 0.01, %v4921_v10  ;;  %v10293_v48 = vadd.f32 %v10179_v47, %v4877_v60 }
 0x66b   : > { %v4513_v35 = vpop.permute.xlu0 %4512  ;;  %v10296_v34 = vsel %vm6153_vm1, %v5718_v9, -inf  ;;  %v10299_v20 = vsel %vm6153_vm1, %v5725_v11, -inf  ;;  %vm4961_vm6 = vcmp.gt.f32.partialorder %v4929_v44, 0.0  ;;  %v4993_v16 = vmul.f32 0.01, %v4929_v44 }
 0x66c   : > { %4595 = vst.msk [vmem:[#allocation4 + $0x70] sm:$0xff] %vm4580_vm12, %v4513_v35  ;;  %v10301_v2 = vmax.f32 %v5261_v15, %v5262_v55  ;;  %v10303_v21 = vmax.f32 %v5268_v22, %v5269_v1  ;;  %v10305_v46 = vmax.f32 %v5275_v18, %v5276_v0  ;;  %v5017_v41 = vsel %vm4953_vm5, %v4921_v10, %v4985_v32 }
 0x66d   : > { %v5115_v59 = vrot.slane %v5017_v41, 2  ;;  %v5116_v51 = vrot.slane %v5017_v41, 4  ;;  %v5117_v26 = vrot.slane %v5017_v41, 6  ;;  %v10308_v14 = vadd.f32 %v10179_v47, %v4886_v23  ;;  %v10316_v17 = vpop.permute.xlu2 %4353 }
 0x66e   : > { %v10310_v40 = vmax.f32 %v5282_v5, %v5283_v36  ;;  %v5733_v50 = vsel %vm5256_vm15, %v5017_v41, -inf  ;;  %v5025_v58 = vsel %vm4961_vm6, %v4929_v44, %v4993_v16  ;;  %v4977_v52 = vmul.f32 0.01, %v10293_v48  ;;  %v4304_v24 = vpop.permute.xlu1 %4303  ;;  %v4635_v9 = vld [vmem:[#allocation4 + $0xb0] sm:$0xff] }
 0x66f   : > { %v5734_v42 = vrot.slane %v5733_v50, 4  ;;  %v5740_v12 = vsel %vm5256_vm15, %v5115_v59, -inf  ;;  %v5747_v38 = vsel %vm5256_vm15, %v5116_v51, -inf  ;;  %v5754_v49 = vsel %vm5256_vm15, %v5117_v26, -inf  ;;  %4394 = vst.msk [vmem:[#allocation4 + $0x30] sm:$0xff] %vm4387_vm11, %v4304_v24  ;;  %6604 = vmatmul.msk.f32.gmra.mxu2 %vm4654_vm13, %v4635_v9 }
 0x670   : > { %vm4945_vm2 = vcmp.gt.f32.partialorder %v10293_v48, 0.0  ;;  %v5741_v13 = vrot.slane %v5740_v12, 4  ;;  %v5748_v31 = vrot.slane %v5747_v38, 4  ;;  %v5755_v61 = vrot.slane %v5754_v49, 4  ;;  %4587 = vst.msk [vmem:[#allocation4 + $0x30] sm:$0xff] %vm4580_vm12, %v10264_v4 }
 0x671   : > { %v5139_v19 = vrot.slane %v5025_v58, 2  ;;  %v5735_v15 = vmax.f32 %v5733_v50, %v5734_v42  ;;  %v5140_v22 = vrot.slane %v5025_v58, 4  ;;  %v5141_v18 = vrot.slane %v5025_v58, 6 }
 0x672   : > { %v5957_v35 = vsel %vm5256_vm15, %v5025_v58, -inf  ;;  %v5742_v37 = vmax.f32 %v5740_v12, %v5741_v13  ;;  %v5749_v39 = vmax.f32 %v5747_v38, %v5748_v31  ;;  %v5756_v57 = vmax.f32 %v5754_v49, %v5755_v61 }
 0x673   : > { %v10314_v8 = vpop.permute.xlu0 %4530  ;;  %v4627_v54 = vld [vmem:[#allocation4 + $0x70] sm:$0xff]  ;;  %v5958_v62 = vrot.slane %v5957_v35, 4  ;;  %v5736_v30 = vrot.slane %v5735_v15, 2  ;;  %v5964_v11 = vsel %vm5256_vm15, %v5139_v19, -inf  ;;  %v5971_v5 = vsel %vm5256_vm15, %v5140_v22, -inf }
 0x674   : > { %6596 = vmatmul.msk.f32.gmra.mxu1 %vm4654_vm13, %v4627_v54  ;;  %v5978_v25 = vsel %vm5256_vm15, %v5141_v18, -inf  ;;  %v5743_v60 = vrot.slane %v5742_v37, 2  ;;  %v5750_v6 = vrot.slane %v5749_v39, 2  ;;  %v5757_v55 = vrot.slane %v5756_v57, 2 }
 0x675   : > { %v5959_v1 = vmax.f32 %v5957_v35, %v5958_v62  ;;  %v5737_v0 = vmax.f32 %v5735_v15, %v5736_v30  ;;  %v5965_v10 = vrot.slane %v5964_v11, 4  ;;  %v5972_v44 = vrot.slane %v5971_v5, 4  ;;  %v4129_v13 = vpop.permute.xlu2 %4128 }
 0x676   : > { %v5979_v23 = vrot.slane %v5978_v25, 4  ;;  %v5744_v36 = vmax.f32 %v5742_v37, %v5743_v60  ;;  %v5751_v32 = vmax.f32 %v5749_v39, %v5750_v6  ;;  %v5758_v16 = vmax.f32 %v5756_v57, %v5757_v55  ;;  %4210 = vst.msk [vmem:[#allocation4 + $0x78] sm:$0xff] %vm4194_vm10, %v4129_v13  ;;  %v4161_v18 = vpop.permute.xlu1 %4160 }
 0x677   : > { %v5960_v41 = vrot.slane %v5959_v1, 2  ;;  %v5738_v59 = vrot.slane %v5737_v0, 1  ;;  %v5966_v51 = vmax.f32 %v5964_v11, %v5965_v10  ;;  %v5973_v26 = vmax.f32 %v5971_v5, %v5972_v44  ;;  %4226 = vst.msk [vmem:[#allocation4 + $0xf8] sm:$0xff] %vm4194_vm10, %v4161_v18  ;;  %v4619_v57 = vld [vmem:[#allocation4 + $0x30] sm:$0xff] }
 0x678   : > { %v5980_v50 = vmax.f32 %v5978_v25, %v5979_v23  ;;  %v5745_v58 = vrot.slane %v5744_v36, 1  ;;  %v5752_v42 = vrot.slane %v5751_v32, 1  ;;  %v5759_v12 = vrot.slane %v5758_v16, 1  ;;  %4419 = vst.msk [vmem:[#allocation4 + $0xf8] sm:$0xff] %vm4387_vm11, %v10316_v17  ;;  %6588 = vmatmul.msk.f32.gmra.mxu0 %vm4654_vm13, %v4619_v57 }
 0x679   : > { %v4986_v38 = vmul.f32 0.01, %v10308_v14  ;;  %v10332_v4 = vmax.f32 %v5959_v1, %v5960_v41  ;;  %v5967_v31 = vrot.slane %v5966_v51, 2  ;;  %v5974_v61 = vrot.slane %v5973_v26, 2 }
 0x67a   : > { %vm4954_vm7 = vcmp.gt.f32.partialorder %v10308_v14, 0.0  ;;  %v10338_v19 = vsel %vm6153_vm1, %v10285_v27, -inf  ;;  %v10342_v54 = vsel %vm6153_vm1, %v10301_v2, -inf  ;;  %v5739_v15 = vmax.f32 %v5737_v0, %v5738_v59 }
 0x67b   : > { %v4306_v49 = vpop.permute.xlu0 %4305  ;;  %v5009_v22 = vsel %vm4945_vm2, %v10293_v48, %v4977_v52  ;;  %v10350_v35 = vsel %vm6153_vm1, %v10303_v21, -inf  ;;  %v5746_v37 = vmax.f32 %v5744_v36, %v5745_v58  ;;  %v5753_v39 = vmax.f32 %v5751_v32, %v5752_v42  ;;  %v4771_v42 = vpop.f32.mrf.mxu0 }
 0x67c   : > { %4395 = vst.msk [vmem:[#allocation4 + $0x38] sm:$0xff] %vm4387_vm11, %v4306_v49  ;;  %v5981_v27 = vrot.slane %v5980_v50, 2  ;;  %v10355_v2 = vsel %vm6153_vm1, %v10305_v46, -inf  ;;  %v10359_v48 = vsel %vm6153_vm1, %v10310_v40, -inf  ;;  %v5760_v52 = vmax.f32 %v5758_v16, %v5759_v12 }
 0x67d   : > { %v5018_v21 = vsel %vm4954_vm7, %v10308_v14, %v4986_v38  ;;  %v5962_v62 = vrot.slane %v10332_v4, 1  ;;  %v5968_v24 = vmax.f32 %v5966_v51, %v5967_v31  ;;  %v5975_v9 = vmax.f32 %v5973_v26, %v5974_v61  ;;  %v4499_v18 = vpop.permute.xlu2 %4498 }
 0x67e   : > { %v5091_v46 = vrot.slane %v5009_v22, 2  ;;  %v10369_v30 = vsel %vm6153_vm1, %v5739_v15, -inf  ;;  %v5092_v40 = vrot.slane %v5009_v22, 4  ;;  %v5093_v11 = vrot.slane %v5009_v22, 6  ;;  %4588 = vst.msk [vmem:[#allocation4 + $0x38] sm:$0xff] %vm4580_vm12, %v4499_v18 }
 0x67f   : > { %v5509_v5 = vsel %vm5256_vm15, %v5009_v22, -inf  ;;  %v10373_v25 = vsel %vm6153_vm1, %v5746_v37, -inf  ;;  %v10376_v14 = vsel %vm6153_vm1, %v5753_v39, -inf  ;;  %v5982_v17 = vmax.f32 %v5980_v50, %v5981_v27 }
 0x680   : > { %v5510_v60 = vrot.slane %v5509_v5, 4  ;;  %v5516_v6 = vsel %vm5256_vm15, %v5091_v46, -inf  ;;  %v5523_v55 = vsel %vm5256_vm15, %v5092_v40, -inf  ;;  %v5530_v1 = vsel %vm5256_vm15, %v5093_v11, -inf  ;;  %v4338_v11 = vpop.permute.xlu1 %4337 }
 0x681   : > { %v5118_v0 = vrot.slane %v5018_v21, 2  ;;  %v10382_v10 = vsel %vm6153_vm1, %v5760_v52, -inf  ;;  %v5969_v44 = vrot.slane %v5968_v24, 1  ;;  %v5976_v23 = vrot.slane %v5975_v9, 1  ;;  %4411 = vst.msk [vmem:[#allocation4 + $0xb8] sm:$0xff] %vm4387_vm11, %v4338_v11 }
 0x682   : > { %11692 = vst [vmem:[#allocation89_spill] sm:$0xff] %v10382_v10  ;;  %v5511_v36 = vmax.f32 %v5509_v5, %v5510_v60  ;;  %v5517_v32 = vrot.slane %v5516_v6, 4  ;;  %v5524_v16 = vrot.slane %v5523_v55, 4  ;;  %v5531_v41 = vrot.slane %v5530_v1, 4 }
 0x683   : > { %v5119_v59 = vrot.slane %v5018_v21, 4  ;;  %v5120_v26 = vrot.slane %v5018_v21, 6  ;;  %v5761_v50 = vsel %vm5256_vm15, %v5018_v21, -inf  ;;  %v5768_v58 = vsel %vm5256_vm15, %v5118_v0, -inf  ;;  %4604 = vst.msk [vmem:[#allocation4 + $0xb8] sm:$0xff] %vm4580_vm12, %v10314_v8  ;;  %v4774_v8 = vpop.f32.mrf.mxu0 }
 0x684   : > { %v5512_v51 = vrot.slane %v5511_v36, 2  ;;  %v5518_v12 = vmax.f32 %v5516_v6, %v5517_v32  ;;  %v5525_v38 = vmax.f32 %v5523_v55, %v5524_v16  ;;  %v5532_v49 = vmax.f32 %v5530_v1, %v5531_v41 }
 0x685   : > { %v5762_v13 = vrot.slane %v5761_v50, 4  ;;  %v5769_v61 = vrot.slane %v5768_v58, 4  ;;  %v5775_v15 = vsel %vm5256_vm15, %v5119_v59, -inf  ;;  %v5782_v22 = vsel %vm5256_vm15, %v5120_v26, -inf }
 0x686   : > { %v5513_v31 = vmax.f32 %v5511_v36, %v5512_v51  ;;  %v5519_v37 = vrot.slane %v5518_v12, 2  ;;  %v5526_v39 = vrot.slane %v5525_v38, 2  ;;  %v5533_v27 = vrot.slane %v5532_v49, 2 }
 0x687   : > { %v5763_v57 = vmax.f32 %v5761_v50, %v5762_v13  ;;  %v5983_v52 = vrot.slane %v5982_v17, 1  ;;  %v5770_v21 = vmax.f32 %v5768_v58, %v5769_v61  ;;  %v5776_v46 = vrot.slane %v5775_v15, 4 }
 0x688   : > { %v5783_v40 = vrot.slane %v5782_v22, 4  ;;  %v5963_v5 = vmax.f32 %v10332_v4, %v5962_v62  ;;  %v5520_v60 = vmax.f32 %v5518_v12, %v5519_v37  ;;  %v5527_v6 = vmax.f32 %v5525_v38, %v5526_v39  ;;  %v4846_v62 = vpop.f32.mrf.mxu3 }
 0x689   : > { %v5764_v55 = vrot.slane %v5763_v57, 2  ;;  %v5514_v1 = vrot.slane %v5513_v31, 1  ;;  %v5771_v0 = vrot.slane %v5770_v21, 2  ;;  %v5777_v36 = vmax.f32 %v5775_v15, %v5776_v46 }
 0x68a   : > { %v5784_v32 = vmax.f32 %v5782_v22, %v5783_v40  ;;  %v5970_v16 = vmax.f32 %v5968_v24, %v5969_v44  ;;  %v5977_v41 = vmax.f32 %v5975_v9, %v5976_v23  ;;  %v5534_v59 = vmax.f32 %v5532_v49, %v5533_v27  ;;  %v4620_v24 = vld [vmem:[#allocation4 + $0x38] sm:$0xff] }
 0x68b   : > { %v5765_v51 = vmax.f32 %v5763_v57, %v5764_v55  ;;  %v5984_v26 = vmax.f32 %v5982_v17, %v5983_v52  ;;  %v5772_v50 = vmax.f32 %v5770_v21, %v5771_v0  ;;  %v5778_v58 = vrot.slane %v5777_v36, 2  ;;  %6589 = vmatmul.msk.f32.gmra.mxu0 %vm4654_vm13, %v4620_v24  ;;  %v4547_v57 = vpop.permute.xlu1 %4546  ;;  %v4636_v11 = vld [vmem:[#allocation4 + $0xb8] sm:$0xff] }
 0x68c   : > { %v5785_v4 = vrot.slane %v5784_v32, 2  ;;  %v10394_v12 = vsel %vm6153_vm1, %v5963_v5, -inf  ;;  %v5521_v38 = vrot.slane %v5520_v60, 1  ;;  %v5528_v13 = vrot.slane %v5527_v6, 1  ;;  %4612 = vst.msk [vmem:[#allocation4 + $0xf8] sm:$0xff] %vm4580_vm12, %v4547_v57  ;;  %6605 = vmatmul.msk.f32.gmra.mxu2 %vm4654_vm13, %v4636_v11 }
 0x68d   : > { %v5766_v61 = vrot.slane %v5765_v51, 1  ;;  %v5515_v15 = vmax.f32 %v5513_v31, %v5514_v1  ;;  %v5773_v22 = vrot.slane %v5772_v50, 1  ;;  %v5779_v18 = vmax.f32 %v5777_v36, %v5778_v58 }
 0x68e   : > { %v5786_v37 = vmax.f32 %v5784_v32, %v5785_v4  ;;  %v10397_v9 = vsel %vm6153_vm1, %v5970_v16, -inf  ;;  %v10400_v17 = vsel %vm6153_vm1, %v5977_v41, -inf  ;;  %v5535_v44 = vrot.slane %v5534_v59, 1 }
 0x68f   : > { %v5767_v23 = vmax.f32 %v5765_v51, %v5766_v61  ;;  %v10404_v49 = vsel %vm6153_vm1, %v5984_v26, -inf  ;;  %v5774_v39 = vmax.f32 %v5772_v50, %v5773_v22  ;;  %v5780_v31 = vrot.slane %v5779_v18, 1 }
 0x690   : > { %v5787_v27 = vrot.slane %v5786_v37, 1  ;;  %v5522_v52 = vmax.f32 %v5520_v60, %v5521_v38  ;;  %v5529_v21 = vmax.f32 %v5527_v6, %v5528_v13  ;;  %v4869_v46 = vmul.f32 %v10174_v43, %v4771_v42  ;;  %v4849_v26 = vpop.f32.mrf.mxu3 }
 0x691   : > { %v4870_v40 = vmul.f32 %v10174_v43, %v4774_v8  ;;  %v10410_v5 = vsel %vm6153_vm1, %v5515_v15, -inf  ;;  %v5781_v55 = vmax.f32 %v5779_v18, %v5780_v31  ;;  %v6254_v0 = vsel %vm6153_vm1, %v5774_v39, -inf }
 0x692   : > { %v5788_v1 = vmax.f32 %v5786_v37, %v5787_v27  ;;  %v5536_v36 = vmax.f32 %v5534_v59, %v5535_v44  ;;  %v6251_v60 = vsel %vm6153_vm1, %v5767_v23, -inf  ;;  %v4905_v6 = vadd.f32 %v10179_v47, %v4869_v46 }
 0x693   : > { %v4906_v42 = vadd.f32 %v10179_v47, %v4870_v40  ;;  %v6255_v32 = vmax.f32 %v10296_v34, %v6254_v0  ;;  %v10419_v16 = vsel %vm6153_vm1, %v5781_v55, -inf  ;;  %v4894_v51 = vmul.f32 %v10174_v43, %v4846_v62 }
 0x694   : > { %v10422_v41 = vsel %vm6153_vm1, %v5788_v1, -inf  ;;  %v10426_v50 = vsel %vm6153_vm1, %v5522_v52, -inf  ;;  %v10429_v59 = vsel %vm6153_vm1, %v5529_v21, -inf  ;;  %vm4937_vm9 = vcmp.gt.f32.partialorder %v4905_v6, 0.0 }
 0x695   : > { %v6252_v58 = vmax.f32 %v10288_v7, %v6251_v60  ;;  %v4969_v34 = vmul.f32 0.01, %v4905_v6  ;;  %vm4938_vm10 = vcmp.gt.f32.partialorder %v4906_v42, 0.0  ;;  %v4970_v4 = vmul.f32 0.01, %v4906_v42 }
 0x696   : > { %v10433_v38 = vsel %vm6153_vm1, %v5536_v36, -inf  ;;  %v6258_v62 = vmax.f32 %v10299_v20, %v10419_v16  ;;  %v10440_v61 = vmul.f32 %v10174_v43, %v4849_v26  ;;  %v10444_v7 = vadd.f32 %v10179_v47, %v4894_v51 }
 0x697   : > { %v6445_v15 = vsel %vm6410_vm8, %v6255_v32, %v6252_v58  ;;  %v5001_v22 = vsel %vm4937_vm9, %v4905_v6, %v4969_v34  ;;  %v5002_v18 = vsel %vm4938_vm10, %v4906_v42, %v4970_v4  ;;  %vm6418_vm3 = vcmask 1045509  }
 0x698   : > { %v5067_v37 = vrot.slane %v5001_v22, 2  ;;  %v5068_v8 = vrot.slane %v5001_v22, 4  ;;  %v5069_v24 = vrot.slane %v5001_v22, 6  ;;  %v5285_v44 = vsel %vm5256_vm15, %v5001_v22, -inf }
 0x699   : > { %v5286_v20 = vrot.slane %v5285_v44, 4  ;;  %v5070_v23 = vrot.slane %v5002_v18, 2  ;;  %v5071_v39 = vrot.slane %v5002_v18, 4  ;;  %v5072_v31 = vrot.slane %v5002_v18, 6 }
 0x69a   : > { %v5292_v27 = vsel %vm5256_vm15, %v5067_v37, -inf  ;;  %v5299_v57 = vsel %vm5256_vm15, %v5068_v8, -inf  ;;  %v5306_v52 = vsel %vm5256_vm15, %v5069_v24, -inf  ;;  %v5313_v21 = vsel %vm5256_vm15, %v5002_v18, -inf }
 0x69b   : > { %v5287_v46 = vmax.f32 %v5285_v44, %v5286_v20  ;;  %v5293_v40 = vrot.slane %v5292_v27, 4  ;;  %v5300_v11 = vrot.slane %v5299_v57, 4  ;;  %v5307_v55 = vrot.slane %v5306_v52, 4 }
 0x69c   : > { %v5314_v1 = vrot.slane %v5313_v21, 4  ;;  %v5320_v0 = vsel %vm5256_vm15, %v5070_v23, -inf  ;;  %v5327_v36 = vsel %vm5256_vm15, %v5071_v39, -inf  ;;  %v5334_v60 = vsel %vm5256_vm15, %v5072_v31, -inf  ;;  %v4322_v23 = vpop.permute.xlu1 %4321  ;;  %v4644_v39 = vld [vmem:[#allocation4 + $0xf8] sm:$0xff] }
 0x69d   : > { %v5288_v6 = vrot.slane %v5287_v46, 2  ;;  %v5294_v42 = vmax.f32 %v5292_v27, %v5293_v40  ;;  %v5301_v32 = vmax.f32 %v5299_v57, %v5300_v11  ;;  %v5308_v16 = vmax.f32 %v5306_v52, %v5307_v55  ;;  %v4515_v57 = vpop.permute.xlu0 %4514  ;;  %4403 = vst.msk [vmem:[#allocation4 + $0x78] sm:$0xff] %vm4387_vm11, %v4322_v23  ;;  %6613 = vmatmul.msk.f32.gmra.mxu3 %vm4654_vm13, %v4644_v39 }
 0x69e   : > { %v5315_v51 = vmax.f32 %v5313_v21, %v5314_v1  ;;  %v5321_v26 = vrot.slane %v5320_v0, 4  ;;  %v5328_v58 = vrot.slane %v5327_v36, 4  ;;  %v5335_v34 = vrot.slane %v5334_v60, 4  ;;  %4596 = vst.msk [vmem:[#allocation4 + $0x78] sm:$0xff] %vm4580_vm12, %v4515_v57 }
 0x69f   : > { %v5289_v4 = vmax.f32 %v5287_v46, %v5288_v6  ;;  %v5295_v22 = vrot.slane %v5294_v42, 2  ;;  %v5302_v18 = vrot.slane %v5301_v32, 2  ;;  %v5309_v37 = vrot.slane %v5308_v16, 2 }
 0x6a0   : > { %v5316_v8 = vrot.slane %v5315_v51, 2  ;;  %v5322_v24 = vmax.f32 %v5320_v0, %v5321_v26  ;;  %v5329_v44 = vmax.f32 %v5327_v36, %v5328_v58  ;;  %v5336_v20 = vmax.f32 %v5334_v60, %v5335_v34 }
 0x6a1   : > { %v5290_v13 = vrot.slane %v5289_v4, 1  ;;  %v5296_v31 = vmax.f32 %v5294_v42, %v5295_v22  ;;  %v5303_v10 = vmax.f32 %v5301_v32, %v5302_v18  ;;  %v5310_v27 = vmax.f32 %v5308_v16, %v5309_v37  ;;  %v4798_v32 = vpop.f32.mrf.mxu1 }
 0x6a2   : > { %v5317_v52 = vmax.f32 %v5315_v51, %v5316_v8  ;;  %v5323_v21 = vrot.slane %v5322_v24, 2  ;;  %v5330_v46 = vrot.slane %v5329_v44, 2  ;;  %v5337_v40 = vrot.slane %v5336_v20, 2 }
 0x6a3   : > { %v6446_v11 = vsel %vm6412_vm14, %v6258_v62, %v6445_v15  ;;  %v5297_v55 = vrot.slane %v5296_v31, 1  ;;  %v5304_v1 = vrot.slane %v5303_v10, 1  ;;  %v5311_v0 = vrot.slane %v5310_v27, 1 }
 0x6a4   : > { %v5318_v36 = vrot.slane %v5317_v52, 1  ;;  %v5324_v60 = vmax.f32 %v5322_v24, %v5323_v21  ;;  %v5331_v6 = vmax.f32 %v5329_v44, %v5330_v46  ;;  %v5338_v42 = vmax.f32 %v5336_v20, %v5337_v40 }
 0x6a5   : > { %v5291_v16 = vmax.f32 %v5289_v4, %v5290_v13  ;;  %v5298_v26 = vmax.f32 %v5296_v31, %v5297_v55  ;;  %vm4962_vm11 = vcmp.gt.f32.partialorder %v10444_v7, 0.0  ;;  %v4931_v51 = vadd.f32 %v10179_v47, %v10440_v61 }
 0x6a6   : > { %v5319_v58 = vmax.f32 %v5317_v52, %v5318_v36  ;;  %v5325_v34 = vrot.slane %v5324_v60, 1  ;;  %v5332_v22 = vrot.slane %v5331_v6, 1  ;;  %v5339_v18 = vrot.slane %v5338_v42, 1 }
 0x6a7   : > { %v11693_v62 = vmax.f32 %v10338_v19, %v10422_v41  ;;  %v10467_v37 = vmax.f32 %v5303_v10, %v5304_v1  ;;  %v4994_v13 = vmul.f32 0.01, %v10444_v7  ;;  %v10471_v4 = vmul.f32 %v10174_v43, %v4798_v32  ;;  %v4628_v41 = vld [vmem:[#allocation4 + $0x78] sm:$0xff] }
 0x6a8   : > { %v10473_v8 = vmax.f32 %v5310_v27, %v5311_v0  ;;  %v5326_v47 = vmax.f32 %v5324_v60, %v5325_v34  ;;  %v5333_v61 = vmax.f32 %v5331_v6, %v5332_v22  ;;  %v6155_v24 = vsel %vm6153_vm1, %v5319_v58, -inf  ;;  %6597 = vmatmul.msk.f32.gmra.mxu1 %vm4654_vm13, %v4628_v41 }
 0x6a9   : > { %v10465_v15 = vsel %vm6414_vm0, %v11693_v62, %v6446_v11  ;;  %v5340_v44 = vmax.f32 %v5338_v42, %v5339_v18  ;;  %v5026_v20 = vsel %vm4962_vm11, %v10444_v7, %v4994_v13  ;;  %vm4963_vm12 = vcmp.gt.f32.partialorder %v4931_v51, 0.0 }
 0x6aa   : > { %v4995_v19 = vmul.f32 0.01, %v4931_v51  ;;  %v10478_v10 = vsel %vm6153_vm1, %v5291_v16, -inf  ;;  %v10481_v23 = vsel %vm6153_vm1, %v5298_v26, -inf  ;;  %v6158_v43 = vsel %vm6153_vm1, %v5326_v47, -inf }
 0x6ab   : > { %v5142_v39 = vrot.slane %v5026_v20, 2  ;;  %v6156_v31 = vmax.f32 %v10342_v54, %v6155_v24  ;;  %v6159_v27 = vmax.f32 %v10350_v35, %v6158_v43  ;;  %v10488_v7 = vsel %vm6153_vm1, %v5333_v61, -inf }
 0x6ac   : > { %v5143_v57 = vrot.slane %v5026_v20, 4  ;;  %v5144_v52 = vrot.slane %v5026_v20, 6  ;;  %v5985_v21 = vsel %vm5256_vm15, %v5026_v20, -inf  ;;  %v5027_v40 = vsel %vm4963_vm12, %v4931_v51, %v4995_v19 }
 0x6ad   : > { %v5992_v46 = vsel %vm5256_vm15, %v5142_v39, -inf  ;;  %v10493_v11 = vsel %vm6153_vm1, %v5340_v44, -inf  ;;  %v5986_v55 = vrot.slane %v5985_v21, 4  ;;  %v6162_v54 = vmax.f32 %v10355_v2, %v10488_v7 }
 0x6ae   : > { %v5993_v1 = vrot.slane %v5992_v46, 4  ;;  %v5999_v0 = vsel %vm5256_vm15, %v5143_v57, -inf  ;;  %v6006_v36 = vsel %vm5256_vm15, %v5144_v52, -inf  ;;  %v5145_v60 = vrot.slane %v5027_v40, 2 }
 0x6af   : > { %v6000_v35 = vrot.slane %v5999_v0, 4  ;;  %v10500_v6 = vsel %vm6410_vm8, %v6159_v27, %v6156_v31  ;;  %v5987_v42 = vmax.f32 %v5985_v21, %v5986_v55  ;;  %v6007_v16 = vrot.slane %v6006_v36, 4 }
 0x6b0   : > { %v5994_v32 = vmax.f32 %v5992_v46, %v5993_v1  ;;  %v5146_v51 = vrot.slane %v5027_v40, 4  ;;  %v5147_v58 = vrot.slane %v5027_v40, 6  ;;  %v6013_v34 = vsel %vm5256_vm15, %v5027_v40, -inf }
 0x6b1   : > { %v6001_v26 = vmax.f32 %v5999_v0, %v6000_v35  ;;  %v5988_v22 = vrot.slane %v5987_v42, 2  ;;  %v6008_v62 = vmax.f32 %v6006_v36, %v6007_v16  ;;  %v6014_v13 = vrot.slane %v6013_v34, 4 }
 0x6b2   : > { %v5995_v18 = vrot.slane %v5994_v32, 2  ;;  %v6020_v61 = vsel %vm5256_vm15, %v5145_v60, -inf  ;;  %v6027_v24 = vsel %vm5256_vm15, %v5146_v51, -inf  ;;  %v6034_v44 = vsel %vm5256_vm15, %v5147_v58, -inf }
 0x6b3   : > { %v6002_v47 = vrot.slane %v6001_v26, 2  ;;  %v5989_v20 = vmax.f32 %v5987_v42, %v5988_v22  ;;  %v6009_v41 = vrot.slane %v6008_v62, 2  ;;  %v6015_v43 = vmax.f32 %v6013_v34, %v6014_v13 }
 0x6b4   : > { %v5996_v19 = vmax.f32 %v5994_v32, %v5995_v18  ;;  %v6021_v31 = vrot.slane %v6020_v61, 4  ;;  %v6028_v27 = vrot.slane %v6027_v24, 4  ;;  %v6035_v57 = vrot.slane %v6034_v44, 4 }
 0x6b5   : > { %v6003_v39 = vmax.f32 %v6001_v26, %v6002_v47  ;;  %v5990_v52 = vrot.slane %v5989_v20, 1  ;;  %v6010_v46 = vmax.f32 %v6008_v62, %v6009_v41  ;;  %v6016_v40 = vrot.slane %v6015_v43, 2 }
 0x6b6   : > { %v5997_v21 = vrot.slane %v5996_v19, 1  ;;  %v6022_v1 = vmax.f32 %v6020_v61, %v6021_v31  ;;  %v6029_v0 = vmax.f32 %v6027_v24, %v6028_v27  ;;  %v6036_v35 = vmax.f32 %v6034_v44, %v6035_v57 }
 0x6b7   : > { %v6004_v55 = vrot.slane %v6003_v39, 1  ;;  %v5991_v36 = vmax.f32 %v5989_v20, %v5990_v52  ;;  %v6011_v16 = vrot.slane %v6010_v46, 1  ;;  %v6017_v51 = vmax.f32 %v6015_v43, %v6016_v40  ;;  %v4801_v40 = vpop.f32.mrf.mxu1 }
 0x6b8   : > { %v5998_v60 = vmax.f32 %v5996_v19, %v5997_v21  ;;  %v6023_v32 = vrot.slane %v6022_v1, 2  ;;  %v6030_v58 = vrot.slane %v6029_v0, 2  ;;  %v6037_v34 = vrot.slane %v6036_v35, 2 }
 0x6b9   : > { %v6005_v42 = vmax.f32 %v6003_v39, %v6004_v55  ;;  %v6012_v26 = vmax.f32 %v6010_v46, %v6011_v16  ;;  %v6299_v22 = vsel %vm6153_vm1, %v5991_v36, -inf  ;;  %v6018_v62 = vrot.slane %v6017_v51, 1  ;;  %v10527_v36 = vld [vmem:[%s11046_s6] ss:$0 sm:$0xff] }
 0x6ba   : > { %v6302_v18 = vsel %vm6153_vm1, %v5998_v60, -inf  ;;  %v6300_v13 = vmax.f32 %v10267_v63, %v6299_v22  ;;  %v6024_v24 = vmax.f32 %v6022_v1, %v6023_v32  ;;  %v6031_v41 = vmax.f32 %v6029_v0, %v6030_v58 }
 0x6bb   : > { %v6303_v47 = vmax.f32 %v10270_v28, %v6302_v18  ;;  %v6305_v61 = vsel %vm6153_vm1, %v6005_v42, -inf  ;;  %v6308_v20 = vsel %vm6153_vm1, %v6012_v26, -inf  ;;  %v6019_v19 = vmax.f32 %v6017_v51, %v6018_v62  ;;  %v10536_v51 = vld [vmem:[%s11045_s5] ss:$0 sm:$0xff]  ;;  %v4777_v62 = vpop.f32.mrf.mxu0 }
 0x6bc   : > { %v6306_v44 = vmax.f32 %v10274_v45, %v6305_v61  ;;  %v6309_v43 = vmax.f32 %v10277_v3, %v6308_v20  ;;  %v6025_v31 = vrot.slane %v6024_v24, 1  ;;  %v6038_v27 = vmax.f32 %v6036_v35, %v6037_v34  ;;  %v4825_v3 = vpop.f32.mrf.mxu2 }
 0x6bd   : > { %v6459_v39 = vsel %vm6410_vm8, %v6303_v47, %v6300_v13  ;;  %v6032_v28 = vrot.slane %v6031_v41, 1  ;;  %v6311_v57 = vsel %vm6153_vm1, %v6019_v19, -inf  ;;  %vm6416_vm13 = vcmask 1044484  }
 0x6be   : > { %v6460_v63 = vsel %vm6412_vm14, %v6306_v44, %v6459_v39  ;;  %v6026_v52 = vmax.f32 %v6024_v24, %v6025_v31  ;;  %v6039_v21 = vrot.slane %v6038_v27, 1  ;;  %v6312_v46 = vmax.f32 %v10394_v12, %v6311_v57 }
 0x6bf   : > { %v6461_v45 = vsel %vm6414_vm0, %v6309_v43, %v6460_v63  ;;  %v6033_v55 = vmax.f32 %v6031_v41, %v6032_v28  ;;  %vm6420_vm4 = vcmask 1046534   ;;  %vm6422_vm5 = vcmask 1047559  }
 0x6c0   : > { %v6040_v1 = vmax.f32 %v6038_v27, %v6039_v21  ;;  %v6314_v0 = vsel %vm6153_vm1, %v6026_v52, -inf  ;;  %v6462_v35 = vsel %vm6416_vm13, %v6312_v46, %v6461_v45  ;;  %v4914_v12 = vadd.f32 %v10527_v36, %v10471_v4 }
 0x6c1   : > { %v6315_v60 = vmax.f32 %v10397_v9, %v6314_v0  ;;  %v6317_v16 = vsel %vm6153_vm1, %v6033_v55, -inf  ;;  %v4879_v42 = vmul.f32 %v10536_v51, %v4801_v40  ;;  %v4887_v32 = vmul.f32 %v10536_v51, %v4825_v3 }
 0x6c2   : > { %v6318_v58 = vmax.f32 %v10400_v17, %v6317_v16  ;;  %v6320_v34 = vsel %vm6153_vm1, %v6040_v1, -inf  ;;  %vm4946_vm6 = vcmp.gt.f32.partialorder %v4914_v12, 0.0  ;;  %v4978_v26 = vmul.f32 0.01, %v4914_v12 }
 0x6c3   : > { %v6165_v9 = vmax.f32 %v10359_v48, %v10493_v11  ;;  %v6321_v4 = vmax.f32 %v10404_v49, %v6320_v34  ;;  %v6463_v22 = vsel %vm6418_vm3, %v6315_v60, %v6462_v35  ;;  %v4915_v18 = vadd.f32 %v10527_v36, %v4879_v42  ;;  %v4804_v11 = vpop.f32.mrf.mxu1 }
 0x6c4   : > { %v10552_v17 = vsel %vm6412_vm14, %v6162_v54, %v10500_v6  ;;  %v6464_v13 = vsel %vm6420_vm4, %v6318_v58, %v6463_v22  ;;  %v5010_v47 = vsel %vm4946_vm6, %v4914_v12, %v4978_v26  ;;  %v10556_v61 = vadd.f32 %v10527_v36, %v4887_v32 }
 0x6c5   : > { %v6465_v49 = vsel %vm6422_vm5, %v6321_v4, %v6464_v13  ;;  %v5094_v24 = vrot.slane %v5010_v47, 2  ;;  %v5095_v44 = vrot.slane %v5010_v47, 4  ;;  %v5096_v20 = vrot.slane %v5010_v47, 6 }
 0x6c6   : > { %6487 = vst.msk [vmem:[%s10559_s13 + $0x30] sm:$0xff] %vm6153_vm1, %v6465_v49  ;;  %v5537_v2 = vsel %vm5256_vm15, %v5010_v47, -inf  ;;  %vm4947_vm2 = vcmp.gt.f32.partialorder %v4915_v18, 0.0  ;;  %v4979_v7 = vmul.f32 0.01, %v4915_v18  ;;  %v10565_v54 = vmul.f32 %v10536_v51, %v4777_v62 }
 0x6c7   : > { %v5538_v6 = vrot.slane %v5537_v2, 4  ;;  %v5544_v19 = vsel %vm5256_vm15, %v5094_v24, -inf  ;;  %v5551_v41 = vsel %vm5256_vm15, %v5095_v44, -inf  ;;  %v5558_v43 = vsel %vm5256_vm15, %v5096_v20, -inf }
 0x6c8   : > { %v5545_v39 = vrot.slane %v5544_v19, 4  ;;  %v5552_v31 = vrot.slane %v5551_v41, 4  ;;  %v5559_v27 = vrot.slane %v5558_v43, 4  ;;  %v5011_v63 = vsel %vm4947_vm2, %v4915_v18, %v4979_v7 }
 0x6c9   : > { %v5539_v28 = vmax.f32 %v5537_v2, %v5538_v6  ;;  %v5097_v57 = vrot.slane %v5011_v63, 2  ;;  %v5098_v45 = vrot.slane %v5011_v63, 4  ;;  %v5099_v52 = vrot.slane %v5011_v63, 6 }
 0x6ca   : > { %v5546_v21 = vmax.f32 %v5544_v19, %v5545_v39  ;;  %v5553_v46 = vmax.f32 %v5551_v41, %v5552_v31  ;;  %v5560_v40 = vmax.f32 %v5558_v43, %v5559_v27  ;;  %v5565_v3 = vsel %vm5256_vm15, %v5011_v63, -inf }
 0x6cb   : > { %v5540_v55 = vrot.slane %v5539_v28, 2  ;;  %v5566_v1 = vrot.slane %v5565_v3, 4  ;;  %v5572_v0 = vsel %vm5256_vm15, %v5097_v57, -inf  ;;  %v5579_v35 = vsel %vm5256_vm15, %v5098_v45, -inf }
 0x6cc   : > { %v5547_v12 = vrot.slane %v5546_v21, 2  ;;  %v5554_v60 = vrot.slane %v5553_v46, 2  ;;  %v5561_v16 = vrot.slane %v5560_v40, 2  ;;  %v5573_v42 = vrot.slane %v5572_v0, 4 }
 0x6cd   : > { %v5541_v32 = vmax.f32 %v5539_v28, %v5540_v55  ;;  %v5567_v58 = vmax.f32 %v5565_v3, %v5566_v1  ;;  %v5580_v34 = vrot.slane %v5579_v35, 4  ;;  %v5586_v26 = vsel %vm5256_vm15, %v5099_v52, -inf  ;;  %v4828_v55 = vpop.f32.mrf.mxu2 }
 0x6ce   : > { %v5548_v4 = vmax.f32 %v5546_v21, %v5547_v12  ;;  %v5555_v22 = vmax.f32 %v5553_v46, %v5554_v60  ;;  %v5562_v18 = vmax.f32 %v5560_v40, %v5561_v16  ;;  %v5574_v62 = vmax.f32 %v5572_v0, %v5573_v42 }
 0x6cf   : > { %vm4955_vm7 = vcmp.gt.f32.partialorder %v10556_v61, 0.0  ;;  %v5542_v13 = vrot.slane %v5541_v32, 1  ;;  %v5568_v47 = vrot.slane %v5567_v58, 2  ;;  %v5581_v49 = vmax.f32 %v5579_v35, %v5580_v34 }
 0x6d0   : > { %v5587_v24 = vrot.slane %v5586_v26, 4  ;;  %v5549_v44 = vrot.slane %v5548_v4, 1  ;;  %v5556_v20 = vrot.slane %v5555_v22, 1  ;;  %v5563_v2 = vrot.slane %v5562_v18, 1 }
 0x6d1   : > { %v5575_v7 = vrot.slane %v5574_v62, 2  ;;  %v5543_v6 = vmax.f32 %v5541_v32, %v5542_v13  ;;  %v5569_v19 = vmax.f32 %v5567_v58, %v5568_v47  ;;  %v5582_v41 = vrot.slane %v5581_v49, 2 }
 0x6d2   : > { %v5588_v43 = vmax.f32 %v5586_v26, %v5587_v24  ;;  %v5550_v39 = vmax.f32 %v5548_v4, %v5549_v44  ;;  %v5557_v31 = vmax.f32 %v5555_v22, %v5556_v20  ;;  %v5564_v27 = vmax.f32 %v5562_v18, %v5563_v2 }
 0x6d3   : > { %v5576_v63 = vmax.f32 %v5574_v62, %v5575_v7  ;;  %v6203_v28 = vsel %vm6153_vm1, %v5543_v6, -inf  ;;  %v5570_v57 = vrot.slane %v5569_v19, 1  ;;  %v5583_v45 = vmax.f32 %v5581_v49, %v5582_v41 }
 0x6d4   : > { %v5589_v52 = vrot.slane %v5588_v43, 2  ;;  %v6204_v21 = vmax.f32 %v10224_v56, %v6203_v28  ;;  %v6206_v46 = vsel %vm6153_vm1, %v5550_v39, -inf  ;;  %v6209_v40 = vsel %vm6153_vm1, %v5557_v31, -inf }
 0x6d5   : > { %v6212_v3 = vsel %vm6153_vm1, %v5564_v27, -inf  ;;  %v6207_v1 = vmax.f32 %v10234_v29, %v6206_v46  ;;  %v6210_v0 = vmax.f32 %v10258_v33, %v6209_v40  ;;  %v5571_v12 = vmax.f32 %v5569_v19, %v5570_v57 }
 0x6d6   : > { %v6213_v35 = vmax.f32 %v10262_v53, %v6212_v3  ;;  %v5577_v60 = vrot.slane %v5576_v63, 1  ;;  %v5584_v16 = vrot.slane %v5583_v45, 1  ;;  %v5590_v42 = vmax.f32 %v5588_v43, %v5589_v52 }
 0x6d7   : > { %v4987_v32 = vmul.f32 0.01, %v10556_v61  ;;  %v6431_v56 = vsel %vm6410_vm8, %v6207_v1, %v6204_v21  ;;  %v6215_v58 = vsel %vm6153_vm1, %v5571_v12, -inf  ;;  %v4907_v34 = vadd.f32 %v10527_v36, %v10565_v54 }
 0x6d8   : > { %v4888_v26 = vmul.f32 %v10536_v51, %v4828_v55  ;;  %v6432_v29 = vsel %vm6412_vm14, %v6210_v0, %v6431_v56  ;;  %v5578_v33 = vmax.f32 %v5576_v63, %v5577_v60  ;;  %v5585_v4 = vmax.f32 %v5583_v45, %v5584_v16 }
 0x6d9   : > { %v5591_v53 = vrot.slane %v5590_v42, 1  ;;  %v6433_v22 = vsel %vm6414_vm0, %v6213_v35, %v6432_v29  ;;  %v6216_v18 = vmax.f32 %v10410_v5, %v6215_v58  ;;  %v5019_v62 = vsel %vm4955_vm7, %v10556_v61, %v4987_v32 }
 0x6da   : > { %vm4939_vm9 = vcmp.gt.f32.partialorder %v4907_v34, 0.0  ;;  %v6218_v47 = vsel %vm6153_vm1, %v5578_v33, -inf  ;;  %v6221_v54 = vsel %vm6153_vm1, %v5585_v4, -inf  ;;  %v5121_v49 = vrot.slane %v5019_v62, 2 }
 0x6db   : > { %v5592_v13 = vmax.f32 %v5590_v42, %v5591_v53  ;;  %v6219_v24 = vmax.f32 %v10426_v50, %v6218_v47  ;;  %v6222_v44 = vmax.f32 %v10429_v59, %v6221_v54  ;;  %v6434_v20 = vsel %vm6416_vm13, %v6216_v18, %v6433_v22  ;;  %v4852_v50 = vpop.f32.mrf.mxu3 }
 0x6dc   : > { %v5122_v2 = vrot.slane %v5019_v62, 4  ;;  %v5123_v7 = vrot.slane %v5019_v62, 6  ;;  %v5789_v61 = vsel %vm5256_vm15, %v5019_v62, -inf  ;;  %v5796_v6 = vsel %vm5256_vm15, %v5121_v49, -inf }
 0x6dd   : > { %v6224_v5 = vsel %vm6153_vm1, %v5592_v13, -inf  ;;  %v6435_v41 = vsel %vm6418_vm3, %v6219_v24, %v6434_v20  ;;  %v5790_v43 = vrot.slane %v5789_v61, 4  ;;  %v5797_v39 = vrot.slane %v5796_v6, 4 }
 0x6de   : > { %v6225_v19 = vmax.f32 %v10433_v38, %v6224_v5  ;;  %v6436_v59 = vsel %vm6420_vm4, %v6222_v44, %v6435_v41  ;;  %v5803_v31 = vsel %vm5256_vm15, %v5122_v2, -inf  ;;  %v5810_v27 = vsel %vm5256_vm15, %v5123_v7, -inf }
 0x6df   : > { %v4971_v63 = vmul.f32 0.01, %v4907_v34  ;;  %v5791_v57 = vmax.f32 %v5789_v61, %v5790_v43  ;;  %v5798_v45 = vmax.f32 %v5796_v6, %v5797_v39  ;;  %v5804_v52 = vrot.slane %v5803_v31, 4 }
 0x6e0   : > { %v6437_v28 = vsel %vm6422_vm5, %v6225_v19, %v6436_v59  ;;  %v5811_v38 = vrot.slane %v5810_v27, 4  ;;  %v10613_v46 = vadd.f32 %v10527_v36, %v4888_v26  ;;  %v10616_v40 = vmul.f32 %v10536_v51, %v4852_v50 }
 0x6e1   : > { %6483 = vst.msk [vmem:[%s10559_s13 + $0x10] sm:$0xff] %vm6153_vm1, %v6437_v28  ;;  %v5003_v21 = vsel %vm4939_vm9, %v4907_v34, %v4971_v63  ;;  %v5792_v3 = vrot.slane %v5791_v57, 2  ;;  %v5799_v55 = vrot.slane %v5798_v45, 2  ;;  %v5805_v1 = vmax.f32 %v5803_v31, %v5804_v52 }
 0x6e2   : > { %v5073_v0 = vrot.slane %v5003_v21, 2  ;;  %v5812_v35 = vmax.f32 %v5810_v27, %v5811_v38  ;;  %v5074_v12 = vrot.slane %v5003_v21, 4  ;;  %v5075_v60 = vrot.slane %v5003_v21, 6 }
 0x6e3   : > { %v5341_v16 = vsel %vm5256_vm15, %v5003_v21, -inf  ;;  %v5793_v42 = vmax.f32 %v5791_v57, %v5792_v3  ;;  %v5800_v32 = vmax.f32 %v5798_v45, %v5799_v55  ;;  %v5806_v56 = vrot.slane %v5805_v1, 2  ;;  %v11694_v3 = vld [vmem:[#allocation89_spill] sm:$0xff] }
 0x6e4   : > { %v5342_v58 = vrot.slane %v5341_v16, 4  ;;  %v5813_v34 = vrot.slane %v5812_v35, 2  ;;  %v5348_v26 = vsel %vm5256_vm15, %v5073_v0, -inf  ;;  %v5355_v29 = vsel %vm5256_vm15, %v5074_v12, -inf }
 0x6e5   : > { %v5362_v33 = vsel %vm5256_vm15, %v5075_v60, -inf  ;;  %v5794_v4 = vrot.slane %v5793_v42, 1  ;;  %v5801_v53 = vrot.slane %v5800_v32, 1  ;;  %v5807_v22 = vmax.f32 %v5805_v1, %v5806_v56 }
 0x6e6   : > { %v5343_v18 = vmax.f32 %v5341_v16, %v5342_v58  ;;  %v5814_v62 = vmax.f32 %v5812_v35, %v5813_v34  ;;  %v5349_v13 = vrot.slane %v5348_v26, 4  ;;  %v5356_v47 = vrot.slane %v5355_v29, 4 }
 0x6e7   : > { %v5363_v54 = vrot.slane %v5362_v33, 4  ;;  %v5795_v49 = vmax.f32 %v5793_v42, %v5794_v4  ;;  %v5802_v24 = vmax.f32 %v5800_v32, %v5801_v53  ;;  %v5808_v44 = vrot.slane %v5807_v22, 1 }
 0x6e8   : > { %v5344_v20 = vrot.slane %v5343_v18, 2  ;;  %v5815_v2 = vrot.slane %v5814_v62, 1  ;;  %v5350_v5 = vmax.f32 %v5348_v26, %v5349_v13  ;;  %v5357_v7 = vmax.f32 %v5355_v29, %v5356_v47 }
 0x6e9   : > { %v5364_v61 = vmax.f32 %v5362_v33, %v5363_v54  ;;  %v5809_v6 = vmax.f32 %v5807_v22, %v5808_v44  ;;  %v6263_v19 = vsel %vm6153_vm1, %v5795_v49, -inf  ;;  %v6266_v41 = vsel %vm6153_vm1, %v5802_v24, -inf }
 0x6ea   : > { %v5345_v43 = vmax.f32 %v5343_v18, %v5344_v20  ;;  %v5816_v39 = vmax.f32 %v5814_v62, %v5815_v2  ;;  %v6264_v50 = vmax.f32 %v10369_v30, %v6263_v19  ;;  %v6267_v59 = vmax.f32 %v10373_v25, %v6266_v41 }
 0x6eb   : > { %v5351_v31 = vrot.slane %v5350_v5, 2  ;;  %v6269_v27 = vsel %vm6153_vm1, %v5809_v6, -inf  ;;  %v5358_v28 = vrot.slane %v5357_v7, 2  ;;  %v5365_v57 = vrot.slane %v5364_v61, 2 }
 0x6ec   : > { %v5346_v63 = vrot.slane %v5345_v43, 1  ;;  %v6270_v45 = vmax.f32 %v10376_v14, %v6269_v27  ;;  %v6272_v52 = vsel %vm6153_vm1, %v5816_v39, -inf  ;;  %v6448_v38 = vsel %vm6416_vm13, %v6264_v50, %v10465_v15 }
 0x6ed   : > { %v5352_v21 = vmax.f32 %v5350_v5, %v5351_v31  ;;  %v6273_v55 = vmax.f32 %v11694_v3, %v6272_v52  ;;  %v6449_v30 = vsel %vm6418_vm3, %v6267_v59, %v6448_v38  ;;  %v5359_v1 = vmax.f32 %v5357_v7, %v5358_v28  ;;  %v4831_v31 = vpop.f32.mrf.mxu2 }
 0x6ee   : > { %v5347_v25 = vmax.f32 %v5345_v43, %v5346_v63  ;;  %v6450_v0 = vsel %vm6420_vm4, %v6270_v45, %v6449_v30  ;;  %v5366_v12 = vmax.f32 %v5364_v61, %v5365_v57  ;;  %vm4956_vm10 = vcmp.gt.f32.partialorder %v10613_v46, 0.0 }
 0x6ef   : > { %v5353_v35 = vrot.slane %v5352_v21, 1  ;;  %v6451_v14 = vsel %vm6422_vm5, %v6273_v55, %v6450_v0  ;;  %v5360_v60 = vrot.slane %v5359_v1, 1  ;;  %v4988_v15 = vmul.f32 0.01, %v10613_v46 }
 0x6f0   : > { %v6167_v16 = vsel %vm6153_vm1, %v5347_v25, -inf  ;;  %v6172_v42 = vsel %vm6153_vm1, %v10467_v37, -inf  ;;  %6485 = vst.msk [vmem:[%s10559_s13 + $0x20] sm:$0xff] %vm6153_vm1, %v6451_v14  ;;  %v5367_v56 = vrot.slane %v5366_v12, 1  ;;  %v6415_v34 = vsel %vm6414_vm0, %v6165_v9, %v10552_v17 }
 0x6f1   : > { %v5354_v32 = vmax.f32 %v5352_v21, %v5353_v35  ;;  %v6168_v58 = vmax.f32 %v10478_v10, %v6167_v16  ;;  %v5361_v26 = vmax.f32 %v5359_v1, %v5360_v60  ;;  %v5020_v29 = vsel %vm4956_vm10, %v10613_v46, %v4988_v15 }
 0x6f2   : > { %v4932_v33 = vadd.f32 %v10527_v36, %v10616_v40  ;;  %v5368_v4 = vmax.f32 %v5366_v12, %v5367_v56  ;;  %v5124_v22 = vrot.slane %v5020_v29, 2  ;;  %v5125_v62 = vrot.slane %v5020_v29, 4 }
 0x6f3   : > { %v6170_v37 = vsel %vm6153_vm1, %v5354_v32, -inf  ;;  %v6417_v53 = vsel %vm6416_vm13, %v6168_v58, %v6415_v34  ;;  %v6173_v18 = vsel %vm6153_vm1, %v5361_v26, -inf  ;;  %v5126_v48 = vrot.slane %v5020_v29, 6 }
 0x6f4   : > { %v6171_v10 = vmax.f32 %v10481_v23, %v6170_v37  ;;  %v6175_v9 = vsel %vm6153_vm1, %v10473_v8, -inf  ;;  %v6174_v17 = vmax.f32 %v6172_v42, %v6173_v18  ;;  %v6176_v46 = vsel %vm6153_vm1, %v5368_v4, -inf }
 0x6f5   : > { %v5817_v40 = vsel %vm5256_vm15, %v5020_v29, -inf  ;;  %v6177_v13 = vmax.f32 %v6175_v9, %v6176_v46  ;;  %v5824_v23 = vsel %vm5256_vm15, %v5124_v22, -inf  ;;  %v5831_v49 = vsel %vm5256_vm15, %v5125_v62, -inf }
 0x6f6   : > { %v6419_v47 = vsel %vm6418_vm3, %v6171_v10, %v6417_v53  ;;  %v4880_v24 = vmul.f32 %v10536_v51, %v4804_v11  ;;  %v5818_v20 = vrot.slane %v5817_v40, 4  ;;  %v5838_v8 = vsel %vm5256_vm15, %v5126_v48, -inf }
 0x6f7   : > { %v6421_v54 = vsel %vm6420_vm4, %v6174_v17, %v6419_v47  ;;  %vm4964_vm11 = vcmp.gt.f32.partialorder %v4932_v33, 0.0  ;;  %v4996_v2 = vmul.f32 0.01, %v4932_v33  ;;  %v5825_v5 = vrot.slane %v5824_v23, 4 }
 0x6f8   : > { %v6423_v44 = vsel %vm6422_vm5, %v6177_v13, %v6421_v54  ;;  %v5832_v7 = vrot.slane %v5831_v49, 4  ;;  %v5839_v61 = vrot.slane %v5838_v8, 4  ;;  %v5819_v19 = vmax.f32 %v5817_v40, %v5818_v20 }
 0x6f9   : > { %6481 = vst.msk [vmem:[%s10559_s13] sm:$0xff] %vm6153_vm1, %v6423_v44  ;;  %v5028_v6 = vsel %vm4964_vm11, %v4932_v33, %v4996_v2  ;;  %v4916_v43 = vadd.f32 %v10527_v36, %v4880_v24  ;;  %v5826_v27 = vmax.f32 %v5824_v23, %v5825_v5  ;;  %v4889_v55 = vmul.f32 %v10536_v51, %v4831_v31  ;;  %v4780_v23 = vpop.f32.mrf.mxu0 }
 0x6fa   : > { %v5148_v41 = vrot.slane %v5028_v6, 2  ;;  %v5149_v39 = vrot.slane %v5028_v6, 4  ;;  %v5150_v50 = vrot.slane %v5028_v6, 6  ;;  %v6041_v59 = vsel %vm5256_vm15, %v5028_v6, -inf }
 0x6fb   : > { %v5833_v63 = vmax.f32 %v5831_v49, %v5832_v7  ;;  %v6042_v28 = vrot.slane %v6041_v59, 4  ;;  %v5840_v57 = vmax.f32 %v5838_v8, %v5839_v61  ;;  %v5820_v21 = vrot.slane %v5819_v19, 2 }
 0x6fc   : > { %v6048_v45 = vsel %vm5256_vm15, %v5148_v41, -inf  ;;  %v6055_v52 = vsel %vm5256_vm15, %v5149_v39, -inf  ;;  %v6062_v38 = vsel %vm5256_vm15, %v5150_v50, -inf  ;;  %v4980_v3 = vmul.f32 0.01, %v4916_v43 }
 0x6fd   : > { %v6049_v30 = vrot.slane %v6048_v45, 4  ;;  %v6056_v25 = vrot.slane %v6055_v52, 4  ;;  %v6063_v1 = vrot.slane %v6062_v38, 4  ;;  %vm4948_vm12 = vcmp.gt.f32.partialorder %v4916_v43, 0.0 }
 0x6fe   : > { %v5827_v0 = vrot.slane %v5826_v27, 2  ;;  %v6043_v35 = vmax.f32 %v6041_v59, %v6042_v28  ;;  %v5834_v12 = vrot.slane %v5833_v63, 2  ;;  %v5841_v14 = vrot.slane %v5840_v57, 2 }
 0x6ff   : > { %v6050_v60 = vmax.f32 %v6048_v45, %v6049_v30  ;;  %v5012_v16 = vsel %vm4948_vm12, %v4916_v43, %v4980_v3  ;;  %v5821_v15 = vmax.f32 %v5819_v19, %v5820_v21  ;;  %v6057_v42 = vmax.f32 %v6055_v52, %v6056_v25 }
 0x700   : > { %v6064_v32 = vmax.f32 %v6062_v38, %v6063_v1  ;;  %v4925_v56 = vadd.f32 %v10527_v36, %v4889_v55  ;;  %v5828_v58 = vmax.f32 %v5826_v27, %v5827_v0  ;;  %v6044_v34 = vrot.slane %v6043_v35, 2 }
 0x701   : > { %v5100_v26 = vrot.slane %v5012_v16, 2  ;;  %v5101_v29 = vrot.slane %v5012_v16, 4  ;;  %v5835_v33 = vmax.f32 %v5833_v63, %v5834_v12  ;;  %v5842_v4 = vmax.f32 %v5840_v57, %v5841_v14 }
 0x702   : > { %v6051_v37 = vrot.slane %v6050_v60, 2  ;;  %v5593_v53 = vsel %vm5256_vm15, %v5012_v16, -inf  ;;  %v5102_v22 = vrot.slane %v5012_v16, 6  ;;  %v5822_v48 = vrot.slane %v5821_v15, 1 }
 0x703   : > { %v5594_v10 = vrot.slane %v5593_v53, 4  ;;  %v5600_v18 = vsel %vm5256_vm15, %v5100_v26, -inf  ;;  %v5607_v62 = vsel %vm5256_vm15, %v5101_v29, -inf  ;;  %v6058_v11 = vrot.slane %v6057_v42, 2 }
 0x704   : > { %v6065_v9 = vrot.slane %v6064_v32, 2  ;;  %v5601_v17 = vrot.slane %v5600_v18, 4  ;;  %v6045_v46 = vmax.f32 %v6043_v35, %v6044_v34  ;;  %v5829_v13 = vrot.slane %v5828_v58, 1 }
 0x705   : > { %v5595_v40 = vmax.f32 %v5593_v53, %v5594_v10  ;;  %v6052_v47 = vmax.f32 %v6050_v60, %v6051_v37  ;;  %v5608_v54 = vrot.slane %v5607_v62, 4  ;;  %vm4957_vm6 = vcmp.gt.f32.partialorder %v4925_v56, 0.0 }
 0x706   : > { %v5836_v49 = vrot.slane %v5835_v33, 1  ;;  %v5843_v24 = vrot.slane %v5842_v4, 1  ;;  %v5614_v44 = vsel %vm5256_vm15, %v5102_v22, -inf  ;;  %v4989_v20 = vmul.f32 0.01, %v4925_v56 }
 0x707   : > { %v5823_v8 = vmax.f32 %v5821_v15, %v5822_v48  ;;  %v6059_v2 = vmax.f32 %v6057_v42, %v6058_v11  ;;  %v6066_v5 = vmax.f32 %v6064_v32, %v6065_v9  ;;  %v5602_v7 = vmax.f32 %v5600_v18, %v5601_v17 }
 0x708   : > { %v6046_v61 = vrot.slane %v6045_v46, 1  ;;  %v5596_v6 = vrot.slane %v5595_v40, 2  ;;  %v5021_v19 = vsel %vm4957_vm6, %v4925_v56, %v4989_v20  ;;  %v6053_v41 = vrot.slane %v6052_v47, 1  ;;  %v4783_v56 = vpop.f32.mrf.mxu0 }
 0x709   : > { %v5609_v43 = vmax.f32 %v5607_v62, %v5608_v54  ;;  %v5615_v39 = vrot.slane %v5614_v44, 4  ;;  %v5127_v50 = vrot.slane %v5021_v19, 2  ;;  %v5830_v59 = vmax.f32 %v5828_v58, %v5829_v13 }
 0x70a   : > { %v5837_v31 = vmax.f32 %v5835_v33, %v5836_v49  ;;  %v5844_v27 = vmax.f32 %v5842_v4, %v5843_v24  ;;  %v4872_v63 = vmul.f32 %v10536_v51, %v4780_v23  ;;  %v10681_v28 = vsel %vm6153_vm1, %v5823_v8, -inf }
 0x70b   : > { %v6060_v57 = vrot.slane %v6059_v2, 1  ;;  %v6067_v45 = vrot.slane %v6066_v5, 1  ;;  %v5603_v52 = vrot.slane %v5602_v7, 2  ;;  %v6047_v38 = vmax.f32 %v6045_v46, %v6046_v61 }
 0x70c   : > { %v5597_v21 = vmax.f32 %v5595_v40, %v5596_v6  ;;  %v5128_v3 = vrot.slane %v5021_v19, 4  ;;  %v5845_v55 = vsel %vm5256_vm15, %v5021_v19, -inf  ;;  %v6054_v30 = vmax.f32 %v6052_v47, %v6053_v41 }
 0x70d   : > { %v5610_v25 = vrot.slane %v5609_v43, 2  ;;  %v5616_v1 = vmax.f32 %v5614_v44, %v5615_v39  ;;  %v5852_v0 = vsel %vm5256_vm15, %v5127_v50, -inf  ;;  %v10686_v35 = vsel %vm6153_vm1, %v5830_v59, -inf  ;;  %v4855_v39 = vpop.f32.mrf.mxu3 }
 0x70e   : > { %v10689_v12 = vsel %vm6153_vm1, %v5837_v31, -inf  ;;  %v10692_v14 = vsel %vm6153_vm1, %v5844_v27, -inf  ;;  %v5129_v60 = vrot.slane %v5021_v19, 6  ;;  %v6061_v16 = vmax.f32 %v6059_v2, %v6060_v57 }
 0x70f   : > { %v6068_v15 = vmax.f32 %v6066_v5, %v6067_v45  ;;  %v5604_v42 = vmax.f32 %v5602_v7, %v5603_v52  ;;  %v5846_v32 = vrot.slane %v5845_v55, 4  ;;  %v5598_v58 = vrot.slane %v5597_v21, 1 }
 0x710   : > { %v5853_v34 = vrot.slane %v5852_v0, 4  ;;  %v5859_v26 = vsel %vm5256_vm15, %v5128_v3, -inf  ;;  %v4908_v29 = vadd.f32 %v10527_v36, %v4872_v63  ;;  %v10697_v33 = vsel %vm6153_vm1, %v6047_v38, -inf }
 0x711   : > { %v10700_v4 = vsel %vm6153_vm1, %v6054_v30, -inf  ;;  %v5611_v37 = vmax.f32 %v5609_v43, %v5610_v25  ;;  %v5617_v53 = vrot.slane %v5616_v1, 2  ;;  %v5866_v22 = vsel %vm5256_vm15, %v5129_v60, -inf }
 0x712   : > { %vm4940_vm2 = vcmp.gt.f32.partialorder %v4908_v29, 0.0  ;;  %v4972_v10 = vmul.f32 0.01, %v4908_v29  ;;  %v4873_v18 = vmul.f32 %v10536_v51, %v4783_v56  ;;  %v10705_v62 = vsel %vm6153_vm1, %v6061_v16, -inf }
 0x713   : > { %v5605_v48 = vrot.slane %v5604_v42, 1  ;;  %v5847_v11 = vmax.f32 %v5845_v55, %v5846_v32  ;;  %v5860_v9 = vrot.slane %v5859_v26, 4  ;;  %v10708_v17 = vsel %vm6153_vm1, %v6068_v15, -inf }
 0x714   : > { %v5599_v46 = vmax.f32 %v5597_v21, %v5598_v58  ;;  %v5854_v40 = vmax.f32 %v5852_v0, %v5853_v34  ;;  %v5004_v13 = vsel %vm4940_vm2, %v4908_v29, %v4972_v10  ;;  %v5612_v47 = vrot.slane %v5611_v37, 1 }
 0x715   : > { %v5618_v54 = vmax.f32 %v5616_v1, %v5617_v53  ;;  %v5867_v23 = vrot.slane %v5866_v22, 4  ;;  %v5076_v49 = vrot.slane %v5004_v13, 2  ;;  %v5077_v24 = vrot.slane %v5004_v13, 4 }
 0x716   : > { %v5078_v44 = vrot.slane %v5004_v13, 6  ;;  %v5369_v20 = vsel %vm5256_vm15, %v5004_v13, -inf  ;;  %v4909_v8 = vadd.f32 %v10527_v36, %v4873_v18  ;;  %v5606_v2 = vmax.f32 %v5604_v42, %v5605_v48  ;;  %v4858_v48 = vpop.f32.mrf.mxu3 }
 0x717   : > { %v5848_v5 = vrot.slane %v5847_v11, 2  ;;  %v5861_v7 = vmax.f32 %v5859_v26, %v5860_v9  ;;  %v5370_v61 = vrot.slane %v5369_v20, 4  ;;  %v5855_v6 = vrot.slane %v5854_v40, 2 }
 0x718   : > { %v5376_v19 = vsel %vm5256_vm15, %v5076_v49, -inf  ;;  %v5383_v41 = vsel %vm5256_vm15, %v5077_v24, -inf  ;;  %v5390_v43 = vsel %vm5256_vm15, %v5078_v44, -inf  ;;  %v5613_v50 = vmax.f32 %v5611_v37, %v5612_v47 }
 0x719   : > { %v5868_v59 = vmax.f32 %v5866_v22, %v5867_v23  ;;  %v5371_v31 = vmax.f32 %v5369_v20, %v5370_v61  ;;  %v5377_v27 = vrot.slane %v5376_v19, 4  ;;  %v5384_v63 = vrot.slane %v5383_v41, 4 }
 0x71a   : > { %v5391_v57 = vrot.slane %v5390_v43, 4  ;;  %vm4941_vm7 = vcmp.gt.f32.partialorder %v4909_v8, 0.0  ;;  %v4973_v45 = vmul.f32 0.01, %v4909_v8  ;;  %v5619_v52 = vrot.slane %v5618_v54, 1 }
 0x71b   : > { %v5849_v38 = vmax.f32 %v5847_v11, %v5848_v5  ;;  %v5862_v21 = vrot.slane %v5861_v7, 2  ;;  %v5378_v3 = vmax.f32 %v5376_v19, %v5377_v27  ;;  %v5856_v55 = vmax.f32 %v5854_v40, %v5855_v6 }
 0x71c   : > { %v5385_v30 = vmax.f32 %v5383_v41, %v5384_v63  ;;  %v5392_v25 = vmax.f32 %v5390_v43, %v5391_v57  ;;  %v5005_v1 = vsel %vm4941_vm7, %v4909_v8, %v4973_v45  ;;  %v5869_v0 = vrot.slane %v5868_v59, 2 }
 0x71d   : > { %v5372_v60 = vrot.slane %v5371_v31, 2  ;;  %v5079_v16 = vrot.slane %v5005_v1, 2  ;;  %v5080_v15 = vrot.slane %v5005_v1, 4  ;;  %v5379_v42 = vrot.slane %v5378_v3, 2 }
 0x71e   : > { %v5386_v32 = vrot.slane %v5385_v30, 2  ;;  %v5397_v56 = vsel %vm5256_vm15, %v5005_v1, -inf  ;;  %v4897_v58 = vmul.f32 %v10536_v51, %v4855_v39  ;;  %v10718_v34 = vsel %vm6153_vm1, %v5599_v46, -inf }
 0x71f   : > { %v5393_v26 = vrot.slane %v5392_v25, 2  ;;  %v5398_v29 = vrot.slane %v5397_v56, 4  ;;  %v5404_v37 = vsel %vm5256_vm15, %v5079_v16, -inf  ;;  %v5850_v53 = vrot.slane %v5849_v38, 1 }
 0x720   : > { %v5863_v22 = vmax.f32 %v5861_v7, %v5862_v21  ;;  %v5405_v10 = vrot.slane %v5404_v37, 4  ;;  %v5411_v18 = vsel %vm5256_vm15, %v5080_v15, -inf  ;;  %v5857_v11 = vrot.slane %v5856_v55, 1 }
 0x721   : > { %v5870_v9 = vmax.f32 %v5868_v59, %v5869_v0  ;;  %v5373_v40 = vmax.f32 %v5371_v31, %v5372_v60  ;;  %v5081_v13 = vrot.slane %v5005_v1, 6  ;;  %v5380_v47 = vmax.f32 %v5378_v3, %v5379_v42  ;;  %v4807_v3 = vpop.f32.mrf.mxu1 }
 0x722   : > { %v5387_v23 = vmax.f32 %v5385_v30, %v5386_v32  ;;  %v5399_v49 = vmax.f32 %v5397_v56, %v5398_v29  ;;  %v4933_v46 = vadd.f32 %v10527_v36, %v4897_v58  ;;  %v10724_v24 = vsel %vm6153_vm1, %v5606_v2, -inf }
 0x723   : > { %v5394_v44 = vmax.f32 %v5392_v25, %v5393_v26  ;;  %v5412_v20 = vrot.slane %v5411_v18, 4  ;;  %v4898_v8 = vmul.f32 %v10536_v51, %v4858_v48  ;;  %v10727_v5 = vmax.f32 %v5618_v54, %v5619_v52 }
 0x724   : > { %v5851_v7 = vmax.f32 %v5849_v38, %v5850_v53  ;;  %v5864_v61 = vrot.slane %v5863_v22, 1  ;;  %v5406_v6 = vmax.f32 %v5404_v37, %v5405_v10  ;;  %v5858_v19 = vmax.f32 %v5856_v55, %v5857_v11 }
 0x725   : > { %v5871_v41 = vrot.slane %v5870_v9, 1  ;;  %v5374_v43 = vrot.slane %v5373_v40, 1  ;;  %v5418_v39 = vsel %vm5256_vm15, %v5081_v13, -inf  ;;  %v5381_v59 = vrot.slane %v5380_v47, 1 }
 0x726   : > { %v5388_v31 = vrot.slane %v5387_v23, 1  ;;  %v5400_v27 = vrot.slane %v5399_v49, 2  ;;  %vm4965_vm9 = vcmp.gt.f32.partialorder %v4933_v46, 0.0  ;;  %v5395_v2 = vrot.slane %v5394_v44, 1 }
 0x727   : > { %v5413_v63 = vmax.f32 %v5411_v18, %v5412_v20  ;;  %v4997_v57 = vmul.f32 0.01, %v4933_v46  ;;  %v4934_v45 = vadd.f32 %v10527_v36, %v4898_v8  ;;  %v10732_v54 = vsel %vm6153_vm1, %v5613_v50, -inf }
 0x728   : > { %v5865_v52 = vmax.f32 %v5863_v22, %v5864_v61  ;;  %v5407_v38 = vrot.slane %v5406_v6, 2  ;;  %v5419_v21 = vrot.slane %v5418_v39, 4  ;;  %v5872_v55 = vmax.f32 %v5870_v9, %v5871_v41 }
 0x729   : > { %v10735_v30 = vsel %vm6153_vm1, %v5851_v7, -inf  ;;  %v10738_v25 = vsel %vm6153_vm1, %v5858_v19, -inf  ;;  %v5029_v1 = vsel %vm4965_vm9, %v4933_v46, %v4997_v57  ;;  %v5375_v0 = vmax.f32 %v5373_v40, %v5374_v43 }
 0x72a   : > { %v5382_v60 = vmax.f32 %v5380_v47, %v5381_v59  ;;  %v5389_v16 = vmax.f32 %v5387_v23, %v5388_v31  ;;  %v5401_v15 = vmax.f32 %v5399_v49, %v5400_v27  ;;  %v5396_v42 = vmax.f32 %v5394_v44, %v5395_v2  ;;  %v4810_v59 = vpop.f32.mrf.mxu1 }
 0x72b   : > { %v5414_v32 = vrot.slane %v5413_v63, 2  ;;  %v5151_v50 = vrot.slane %v5029_v1, 2  ;;  %v4998_v56 = vmul.f32 0.01, %v4934_v45  ;;  %v5408_v58 = vmax.f32 %v5406_v6, %v5407_v38 }
 0x72c   : > { %v5420_v26 = vmax.f32 %v5418_v39, %v5419_v21  ;;  %v5152_v29 = vrot.slane %v5029_v1, 4  ;;  %vm4966_vm10 = vcmp.gt.f32.partialorder %v4934_v45, 0.0  ;;  %v10741_v37 = vsel %vm6153_vm1, %v5865_v52, -inf }
 0x72d   : > { %v10744_v53 = vsel %vm6153_vm1, %v5872_v55, -inf  ;;  %v5153_v22 = vrot.slane %v5029_v1, 6  ;;  %v6069_v10 = vsel %vm5256_vm15, %v5029_v1, -inf  ;;  %v10748_v18 = vsel %vm6153_vm1, %v5375_v0, -inf }
 0x72e   : > { %v10751_v48 = vsel %vm6153_vm1, %v5382_v60, -inf  ;;  %v10754_v11 = vsel %vm6153_vm1, %v5389_v16, -inf  ;;  %v5402_v9 = vrot.slane %v5401_v15, 1  ;;  %v10757_v40 = vsel %vm6153_vm1, %v5396_v42, -inf }
 0x72f   : > { %v5415_v13 = vmax.f32 %v5413_v63, %v5414_v32  ;;  %v6076_v47 = vsel %vm5256_vm15, %v5151_v50, -inf  ;;  %v5030_v23 = vsel %vm4966_vm10, %v4934_v45, %v4998_v56  ;;  %v5409_v49 = vrot.slane %v5408_v58, 1 }
 0x730   : > { %v5421_v46 = vrot.slane %v5420_v26, 2  ;;  %v6070_v44 = vrot.slane %v6069_v10, 4  ;;  %v6083_v20 = vsel %vm5256_vm15, %v5152_v29, -inf  ;;  %v6090_v8 = vsel %vm5256_vm15, %v5153_v22, -inf }
 0x731   : > { %v5154_v7 = vrot.slane %v5030_v23, 2  ;;  %v5155_v61 = vrot.slane %v5030_v23, 4  ;;  %v5156_v6 = vrot.slane %v5030_v23, 6  ;;  %v5403_v19 = vmax.f32 %v5401_v15, %v5402_v9 }
 0x732   : > { %v6077_v41 = vrot.slane %v6076_v47, 4  ;;  %v6097_v43 = vsel %vm5256_vm15, %v5030_v23, -inf  ;;  %v4881_v39 = vmul.f32 %v10536_v51, %v4807_v3  ;;  %v5416_v31 = vrot.slane %v5415_v13, 1 }
 0x733   : > { %v6098_v27 = vrot.slane %v6097_v43, 4  ;;  %v6104_v2 = vsel %vm5256_vm15, %v5154_v7, -inf  ;;  %v6111_v63 = vsel %vm5256_vm15, %v5155_v61, -inf  ;;  %v6071_v57 = vmax.f32 %v6069_v10, %v6070_v44 }
 0x734   : > { %v6084_v45 = vrot.slane %v6083_v20, 4  ;;  %v6091_v52 = vrot.slane %v6090_v8, 4  ;;  %v6105_v38 = vrot.slane %v6104_v2, 4  ;;  %v6112_v55 = vrot.slane %v6111_v63, 4 }
 0x735   : > { %v6099_v21 = vmax.f32 %v6097_v43, %v6098_v27  ;;  %v6118_v1 = vsel %vm5256_vm15, %v5156_v6, -inf  ;;  %v4882_v0 = vmul.f32 %v10536_v51, %v4810_v59  ;;  %v5422_v60 = vmax.f32 %v5420_v26, %v5421_v46  ;;  %v10778_v59 = vld [vmem:[%s11046_s6] ss:$0 sm:$0xff] }
 0x736   : > { %v6078_v16 = vmax.f32 %v6076_v47, %v6077_v41  ;;  %v6106_v3 = vmax.f32 %v6104_v2, %v6105_v38  ;;  %v4917_v15 = vadd.f32 %v10527_v36, %v4881_v39  ;;  %v5410_v42 = vmax.f32 %v5408_v58, %v5409_v49 }
 0x737   : > { %v6100_v32 = vrot.slane %v6099_v21, 2  ;;  %v6113_v50 = vmax.f32 %v6111_v63, %v6112_v55  ;;  %v6119_v56 = vrot.slane %v6118_v1, 4  ;;  %v6072_v29 = vrot.slane %v6071_v57, 2 }
 0x738   : > { %v6085_v22 = vmax.f32 %v6083_v20, %v6084_v45  ;;  %v6092_v10 = vmax.f32 %v6090_v8, %v6091_v52  ;;  %v6107_v9 = vrot.slane %v6106_v3, 2  ;;  %v5417_v23 = vmax.f32 %v5415_v13, %v5416_v31 }
 0x739   : > { %v6101_v44 = vmax.f32 %v6099_v21, %v6100_v32  ;;  %v6114_v7 = vrot.slane %v6113_v50, 2  ;;  %v6120_v61 = vmax.f32 %v6118_v1, %v6119_v56  ;;  %v5423_v6 = vrot.slane %v5422_v60, 1  ;;  %v4834_v56 = vpop.f32.mrf.mxu2 }
 0x73a   : > { %v6079_v43 = vrot.slane %v6078_v16, 2  ;;  %v6108_v51 = vmax.f32 %v6106_v3, %v6107_v9  ;;  %vm4949_vm11 = vcmp.gt.f32.partialorder %v4917_v15, 0.0  ;;  %v4981_v36 = vmul.f32 0.01, %v4917_v15 }
 0x73b   : > { %v6102_v26 = vrot.slane %v6101_v44, 1  ;;  %v6115_v47 = vmax.f32 %v6113_v50, %v6114_v7  ;;  %v6121_v46 = vrot.slane %v6120_v61, 2  ;;  %v6073_v58 = vmax.f32 %v6071_v57, %v6072_v29 }
 0x73c   : > { %v6086_v49 = vrot.slane %v6085_v22, 2  ;;  %v6093_v41 = vrot.slane %v6092_v10, 2  ;;  %v6109_v39 = vrot.slane %v6108_v51, 1  ;;  %v10770_v20 = vsel %vm6153_vm1, %v5403_v19, -inf }
 0x73d   : > { %v10773_v13 = vsel %vm6153_vm1, %v5410_v42, -inf  ;;  %v5013_v8 = vsel %vm4949_vm11, %v4917_v15, %v4981_v36  ;;  %v4918_v31 = vadd.f32 %v10778_v59, %v4882_v0  ;;  %v5424_v27 = vmax.f32 %v5422_v60, %v5423_v6 }
 0x73e   : > { %v6080_v2 = vmax.f32 %v6078_v16, %v6079_v43  ;;  %v6122_v63 = vmax.f32 %v6120_v61, %v6121_v46  ;;  %v5103_v57 = vrot.slane %v5013_v8, 2  ;;  %v6103_v45 = vmax.f32 %v6101_v44, %v6102_v26  ;;  %v10795_v26 = vld [vmem:[%s11045_s5] ss:$0 sm:$0xff] }
 0x73f   : > { %v6110_v52 = vmax.f32 %v6108_v51, %v6109_v39  ;;  %v6116_v38 = vrot.slane %v6115_v47, 1  ;;  %v5621_v19 = vsel %vm5256_vm15, %v5013_v8, -inf  ;;  %v6074_v21 = vrot.slane %v6073_v58, 1 }
 0x740   : > { %v6087_v55 = vmax.f32 %v6085_v22, %v6086_v49  ;;  %v6094_v1 = vmax.f32 %v6092_v10, %v6093_v41  ;;  %v5628_v3 = vsel %vm5256_vm15, %v5103_v57, -inf  ;;  %v10784_v15 = vsel %vm6153_vm1, %v5417_v23, -inf }
 0x741   : > { %v5104_v42 = vrot.slane %v5013_v8, 4  ;;  %v5622_v32 = vrot.slane %v5621_v19, 4  ;;  %v4982_v0 = vmul.f32 0.01, %v4918_v31  ;;  %v10787_v60 = vsel %vm6153_vm1, %v5424_v27, -inf }
 0x742   : > { %v6081_v16 = vrot.slane %v6080_v2, 1  ;;  %v6123_v50 = vrot.slane %v6122_v63, 1  ;;  %vm4950_vm12 = vcmp.gt.f32.partialorder %v4918_v31, 0.0  ;;  %v6117_v29 = vmax.f32 %v6115_v47, %v6116_v38 }
 0x743   : > { %v6323_v9 = vsel %vm6153_vm1, %v6103_v45, -inf  ;;  %v6326_v22 = vsel %vm6153_vm1, %v6110_v52, -inf  ;;  %v5629_v10 = vrot.slane %v5628_v3, 4  ;;  %v6075_v44 = vmax.f32 %v6073_v58, %v6074_v21 }
 0x744   : > { %v6088_v7 = vrot.slane %v6087_v55, 1  ;;  %v6095_v23 = vrot.slane %v6094_v1, 1  ;;  %v5105_v61 = vrot.slane %v5013_v8, 6  ;;  %v5623_v6 = vmax.f32 %v5621_v19, %v5622_v32 }
 0x745   : > { %v5635_v43 = vsel %vm5256_vm15, %v5104_v42, -inf  ;;  %v5014_v51 = vsel %vm4950_vm12, %v4918_v31, %v4982_v0  ;;  %v4890_v47 = vmul.f32 %v10795_v26, %v4834_v56  ;;  %v6124_v46 = vmax.f32 %v6122_v63, %v6123_v50 }
 0x746   : > { %v6324_v36 = vmax.f32 %v10697_v33, %v6323_v9  ;;  %v6327_v49 = vmax.f32 %v10700_v4, %v6326_v22  ;;  %v5106_v58 = vrot.slane %v5014_v51, 2  ;;  %v6329_v41 = vsel %vm6153_vm1, %v6117_v29, -inf  ;;  %v4786_v29 = vpop.f32.mrf.mxu0 }
 0x747   : > { %v5630_v39 = vmax.f32 %v5628_v3, %v5629_v10  ;;  %v5107_v8 = vrot.slane %v5014_v51, 4  ;;  %v5108_v27 = vrot.slane %v5014_v51, 6  ;;  %v5636_v57 = vrot.slane %v5635_v43, 4 }
 0x748   : > { %v5642_v31 = vsel %vm5256_vm15, %v5105_v61, -inf  ;;  %v5649_v45 = vsel %vm5256_vm15, %v5014_v51, -inf  ;;  %v5656_v52 = vsel %vm5256_vm15, %v5106_v58, -inf  ;;  %v6082_v38 = vmax.f32 %v6080_v2, %v6081_v16 }
 0x749   : > { %v5624_v19 = vrot.slane %v5623_v6, 2  ;;  %v5650_v63 = vrot.slane %v5649_v45, 4  ;;  %v5657_v21 = vrot.slane %v5656_v52, 4  ;;  %v6089_v33 = vmax.f32 %v6087_v55, %v6088_v7 }
 0x74a   : > { %v6330_v4 = vmax.f32 %v10705_v62, %v6329_v41  ;;  %v6466_v42 = vsel %vm6410_vm8, %v6327_v49, %v6324_v36  ;;  %v4926_v3 = vadd.f32 %v10778_v59, %v4890_v47  ;;  %v5631_v32 = vrot.slane %v5630_v39, 2 }
 0x74b   : > { %v5643_v0 = vrot.slane %v5642_v31, 4  ;;  %v5663_v50 = vsel %vm5256_vm15, %v5107_v8, -inf  ;;  %v5670_v56 = vsel %vm5256_vm15, %v5108_v27, -inf  ;;  %v6096_v9 = vmax.f32 %v6094_v1, %v6095_v23 }
 0x74c   : > { %v6332_v2 = vsel %vm6153_vm1, %v6124_v46, -inf  ;;  %v5637_v16 = vmax.f32 %v5635_v43, %v5636_v57  ;;  %v5651_v22 = vmax.f32 %v5649_v45, %v5650_v63  ;;  %v10811_v55 = vsel %vm6153_vm1, %v6075_v44, -inf }
 0x74d   : > { %v10814_v62 = vsel %vm6153_vm1, %v6082_v38, -inf  ;;  %v5625_v10 = vmax.f32 %v5623_v6, %v5624_v19  ;;  %v5658_v7 = vmax.f32 %v5656_v52, %v5657_v21  ;;  %v6467_v61 = vsel %vm6412_vm14, %v6330_v4, %v6466_v42 }
 0x74e   : > { %v5664_v51 = vrot.slane %v5663_v50, 4  ;;  %v5671_v47 = vrot.slane %v5670_v56, 4  ;;  %vm4958_vm6 = vcmp.gt.f32.partialorder %v4926_v3, 0.0  ;;  %v6333_v36 = vmax.f32 %v10708_v17, %v6332_v2  ;;  %v4789_v63 = vpop.f32.mrf.mxu0 }
 0x74f   : > { %v5632_v1 = vmax.f32 %v5630_v39, %v5631_v32  ;;  %v5644_v23 = vmax.f32 %v5642_v31, %v5643_v0  ;;  %v4990_v46 = vmul.f32 0.01, %v4926_v3  ;;  %v10819_v43 = vsel %vm6153_vm1, %v6089_v33, -inf }
 0x750   : > { %v10822_v44 = vsel %vm6153_vm1, %v6096_v9, -inf  ;;  %v5638_v49 = vrot.slane %v5637_v16, 2  ;;  %v5652_v58 = vrot.slane %v5651_v22, 2  ;;  %v10825_v6 = vsel %vm6414_vm0, %v6333_v36, %v6467_v61 }
 0x751   : > { %v5626_v41 = vrot.slane %v5625_v10, 1  ;;  %v5659_v8 = vrot.slane %v5658_v7, 2  ;;  %v5022_v27 = vsel %vm4958_vm6, %v4926_v3, %v4990_v46  ;;  %v5665_v57 = vmax.f32 %v5663_v50, %v5664_v51 }
 0x752   : > { %v5672_v45 = vmax.f32 %v5670_v56, %v5671_v47  ;;  %v5130_v17 = vrot.slane %v5022_v27, 2  ;;  %v5131_v39 = vrot.slane %v5022_v27, 4  ;;  %v5633_v31 = vrot.slane %v5632_v1, 1 }
 0x753   : > { %v5645_v52 = vrot.slane %v5644_v23, 2  ;;  %v5132_v38 = vrot.slane %v5022_v27, 6  ;;  %v5873_v19 = vsel %vm5256_vm15, %v5022_v27, -inf  ;;  %v10828_v21 = vmax.f32 %v5637_v16, %v5638_v49 }
 0x754   : > { %v5653_v33 = vmax.f32 %v5651_v22, %v5652_v58  ;;  %v5874_v4 = vrot.slane %v5873_v19, 4  ;;  %v5880_v42 = vsel %vm5256_vm15, %v5130_v17, -inf  ;;  %v10831_v32 = vmax.f32 %v5625_v10, %v5626_v41 }
 0x755   : > { %v5660_v0 = vmax.f32 %v5658_v7, %v5659_v8  ;;  %v5881_v3 = vrot.slane %v5880_v42, 4  ;;  %v5887_v50 = vsel %vm5256_vm15, %v5131_v39, -inf  ;;  %v5666_v56 = vrot.slane %v5665_v57, 2 }
 0x756   : > { %11695 = vst [vmem:[#allocation90_spill] sm:$0xff] %v10831_v32  ;;  %v5673_v9 = vrot.slane %v5672_v45, 2  ;;  %v4874_v2 = vmul.f32 %v10795_v26, %v4786_v29  ;;  %v4875_v61 = vmul.f32 %v10795_v26, %v4789_v63  ;;  %v5875_v51 = vmax.f32 %v5873_v19, %v5874_v4 }
 0x757   : > { %v5882_v47 = vmax.f32 %v5880_v42, %v5881_v3  ;;  %v5888_v16 = vrot.slane %v5887_v50, 4  ;;  %v5894_v22 = vsel %vm5256_vm15, %v5132_v38, -inf  ;;  %v10837_v36 = vmax.f32 %v5632_v1, %v5633_v31  ;;  %v4837_v31 = vpop.f32.mrf.mxu2 }
 0x758   : > { %v10839_v46 = vmax.f32 %v5644_v23, %v5645_v52  ;;  %v5654_v10 = vrot.slane %v5653_v33, 1  ;;  %v5895_v7 = vrot.slane %v5894_v22, 4  ;;  %v5661_v58 = vrot.slane %v5660_v0, 1 }
 0x759   : > { %11696 = vst [vmem:[#allocation91_spill] sm:$0xff] %v10837_v36  ;;  %v5876_v41 = vrot.slane %v5875_v51, 2  ;;  %v5883_v8 = vrot.slane %v5882_v47, 2  ;;  %v5889_v27 = vmax.f32 %v5887_v50, %v5888_v16  ;;  %v4910_v17 = vadd.f32 %v10778_v59, %v4874_v2 }
 0x75a   : > { %v5896_v29 = vmax.f32 %v5894_v22, %v5895_v7  ;;  %v4911_v39 = vadd.f32 %v10778_v59, %v4875_v61  ;;  %v10844_v19 = vmax.f32 %v5665_v57, %v5666_v56  ;;  %v10846_v38 = vmax.f32 %v5672_v45, %v5673_v9 }
 0x75b   : > { %v5877_v1 = vmax.f32 %v5875_v51, %v5876_v41  ;;  %v5884_v23 = vmax.f32 %v5882_v47, %v5883_v8  ;;  %v10848_v52 = vmax.f32 %v5653_v33, %v5654_v10  ;;  %v5890_v63 = vrot.slane %v5889_v27, 2 }
 0x75c   : > { %v5897_v4 = vrot.slane %v5896_v29, 2  ;;  %vm4942_vm2 = vcmp.gt.f32.partialorder %v4910_v17, 0.0  ;;  %v10850_v42 = vmax.f32 %v5660_v0, %v5661_v58  ;;  %v4974_v16 = vmul.f32 0.01, %v4910_v17 }
 0x75d   : > { %v5878_v3 = vrot.slane %v5877_v1, 1  ;;  %v5885_v50 = vrot.slane %v5884_v23, 1  ;;  %v5891_v2 = vmax.f32 %v5889_v27, %v5890_v63  ;;  %vm4943_vm7 = vcmp.gt.f32.partialorder %v4911_v39, 0.0 }
 0x75e   : > { %v5898_v22 = vmax.f32 %v5896_v29, %v5897_v4  ;;  %v4891_v57 = vmul.f32 %v10795_v26, %v4837_v31  ;;  %v5006_v9 = vsel %vm4942_vm2, %v4910_v17, %v4974_v16  ;;  %v4975_v61 = vmul.f32 0.01, %v4911_v39  ;;  %v4861_v4 = vpop.f32.mrf.mxu3 }
 0x75f   : > { %v5879_v45 = vmax.f32 %v5877_v1, %v5878_v3  ;;  %v5886_v56 = vmax.f32 %v5884_v23, %v5885_v50  ;;  %v5892_v51 = vrot.slane %v5891_v2, 1  ;;  %v5082_v47 = vrot.slane %v5006_v9, 2 }
 0x760   : > { %v5899_v33 = vrot.slane %v5898_v22, 1  ;;  %v5083_v10 = vrot.slane %v5006_v9, 4  ;;  %v5084_v58 = vrot.slane %v5006_v9, 6  ;;  %v5425_v41 = vsel %vm5256_vm15, %v5006_v9, -inf }
 0x761   : > { %v6275_v7 = vsel %vm6153_vm1, %v5879_v45, -inf  ;;  %v6278_v0 = vsel %vm6153_vm1, %v5886_v56, -inf  ;;  %v5893_v8 = vmax.f32 %v5891_v2, %v5892_v51  ;;  %v5426_v23 = vrot.slane %v5425_v41, 4 }
 0x762   : > { %v5900_v27 = vmax.f32 %v5898_v22, %v5899_v33  ;;  %v6276_v29 = vmax.f32 %v10681_v28, %v6275_v7  ;;  %v6279_v1 = vmax.f32 %v10686_v35, %v6278_v0  ;;  %v5432_v17 = vsel %vm5256_vm15, %v5082_v47, -inf }
 0x763   : > { %v5439_v31 = vsel %vm5256_vm15, %v5083_v10, -inf  ;;  %v5446_v63 = vsel %vm5256_vm15, %v5084_v58, -inf  ;;  %v6281_v3 = vsel %vm6153_vm1, %v5893_v8, -inf  ;;  %v5433_v16 = vrot.slane %v5432_v17, 4 }
 0x764   : > { %v10863_v50 = vsel %vm6153_vm1, %v5900_v27, -inf  ;;  %v10866_v2 = vadd.f32 %v10778_v59, %v4891_v57  ;;  %v6282_v28 = vmax.f32 %v10689_v12, %v6281_v3  ;;  %v6452_v35 = vsel %vm6410_vm8, %v6279_v1, %v6276_v29 }
 0x765   : > { %v5427_v22 = vmax.f32 %v5425_v41, %v5426_v23  ;;  %v5440_v45 = vrot.slane %v5439_v31, 4  ;;  %v5434_v56 = vmax.f32 %v5432_v17, %v5433_v16  ;;  %v5447_v9 = vrot.slane %v5446_v63, 4 }
 0x766   : > { %v5007_v51 = vsel %vm4943_vm7, %v4911_v39, %v4975_v61  ;;  %v4899_v33 = vmul.f32 %v10795_v26, %v4861_v4  ;;  %v10875_v57 = vsel %vm6412_vm14, %v6282_v28, %v6452_v35  ;;  %vm4959_vm9 = vcmp.gt.f32.partialorder %v10866_v2, 0.0 }
 0x767   : > { %v5428_v10 = vrot.slane %v5427_v22, 2  ;;  %v5441_v7 = vmax.f32 %v5439_v31, %v5440_v45  ;;  %v5085_v0 = vrot.slane %v5007_v51, 2  ;;  %v5435_v12 = vrot.slane %v5434_v56, 2 }
 0x768   : > { %v5448_v58 = vmax.f32 %v5446_v63, %v5447_v9  ;;  %v5086_v8 = vrot.slane %v5007_v51, 4  ;;  %v5087_v29 = vrot.slane %v5007_v51, 6  ;;  %v5453_v1 = vsel %vm5256_vm15, %v5007_v51, -inf }
 0x769   : > { %v5429_v41 = vmax.f32 %v5427_v22, %v5428_v10  ;;  %v5442_v27 = vrot.slane %v5441_v7, 2  ;;  %v5436_v39 = vmax.f32 %v5434_v56, %v5435_v12  ;;  %v5454_v23 = vrot.slane %v5453_v1, 4 }
 0x76a   : > { %v5449_v61 = vrot.slane %v5448_v58, 2  ;;  %v5460_v17 = vsel %vm5256_vm15, %v5085_v0, -inf  ;;  %v5467_v16 = vsel %vm5256_vm15, %v5086_v8, -inf  ;;  %v5474_v56 = vsel %vm5256_vm15, %v5087_v29, -inf }
 0x76b   : > { %v5430_v4 = vrot.slane %v5429_v41, 1  ;;  %v5443_v3 = vmax.f32 %v5441_v7, %v5442_v27  ;;  %v5461_v31 = vrot.slane %v5460_v17, 4  ;;  %v5437_v28 = vrot.slane %v5436_v39, 1 }
 0x76c   : > { %v5450_v63 = vmax.f32 %v5448_v58, %v5449_v61  ;;  %v5455_v35 = vmax.f32 %v5453_v1, %v5454_v23  ;;  %v5468_v22 = vrot.slane %v5467_v16, 4  ;;  %v5475_v8 = vrot.slane %v5474_v56, 4 }
 0x76d   : > { %v5431_v45 = vmax.f32 %v5429_v41, %v5430_v4  ;;  %v5444_v9 = vrot.slane %v5443_v3, 1  ;;  %v5462_v10 = vmax.f32 %v5460_v17, %v5461_v31  ;;  %v5438_v51 = vmax.f32 %v5436_v39, %v5437_v28 }
 0x76e   : > { %v5451_v12 = vrot.slane %v5450_v63, 1  ;;  %v5456_v49 = vrot.slane %v5455_v35, 2  ;;  %v5469_v0 = vmax.f32 %v5467_v16, %v5468_v22 }
 0x76f   : > { %v5445_v47 = vmax.f32 %v5443_v3, %v5444_v9  ;;  %v6179_v7 = vsel %vm6153_vm1, %v5431_v45, -inf  ;;  %v5463_v27 = vrot.slane %v5462_v10, 2  ;;  %v6182_v58 = vsel %vm6153_vm1, %v5438_v51, -inf }
 0x770   : > { %v5452_v36 = vmax.f32 %v5450_v63, %v5451_v12  ;;  %v6180_v32 = vmax.f32 %v10748_v18, %v6179_v7  ;;  %v5457_v1 = vmax.f32 %v5455_v35, %v5456_v49  ;;  %v6183_v41 = vmax.f32 %v10751_v48, %v6182_v58  ;;  %v4813_v63 = vpop.f32.mrf.mxu1 }
 0x771   : > { %v6185_v61 = vsel %vm6153_vm1, %v5445_v47, -inf  ;;  %v5464_v29 = vmax.f32 %v5462_v10, %v5463_v27  ;;  %v5470_v39 = vrot.slane %v5469_v0, 2  ;;  %v5476_v3 = vmax.f32 %v5474_v56, %v5475_v8 }
 0x772   : > { %v6186_v23 = vmax.f32 %v10754_v11, %v6185_v61  ;;  %v6188_v17 = vsel %vm6153_vm1, %v5452_v36, -inf  ;;  %v5458_v4 = vrot.slane %v5457_v1, 1  ;;  %v6424_v16 = vsel %vm6410_vm8, %v6183_v41, %v6180_v32 }
 0x773   : > { %v6189_v31 = vmax.f32 %v10757_v40, %v6188_v17  ;;  %v5465_v18 = vrot.slane %v5464_v29, 1  ;;  %v5471_v28 = vmax.f32 %v5469_v0, %v5470_v39  ;;  %v5477_v35 = vrot.slane %v5476_v3, 2 }
 0x774   : > { %v6425_v49 = vsel %vm6412_vm14, %v6186_v23, %v6424_v16  ;;  %v5459_v48 = vmax.f32 %v5457_v1, %v5458_v4  ;;  %v4991_v47 = vmul.f32 0.01, %v10866_v2  ;;  %v4935_v36 = vadd.f32 %v10778_v59, %v4899_v33 }
 0x775   : > { %v6426_v22 = vsel %vm6414_vm0, %v6189_v31, %v6425_v49  ;;  %v5466_v11 = vmax.f32 %v5464_v29, %v5465_v18  ;;  %v5472_v45 = vrot.slane %v5471_v28, 1  ;;  %v5478_v9 = vmax.f32 %v5476_v3, %v5477_v35 }
 0x776   : > { %v6191_v40 = vsel %vm6153_vm1, %v5459_v48, -inf  ;;  %v5023_v32 = vsel %vm4959_vm9, %v10866_v2, %v4991_v47  ;;  %v4883_v10 = vmul.f32 %v10795_v26, %v4813_v63  ;;  %vm4967_vm10 = vcmp.gt.f32.partialorder %v4935_v36, 0.0 }
 0x777   : > { %v5473_v56 = vmax.f32 %v5471_v28, %v5472_v45  ;;  %v6192_v51 = vmax.f32 %v10770_v20, %v6191_v40  ;;  %v6194_v12 = vsel %vm6153_vm1, %v5466_v11, -inf  ;;  %v5133_v0 = vrot.slane %v5023_v32, 2 }
 0x778   : > { %v5479_v7 = vrot.slane %v5478_v9, 1  ;;  %v6195_v27 = vmax.f32 %v10773_v13, %v6194_v12  ;;  %v5134_v8 = vrot.slane %v5023_v32, 4  ;;  %v5135_v33 = vrot.slane %v5023_v32, 6 }
 0x779   : > { %v6197_v58 = vsel %vm6153_vm1, %v5473_v56, -inf  ;;  %v6427_v1 = vsel %vm6416_vm13, %v6192_v51, %v6426_v22  ;;  %v5901_v41 = vsel %vm5256_vm15, %v5023_v32, -inf  ;;  %v5908_v2 = vsel %vm5256_vm15, %v5133_v0, -inf }
 0x77a   : > { %v5480_v26 = vmax.f32 %v5478_v9, %v5479_v7  ;;  %v6198_v61 = vmax.f32 %v10784_v15, %v6197_v58  ;;  %v6428_v20 = vsel %vm6418_vm3, %v6195_v27, %v6427_v1  ;;  %v5902_v29 = vrot.slane %v5901_v41, 4 }
 0x77b   : > { %v5909_v39 = vrot.slane %v5908_v2, 4  ;;  %v5915_v23 = vsel %vm5256_vm15, %v5134_v8, -inf  ;;  %v5922_v13 = vsel %vm5256_vm15, %v5135_v33, -inf  ;;  %v4999_v28 = vmul.f32 0.01, %v4935_v36 }
 0x77c   : > { %v6200_v17 = vsel %vm6153_vm1, %v5480_v26, -inf  ;;  %v6429_v4 = vsel %vm6420_vm4, %v6198_v61, %v6428_v20  ;;  %v5903_v3 = vmax.f32 %v5901_v41, %v5902_v29  ;;  %v5916_v31 = vrot.slane %v5915_v23, 4 }
 0x77d   : > { %v6201_v16 = vmax.f32 %v10787_v60, %v6200_v17  ;;  %v5910_v18 = vmax.f32 %v5908_v2, %v5909_v39  ;;  %v5923_v15 = vrot.slane %v5922_v13, 4  ;;  %v11697_v63 = vmax.f32 %v10692_v14, %v10863_v50 }
 0x77e   : > { %v5904_v48 = vrot.slane %v5903_v3, 2  ;;  %v5917_v35 = vmax.f32 %v5915_v23, %v5916_v31  ;;  %v10920_v47 = vadd.f32 %v10778_v59, %v4883_v10  ;;  %v5031_v60 = vsel %vm4967_vm10, %v4935_v36, %v4999_v28 }
 0x77f   : > { %v6454_v49 = vsel %vm6414_vm0, %v11697_v63, %v10875_v57  ;;  %v6430_v22 = vsel %vm6422_vm5, %v6201_v16, %v6429_v4  ;;  %v5911_v11 = vrot.slane %v5910_v18, 2  ;;  %v5924_v45 = vmax.f32 %v5922_v13, %v5923_v15 }
 0x780   : > { %6482 = vst.msk [vmem:[%s10559_s13 + $0x8] sm:$0xff] %vm6153_vm1, %v6430_v22  ;;  %v5905_v9 = vmax.f32 %v5903_v3, %v5904_v48  ;;  %v5918_v40 = vrot.slane %v5917_v35, 2  ;;  %v5157_v32 = vrot.slane %v5031_v60, 2  ;;  %v5158_v56 = vrot.slane %v5031_v60, 4 }
 0x781   : > { %v5912_v14 = vmax.f32 %v5910_v18, %v5911_v11  ;;  %v5925_v50 = vrot.slane %v5924_v45, 2  ;;  %v5159_v57 = vrot.slane %v5031_v60, 6  ;;  %v6125_v51 = vsel %vm5256_vm15, %v5031_v60, -inf }
 0x782   : > { %v5906_v12 = vrot.slane %v5905_v9, 1  ;;  %v5919_v59 = vmax.f32 %v5917_v35, %v5918_v40  ;;  %v6126_v10 = vrot.slane %v6125_v51, 4  ;;  %v6132_v0 = vsel %vm5256_vm15, %v5157_v32, -inf }
 0x783   : > { %v5913_v7 = vrot.slane %v5912_v14, 1  ;;  %v5926_v27 = vmax.f32 %v5924_v45, %v5925_v50  ;;  %v6133_v8 = vrot.slane %v6132_v0, 4  ;;  %v6139_v36 = vsel %vm5256_vm15, %v5158_v56, -inf }
 0x784   : > { %v5907_v33 = vmax.f32 %v5905_v9, %v5906_v12  ;;  %v5920_v58 = vrot.slane %v5919_v59, 1  ;;  %v6127_v1 = vmax.f32 %v6125_v51, %v6126_v10  ;;  %v6140_v41 = vrot.slane %v6139_v36, 4 }
 0x785   : > { %v5914_v2 = vmax.f32 %v5912_v14, %v5913_v7  ;;  %v5927_v26 = vrot.slane %v5926_v27, 1  ;;  %v6134_v61 = vmax.f32 %v6132_v0, %v6133_v8  ;;  %v6146_v20 = vsel %vm5256_vm15, %v5159_v57, -inf }
 0x786   : > { %v5921_v29 = vmax.f32 %v5919_v59, %v5920_v58  ;;  %v6287_v39 = vsel %vm6153_vm1, %v5907_v33, -inf  ;;  %v6128_v23 = vrot.slane %v6127_v1, 2  ;;  %v6141_v13 = vmax.f32 %v6139_v36, %v6140_v41 }
 0x787   : > { %v5928_v17 = vmax.f32 %v5926_v27, %v5927_v26  ;;  %v6288_v4 = vmax.f32 %v10735_v30, %v6287_v39  ;;  %v6290_v3 = vsel %vm6153_vm1, %v5914_v2, -inf  ;;  %v6135_v31 = vrot.slane %v6134_v61, 2 }
 0x788   : > { %v6291_v16 = vmax.f32 %v10738_v25, %v6290_v3  ;;  %v6293_v18 = vsel %vm6153_vm1, %v5921_v29, -inf  ;;  %v6129_v15 = vmax.f32 %v6127_v1, %v6128_v23  ;;  %v6142_v28 = vrot.slane %v6141_v13, 2 }
 0x789   : > { %v6294_v63 = vmax.f32 %v10741_v37, %v6293_v18  ;;  %v6296_v48 = vsel %vm6153_vm1, %v5928_v17, -inf  ;;  %v6455_v35 = vsel %vm6416_vm13, %v6288_v4, %v6454_v49  ;;  %v6136_v22 = vmax.f32 %v6134_v61, %v6135_v31 }
 0x78a   : > { %v6297_v11 = vmax.f32 %v10744_v53, %v6296_v48  ;;  %v6456_v30 = vsel %vm6418_vm3, %v6291_v16, %v6455_v35  ;;  %v6130_v45 = vrot.slane %v6129_v15, 1  ;;  %v6143_v60 = vmax.f32 %v6141_v13, %v6142_v28 }
 0x78b   : > { %v6457_v25 = vsel %vm6420_vm4, %v6294_v63, %v6456_v30  ;;  %v6137_v9 = vrot.slane %v6136_v22, 1  ;;  %v6147_v40 = vrot.slane %v6146_v20, 4  ;;  %vm4951_vm11 = vcmp.gt.f32.partialorder %v10920_v47, 0.0 }
 0x78c   : > { %v6458_v37 = vsel %vm6422_vm5, %v6297_v11, %v6457_v25  ;;  %v6131_v32 = vmax.f32 %v6129_v15, %v6130_v45  ;;  %v6144_v56 = vrot.slane %v6143_v60, 1  ;;  %v4983_v49 = vmul.f32 0.01, %v10920_v47 }
 0x78d   : > { %v5668_v14 = vrot.slane %v10844_v19, 1  ;;  %v5675_v53 = vrot.slane %v10846_v38, 1  ;;  %6486 = vst.msk [vmem:[%s10559_s13 + $0x28] sm:$0xff] %vm6153_vm1, %v6458_v37  ;;  %v6138_v50 = vmax.f32 %v6136_v22, %v6137_v9  ;;  %v6148_v57 = vmax.f32 %v6146_v20, %v6147_v40 }
 0x78e   : > { %v6230_v51 = vsel %vm6153_vm1, %v10850_v42, -inf  ;;  %v6145_v12 = vmax.f32 %v6143_v60, %v6144_v56  ;;  %v6335_v59 = vsel %vm6153_vm1, %v6131_v32, -inf  ;;  %v5015_v10 = vsel %vm4951_vm11, %v10920_v47, %v4983_v49 }
 0x78f   : > { %v6149_v0 = vrot.slane %v6148_v57, 2  ;;  %v6336_v7 = vmax.f32 %v10811_v55, %v6335_v59  ;;  %v6338_v27 = vsel %vm6153_vm1, %v6138_v50, -inf  ;;  %v5109_v8 = vrot.slane %v5015_v10, 2  ;;  %v11699_v50 = vld [vmem:[#allocation90_spill] sm:$0xff] }
 0x790   : > { %v6339_v36 = vmax.f32 %v10814_v62, %v6338_v27  ;;  %v6341_v33 = vsel %vm6153_vm1, %v6145_v12, -inf  ;;  %v5110_v58 = vrot.slane %v5015_v10, 4  ;;  %v5111_v1 = vrot.slane %v5015_v10, 6 }
 0x791   : > { %v5669_v41 = vmax.f32 %v10844_v19, %v5668_v14  ;;  %v6150_v42 = vmax.f32 %v6148_v57, %v6149_v0  ;;  %v6469_v2 = vsel %vm6416_vm13, %v6336_v7, %v10825_v6  ;;  %v5677_v47 = vsel %vm5256_vm15, %v5015_v10, -inf  ;;  %v11700_v0 = vld [vmem:[#allocation91_spill] sm:$0xff] }
 0x792   : > { %v6342_v26 = vmax.f32 %v10819_v43, %v6341_v33  ;;  %v5678_v55 = vrot.slane %v5677_v47, 4  ;;  %v5684_v61 = vsel %vm5256_vm15, %v5109_v8, -inf  ;;  %v5691_v20 = vsel %vm5256_vm15, %v5110_v58, -inf }
 0x793   : > { %v6151_v62 = vrot.slane %v6150_v42, 1  ;;  %v6470_v29 = vsel %vm6418_vm3, %v6339_v36, %v6469_v2  ;;  %v5685_v39 = vrot.slane %v5684_v61, 4  ;;  %v5692_v23 = vrot.slane %v5691_v20, 4 }
 0x794   : > { %v5676_v19 = vmax.f32 %v10846_v38, %v5675_v53  ;;  %v6227_v13 = vsel %vm6153_vm1, %v10848_v52, -inf  ;;  %v5679_v6 = vmax.f32 %v5677_v47, %v5678_v55  ;;  %v5698_v17 = vsel %vm5256_vm15, %v5111_v1, -inf }
 0x795   : > { %v6152_v4 = vmax.f32 %v6150_v42, %v6151_v62  ;;  %v5686_v43 = vmax.f32 %v5684_v61, %v5685_v39  ;;  %v5693_v3 = vmax.f32 %v5691_v20, %v5692_v23  ;;  %v5699_v31 = vrot.slane %v5698_v17, 4 }
 0x796   : > { %v6231_v16 = vmax.f32 %v10724_v24, %v6230_v51  ;;  %v6233_v18 = vsel %vm6153_vm1, %v5669_v41, -inf  ;;  %v6471_v15 = vsel %vm6420_vm4, %v6342_v26, %v6470_v29  ;;  %v5680_v28 = vrot.slane %v5679_v6, 2 }
 0x797   : > { %v6344_v63 = vsel %vm6153_vm1, %v6152_v4, -inf  ;;  %v5687_v38 = vrot.slane %v5686_v43, 2  ;;  %v5694_v48 = vrot.slane %v5693_v3, 2  ;;  %v5700_v52 = vmax.f32 %v5698_v17, %v5699_v31 }
 0x798   : > { %v5647_v35 = vrot.slane %v10839_v46, 1  ;;  %v6228_v22 = vmax.f32 %v10718_v34, %v6227_v13  ;;  %v6345_v11 = vmax.f32 %v10822_v44, %v6344_v63  ;;  %v5681_v30 = vmax.f32 %v5679_v6, %v5680_v28 }
 0x799   : > { %v6234_v24 = vmax.f32 %v10732_v54, %v6233_v18  ;;  %v5688_v45 = vmax.f32 %v5686_v43, %v5687_v38  ;;  %v5695_v60 = vmax.f32 %v5693_v3, %v5694_v48  ;;  %v5701_v25 = vrot.slane %v5700_v52, 2 }
 0x79a   : > { %v11698_v9 = vrot.slane %v10828_v21, 1  ;;  %v6438_v37 = vsel %vm6410_vm8, %v6231_v16, %v6228_v22  ;;  %v6472_v32 = vsel %vm6422_vm5, %v6345_v11, %v6471_v15  ;;  %v5682_v56 = vrot.slane %v5681_v30, 1 }
 0x79b   : > { %v6236_v34 = vsel %vm6153_vm1, %v5676_v19, -inf  ;;  %6488 = vst.msk [vmem:[%s10559_s13 + $0x38] sm:$0xff] %vm6153_vm1, %v6472_v32  ;;  %v5689_v44 = vrot.slane %v5688_v45, 1  ;;  %v5696_v49 = vrot.slane %v5695_v60, 1  ;;  %v5702_v54 = vmax.f32 %v5700_v52, %v5701_v25 }
 0x79c   : > { %v5641_v40 = vmax.f32 %v10828_v21, %v11698_v9  ;;  %v6235_v14 = vsel %vm6153_vm1, %v10727_v5, -inf  ;;  %v5648_v53 = vmax.f32 %v10839_v46, %v5647_v35  ;;  %v6238_v21 = vsel %vm6153_vm1, %v11699_v50, -inf }
 0x79d   : > { %v5683_v57 = vmax.f32 %v5681_v30, %v5682_v56  ;;  %v6439_v51 = vsel %vm6412_vm14, %v6234_v24, %v6438_v37  ;;  %v5690_v12 = vmax.f32 %v5688_v45, %v5689_v44  ;;  %v5697_v59 = vmax.f32 %v5695_v60, %v5696_v49 }
 0x79e   : > { %v5703_v10 = vrot.slane %v5702_v54, 1  ;;  %v6241_v7 = vsel %vm6153_vm1, %v11700_v0, -inf  ;;  %v6244_v5 = vsel %vm6153_vm1, %v5641_v40, -inf  ;;  %v6237_v46 = vmax.f32 %v6235_v14, %v6236_v34 }
 0x79f   : > { %v6239_v27 = vsel %vm6153_vm1, %v5683_v57, -inf  ;;  %v6242_v33 = vsel %vm6153_vm1, %v5690_v12, -inf  ;;  %v6245_v58 = vsel %vm6153_vm1, %v5697_v59, -inf  ;;  %v6247_v2 = vsel %vm6153_vm1, %v5648_v53, -inf }
 0x7a0   : > { %v5704_v8 = vmax.f32 %v5702_v54, %v5703_v10  ;;  %v6240_v36 = vmax.f32 %v6238_v21, %v6239_v27  ;;  %v6440_v1 = vsel %vm6414_vm0, %v6237_v46, %v6439_v51  ;;  %v6243_v41 = vmax.f32 %v6241_v7, %v6242_v33 }
 0x7a1   : > { %v6246_v42 = vmax.f32 %v6244_v5, %v6245_v58 }
 0x7a2   : > { %v6248_v47 = vsel %vm6153_vm1, %v5704_v8, -inf  ;;  %v6441_v26 = vsel %vm6416_vm13, %v6240_v36, %v6440_v1 }
 0x7a3   : > { %v6249_v55 = vmax.f32 %v6247_v2, %v6248_v47  ;;  %v6442_v61 = vsel %vm6418_vm3, %v6243_v41, %v6441_v26 }
 0x7a4   : > { %v6443_v20 = vsel %vm6420_vm4, %v6246_v42, %v6442_v61 }
 0x7a5   : > { %v6444_v62 = vsel %vm6422_vm5, %v6249_v55, %v6443_v20 }
 0x7a6   : > { %6484 = vst.msk [vmem:[%s10559_s13 + $0x18] sm:$0xff] %vm6153_vm1, %v6444_v62 }
 0x7a7   : > { %6754 = shalt.err (!%p6751_p3)
}
 0x7a8   : > { %s6801_s17 = smov 128  }
 0x7a9   : > { %6648 = dma.vmem_to_hbm [thread:$0]  (%p6880_p5), %s6503_s23, 1024, %s6505_s29, %s6490_s8, %s6801_s17, %s6801_s17, %s6793_s22  }
 0x7aa PF: > { %p6654_p4 = scmp.ge.s32.totalorder %s6789_s27, 2  ;;  %s6519_s13 = sand.u32 1, %s6777_s24  }
 0x7ab   : > { %s6520_s16 = scalar_lea.sflag [#allocation6], %s6519_s13 }
 0x7ac   : > { %p6651_p7 = pnand %p6654_p4, %p6884_p6 }
 0x7ae   : > { %p6652_p8 = pneg %p6651_p7 }
 0x7b0   : > { %6772 = dma.done.wait (%p6652_p8), %s6520_s16, 1024  }
 0x7b1   : > { %6774 = vsyncadd (%p6652_p8), %s6520_s16, 4294966272  ;;  %p17_p9 = scmp.ge.s32.totalorder %s6867_s30, 4   ;;  %s11701_s24 = smov %s6781_s25 }
 0x7b2   : > { %s11702_s25 = smov %s6785_s26  ;;  %s11703_s26 = smov %s6878_s10 }
 0x7b3   : > { %s11704_s27 = smov %s6867_s30  ;;  %19 = sbr.rel (!%p17_p9) target bundleno = 3 (0x3), region = 95 }
 0x7b8   :  { %6526 = vsyncpa [#allocation6], 1 }
 0x7b9   :  { %6528 = vsyncpa [#allocation6 + $0x1], 1 }

</bundles_post_ra>
